<compile_context>
chip_gen: v7x
topology: tpu7x:2x2x1
jax: 0.10.0
libtpu: 0.0.40
codegen_flags: <defaults>
</compile_context>

<pallas_src>
import jax
import jax.numpy as jnp
from jax.experimental import pallas as pl
from jax.experimental.pallas import tpu as pltpu

C_IN, C_OUT, K = 8, 64, 3
L_IN = 750                       # implied by Linear(9600, ...) = 64 * (750 // 5)
L_PAD = L_IN + 2                 # 'same' padding for k=3
POOL = 5
L_OUT = L_IN // POOL             # 150
FLAT = C_OUT * L_OUT             # 9600
HID, NCLS = 100, 3


# ---------------------------------------------------------------------------
# Kernel 1: Conv1d (3 shifted dots) + bias + ReLU + MaxPool1d(5)
# ---------------------------------------------------------------------------
def conv_relu_pool_kernel(xp_ref, w_ref, b_ref, o_ref):
    # xp_ref: (1, 752, 8) zero-padded channels-last input for one sample
    # w_ref:  (24, 64)    conv weight, row = k*C_IN + c_in
    # b_ref:  (1, 64)     conv bias
    # o_ref:  (1, 150, 64) pooled output
    acc = jnp.dot(xp_ref[0, 0:L_IN, :], w_ref[0:C_IN, :],
                  preferred_element_type=jnp.float32)
    for k in range(1, K):
        acc = acc + jnp.dot(xp_ref[0, k:k + L_IN, :],
                            w_ref[k * C_IN:(k + 1) * C_IN, :],
                            preferred_element_type=jnp.float32)
    h = jnp.maximum(acc + b_ref[...], 0.0)                       # bias + ReLU
    # Dropout(0.5) is the identity at inference (eval mode).
    # TODO(synk): training-mode dropout would use pltpu.prng_seed/prng_random_bits.
    o_ref[0] = jnp.max(h.reshape(L_OUT, POOL, C_OUT), axis=1)    # MaxPool1d(5)


# ---------------------------------------------------------------------------
# Kernel 2: Linear(9600,100) + ReLU + Linear(100,3)
# ---------------------------------------------------------------------------
def mlp_kernel(x_ref, w1_ref, b1_ref, w2_ref, b2_ref, o_ref):
    h = jnp.dot(x_ref[...], w1_ref[...], preferred_element_type=jnp.float32)
    h = jnp.maximum(h + b1_ref[...], 0.0)
    o_ref[...] = jnp.dot(h, w2_ref[...],
                         preferred_element_type=jnp.float32) + b2_ref[...]


# ---------------------------------------------------------------------------
# One-time parameter layout prep (run OUTSIDE the jitted forward)
# ---------------------------------------------------------------------------
def prepare_params(params):
    wc, bc, w1, b1, w2, b2 = params
    # Conv1d weight (C_OUT, C_IN, K) -> (K*C_IN, C_OUT), row = k*C_IN + c_in.
    wc_col = jnp.transpose(wc, (2, 1, 0)).reshape(K * C_IN, C_OUT)
    # FC1 weight (HID, FLAT) indexed with PyTorch's flatten order (c*L_OUT + l)
    # -> (FLAT, HID) indexed with the kernel's row-major order (l*C_OUT + c),
    # so the conv output needs no transpose before the matmul.
    w1p = jnp.transpose(w1.reshape(HID, C_OUT, L_OUT), (2, 1, 0)).reshape(FLAT, HID)
    return (wc_col, bc.reshape(1, C_OUT), w1p, b1.reshape(1, HID),
            jnp.transpose(w2), b2.reshape(1, NCLS))


def _batch_tile(n):
    for t in (128, 64, 32, 16, 8):
        if n % t == 0:
            return t
    return n


# ---------------------------------------------------------------------------
# Forward wrapper
# ---------------------------------------------------------------------------
def simple_cnn_forward(x_ncl, prepared):
    wc_col, bc2, w1p, b1r, w2t, b2r = prepared
    N = x_ncl.shape[0]

    # NCL -> NLC and 'same' zero padding only (no im2col materialization).
    x_nlc = jnp.transpose(x_ncl, (0, 2, 1))              # (N, 750, 8)
    xp = jnp.pad(x_nlc, ((0, 0), (1, 1), (0, 0)))        # (N, 752, 8)

    conv_out = pl.pallas_call(
        conv_relu_pool_kernel,
        out_shape=jax.ShapeDtypeStruct((N, L_OUT, C_OUT), jnp.float32),
        grid_spec=pltpu.PrefetchScalarGridSpec(
            num_scalar_prefetch=0,
            grid=(N,),
            in_specs=[
                pl.BlockSpec((1, L_PAD, C_IN), lambda n: (n, 0, 0)),
                pl.BlockSpec((K * C_IN, C_OUT), lambda n: (0, 0)),
                pl.BlockSpec((1, C_OUT), lambda n: (0, 0)),
            ],
            out_specs=pl.BlockSpec((1, L_OUT, C_OUT), lambda n: (n, 0, 0)),
        ),
        compiler_params=pltpu.CompilerParams(dimension_semantics=("parallel",)),
    )(xp, wc_col, bc2)

    # Row-major (N,150,64) -> (N,9600) is a free reshape; the PyTorch
    # channel-major flatten order is already absorbed into w1p's row order.
    flat = conv_out.reshape(N, FLAT)

    tb = _batch_tile(N)
    out = pl.pallas_call(
        mlp_kernel,
        out_shape=jax.ShapeDtypeStruct((N, NCLS), jnp.float32),
        grid_spec=pltpu.PrefetchScalarGridSpec(
            num_scalar_prefetch=0,
            grid=(N // tb,),
            in_specs=[
                pl.BlockSpec((tb, FLAT), lambda i: (i, 0)),
                pl.BlockSpec((FLAT, HID), lambda i: (0, 0)),   # grid-invariant
                pl.BlockSpec((1, HID), lambda i: (0, 0)),
                pl.BlockSpec((HID, NCLS), lambda i: (0, 0)),
                pl.BlockSpec((1, NCLS), lambda i: (0, 0)),
            ],
            out_specs=pl.BlockSpec((tb, NCLS), lambda i: (i, 0)),
        ),
        compiler_params=pltpu.CompilerParams(
            dimension_semantics=("parallel",),
            vmem_limit_bytes=32 * 1024 * 1024,
        ),
    )(flat, w1p, b1r, w2t, b2r)
    return out


def init_params(key):
    """Deterministic PyTorch-style uniform(-1/sqrt(fan_in), 1/sqrt(fan_in)) init."""
    ks = jax.random.split(key, 6)
    def u(k, shape, fan_in):
        bound = 1.0 / jnp.sqrt(fan_in)
        return jax.random.uniform(k, shape, jnp.float32, -bound, bound)
    wc = u(ks[0], (C_OUT, C_IN, K), C_IN * K)        # Conv1d weight
    bc = u(ks[1], (C_OUT,), C_IN * K)                # Conv1d bias
    w1 = u(ks[2], (HID, FLAT), FLAT)                 # Linear(9600, 100) weight
    b1 = u(ks[3], (HID,), FLAT)
    w2 = u(ks[4], (NCLS, HID), HID)                  # Linear(100, 3) weight
    b2 = u(ks[5], (NCLS,), HID)
    return (wc, bc, w1, b1, w2, b2)


if __name__ == "__main__":
    key = jax.random.PRNGKey(0)
    kx, kp = jax.random.split(key)
    N = 2
    x = jax.random.normal(kx, (N, C_IN, L_IN), jnp.float32)   # PyTorch NCL input
    params = init_params(kp)
    prepared = prepare_params(params)          # one-time layout prep, outside jit

    fwd = jax.jit(simple_cnn_forward)
    out = fwd(x, prepared)
    out = jax.block_until_ready(out)
    assert out.shape == (N, NCLS), out.shape
    assert out.dtype == jnp.float32
    print("KERNEL_OK")
</pallas_src>

<mosaic_0001>
module attributes {stable_mosaic.version = 11 : i64} {
  func.func @conv_relu_pool_kernel(%arg0: i32, %arg1: memref<1x752x8xf32, #tpu.memory_space<vmem>>, %arg2: memref<24x64xf32, #tpu.memory_space<vmem>>, %arg3: memref<1x64xf32, #tpu.memory_space<vmem>>, %arg4: memref<1x150x64xf32, #tpu.memory_space<vmem>>) attributes {dimension_semantics = [#tpu.dimension_semantics<parallel>], iteration_bounds = array<i64: 2>, scalar_prefetch = 0 : i64, scratch_operands = 0 : i64, tpu.core_type = #tpu.core_type<tc>, window_params = [{transform_indices = @transform_0, window_bounds = array<i64: 1, 752, 8>}, {pipeline_mode = #tpu.pipeline_mode<synchronous>, transform_indices = @transform_1, window_bounds = array<i64: 24, 64>}, {pipeline_mode = #tpu.pipeline_mode<synchronous>, transform_indices = @transform_2, window_bounds = array<i64: 1, 64>}, {transform_indices = @transform_3, window_bounds = array<i64: 1, 150, 64>}]} {
    %c0 = arith.constant 0 : index
    %c0_0 = arith.constant 0 : index
    %c0_1 = arith.constant 0 : index
    %0 = vector.load %arg1[%c0, %c0_0, %c0_1] : memref<1x752x8xf32, #tpu.memory_space<vmem>>, vector<1x750x8xf32>
    %1 = vector.shape_cast %0 : vector<1x750x8xf32> to vector<750x8xf32>
    %c0_2 = arith.constant 0 : index
    %c0_3 = arith.constant 0 : index
    %2 = vector.load %arg2[%c0_2, %c0_3] : memref<24x64xf32, #tpu.memory_space<vmem>>, vector<8x64xf32>
    %cst = arith.constant dense<0.000000e+00> : vector<750x64xf32>
    %3 = tpu.matmul %1, %2, %cst {dimension_numbers = #tpu.dot_dimension_numbers<[1], [0], [0], [1], [0, 0, 1, 1], [], []>} : vector<750x8xf32>, vector<8x64xf32>, vector<750x64xf32> -> vector<750x64xf32>
    %c0_4 = arith.constant 0 : index
    %c1 = arith.constant 1 : index
    %c0_5 = arith.constant 0 : index
    %4 = vector.load %arg1[%c0_4, %c1, %c0_5] : memref<1x752x8xf32, #tpu.memory_space<vmem>>, vector<1x750x8xf32>
    %5 = vector.shape_cast %4 : vector<1x750x8xf32> to vector<750x8xf32>
    %c8 = arith.constant 8 : index
    %c0_6 = arith.constant 0 : index
    %6 = vector.load %arg2[%c8, %c0_6] : memref<24x64xf32, #tpu.memory_space<vmem>>, vector<8x64xf32>
    %cst_7 = arith.constant dense<0.000000e+00> : vector<750x64xf32>
    %7 = tpu.matmul %5, %6, %cst_7 {dimension_numbers = #tpu.dot_dimension_numbers<[1], [0], [0], [1], [0, 0, 1, 1], [], []>} : vector<750x8xf32>, vector<8x64xf32>, vector<750x64xf32> -> vector<750x64xf32>
    %8 = arith.addf %3, %7 : vector<750x64xf32>
    %c0_8 = arith.constant 0 : index
    %c2 = arith.constant 2 : index
    %c0_9 = arith.constant 0 : index
    %9 = vector.load %arg1[%c0_8, %c2, %c0_9] : memref<1x752x8xf32, #tpu.memory_space<vmem>>, vector<1x750x8xf32>
    %10 = vector.shape_cast %9 : vector<1x750x8xf32> to vector<750x8xf32>
    %c16 = arith.constant 16 : index
    %c0_10 = arith.constant 0 : index
    %11 = vector.load %arg2[%c16, %c0_10] : memref<24x64xf32, #tpu.memory_space<vmem>>, vector<8x64xf32>
    %cst_11 = arith.constant dense<0.000000e+00> : vector<750x64xf32>
    %12 = tpu.matmul %10, %11, %cst_11 {dimension_numbers = #tpu.dot_dimension_numbers<[1], [0], [0], [1], [0, 0, 1, 1], [], []>} : vector<750x8xf32>, vector<8x64xf32>, vector<750x64xf32> -> vector<750x64xf32>
    %13 = arith.addf %8, %12 : vector<750x64xf32>
    %c0_12 = arith.constant 0 : index
    %c0_13 = arith.constant 0 : index
    %14 = vector.load %arg3[%c0_12, %c0_13] : memref<1x64xf32, #tpu.memory_space<vmem>>, vector<1x64xf32>
    %15 = vector.broadcast %14 : vector<1x64xf32> to vector<750x64xf32>
    %16 = arith.addf %13, %15 : vector<750x64xf32>
    %cst_14 = arith.constant 0.000000e+00 : f32
    %17 = vector.broadcast %cst_14 : f32 to vector<750x64xf32>
    %18 = arith.maximumf %16, %17 : vector<750x64xf32>
    %19 = vector.shape_cast %18 : vector<750x64xf32> to vector<150x5x64xf32>
    %cst_15 = arith.constant dense<0xFF800000> : vector<150x64xf32>
    %20 = vector.multi_reduction <maximumf>, %19, %cst_15 [1] : vector<150x5x64xf32> to vector<150x64xf32>
    %c0_16 = arith.constant 0 : index
    %c0_17 = arith.constant 0 : index
    %c0_18 = arith.constant 0 : index
    %21 = vector.load %arg4[%c0_16, %c0_17, %c0_18] : memref<1x150x64xf32, #tpu.memory_space<vmem>>, vector<1x150x64xf32>
    %22 = vector.shape_cast %21 : vector<1x150x64xf32> to vector<150x64xf32>
    %23 = vector.shape_cast %20 : vector<150x64xf32> to vector<1x150x64xf32>
    tpu.vector_store %arg4[%c0_16, %c0_17, %c0_18], %23 {strides = array<i32>} : memref<1x150x64xf32, #tpu.memory_space<vmem>>, vector<1x150x64xf32>,
    return
  }
  func.func @transform_0(%arg0: i32) -> (i32, i32, i32) {
    %c0_i32 = arith.constant 0 : i32
    %c0_i32_0 = arith.constant 0 : i32
    %c0_i32_1 = arith.constant 0 : i32
    return %arg0, %c0_i32, %c0_i32_0 : i32, i32, i32
  }
  func.func @transform_1(%arg0: i32) -> (i32, i32) {
    %c0_i32 = arith.constant 0 : i32
    %c0_i32_0 = arith.constant 0 : i32
    %c0_i32_1 = arith.constant 0 : i32
    return %c0_i32, %c0_i32_0 : i32, i32
  }
  func.func @transform_2(%arg0: i32) -> (i32, i32) {
    %c0_i32 = arith.constant 0 : i32
    %c0_i32_0 = arith.constant 0 : i32
    %c0_i32_1 = arith.constant 0 : i32
    return %c0_i32, %c0_i32_0 : i32, i32
  }
  func.func @transform_3(%arg0: i32) -> (i32, i32, i32) {
    %c0_i32 = arith.constant 0 : i32
    %c0_i32_0 = arith.constant 0 : i32
    %c0_i32_1 = arith.constant 0 : i32
    return %arg0, %c0_i32, %c0_i32_0 : i32, i32, i32
  }
}

module attributes {stable_mosaic.version = 11 : i64} {
  func.func @mlp_kernel(%arg0: i32, %arg1: memref<2x9600xf32, #tpu.memory_space<vmem>>, %arg2: memref<9600x100xf32, #tpu.memory_space<vmem>>, %arg3: memref<1x100xf32, #tpu.memory_space<vmem>>, %arg4: memref<100x3xf32, #tpu.memory_space<vmem>>, %arg5: memref<1x3xf32, #tpu.memory_space<vmem>>, %arg6: memref<2x3xf32, #tpu.memory_space<vmem>>) attributes {dimension_semantics = [#tpu.dimension_semantics<parallel>], iteration_bounds = array<i64: 1>, scalar_prefetch = 0 : i64, scratch_operands = 0 : i64, tpu.core_type = #tpu.core_type<tc>, window_params = [{transform_indices = @transform_0, window_bounds = array<i64: 2, 9600>}, {pipeline_mode = #tpu.pipeline_mode<synchronous>, transform_indices = @transform_1, window_bounds = array<i64: 9600, 100>}, {pipeline_mode = #tpu.pipeline_mode<synchronous>, transform_indices = @transform_2, window_bounds = array<i64: 1, 100>}, {pipeline_mode = #tpu.pipeline_mode<synchronous>, transform_indices = @transform_3, window_bounds = array<i64: 100, 3>}, {pipeline_mode = #tpu.pipeline_mode<synchronous>, transform_indices = @transform_4, window_bounds = array<i64: 1, 3>}, {transform_indices = @transform_5, window_bounds = array<i64: 2, 3>}]} {
    %c0 = arith.constant 0 : index
    %c0_0 = arith.constant 0 : index
    %0 = vector.load %arg1[%c0, %c0_0] : memref<2x9600xf32, #tpu.memory_space<vmem>>, vector<2x9600xf32>
    %c0_1 = arith.constant 0 : index
    %c0_2 = arith.constant 0 : index
    %1 = vector.load %arg2[%c0_1, %c0_2] : memref<9600x100xf32, #tpu.memory_space<vmem>>, vector<9600x100xf32>
    %cst = arith.constant dense<0.000000e+00> : vector<2x100xf32>
    %2 = tpu.matmul %0, %1, %cst {dimension_numbers = #tpu.dot_dimension_numbers<[1], [0], [0], [1], [0, 0, 1, 1], [], []>} : vector<2x9600xf32>, vector<9600x100xf32>, vector<2x100xf32> -> vector<2x100xf32>
    %c0_3 = arith.constant 0 : index
    %c0_4 = arith.constant 0 : index
    %3 = vector.load %arg3[%c0_3, %c0_4] : memref<1x100xf32, #tpu.memory_space<vmem>>, vector<1x100xf32>
    %4 = vector.broadcast %3 : vector<1x100xf32> to vector<2x100xf32>
    %5 = arith.addf %2, %4 : vector<2x100xf32>
    %cst_5 = arith.constant 0.000000e+00 : f32
    %6 = vector.broadcast %cst_5 : f32 to vector<2x100xf32>
    %7 = arith.maximumf %5, %6 : vector<2x100xf32>
    %c0_6 = arith.constant 0 : index
    %c0_7 = arith.constant 0 : index
    %8 = vector.load %arg4[%c0_6, %c0_7] : memref<100x3xf32, #tpu.memory_space<vmem>>, vector<100x3xf32>
    %cst_8 = arith.constant dense<0.000000e+00> : vector<2x3xf32>
    %9 = tpu.matmul %7, %8, %cst_8 {dimension_numbers = #tpu.dot_dimension_numbers<[1], [0], [0], [1], [0, 0, 1, 1], [], []>} : vector<2x100xf32>, vector<100x3xf32>, vector<2x3xf32> -> vector<2x3xf32>
    %c0_9 = arith.constant 0 : index
    %c0_10 = arith.constant 0 : index
    %10 = vector.load %arg5[%c0_9, %c0_10] : memref<1x3xf32, #tpu.memory_space<vmem>>, vector<1x3xf32>
    %11 = vector.broadcast %10 : vector<1x3xf32> to vector<2x3xf32>
    %12 = arith.addf %9, %11 : vector<2x3xf32>
    %c0_11 = arith.constant 0 : index
    %c0_12 = arith.constant 0 : index
    %13 = vector.load %arg6[%c0_11, %c0_12] : memref<2x3xf32, #tpu.memory_space<vmem>>, vector<2x3xf32>
    tpu.vector_store %arg6[%c0_11, %c0_12], %12 {strides = array<i32>} : memref<2x3xf32, #tpu.memory_space<vmem>>, vector<2x3xf32>,
    return
  }
  func.func @transform_0(%arg0: i32) -> (i32, i32) {
    %c0_i32 = arith.constant 0 : i32
    %c0_i32_0 = arith.constant 0 : i32
    return %arg0, %c0_i32 : i32, i32
  }
  func.func @transform_1(%arg0: i32) -> (i32, i32) {
    %c0_i32 = arith.constant 0 : i32
    %c0_i32_0 = arith.constant 0 : i32
    %c0_i32_1 = arith.constant 0 : i32
    return %c0_i32, %c0_i32_0 : i32, i32
  }
  func.func @transform_2(%arg0: i32) -> (i32, i32) {
    %c0_i32 = arith.constant 0 : i32
    %c0_i32_0 = arith.constant 0 : i32
    %c0_i32_1 = arith.constant 0 : i32
    return %c0_i32, %c0_i32_0 : i32, i32
  }
  func.func @transform_3(%arg0: i32) -> (i32, i32) {
    %c0_i32 = arith.constant 0 : i32
    %c0_i32_0 = arith.constant 0 : i32
    %c0_i32_1 = arith.constant 0 : i32
    return %c0_i32, %c0_i32_0 : i32, i32
  }
  func.func @transform_4(%arg0: i32) -> (i32, i32) {
    %c0_i32 = arith.constant 0 : i32
    %c0_i32_0 = arith.constant 0 : i32
    %c0_i32_1 = arith.constant 0 : i32
    return %c0_i32, %c0_i32_0 : i32, i32
  }
  func.func @transform_5(%arg0: i32) -> (i32, i32) {
    %c0_i32 = arith.constant 0 : i32
    %c0_i32_0 = arith.constant 0 : i32
    return %arg0, %c0_i32 : i32, i32
  }
}

</mosaic_0001>

<bundles_post_ra>
// kernel: simple_cnn_forward.3
= control target key start
LH: loop header
LB: loop body
LE: loop exit
PB: predicated region body
PF: predicated region fallthrough
CT: control target
= control target key end

     0   :  { %v7106_v43 = vmov 1983009808   ;;  %v1270_v45 = vlaneseq  ;;  %s11127_s0 = inlined_call_operand.vmem [shape: f32[2,9600], index: 0, kind: input, shape index: {}]   ;;  %s11128_s1 = inlined_call_operand.vmem [shape: f32[9600,100], index: 1, kind: input, shape index: {}]   ;;  %s11129_s2 = inlined_call_operand.vmem [shape: f32[1,100], index: 2, kind: input, shape index: {}]   ;;  %s11130_s3 = inlined_call_operand.vmem [shape: f32[100,3], index: 3, kind: input, shape index: {}]   ;;  %s11131_s4 = inlined_call_operand.vmem [shape: f32[1,3], index: 4, kind: input, shape index: {}]   ;;  %s11132_s5 = inlined_call_operand.hbm [shape: f32[2,3], index: 5, kind: output, shape index: {}]  }
   0x1   :  { %v56_v0 = vld [vmem:[%s11128_s1 + $0x80] sm:$0xff]  ;;  %v57_v1 = vld [vmem:[%s11128_s1 + $0x88] sm:$0xff]  ;;  %v58_v11 = vld [vmem:[%s11128_s1 + $0x90] sm:$0xff]  ;;  %v1268_v44 = vunpack.c.l.s4 %v7106_v43 }
   0x2   :  { %v40_v2 = vld [vmem:[%s11128_s1] sm:$0xff]  ;;  %v5832_v3 = vpack.c.bf16 %v57_v1, %v56_v0  ;;  %v41_v4 = vld [vmem:[%s11128_s1 + $0x8] sm:$0xff]  ;;  %v59_v13 = vld [vmem:[%s11128_s1 + $0x98] sm:$0xff]  ;;  %v1271_v60 = vshrl.u32 %v1270_v45, 7 }
   0x3   :  { %v88_v5 = vld [vmem:[%s11128_s1 + $0x180] sm:$0xff]  ;;  %v89_v6 = vld [vmem:[%s11128_s1 + $0x188] sm:$0xff]  ;;  %v5834_v7 = vpack.c.bf16 %v41_v4, %v40_v2  ;;  %v42_v14 = vld [vmem:[%s11128_s1 + $0x10] sm:$0xff]  ;;  %v5836_v16 = vpack.c.bf16 %v59_v13, %v58_v11  ;;  %v1269_v59 = vunpack.c.0.s8 %v1268_v44 }
   0x4   :  { %v5864_v8 = vpack.c.bf16 %v89_v6, %v88_v5  ;;  %v72_v9 = vld [vmem:[%s11128_s1 + $0x100] sm:$0xff]  ;;  %v73_v10 = vld [vmem:[%s11128_s1 + $0x108] sm:$0xff]  ;;  %5833 = vmatprep.subr.bf16.mxu0 %v5832_v3  ;;  %v43_v15 = vld [vmem:[%s11128_s1 + $0x18] sm:$0xff] }
   0x5   :  { %v5866_v12 = vpack.c.bf16 %v73_v10, %v72_v9  ;;  %5835 = vmatpush3.bf16.msra.mxu0 %v5834_v7  ;;  %v5838_v17 = vpack.c.bf16 %v43_v15, %v42_v14  ;;  %v90_v18 = vld [vmem:[%s11128_s1 + $0x190] sm:$0xff]  ;;  %v91_v19 = vld [vmem:[%s11128_s1 + $0x198] sm:$0xff]  ;;  %v60_v23 = vld [vmem:[%s11128_s1 + $0xa0] sm:$0xff]  ;;  %v7285_v10 = vsub.s32 %v1269_v59, %v1271_v60 }
   0x6   :  { %5865 = vmatprep.subr.bf16.mxu1 %v5864_v8  ;;  %v74_v20 = vld [vmem:[%s11128_s1 + $0x110] sm:$0xff]  ;;  %v5868_v21 = vpack.c.bf16 %v91_v19, %v90_v18  ;;  %v75_v22 = vld [vmem:[%s11128_s1 + $0x118] sm:$0xff]  ;;  %v61_v24 = vld [vmem:[%s11128_s1 + $0xa8] sm:$0xff]  ;;  %5837 = vmatprep.subr.bf16.mxu0 %v5836_v16 }
   0x7   :  { %5867 = vmatpush3.bf16.msra.mxu1 %v5866_v12  ;;  %v5870_v25 = vpack.c.bf16 %v75_v22, %v74_v20  ;;  %v5840_v26 = vpack.c.bf16 %v61_v24, %v60_v23  ;;  %v44_v27 = vld [vmem:[%s11128_s1 + $0x20] sm:$0xff]  ;;  %v45_v28 = vld [vmem:[%s11128_s1 + $0x28] sm:$0xff]  ;;  %v62_v35 = vld [vmem:[%s11128_s1 + $0xb0] sm:$0xff] }
   0x8   :  { %v92_v29 = vld [vmem:[%s11128_s1 + $0x1a0] sm:$0xff]  ;;  %5869 = vmatprep.subr.bf16.mxu1 %v5868_v21  ;;  %v93_v30 = vld [vmem:[%s11128_s1 + $0x1a8] sm:$0xff]  ;;  %v5842_v33 = vpack.c.bf16 %v45_v28, %v44_v27  ;;  %v63_v36 = vld [vmem:[%s11128_s1 + $0xb8] sm:$0xff] }
   0x9   :  { %v76_v31 = vld [vmem:[%s11128_s1 + $0x120] sm:$0xff]  ;;  %v77_v32 = vld [vmem:[%s11128_s1 + $0x128] sm:$0xff]  ;;  %5839 = vmatpush3.bf16.msra.mxu0 %v5838_v17  ;;  %v5872_v34 = vpack.c.bf16 %v93_v30, %v92_v29  ;;  %v46_v37 = vld [vmem:[%s11128_s1 + $0x30] sm:$0xff]  ;;  %v5844_v39 = vpack.c.bf16 %v63_v36, %v62_v35 }
   0xa   :  { %5841 = vmatprep.subr.bf16.mxu0 %v5840_v26  ;;  %v5874_v38 = vpack.c.bf16 %v77_v32, %v76_v31  ;;  %v47_v40 = vld [vmem:[%s11128_s1 + $0x38] sm:$0xff]  ;;  %v94_v41 = vld [vmem:[%s11128_s1 + $0x1b0] sm:$0xff]  ;;  %v64_v49 = vld [vmem:[%s11128_s1 + $0xc0] sm:$0xff] }
   0xb   :  { %5871 = vmatpush3.bf16.msra.mxu1 %v5870_v25  ;;  %v95_v42 = vld [vmem:[%s11128_s1 + $0x1b8] sm:$0xff]  ;;  %v78_v47 = vld [vmem:[%s11128_s1 + $0x130] sm:$0xff]  ;;  %v65_v50 = vld [vmem:[%s11128_s1 + $0xc8] sm:$0xff]  ;;  %v5846_v51 = vpack.c.bf16 %v47_v40, %v46_v37 }
   0xc   :  { %5873 = vmatprep.subr.bf16.mxu1 %v5872_v34  ;;  %v5876_v46 = vpack.c.bf16 %v95_v42, %v94_v41  ;;  %v79_v48 = vld [vmem:[%s11128_s1 + $0x138] sm:$0xff]  ;;  %v96_v52 = vld [vmem:[%s11128_s1 + $0x1c0] sm:$0xff]  ;;  %v97_v53 = vld [vmem:[%s11128_s1 + $0x1c8] sm:$0xff]  ;;  %v5848_v55 = vpack.c.bf16 %v65_v50, %v64_v49 }
   0xd   :  { %5843 = vmatpush3.bf16.msra.mxu0 %v5842_v33  ;;  %v5878_v54 = vpack.c.bf16 %v79_v48, %v78_v47  ;;  %v48_v56 = vld [vmem:[%s11128_s1 + $0x40] sm:$0xff]  ;;  %v49_v57 = vld [vmem:[%s11128_s1 + $0x48] sm:$0xff]  ;;  %v5880_v61 = vpack.c.bf16 %v97_v53, %v96_v52  ;;  %v66_v63 = vld [vmem:[%s11128_s1 + $0xd0] sm:$0xff] }
   0xe   :  { %5845 = vmatprep.subr.bf16.mxu0 %v5844_v39  ;;  %v80_v58 = vld [vmem:[%s11128_s1 + $0x140] sm:$0xff]  ;;  %v81_v62 = vld [vmem:[%s11128_s1 + $0x148] sm:$0xff]  ;;  %v67_v0 = vld [vmem:[%s11128_s1 + $0xd8] sm:$0xff]  ;;  %v5850_v3 = vpack.c.bf16 %v49_v57, %v48_v56 }
   0xf   :  { %5875 = vmatpush3.bf16.msra.mxu1 %v5874_v38  ;;  %v98_v1 = vld [vmem:[%s11128_s1 + $0x1d0] sm:$0xff]  ;;  %v99_v2 = vld [vmem:[%s11128_s1 + $0x1d8] sm:$0xff]  ;;  %v5882_v5 = vpack.c.bf16 %v81_v62, %v80_v58  ;;  %v5852_v6 = vpack.c.bf16 %v67_v0, %v66_v63  ;;  %v68_v12 = vld [vmem:[%s11128_s1 + $0xe0] sm:$0xff] }
  0x10   :  { %5877 = vmatprep.subr.bf16.mxu1 %v5876_v46  ;;  %v50_v4 = vld [vmem:[%s11128_s1 + $0x50] sm:$0xff]  ;;  %v51_v7 = vld [vmem:[%s11128_s1 + $0x58] sm:$0xff]  ;;  %v5884_v11 = vpack.c.bf16 %v99_v2, %v98_v1  ;;  %v69_v13 = vld [vmem:[%s11128_s1 + $0xe8] sm:$0xff] }
  0x11   :  { %5847 = vmatpush3.bf16.msra.mxu0 %v5846_v51  ;;  %v82_v8 = vld [vmem:[%s11128_s1 + $0x150] sm:$0xff]  ;;  %v83_v9 = vld [vmem:[%s11128_s1 + $0x158] sm:$0xff]  ;;  %v100_v14 = vld [vmem:[%s11128_s1 + $0x1e0] sm:$0xff]  ;;  %v5854_v16 = vpack.c.bf16 %v51_v7, %v50_v4  ;;  %v5856_v19 = vpack.c.bf16 %v69_v13, %v68_v12 }
  0x12   :  { %5849 = vmatprep.subr.bf16.mxu0 %v5848_v55  ;;  %v101_v15 = vld [vmem:[%s11128_s1 + $0x1e8] sm:$0xff]  ;;  %v5886_v17 = vpack.c.bf16 %v83_v9, %v82_v8  ;;  %v21_v18 = vld [vmem:[%s11127_s0] sm:$0xff]  ;;  %v70_v27 = vld [vmem:[%s11128_s1 + $0xf0] sm:$0xff] }
  0x13   :  { %5879 = vmatpush3.bf16.msra.mxu1 %v5878_v54  ;;  %v52_v20 = vld [vmem:[%s11128_s1 + $0x60] sm:$0xff]  ;;  %v53_v21 = vld [vmem:[%s11128_s1 + $0x68] sm:$0xff]  ;;  %v1273_v23 = vrot.slane %v21_v18, %v7285_v10  ;;  %v1266_v24 = vcombine.high %v21_v18, %v21_v18  ;;  %v5888_v25 = vpack.c.bf16 %v101_v15, %v100_v14  ;;  %v71_v28 = vld [vmem:[%s11128_s1 + $0xf8] sm:$0xff] }
  0x14   :  { %5881 = vmatprep.subr.bf16.mxu1 %v5880_v61  ;;  %v84_v22 = vld [vmem:[%s11128_s1 + $0x160] sm:$0xff]  ;;  %v85_v26 = vld [vmem:[%s11128_s1 + $0x168] sm:$0xff]  ;;  %v102_v29 = vld [vmem:[%s11128_s1 + $0x1f0] sm:$0xff]  ;;  %v5858_v33 = vpack.c.bf16 %v53_v21, %v52_v20  ;;  %v5860_v35 = vpack.c.bf16 %v71_v28, %v70_v27 }
  0x15   :  { %5851 = vmatpush3.bf16.msra.mxu0 %v5850_v3  ;;  %v103_v30 = vld [vmem:[%s11128_s1 + $0x1f8] sm:$0xff]  ;;  %v1281_v31 = vcombine.high %v1273_v23, %v1273_v23  ;;  %v1280_v32 = vrot.slane %v1266_v24, %v7285_v10  ;;  %v5890_v34 = vpack.c.bf16 %v85_v26, %v84_v22  ;;  %v54_v36 = vld [vmem:[%s11128_s1 + $0x70] sm:$0xff]  ;;  %v120_v42 = vld [vmem:[%s11128_s1 + $0x280] sm:$0xff] }
  0x16   :  { %5853 = vmatprep.subr.bf16.mxu0 %v5852_v6  ;;  %v55_v37 = vld [vmem:[%s11128_s1 + $0x78] sm:$0xff]  ;;  %v86_v38 = vld [vmem:[%s11128_s1 + $0x170] sm:$0xff]  ;;  %v5892_v40 = vpack.c.bf16 %v103_v30, %v102_v29  ;;  %v121_v43 = vld [vmem:[%s11128_s1 + $0x288] sm:$0xff] }
  0x17   :  { %5883 = vmatpush3.bf16.msra.mxu1 %v5882_v5  ;;  %v1282_v39 = vcombine.high %v1280_v32, %v1280_v32  ;;  %1727 = vmatprep.mubr.f32.mxu0 %v1281_v31  ;;  %v87_v41 = vld [vmem:[%s11128_s1 + $0x178] sm:$0xff]  ;;  %v152_v44 = vld [vmem:[%s11128_s1 + $0x380] sm:$0xff]  ;;  %v153_v45 = vld [vmem:[%s11128_s1 + $0x388] sm:$0xff]  ;;  %v5862_v46 = vpack.c.bf16 %v55_v37, %v54_v36  ;;  %v5896_v48 = vpack.c.bf16 %v121_v43, %v120_v42 }
  0x18   :  { %5885 = vmatprep.subr.bf16.mxu1 %v5884_v11  ;;  %v5894_v47 = vpack.c.bf16 %v87_v41, %v86_v38  ;;  %v104_v49 = vld [vmem:[%s11128_s1 + $0x200] sm:$0xff]  ;;  %v105_v50 = vld [vmem:[%s11128_s1 + $0x208] sm:$0xff]  ;;  %v5928_v52 = vpack.c.bf16 %v153_v45, %v152_v44  ;;  %v122_v54 = vld [vmem:[%s11128_s1 + $0x290] sm:$0xff] }
  0x19   :  { %5855 = vmatpush3.bf16.msra.mxu0 %v5854_v16  ;;  %1797 = vmatprep.mubr.f32.mxu1 %v1282_v39  ;;  %v136_v51 = vld [vmem:[%s11128_s1 + $0x300] sm:$0xff]  ;;  %v137_v53 = vld [vmem:[%s11128_s1 + $0x308] sm:$0xff]  ;;  %v123_v55 = vld [vmem:[%s11128_s1 + $0x298] sm:$0xff]  ;;  %v5898_v58 = vpack.c.bf16 %v105_v50, %v104_v49 }
  0x1a   :  { %5857 = vmatprep.subr.bf16.mxu0 %v5856_v19  ;;  %v154_v56 = vld [vmem:[%s11128_s1 + $0x390] sm:$0xff]  ;;  %v155_v57 = vld [vmem:[%s11128_s1 + $0x398] sm:$0xff]  ;;  %v5930_v59 = vpack.c.bf16 %v137_v53, %v136_v51  ;;  %v5900_v60 = vpack.c.bf16 %v123_v55, %v122_v54  ;;  %v124_v2 = vld [vmem:[%s11128_s1 + $0x2a0] sm:$0xff] }
  0x1b   :  { %5887 = vmatpush3.bf16.msra.mxu1 %v5886_v17  ;;  %v106_v61 = vld [vmem:[%s11128_s1 + $0x210] sm:$0xff]  ;;  %v107_v62 = vld [vmem:[%s11128_s1 + $0x218] sm:$0xff]  ;;  %v5932_v0 = vpack.c.bf16 %v155_v57, %v154_v56  ;;  %v125_v3 = vld [vmem:[%s11128_s1 + $0x2a8] sm:$0xff] }
  0x1c   :  { %5889 = vmatprep.subr.bf16.mxu1 %v5888_v25  ;;  %v138_v63 = vld [vmem:[%s11128_s1 + $0x310] sm:$0xff]  ;;  %v139_v1 = vld [vmem:[%s11128_s1 + $0x318] sm:$0xff]  ;;  %v156_v4 = vld [vmem:[%s11128_s1 + $0x3a0] sm:$0xff]  ;;  %v5902_v6 = vpack.c.bf16 %v107_v62, %v106_v61  ;;  %v5904_v8 = vpack.c.bf16 %v125_v3, %v124_v2 }
  0x1d   :  { %5859 = vmatpush3.bf16.msra.mxu0 %v5858_v33  ;;  %v157_v5 = vld [vmem:[%s11128_s1 + $0x3a8] sm:$0xff]  ;;  %v5934_v7 = vpack.c.bf16 %v139_v1, %v138_v63  ;;  %v108_v9 = vld [vmem:[%s11128_s1 + $0x220] sm:$0xff]  ;;  %v126_v15 = vld [vmem:[%s11128_s1 + $0x2b0] sm:$0xff] }
  0x1e   :  { %5861 = vmatprep.subr.bf16.mxu0 %v5860_v35  ;;  %v109_v11 = vld [vmem:[%s11128_s1 + $0x228] sm:$0xff]  ;;  %v140_v12 = vld [vmem:[%s11128_s1 + $0x320] sm:$0xff]  ;;  %v5936_v13 = vpack.c.bf16 %v157_v5, %v156_v4  ;;  %v127_v16 = vld [vmem:[%s11128_s1 + $0x2b8] sm:$0xff] }
  0x1f   :  { %5891 = vmatpush3.bf16.msra.mxu1 %v5890_v34  ;;  %v141_v14 = vld [vmem:[%s11128_s1 + $0x328] sm:$0xff]  ;;  %v158_v17 = vld [vmem:[%s11128_s1 + $0x3b0] sm:$0xff]  ;;  %v159_v18 = vld [vmem:[%s11128_s1 + $0x3b8] sm:$0xff]  ;;  %v5906_v19 = vpack.c.bf16 %v109_v11, %v108_v9  ;;  %v5908_v22 = vpack.c.bf16 %v127_v16, %v126_v15 }
  0x20   :  { %5893 = vmatprep.subr.bf16.mxu1 %v5892_v40  ;;  %v110_v20 = vld [vmem:[%s11128_s1 + $0x230] sm:$0xff]  ;;  %v5938_v21 = vpack.c.bf16 %v141_v14, %v140_v12  ;;  %v143_v25 = vld [vmem:[%s11128_s1 + $0x338] sm:$0xff]  ;;  %v5940_v26 = vpack.c.bf16 %v159_v18, %v158_v17  ;;  %v128_v27 = vld [vmem:[%s11128_s1 + $0x2c0] sm:$0xff] }
  0x21   :  { %5863 = vmatpush3.bf16.msra.mxu0 %v5862_v46  ;;  %v142_v24 = vld [vmem:[%s11128_s1 + $0x330] sm:$0xff]  ;;  %v129_v28 = vld [vmem:[%s11128_s1 + $0x2c8] sm:$0xff]  ;;  %v160_v30 = vld [vmem:[%s11128_s1 + $0x3c0] sm:$0xff] }
  0x22   :  { %5897 = vmatprep.subr.bf16.mxu0 %v5896_v48  ;;  %v22_v29 = vld [vmem:[%s11127_s0 + $0x8] sm:$0xff]  ;;  %v5942_v35 = vpack.c.bf16 %v143_v25, %v142_v24  ;;  %v5912_v36 = vpack.c.bf16 %v129_v28, %v128_v27  ;;  %v112_v37 = vld [vmem:[%s11128_s1 + $0x240] sm:$0xff]  ;;  %v130_v44 = vld [vmem:[%s11128_s1 + $0x2d0] sm:$0xff] }
  0x23   :  { %5895 = vmatpush3.bf16.msra.mxu1 %v5894_v47  ;;  %v161_v31 = vld [vmem:[%s11128_s1 + $0x3c8] sm:$0xff]  ;;  %v1283_v33 = vcombine.high %v22_v29, %v22_v29  ;;  %v144_v39 = vld [vmem:[%s11128_s1 + $0x340] sm:$0xff]  ;;  %v131_v45 = vld [vmem:[%s11128_s1 + $0x2d8] sm:$0xff] }
  0x24   :  { %5929 = vmatprep.subr.bf16.mxu1 %v5928_v52  ;;  %1728 = vmatmul.mubr.f32.vlgmr.msra.gmra.mrb[0].mxu0 %v1273_v23  ;;  %v111_v23 = vld [vmem:[%s11128_s1 + $0x238] sm:$0xff]  ;;  %v113_v38 = vld [vmem:[%s11128_s1 + $0x248] sm:$0xff]  ;;  %v5944_v42 = vpack.c.bf16 %v161_v31, %v160_v30  ;;  %v162_v46 = vld [vmem:[%s11128_s1 + $0x3d0] sm:$0xff]  ;;  %v5916_v51 = vpack.c.bf16 %v131_v45, %v130_v44 }
  0x25   :  { %5899 = vmatpush3.bf16.msra.mxu0 %v5898_v58  ;;  %v5910_v34 = vpack.c.bf16 %v111_v23, %v110_v20  ;;  %v7466_v41 = vrot.slane %v1283_v33, %v7285_v10  ;;  %v145_v43 = vld [vmem:[%s11128_s1 + $0x348] sm:$0xff]  ;;  %v163_v47 = vld [vmem:[%s11128_s1 + $0x3d8] sm:$0xff]  ;;  %v5914_v49 = vpack.c.bf16 %v113_v38, %v112_v37  ;;  %v114_v52 = vld [vmem:[%s11128_s1 + $0x250] sm:$0xff] }
  0x26   :  { %1798 = vmatmul.mubr.f32.vlgmr.msra.gmra.mrb[0].mxu1 %v1280_v32  ;;  %5901 = vmatprep.subr.bf16.mxu0 %v5900_v60  ;;  %v7452_v32 = vrot.slane %v22_v29, %v7285_v10  ;;  %v5946_v50 = vpack.c.bf16 %v145_v43, %v144_v39  ;;  %v115_v53 = vld [vmem:[%s11128_s1 + $0x258] sm:$0xff]  ;;  %v146_v54 = vld [vmem:[%s11128_s1 + $0x350] sm:$0xff]  ;;  %v5948_v55 = vpack.c.bf16 %v163_v47, %v162_v46  ;;  %v132_v57 = vld [vmem:[%s11128_s1 + $0x2e0] sm:$0xff] }
  0x27   :  { %5931 = vmatpush3.bf16.msra.mxu1 %v5930_v59  ;;  %v1299_v48 = vcombine.high %v7466_v41, %v7466_v41  ;;  %v147_v56 = vld [vmem:[%s11128_s1 + $0x358] sm:$0xff]  ;;  %v133_v58 = vld [vmem:[%s11128_s1 + $0x2e8] sm:$0xff]  ;;  %v164_v59 = vld [vmem:[%s11128_s1 + $0x3e0] sm:$0xff]  ;;  %v5918_v61 = vpack.c.bf16 %v115_v53, %v114_v52 }
  0x28   :  { %5933 = vmatprep.subr.bf16.mxu1 %v5932_v0  ;;  %v1298_v40 = vcombine.high %v7452_v32, %v7452_v32  ;;  %v165_v60 = vld [vmem:[%s11128_s1 + $0x3e8] sm:$0xff]  ;;  %v5950_v62 = vpack.c.bf16 %v147_v56, %v146_v54  ;;  %v5920_v63 = vpack.c.bf16 %v133_v58, %v132_v57  ;;  %v116_v0 = vld [vmem:[%s11128_s1 + $0x260] sm:$0xff]  ;;  %v134_v5 = vld [vmem:[%s11128_s1 + $0x2f0] sm:$0xff] }
  0x29   :  { %5903 = vmatpush3.bf16.msra.mxu0 %v5902_v6  ;;  %1937 = vmatprep.mubr.f32.mxu1 %v1299_v48  ;;  %v117_v1 = vld [vmem:[%s11128_s1 + $0x268] sm:$0xff]  ;;  %v148_v2 = vld [vmem:[%s11128_s1 + $0x360] sm:$0xff]  ;;  %v5952_v3 = vpack.c.bf16 %v165_v60, %v164_v59  ;;  %v135_v6 = vld [vmem:[%s11128_s1 + $0x2f8] sm:$0xff] }
  0x2a   :  { %5905 = vmatprep.subr.bf16.mxu0 %v5904_v8  ;;  %1867 = vmatprep.mubr.f32.mxu0 %v1298_v40  ;;  %v149_v4 = vld [vmem:[%s11128_s1 + $0x368] sm:$0xff]  ;;  %v167_v8 = vld [vmem:[%s11128_s1 + $0x3f8] sm:$0xff]  ;;  %v5922_v9 = vpack.c.bf16 %v117_v1, %v116_v0  ;;  %v5924_v12 = vpack.c.bf16 %v135_v6, %v134_v5  ;;  %v150_v15 = vld [vmem:[%s11128_s1 + $0x370] sm:$0xff] }
  0x2b   :  { %5935 = vmatpush3.bf16.msra.mxu1 %v5934_v7  ;;  %v166_v7 = vld [vmem:[%s11128_s1 + $0x3f0] sm:$0xff]  ;;  %v5954_v11 = vpack.c.bf16 %v149_v4, %v148_v2  ;;  %v119_v14 = vld [vmem:[%s11128_s1 + $0x278] sm:$0xff]  ;;  %v184_v18 = vld [vmem:[%s11128_s1 + $0x480] sm:$0xff] }
  0x2c   :  { %5937 = vmatprep.subr.bf16.mxu1 %v5936_v13  ;;  %v118_v13 = vld [vmem:[%s11128_s1 + $0x270] sm:$0xff]  ;;  %v5956_v16 = vpack.c.bf16 %v167_v8, %v166_v7  ;;  %v151_v17 = vld [vmem:[%s11128_s1 + $0x378] sm:$0xff]  ;;  %v216_v20 = vld [vmem:[%s11128_s1 + $0x580] sm:$0xff] }
  0x2d   :  { %5907 = vmatpush3.bf16.msra.mxu0 %v5906_v19  ;;  %v185_v19 = vld [vmem:[%s11128_s1 + $0x488] sm:$0xff]  ;;  %v168_v23 = vld [vmem:[%s11128_s1 + $0x400] sm:$0xff]  ;;  %v5958_v24 = vpack.c.bf16 %v151_v17, %v150_v15  ;;  %v186_v30 = vld [vmem:[%s11128_s1 + $0x490] sm:$0xff] }
  0x2e   :  { %5909 = vmatprep.subr.bf16.mxu0 %v5908_v22  ;;  %v5926_v22 = vpack.c.bf16 %v119_v14, %v118_v13  ;;  %v5960_v25 = vpack.c.bf16 %v185_v19, %v184_v18  ;;  %v200_v27 = vld [vmem:[%s11128_s1 + $0x500] sm:$0xff]  ;;  %v201_v28 = vld [vmem:[%s11128_s1 + $0x508] sm:$0xff]  ;;  %v187_v31 = vld [vmem:[%s11128_s1 + $0x498] sm:$0xff] }
  0x2f   :  { %5939 = vmatpush3.bf16.msra.mxu1 %v5938_v21  ;;  %v217_v21 = vld [vmem:[%s11128_s1 + $0x588] sm:$0xff]  ;;  %v218_v33 = vld [vmem:[%s11128_s1 + $0x590] sm:$0xff]  ;;  %v5964_v38 = vpack.c.bf16 %v187_v31, %v186_v30  ;;  %v171_v40 = vld [vmem:[%s11128_s1 + $0x418] sm:$0xff] }
  0x30   :  { %5941 = vmatprep.subr.bf16.mxu1 %v5940_v26  ;;  %v169_v26 = vld [vmem:[%s11128_s1 + $0x408] sm:$0xff]  ;;  %v5992_v29 = vpack.c.bf16 %v217_v21, %v216_v20  ;;  %v23_v37 = vld [vmem:[%s11127_s0 + $0x10] sm:$0xff]  ;;  %v203_v46 = vld [vmem:[%s11128_s1 + $0x518] sm:$0xff] }
  0x31   :  { %5911 = vmatpush3.bf16.msra.mxu0 %v5910_v34  ;;  %v219_v34 = vld [vmem:[%s11128_s1 + $0x598] sm:$0xff]  ;;  %v170_v39 = vld [vmem:[%s11128_s1 + $0x410] sm:$0xff]  ;;  %v7594_v43 = vrot.slane %v23_v37, %v7285_v10  ;;  %v1300_v44 = vcombine.high %v23_v37, %v23_v37  ;;  %v188_v47 = vld [vmem:[%s11128_s1 + $0x4a0] sm:$0xff] }
  0x32   :  { %5913 = vmatprep.subr.bf16.mxu0 %v5912_v36  ;;  %v5994_v36 = vpack.c.bf16 %v201_v28, %v200_v27  ;;  %v5996_v45 = vpack.c.bf16 %v219_v34, %v218_v33  ;;  %v189_v48 = vld [vmem:[%s11128_s1 + $0x4a8] sm:$0xff]  ;;  %v5966_v53 = vpack.c.bf16 %v171_v40, %v170_v39  ;;  %v204_v57 = vld [vmem:[%s11128_s1 + $0x520] sm:$0xff]  ;;  %v190_v60 = vld [vmem:[%s11128_s1 + $0x4b0] sm:$0xff] }
  0x33   :  { %5943 = vmatpush3.bf16.msra.mxu1 %v5942_v35  ;;  %v5962_v35 = vpack.c.bf16 %v169_v26, %v168_v23  ;;  %v7615_v52 = vrot.slane %v1300_v44, %v7285_v10  ;;  %v5968_v54 = vpack.c.bf16 %v189_v48, %v188_v47  ;;  %v173_v56 = vld [vmem:[%s11128_s1 + $0x428] sm:$0xff]  ;;  %v175_v4 = vld [vmem:[%s11128_s1 + $0x438] sm:$0xff]  ;;  %v206_v5 = vld [vmem:[%s11128_s1 + $0x530] sm:$0xff] }
  0x34   :  { %5945 = vmatprep.subr.bf16.mxu1 %v5944_v42  ;;  %v202_v42 = vld [vmem:[%s11128_s1 + $0x510] sm:$0xff]  ;;  %v205_v59 = vld [vmem:[%s11128_s1 + $0x528] sm:$0xff]  ;;  %v207_v7 = vld [vmem:[%s11128_s1 + $0x538] sm:$0xff] }
  0x35   :  { %5915 = vmatpush3.bf16.msra.mxu0 %v5914_v49  ;;  %v220_v49 = vld [vmem:[%s11128_s1 + $0x5a0] sm:$0xff]  ;;  %v6002_v1 = vpack.c.bf16 %v205_v59, %v204_v57  ;;  %v6006_v14 = vpack.c.bf16 %v207_v7, %v206_v5  ;;  %v177_v17 = vld [vmem:[%s11128_s1 + $0x448] sm:$0xff]  ;;  %v194_v21 = vld [vmem:[%s11128_s1 + $0x4d0] sm:$0xff] }
  0x36   :  { %5917 = vmatprep.subr.bf16.mxu0 %v5916_v51  ;;  %v1315_v51 = vcombine.high %v7594_v43, %v7594_v43  ;;  %v192_v8 = vld [vmem:[%s11128_s1 + $0x4c0] sm:$0xff]  ;;  %v209_v20 = vld [vmem:[%s11128_s1 + $0x548] sm:$0xff]  ;;  %v226_v23 = vld [vmem:[%s11128_s1 + $0x5d0] sm:$0xff] }
  0x37   :  { %5947 = vmatpush3.bf16.msra.mxu1 %v5946_v50  ;;  %v221_v50 = vld [vmem:[%s11128_s1 + $0x5a8] sm:$0xff]  ;;  %v208_v18 = vld [vmem:[%s11128_s1 + $0x540] sm:$0xff]  ;;  %v178_v28 = vld [vmem:[%s11128_s1 + $0x450] sm:$0xff] }
  0x38   :  { %5949 = vmatprep.subr.bf16.mxu1 %v5948_v55  ;;  %v172_v55 = vld [vmem:[%s11128_s1 + $0x420] sm:$0xff]  ;;  %v6000_v58 = vpack.c.bf16 %v221_v50, %v220_v49  ;;  %v6010_v26 = vpack.c.bf16 %v209_v20, %v208_v18  ;;  %v210_v30 = vld [vmem:[%s11128_s1 + $0x550] sm:$0xff]  ;;  %v211_v33 = vld [vmem:[%s11128_s1 + $0x558] sm:$0xff] }
  0x39   :  { %5919 = vmatpush3.bf16.msra.mxu0 %v5918_v61  ;;  %v191_v61 = vld [vmem:[%s11128_s1 + $0x4b8] sm:$0xff]  ;;  %v5970_v0 = vpack.c.bf16 %v173_v56, %v172_v55  ;;  %v196_v34 = vld [vmem:[%s11128_s1 + $0x4e0] sm:$0xff]  ;;  %v229_v37 = vld [vmem:[%s11128_s1 + $0x5e8] sm:$0xff]  ;;  %v6014_v39 = vpack.c.bf16 %v211_v33, %v210_v30 }
  0x3a   :  { %5921 = vmatprep.subr.bf16.mxu0 %v5920_v63  ;;  %v223_v63 = vld [vmem:[%s11128_s1 + $0x5b8] sm:$0xff]  ;;  %v5972_v2 = vpack.c.bf16 %v191_v61, %v190_v60  ;;  %v181_v44 = vld [vmem:[%s11128_s1 + $0x468] sm:$0xff]  ;;  %v198_v48 = vld [vmem:[%s11128_s1 + $0x4f0] sm:$0xff] }
  0x3b   :  { %5951 = vmatpush3.bf16.msra.mxu1 %v5950_v62  ;;  %v222_v62 = vld [vmem:[%s11128_s1 + $0x5b0] sm:$0xff]  ;;  %v213_v47 = vld [vmem:[%s11128_s1 + $0x568] sm:$0xff]  ;;  %v199_v49 = vld [vmem:[%s11128_s1 + $0x4f8] sm:$0xff] }
  0x3c   :  { %5953 = vmatprep.subr.bf16.mxu1 %v5952_v3  ;;  %v174_v3 = vld [vmem:[%s11128_s1 + $0x430] sm:$0xff]  ;;  %v6004_v6 = vpack.c.bf16 %v223_v63, %v222_v62  ;;  %v5988_v55 = vpack.c.bf16 %v199_v49, %v198_v48  ;;  %v183_v57 = vld [vmem:[%s11128_s1 + $0x478] sm:$0xff]  ;;  %v248_v60 = vld [vmem:[%s11128_s1 + $0x680] sm:$0xff] }
  0x3d   :  { %5923 = vmatpush3.bf16.msra.mxu0 %v5922_v9  ;;  %v193_v9 = vld [vmem:[%s11128_s1 + $0x4c8] sm:$0xff]  ;;  %v5974_v13 = vpack.c.bf16 %v175_v4, %v174_v3  ;;  %v230_v50 = vld [vmem:[%s11128_s1 + $0x5f0] sm:$0xff]  ;;  %v215_v59 = vld [vmem:[%s11128_s1 + $0x578] sm:$0xff] }
  0x3e   :  { %5925 = vmatprep.subr.bf16.mxu0 %v5924_v12  ;;  %v225_v12 = vld [vmem:[%s11128_s1 + $0x5c8] sm:$0xff]  ;;  %v5976_v15 = vpack.c.bf16 %v193_v9, %v192_v8  ;;  %v182_v56 = vld [vmem:[%s11128_s1 + $0x470] sm:$0xff]  ;;  %v280_v62 = vld [vmem:[%s11128_s1 + $0x780] sm:$0xff] }
  0x3f   :  { %5955 = vmatpush3.bf16.msra.mxu1 %v5954_v11  ;;  %v224_v11 = vld [vmem:[%s11128_s1 + $0x5c0] sm:$0xff]  ;;  %v249_v61 = vld [vmem:[%s11128_s1 + $0x688] sm:$0xff]  ;;  %v250_v9 = vld [vmem:[%s11128_s1 + $0x690] sm:$0xff] }
  0x40   :  { %5957 = vmatprep.subr.bf16.mxu1 %v5956_v16  ;;  %v176_v16 = vld [vmem:[%s11128_s1 + $0x440] sm:$0xff]  ;;  %v6008_v19 = vpack.c.bf16 %v225_v12, %v224_v11  ;;  %v281_v63 = vld [vmem:[%s11128_s1 + $0x788] sm:$0xff]  ;;  %v6024_v3 = vpack.c.bf16 %v249_v61, %v248_v60  ;;  %v251_v11 = vld [vmem:[%s11128_s1 + $0x698] sm:$0xff] }
  0x41   :  { %5927 = vmatpush3.bf16.msra.mxu0 %v5926_v22  ;;  %v195_v22 = vld [vmem:[%s11128_s1 + $0x4d8] sm:$0xff]  ;;  %v232_v4 = vld [vmem:[%s11128_s1 + $0x600] sm:$0xff]  ;;  %v233_v5 = vld [vmem:[%s11128_s1 + $0x608] sm:$0xff]  ;;  %v6056_v7 = vpack.c.bf16 %v281_v63, %v280_v62  ;;  %v6028_v18 = vpack.c.bf16 %v251_v11, %v250_v9 }
  0x42   :  { %5961 = vmatprep.subr.bf16.mxu0 %v5960_v25  ;;  %v5978_v25 = vpack.c.bf16 %v177_v17, %v176_v16  ;;  %v5980_v27 = vpack.c.bf16 %v195_v22, %v194_v21  ;;  %v265_v8 = vld [vmem:[%s11128_s1 + $0x708] sm:$0xff]  ;;  %v6026_v16 = vpack.c.bf16 %v233_v5, %v232_v4  ;;  %v235_v20 = vld [vmem:[%s11128_s1 + $0x618] sm:$0xff]  ;;  %v266_v21 = vld [vmem:[%s11128_s1 + $0x710] sm:$0xff] }
  0x43   :  { %5959 = vmatpush3.bf16.msra.mxu1 %v5958_v24  ;;  %v227_v24 = vld [vmem:[%s11128_s1 + $0x5d8] sm:$0xff]  ;;  %v270_v48 = vld [vmem:[%s11128_s1 + $0x730] sm:$0xff]  ;;  %v273_v61 = vld [vmem:[%s11128_s1 + $0x748] sm:$0xff] }
  0x44   :  { %5993 = vmatprep.subr.bf16.mxu1 %v5992_v29  ;;  %1868 = vmatmul.mubr.f32.vlgmr.msra.gmra.mrb[2].mxu0 %v7452_v32  ;;  %v5998_v32 = vpack.c.bf16 %v203_v46, %v202_v42  ;;  %v179_v29 = vld [vmem:[%s11128_s1 + $0x458] sm:$0xff]  ;;  %v6012_v31 = vpack.c.bf16 %v227_v24, %v226_v23  ;;  %v180_v42 = vld [vmem:[%s11128_s1 + $0x460] sm:$0xff]  ;;  %v258_v62 = vld [vmem:[%s11128_s1 + $0x6d0] sm:$0xff] }
  0x45   :  { %5963 = vmatpush3.bf16.msra.mxu0 %v5962_v35  ;;  %2007 = vmatprep.mubr.f32.mxu0 %v1315_v51  ;;  %v197_v35 = vld [vmem:[%s11128_s1 + $0x4e8] sm:$0xff]  ;;  %v231_v51 = vld [vmem:[%s11128_s1 + $0x5f8] sm:$0xff]  ;;  %v252_v24 = vld [vmem:[%s11128_s1 + $0x6a0] sm:$0xff] }
  0x46   :  { %1938 = vmatmul.mubr.f32.vlgmr.msra.gmra.mrb[2].mxu1 %v7466_v41  ;;  %5965 = vmatprep.subr.bf16.mxu0 %v5964_v38  ;;  %v1316_v41 = vcombine.high %v7615_v52, %v7615_v52  ;;  %v5982_v38 = vpack.c.bf16 %v179_v29, %v178_v28  ;;  %v5984_v40 = vpack.c.bf16 %v197_v35, %v196_v34  ;;  %v267_v23 = vld [vmem:[%s11128_s1 + $0x718] sm:$0xff]  ;;  %v285_v28 = vld [vmem:[%s11128_s1 + $0x7a8] sm:$0xff]  ;;  %v268_v35 = vld [vmem:[%s11128_s1 + $0x720] sm:$0xff] }
  0x47   :  { %5995 = vmatpush3.bf16.msra.mxu1 %v5994_v36  ;;  %v228_v36 = vld [vmem:[%s11128_s1 + $0x5e0] sm:$0xff]  ;;  %v237_v34 = vld [vmem:[%s11128_s1 + $0x628] sm:$0xff]  ;;  %v259_v63 = vld [vmem:[%s11128_s1 + $0x6d8] sm:$0xff] }
  0x48   :  { %5997 = vmatprep.subr.bf16.mxu1 %v5996_v45  ;;  %2077 = vmatprep.mubr.f32.mxu1 %v1316_v41  ;;  %v212_v45 = vld [vmem:[%s11128_s1 + $0x560] sm:$0xff]  ;;  %v6016_v46 = vpack.c.bf16 %v229_v37, %v228_v36  ;;  %v214_v41 = vld [vmem:[%s11128_s1 + $0x570] sm:$0xff]  ;;  %v6044_v4 = vpack.c.bf16 %v259_v63, %v258_v62  ;;  %v275_v9 = vld [vmem:[%s11128_s1 + $0x758] sm:$0xff] }
  0x49   :  { %5967 = vmatpush3.bf16.msra.mxu0 %v5966_v53  ;;  %v5986_v53 = vpack.c.bf16 %v181_v44, %v180_v42  ;;  %v254_v37 = vld [vmem:[%s11128_s1 + $0x6b0] sm:$0xff]  ;;  %v260_v11 = vld [vmem:[%s11128_s1 + $0x6e0] sm:$0xff] }
  0x4a   :  { %5969 = vmatprep.subr.bf16.mxu0 %v5968_v54  ;;  %v6018_v54 = vpack.c.bf16 %v213_v47, %v212_v45  ;;  %v239_v47 = vld [vmem:[%s11128_s1 + $0x638] sm:$0xff]  ;;  %v242_v5 = vld [vmem:[%s11128_s1 + $0x650] sm:$0xff] }
  0x4b   :  { %5999 = vmatpush3.bf16.msra.mxu1 %v5998_v32  ;;  %v24_v32 = vld [vmem:[%s11127_s0 + $0x18] sm:$0xff]  ;;  %v330_v62 = vld [vmem:[%s11128_s1 + $0x910] sm:$0xff] }
  0x4c   :  { %6001 = vmatprep.subr.bf16.mxu1 %v6000_v58  ;;  %v6020_v58 = vpack.c.bf16 %v231_v51, %v230_v50  ;;  %v7786_v12 = vrot.slane %v24_v32, %v7285_v10  ;;  %v271_v50 = vld [vmem:[%s11128_s1 + $0x738] sm:$0xff]  ;;  %v256_v51 = vld [vmem:[%s11128_s1 + $0x6c0] sm:$0xff] }
  0x4d   :  { %5971 = vmatpush3.bf16.msra.mxu0 %v5970_v0  ;;  %v1317_v0 = vcombine.high %v24_v32, %v24_v32  ;;  %v288_v32 = vld [vmem:[%s11128_s1 + $0x7c0] sm:$0xff] }
  0x4e   :  { %5973 = vmatprep.subr.bf16.mxu0 %v5972_v2  ;;  %v6022_v2 = vpack.c.bf16 %v215_v59, %v214_v41  ;;  %v240_v41 = vld [vmem:[%s11128_s1 + $0x640] sm:$0xff] }
  0x4f   :  { %6003 = vmatpush3.bf16.msra.mxu1 %v6002_v1  ;;  %v5990_v1 = vpack.c.bf16 %v183_v57, %v182_v56  ;;  %v6070_v56 = vpack.c.bf16 %v271_v50, %v270_v48  ;;  %v272_v59 = vld [vmem:[%s11128_s1 + $0x740] sm:$0xff]  ;;  %v297_v48 = vld [vmem:[%s11128_s1 + $0x808] sm:$0xff] }
  0x50   :  { %6005 = vmatprep.subr.bf16.mxu1 %v6004_v6  ;;  %v264_v6 = vld [vmem:[%s11128_s1 + $0x700] sm:$0xff] }
  0x51   :  { %5975 = vmatpush3.bf16.msra.mxu0 %v5974_v13  ;;  %v282_v13 = vld [vmem:[%s11128_s1 + $0x790] sm:$0xff]  ;;  %v6058_v17 = vpack.c.bf16 %v265_v8, %v264_v6  ;;  %v243_v6 = vld [vmem:[%s11128_s1 + $0x658] sm:$0xff] }
  0x52   :  { %5977 = vmatprep.subr.bf16.mxu0 %v5976_v15  ;;  %v7795_v15 = vrot.slane %v1317_v0, %v7285_v10  ;;  %v290_v0 = vld [vmem:[%s11128_s1 + $0x7d0] sm:$0xff] }
  0x53   :  { %6007 = vmatpush3.bf16.msra.mxu1 %v6006_v14  ;;  %v283_v14 = vld [vmem:[%s11128_s1 + $0x798] sm:$0xff] }
  0x54   :  { %6009 = vmatprep.subr.bf16.mxu1 %v6008_v19  ;;  %v234_v19 = vld [vmem:[%s11128_s1 + $0x610] sm:$0xff]  ;;  %v6060_v22 = vpack.c.bf16 %v283_v14, %v282_v13  ;;  %v1333_v29 = vcombine.high %v7795_v15, %v7795_v15  ;;  %v261_v13 = vld [vmem:[%s11128_s1 + $0x6e8] sm:$0xff]  ;;  %v292_v14 = vld [vmem:[%s11128_s1 + $0x7e0] sm:$0xff] }
  0x55   :  { %5979 = vmatpush3.bf16.msra.mxu0 %v5978_v25  ;;  %v253_v25 = vld [vmem:[%s11128_s1 + $0x6a8] sm:$0xff]  ;;  %v6030_v30 = vpack.c.bf16 %v235_v20, %v234_v19  ;;  %v6048_v19 = vpack.c.bf16 %v261_v13, %v260_v11  ;;  %v244_v20 = vld [vmem:[%s11128_s1 + $0x660] sm:$0xff] }
  0x56   :  { %5981 = vmatprep.subr.bf16.mxu0 %v5980_v27  ;;  %v284_v27 = vld [vmem:[%s11128_s1 + $0x7a0] sm:$0xff]  ;;  %v6032_v33 = vpack.c.bf16 %v253_v25, %v252_v24  ;;  %v277_v24 = vld [vmem:[%s11128_s1 + $0x768] sm:$0xff]  ;;  %v262_v25 = vld [vmem:[%s11128_s1 + $0x6f0] sm:$0xff] }
  0x57   :  { %6011 = vmatpush3.bf16.msra.mxu1 %v6010_v26  ;;  %v1332_v26 = vcombine.high %v7786_v12, %v7786_v12  ;;  %v6064_v36 = vpack.c.bf16 %v285_v28, %v284_v27  ;;  %v294_v27 = vld [vmem:[%s11128_s1 + $0x7f0] sm:$0xff]  ;;  %v295_v28 = vld [vmem:[%s11128_s1 + $0x7f8] sm:$0xff]  ;;  %v301_v11 = vld [vmem:[%s11128_s1 + $0x828] sm:$0xff] }
  0x58   :  { %6013 = vmatprep.subr.bf16.mxu1 %v6012_v31  ;;  %v6062_v31 = vpack.c.bf16 %v267_v23, %v266_v21  ;;  %v245_v21 = vld [vmem:[%s11128_s1 + $0x668] sm:$0xff]  ;;  %v332_v13 = vld [vmem:[%s11128_s1 + $0x920] sm:$0xff] }
  0x59   :  { %5983 = vmatpush3.bf16.msra.mxu0 %v5982_v38  ;;  %v255_v38 = vld [vmem:[%s11128_s1 + $0x6b8] sm:$0xff] }
  0x5a   :  { %5985 = vmatprep.subr.bf16.mxu0 %v5984_v40  ;;  %v287_v40 = vld [vmem:[%s11128_s1 + $0x7b8] sm:$0xff]  ;;  %v6036_v45 = vpack.c.bf16 %v255_v38, %v254_v37  ;;  %v312_v37 = vld [vmem:[%s11128_s1 + $0x880] sm:$0xff]  ;;  %v313_v38 = vld [vmem:[%s11128_s1 + $0x888] sm:$0xff] }
  0x5b   :  { %6015 = vmatpush3.bf16.msra.mxu1 %v6014_v39  ;;  %v286_v39 = vld [vmem:[%s11128_s1 + $0x7b0] sm:$0xff] }
  0x5c   :  { %6017 = vmatprep.subr.bf16.mxu1 %v6016_v46  ;;  %v238_v46 = vld [vmem:[%s11128_s1 + $0x630] sm:$0xff]  ;;  %v6068_v49 = vpack.c.bf16 %v287_v40, %v286_v39  ;;  %v344_v39 = vld [vmem:[%s11128_s1 + $0x980] sm:$0xff]  ;;  %v345_v40 = vld [vmem:[%s11128_s1 + $0x988] sm:$0xff] }
  0x5d   :  { %5987 = vmatpush3.bf16.msra.mxu0 %v5986_v53  ;;  %v257_v53 = vld [vmem:[%s11128_s1 + $0x6c8] sm:$0xff]  ;;  %v6120_v50 = vpack.c.bf16 %v345_v40, %v344_v39  ;;  %v322_v39 = vld [vmem:[%s11128_s1 + $0x8d0] sm:$0xff]  ;;  %v323_v40 = vld [vmem:[%s11128_s1 + $0x8d8] sm:$0xff] }
  0x5e   :  { %5989 = vmatprep.subr.bf16.mxu0 %v5988_v55  ;;  %v6038_v55 = vpack.c.bf16 %v239_v47, %v238_v46  ;;  %v6040_v57 = vpack.c.bf16 %v257_v53, %v256_v51  ;;  %v6088_v46 = vpack.c.bf16 %v313_v38, %v312_v37  ;;  %v296_v47 = vld [vmem:[%s11128_s1 + $0x800] sm:$0xff]  ;;  %v329_v51 = vld [vmem:[%s11128_s1 + $0x908] sm:$0xff]  ;;  %v314_v53 = vld [vmem:[%s11128_s1 + $0x890] sm:$0xff] }
  0x5f   :  { %6019 = vmatpush3.bf16.msra.mxu1 %v6018_v54  ;;  %v289_v54 = vld [vmem:[%s11128_s1 + $0x7c8] sm:$0xff] }
  0x60   :  { %6021 = vmatprep.subr.bf16.mxu1 %v6020_v58  ;;  %v241_v58 = vld [vmem:[%s11128_s1 + $0x648] sm:$0xff]  ;;  %v6072_v60 = vpack.c.bf16 %v289_v54, %v288_v32  ;;  %v315_v32 = vld [vmem:[%s11128_s1 + $0x898] sm:$0xff] }
  0x61   :  { %5991 = vmatpush3.bf16.msra.mxu0 %v5990_v1  ;;  %v291_v1 = vld [vmem:[%s11128_s1 + $0x7d8] sm:$0xff]  ;;  %v337_v38 = vld [vmem:[%s11128_s1 + $0x948] sm:$0xff] }
  0x62   :  { %6025 = vmatprep.subr.bf16.mxu0 %v6024_v3  ;;  %v6074_v3 = vpack.c.bf16 %v273_v61, %v272_v59  ;;  %v6076_v8 = vpack.c.bf16 %v291_v1, %v290_v0  ;;  %v6092_v59 = vpack.c.bf16 %v315_v32, %v314_v53  ;;  %v299_v61 = vld [vmem:[%s11128_s1 + $0x818] sm:$0xff]  ;;  %v316_v1 = vld [vmem:[%s11128_s1 + $0x8a0] sm:$0xff] }
  0x63   :  { %6023 = vmatpush3.bf16.msra.mxu1 %v6022_v2  ;;  %v6042_v2 = vpack.c.bf16 %v241_v58, %v240_v41  ;;  %v6090_v41 = vpack.c.bf16 %v297_v48, %v296_v47  ;;  %v331_v0 = vld [vmem:[%s11128_s1 + $0x918] sm:$0xff]  ;;  %v6108_v47 = vpack.c.bf16 %v323_v40, %v322_v39  ;;  %v306_v48 = vld [vmem:[%s11128_s1 + $0x850] sm:$0xff]  ;;  %v324_v32 = vld [vmem:[%s11128_s1 + $0x8e0] sm:$0xff] }
  0x64   :  { %6057 = vmatprep.subr.bf16.mxu1 %v6056_v7  ;;  %2008 = vmatmul.mubr.f32.vlgmr.msra.gmra.mrb[4].mxu0 %v7594_v43  ;;  %v236_v43 = vld [vmem:[%s11128_s1 + $0x620] sm:$0xff]  ;;  %v274_v7 = vld [vmem:[%s11128_s1 + $0x750] sm:$0xff]  ;;  %v339_v53 = vld [vmem:[%s11128_s1 + $0x958] sm:$0xff] }
  0x65   :  { %6027 = vmatpush3.bf16.msra.mxu0 %v6026_v16  ;;  %2147 = vmatprep.mubr.f32.mxu0 %v1332_v26  ;;  %v6034_v42 = vpack.c.bf16 %v237_v34, %v236_v43  ;;  %v293_v16 = vld [vmem:[%s11128_s1 + $0x7e8] sm:$0xff]  ;;  %v263_v26 = vld [vmem:[%s11128_s1 + $0x6f8] sm:$0xff]  ;;  %v246_v43 = vld [vmem:[%s11128_s1 + $0x670] sm:$0xff] }
  0x66   :  { %2078 = vmatmul.mubr.f32.vlgmr.msra.gmra.mrb[4].mxu1 %v7615_v52  ;;  %6029 = vmatprep.subr.bf16.mxu0 %v6028_v18  ;;  %v269_v52 = vld [vmem:[%s11128_s1 + $0x728] sm:$0xff]  ;;  %v6078_v18 = vpack.c.bf16 %v275_v9, %v274_v7  ;;  %v6080_v23 = vpack.c.bf16 %v293_v16, %v292_v14  ;;  %v247_v34 = vld [vmem:[%s11128_s1 + $0x678] sm:$0xff]  ;;  %v318_v16 = vld [vmem:[%s11128_s1 + $0x8b0] sm:$0xff] }
  0x67   :  { %6059 = vmatpush3.bf16.msra.mxu1 %v6058_v17  ;;  %2217 = vmatprep.mubr.f32.mxu1 %v1333_v29  ;;  %v6066_v44 = vpack.c.bf16 %v269_v52, %v268_v35  ;;  %v6046_v17 = vpack.c.bf16 %v243_v6, %v242_v5  ;;  %v6050_v29 = vpack.c.bf16 %v245_v21, %v244_v20  ;;  %v278_v35 = vld [vmem:[%s11128_s1 + $0x770] sm:$0xff]  ;;  %v279_v52 = vld [vmem:[%s11128_s1 + $0x778] sm:$0xff]  ;;  %v349_v5 = vld [vmem:[%s11128_s1 + $0x9a8] sm:$0xff] }
  0x68   :  { %6061 = vmatprep.subr.bf16.mxu1 %v6060_v22  ;;  %v276_v22 = vld [vmem:[%s11128_s1 + $0x760] sm:$0xff]  ;;  %v394_v39 = vld [vmem:[%s11128_s1 + $0xb10] sm:$0xff] }
  0x69   :  { %6031 = vmatpush3.bf16.msra.mxu0 %v6030_v30  ;;  %v25_v30 = vld [vmem:[%s11127_s0 + $0x20] sm:$0xff] }
  0x6a   :  { %6033 = vmatprep.subr.bf16.mxu0 %v6032_v33  ;;  %v6052_v33 = vpack.c.bf16 %v263_v26, %v262_v25  ;;  %v7993_v54 = vrot.slane %v25_v30, %v7285_v10  ;;  %v334_v25 = vld [vmem:[%s11128_s1 + $0x930] sm:$0xff] }
  0x6b   :  { %6063 = vmatpush3.bf16.msra.mxu1 %v6062_v31  ;;  %v6082_v31 = vpack.c.bf16 %v277_v24, %v276_v22  ;;  %v303_v24 = vld [vmem:[%s11128_s1 + $0x838] sm:$0xff] }
  0x6c   :  { %6065 = vmatprep.subr.bf16.mxu1 %v6064_v36  ;;  %v6084_v36 = vpack.c.bf16 %v295_v28, %v294_v27  ;;  %v335_v27 = vld [vmem:[%s11128_s1 + $0x938] sm:$0xff]  ;;  %v320_v28 = vld [vmem:[%s11128_s1 + $0x8c0] sm:$0xff] }
  0x6d   :  { %6035 = vmatpush3.bf16.msra.mxu0 %v6034_v42  ;;  %v1334_v42 = vcombine.high %v25_v30, %v25_v30  ;;  %v352_v30 = vld [vmem:[%s11128_s1 + $0x9c0] sm:$0xff] }
  0x6e   :  { %6037 = vmatprep.subr.bf16.mxu0 %v6036_v45  ;;  %v6086_v45 = vpack.c.bf16 %v279_v52, %v278_v35  ;;  %v304_v35 = vld [vmem:[%s11128_s1 + $0x840] sm:$0xff] }
  0x6f   :  { %6067 = vmatpush3.bf16.msra.mxu1 %v6066_v44  ;;  %v6054_v44 = vpack.c.bf16 %v247_v34, %v246_v43  ;;  %v6134_v43 = vpack.c.bf16 %v335_v27, %v334_v25  ;;  %v336_v52 = vld [vmem:[%s11128_s1 + $0x940] sm:$0xff]  ;;  %v361_v25 = vld [vmem:[%s11128_s1 + $0xa08] sm:$0xff] }
  0x70   :  { %6069 = vmatprep.subr.bf16.mxu1 %v6068_v49  ;;  %v328_v49 = vld [vmem:[%s11128_s1 + $0x900] sm:$0xff] }
  0x71   :  { %6039 = vmatpush3.bf16.msra.mxu0 %v6038_v55  ;;  %v346_v55 = vld [vmem:[%s11128_s1 + $0x990] sm:$0xff]  ;;  %v6122_v58 = vpack.c.bf16 %v329_v51, %v328_v49  ;;  %v307_v49 = vld [vmem:[%s11128_s1 + $0x858] sm:$0xff] }
  0x72   :  { %6041 = vmatprep.subr.bf16.mxu0 %v6040_v57  ;;  %v8002_v57 = vrot.slane %v1334_v42, %v7285_v10  ;;  %v354_v42 = vld [vmem:[%s11128_s1 + $0x9d0] sm:$0xff] }
  0x73   :  { %6071 = vmatpush3.bf16.msra.mxu1 %v6070_v56  ;;  %v347_v56 = vld [vmem:[%s11128_s1 + $0x998] sm:$0xff] }
  0x74   :  { %6073 = vmatprep.subr.bf16.mxu1 %v6072_v60  ;;  %v298_v60 = vld [vmem:[%s11128_s1 + $0x810] sm:$0xff]  ;;  %v6124_v63 = vpack.c.bf16 %v347_v56, %v346_v55  ;;  %v1350_v6 = vcombine.high %v8002_v57, %v8002_v57  ;;  %v325_v55 = vld [vmem:[%s11128_s1 + $0x8e8] sm:$0xff]  ;;  %v356_v56 = vld [vmem:[%s11128_s1 + $0x9e0] sm:$0xff] }
  0x75   :  { %6043 = vmatpush3.bf16.msra.mxu0 %v6042_v2  ;;  %v317_v2 = vld [vmem:[%s11128_s1 + $0x8a8] sm:$0xff]  ;;  %v6094_v7 = vpack.c.bf16 %v299_v61, %v298_v60  ;;  %v6112_v60 = vpack.c.bf16 %v325_v55, %v324_v32  ;;  %v308_v61 = vld [vmem:[%s11128_s1 + $0x860] sm:$0xff] }
  0x76   :  { %6045 = vmatprep.subr.bf16.mxu0 %v6044_v4  ;;  %v348_v4 = vld [vmem:[%s11128_s1 + $0x9a0] sm:$0xff]  ;;  %v6096_v9 = vpack.c.bf16 %v317_v2, %v316_v1  ;;  %v341_v1 = vld [vmem:[%s11128_s1 + $0x968] sm:$0xff]  ;;  %v326_v2 = vld [vmem:[%s11128_s1 + $0x8f0] sm:$0xff] }
  0x77   :  { %6075 = vmatpush3.bf16.msra.mxu1 %v6074_v3  ;;  %v1349_v3 = vcombine.high %v7993_v54, %v7993_v54  ;;  %v6128_v14 = vpack.c.bf16 %v349_v5, %v348_v4  ;;  %v358_v4 = vld [vmem:[%s11128_s1 + $0x9f0] sm:$0xff]  ;;  %v359_v5 = vld [vmem:[%s11128_s1 + $0x9f8] sm:$0xff]  ;;  %v365_v32 = vld [vmem:[%s11128_s1 + $0xa28] sm:$0xff] }
  0x78   :  { %6077 = vmatprep.subr.bf16.mxu1 %v6076_v8  ;;  %v6126_v8 = vpack.c.bf16 %v331_v0, %v330_v62  ;;  %v309_v62 = vld [vmem:[%s11128_s1 + $0x868] sm:$0xff]  ;;  %v396_v55 = vld [vmem:[%s11128_s1 + $0xb20] sm:$0xff] }
  0x79   :  { %6047 = vmatpush3.bf16.msra.mxu0 %v6046_v17  ;;  %v319_v17 = vld [vmem:[%s11128_s1 + $0x8b8] sm:$0xff] }
  0x7a   :  { %6049 = vmatprep.subr.bf16.mxu0 %v6048_v19  ;;  %v351_v19 = vld [vmem:[%s11128_s1 + $0x9b8] sm:$0xff]  ;;  %v6100_v22 = vpack.c.bf16 %v319_v17, %v318_v16  ;;  %v376_v16 = vld [vmem:[%s11128_s1 + $0xa80] sm:$0xff]  ;;  %v377_v17 = vld [vmem:[%s11128_s1 + $0xa88] sm:$0xff] }
  0x7b   :  { %6079 = vmatpush3.bf16.msra.mxu1 %v6078_v18  ;;  %v350_v18 = vld [vmem:[%s11128_s1 + $0x9b0] sm:$0xff] }
  0x7c   :  { %6081 = vmatprep.subr.bf16.mxu1 %v6080_v23  ;;  %v302_v23 = vld [vmem:[%s11128_s1 + $0x830] sm:$0xff]  ;;  %v6132_v26 = vpack.c.bf16 %v351_v19, %v350_v18  ;;  %v408_v18 = vld [vmem:[%s11128_s1 + $0xb80] sm:$0xff]  ;;  %v409_v19 = vld [vmem:[%s11128_s1 + $0xb88] sm:$0xff] }
  0x7d   :  { %6051 = vmatpush3.bf16.msra.mxu0 %v6050_v29  ;;  %v321_v29 = vld [vmem:[%s11128_s1 + $0x8c8] sm:$0xff]  ;;  %v6184_v27 = vpack.c.bf16 %v409_v19, %v408_v18  ;;  %v386_v18 = vld [vmem:[%s11128_s1 + $0xad0] sm:$0xff]  ;;  %v387_v19 = vld [vmem:[%s11128_s1 + $0xad8] sm:$0xff] }
  0x7e   :  { %6053 = vmatprep.subr.bf16.mxu0 %v6052_v33  ;;  %v6102_v33 = vpack.c.bf16 %v303_v24, %v302_v23  ;;  %v6104_v34 = vpack.c.bf16 %v321_v29, %v320_v28  ;;  %v6152_v23 = vpack.c.bf16 %v377_v17, %v376_v16  ;;  %v360_v24 = vld [vmem:[%s11128_s1 + $0xa00] sm:$0xff]  ;;  %v393_v28 = vld [vmem:[%s11128_s1 + $0xb08] sm:$0xff]  ;;  %v378_v29 = vld [vmem:[%s11128_s1 + $0xa90] sm:$0xff] }
  0x7f   :  { %6083 = vmatpush3.bf16.msra.mxu1 %v6082_v31  ;;  %v353_v31 = vld [vmem:[%s11128_s1 + $0x9c8] sm:$0xff] }
  0x80   :  { %6085 = vmatprep.subr.bf16.mxu1 %v6084_v36  ;;  %v305_v36 = vld [vmem:[%s11128_s1 + $0x848] sm:$0xff]  ;;  %v6136_v37 = vpack.c.bf16 %v353_v31, %v352_v30  ;;  %v379_v30 = vld [vmem:[%s11128_s1 + $0xa98] sm:$0xff] }
  0x81   :  { %6055 = vmatpush3.bf16.msra.mxu0 %v6054_v44  ;;  %v355_v44 = vld [vmem:[%s11128_s1 + $0x9d8] sm:$0xff]  ;;  %v401_v17 = vld [vmem:[%s11128_s1 + $0xb48] sm:$0xff] }
  0x82   :  { %6089 = vmatprep.subr.bf16.mxu0 %v6088_v46  ;;  %v6138_v46 = vpack.c.bf16 %v337_v38, %v336_v52  ;;  %v6140_v51 = vpack.c.bf16 %v355_v44, %v354_v42  ;;  %v6156_v52 = vpack.c.bf16 %v379_v30, %v378_v29  ;;  %v363_v38 = vld [vmem:[%s11128_s1 + $0xa18] sm:$0xff]  ;;  %v380_v44 = vld [vmem:[%s11128_s1 + $0xaa0] sm:$0xff] }
  0x83   :  { %6087 = vmatpush3.bf16.msra.mxu1 %v6086_v45  ;;  %v6106_v45 = vpack.c.bf16 %v305_v36, %v304_v35  ;;  %v6154_v35 = vpack.c.bf16 %v361_v25, %v360_v24  ;;  %v395_v42 = vld [vmem:[%s11128_s1 + $0xb18] sm:$0xff]  ;;  %v6172_v24 = vpack.c.bf16 %v387_v19, %v386_v18  ;;  %v370_v25 = vld [vmem:[%s11128_s1 + $0xa50] sm:$0xff]  ;;  %v388_v30 = vld [vmem:[%s11128_s1 + $0xae0] sm:$0xff] }
  0x84   :  { %6121 = vmatprep.subr.bf16.mxu1 %v6120_v50  ;;  %2148 = vmatmul.mubr.f32.vlgmr.msra.gmra.mrb[6].mxu0 %v7786_v12  ;;  %v300_v12 = vld [vmem:[%s11128_s1 + $0x820] sm:$0xff]  ;;  %v338_v50 = vld [vmem:[%s11128_s1 + $0x950] sm:$0xff]  ;;  %v403_v29 = vld [vmem:[%s11128_s1 + $0xb58] sm:$0xff] }
  0x85   :  { %6091 = vmatpush3.bf16.msra.mxu0 %v6090_v41  ;;  %2287 = vmatprep.mubr.f32.mxu0 %v1349_v3  ;;  %v6098_v20 = vpack.c.bf16 %v301_v11, %v300_v12  ;;  %v357_v41 = vld [vmem:[%s11128_s1 + $0x9e8] sm:$0xff]  ;;  %v327_v3 = vld [vmem:[%s11128_s1 + $0x8f8] sm:$0xff]  ;;  %v310_v12 = vld [vmem:[%s11128_s1 + $0x870] sm:$0xff] }
  0x86   :  { %2218 = vmatmul.mubr.f32.vlgmr.msra.gmra.mrb[6].mxu1 %v7795_v15  ;;  %6093 = vmatprep.subr.bf16.mxu0 %v6092_v59  ;;  %v333_v15 = vld [vmem:[%s11128_s1 + $0x928] sm:$0xff]  ;;  %v6142_v59 = vpack.c.bf16 %v339_v53, %v338_v50  ;;  %v6144_v0 = vpack.c.bf16 %v357_v41, %v356_v56  ;;  %v311_v11 = vld [vmem:[%s11128_s1 + $0x878] sm:$0xff]  ;;  %v382_v41 = vld [vmem:[%s11128_s1 + $0xab0] sm:$0xff] }
  0x87   :  { %6123 = vmatpush3.bf16.msra.mxu1 %v6122_v58  ;;  %2357 = vmatprep.mubr.f32.mxu1 %v1350_v6  ;;  %v6130_v21 = vpack.c.bf16 %v333_v15, %v332_v13  ;;  %v6110_v58 = vpack.c.bf16 %v307_v49, %v306_v48  ;;  %v6114_v6 = vpack.c.bf16 %v309_v62, %v308_v61  ;;  %v342_v13 = vld [vmem:[%s11128_s1 + $0x970] sm:$0xff]  ;;  %v343_v15 = vld [vmem:[%s11128_s1 + $0x978] sm:$0xff]  ;;  %v413_v48 = vld [vmem:[%s11128_s1 + $0xba8] sm:$0xff] }
  0x88   :  { %6125 = vmatprep.subr.bf16.mxu1 %v6124_v63  ;;  %v340_v63 = vld [vmem:[%s11128_s1 + $0x960] sm:$0xff]  ;;  %v458_v18 = vld [vmem:[%s11128_s1 + $0xd10] sm:$0xff] }
  0x89   :  { %6095 = vmatpush3.bf16.msra.mxu0 %v6094_v7  ;;  %v26_v7 = vld [vmem:[%s11127_s0 + $0x28] sm:$0xff] }
  0x8a   :  { %6097 = vmatprep.subr.bf16.mxu0 %v6096_v9  ;;  %v6116_v9 = vpack.c.bf16 %v327_v3, %v326_v2  ;;  %v8200_v31 = vrot.slane %v26_v7, %v7285_v10  ;;  %v398_v2 = vld [vmem:[%s11128_s1 + $0xb30] sm:$0xff] }
  0x8b   :  { %6127 = vmatpush3.bf16.msra.mxu1 %v6126_v8  ;;  %v6146_v8 = vpack.c.bf16 %v341_v1, %v340_v63  ;;  %v367_v1 = vld [vmem:[%s11128_s1 + $0xa38] sm:$0xff] }
  0x8c   :  { %6129 = vmatprep.subr.bf16.mxu1 %v6128_v14  ;;  %v6148_v14 = vpack.c.bf16 %v359_v5, %v358_v4  ;;  %v399_v4 = vld [vmem:[%s11128_s1 + $0xb38] sm:$0xff]  ;;  %v384_v5 = vld [vmem:[%s11128_s1 + $0xac0] sm:$0xff] }
  0x8d   :  { %6099 = vmatpush3.bf16.msra.mxu0 %v6098_v20  ;;  %v1351_v20 = vcombine.high %v26_v7, %v26_v7  ;;  %v416_v7 = vld [vmem:[%s11128_s1 + $0xbc0] sm:$0xff] }
  0x8e   :  { %6101 = vmatprep.subr.bf16.mxu0 %v6100_v22  ;;  %v6150_v22 = vpack.c.bf16 %v343_v15, %v342_v13  ;;  %v368_v13 = vld [vmem:[%s11128_s1 + $0xa40] sm:$0xff] }
  0x8f   :  { %6131 = vmatpush3.bf16.msra.mxu1 %v6130_v21  ;;  %v6118_v21 = vpack.c.bf16 %v311_v11, %v310_v12  ;;  %v6198_v12 = vpack.c.bf16 %v399_v4, %v398_v2  ;;  %v400_v15 = vld [vmem:[%s11128_s1 + $0xb40] sm:$0xff]  ;;  %v425_v2 = vld [vmem:[%s11128_s1 + $0xc08] sm:$0xff] }
  0x90   :  { %6133 = vmatprep.subr.bf16.mxu1 %v6132_v26  ;;  %v392_v26 = vld [vmem:[%s11128_s1 + $0xb00] sm:$0xff] }
  0x91   :  { %6103 = vmatpush3.bf16.msra.mxu0 %v6102_v33  ;;  %v410_v33 = vld [vmem:[%s11128_s1 + $0xb90] sm:$0xff]  ;;  %v6186_v36 = vpack.c.bf16 %v393_v28, %v392_v26  ;;  %v371_v26 = vld [vmem:[%s11128_s1 + $0xa58] sm:$0xff] }
  0x92   :  { %6105 = vmatprep.subr.bf16.mxu0 %v6104_v34  ;;  %v8209_v34 = vrot.slane %v1351_v20, %v7285_v10  ;;  %v418_v20 = vld [vmem:[%s11128_s1 + $0xbd0] sm:$0xff] }
  0x93   :  { %6135 = vmatpush3.bf16.msra.mxu1 %v6134_v43  ;;  %v411_v43 = vld [vmem:[%s11128_s1 + $0xb98] sm:$0xff] }
  0x94   :  { %6137 = vmatprep.subr.bf16.mxu1 %v6136_v37  ;;  %v362_v37 = vld [vmem:[%s11128_s1 + $0xa10] sm:$0xff]  ;;  %v6188_v40 = vpack.c.bf16 %v411_v43, %v410_v33  ;;  %v1367_v49 = vcombine.high %v8209_v34, %v8209_v34  ;;  %v389_v33 = vld [vmem:[%s11128_s1 + $0xae8] sm:$0xff]  ;;  %v420_v43 = vld [vmem:[%s11128_s1 + $0xbe0] sm:$0xff] }
  0x95   :  { %6107 = vmatpush3.bf16.msra.mxu0 %v6106_v45  ;;  %v381_v45 = vld [vmem:[%s11128_s1 + $0xaa8] sm:$0xff]  ;;  %v6158_v50 = vpack.c.bf16 %v363_v38, %v362_v37  ;;  %v6176_v37 = vpack.c.bf16 %v389_v33, %v388_v30  ;;  %v372_v38 = vld [vmem:[%s11128_s1 + $0xa60] sm:$0xff] }
  0x96   :  { %6109 = vmatprep.subr.bf16.mxu0 %v6108_v47  ;;  %v412_v47 = vld [vmem:[%s11128_s1 + $0xba0] sm:$0xff]  ;;  %v6160_v53 = vpack.c.bf16 %v381_v45, %v380_v44  ;;  %v405_v44 = vld [vmem:[%s11128_s1 + $0xb68] sm:$0xff]  ;;  %v390_v45 = vld [vmem:[%s11128_s1 + $0xaf0] sm:$0xff] }
  0x97   :  { %6139 = vmatpush3.bf16.msra.mxu1 %v6138_v46  ;;  %v1366_v46 = vcombine.high %v8200_v31, %v8200_v31  ;;  %v6192_v56 = vpack.c.bf16 %v413_v48, %v412_v47  ;;  %v422_v47 = vld [vmem:[%s11128_s1 + $0xbf0] sm:$0xff]  ;;  %v423_v48 = vld [vmem:[%s11128_s1 + $0xbf8] sm:$0xff]  ;;  %v429_v30 = vld [vmem:[%s11128_s1 + $0xc28] sm:$0xff] }
  0x98   :  { %6141 = vmatprep.subr.bf16.mxu1 %v6140_v51  ;;  %v6190_v51 = vpack.c.bf16 %v395_v42, %v394_v39  ;;  %v373_v39 = vld [vmem:[%s11128_s1 + $0xa68] sm:$0xff]  ;;  %v460_v33 = vld [vmem:[%s11128_s1 + $0xd20] sm:$0xff] }
  0x99   :  { %6111 = vmatpush3.bf16.msra.mxu0 %v6110_v58  ;;  %v383_v58 = vld [vmem:[%s11128_s1 + $0xab8] sm:$0xff] }
  0x9a   :  { %6113 = vmatprep.subr.bf16.mxu0 %v6112_v60  ;;  %v415_v60 = vld [vmem:[%s11128_s1 + $0xbb8] sm:$0xff]  ;;  %v6164_v63 = vpack.c.bf16 %v383_v58, %v382_v41  ;;  %v440_v41 = vld [vmem:[%s11128_s1 + $0xc80] sm:$0xff]  ;;  %v441_v58 = vld [vmem:[%s11128_s1 + $0xc88] sm:$0xff] }
  0x9b   :  { %6143 = vmatpush3.bf16.msra.mxu1 %v6142_v59  ;;  %v414_v59 = vld [vmem:[%s11128_s1 + $0xbb0] sm:$0xff] }
  0x9c   :  { %6145 = vmatprep.subr.bf16.mxu1 %v6144_v0  ;;  %v366_v0 = vld [vmem:[%s11128_s1 + $0xa30] sm:$0xff]  ;;  %v6196_v3 = vpack.c.bf16 %v415_v60, %v414_v59  ;;  %v472_v59 = vld [vmem:[%s11128_s1 + $0xd80] sm:$0xff]  ;;  %v473_v60 = vld [vmem:[%s11128_s1 + $0xd88] sm:$0xff] }
  0x9d   :  { %6115 = vmatpush3.bf16.msra.mxu0 %v6114_v6  ;;  %v385_v6 = vld [vmem:[%s11128_s1 + $0xac8] sm:$0xff]  ;;  %v6248_v4 = vpack.c.bf16 %v473_v60, %v472_v59  ;;  %v450_v59 = vld [vmem:[%s11128_s1 + $0xcd0] sm:$0xff]  ;;  %v451_v60 = vld [vmem:[%s11128_s1 + $0xcd8] sm:$0xff] }
  0x9e   :  { %6117 = vmatprep.subr.bf16.mxu0 %v6116_v9  ;;  %v6166_v9 = vpack.c.bf16 %v367_v1, %v366_v0  ;;  %v6168_v11 = vpack.c.bf16 %v385_v6, %v384_v5  ;;  %v6216_v0 = vpack.c.bf16 %v441_v58, %v440_v41  ;;  %v424_v1 = vld [vmem:[%s11128_s1 + $0xc00] sm:$0xff]  ;;  %v457_v5 = vld [vmem:[%s11128_s1 + $0xd08] sm:$0xff]  ;;  %v442_v6 = vld [vmem:[%s11128_s1 + $0xc90] sm:$0xff] }
  0x9f   :  { %6147 = vmatpush3.bf16.msra.mxu1 %v6146_v8  ;;  %v417_v8 = vld [vmem:[%s11128_s1 + $0xbc8] sm:$0xff] }
  0xa0   :  { %6149 = vmatprep.subr.bf16.mxu1 %v6148_v14  ;;  %v369_v14 = vld [vmem:[%s11128_s1 + $0xa48] sm:$0xff]  ;;  %v6200_v16 = vpack.c.bf16 %v417_v8, %v416_v7  ;;  %v443_v7 = vld [vmem:[%s11128_s1 + $0xc98] sm:$0xff] }
  0xa1   :  { %6119 = vmatpush3.bf16.msra.mxu0 %v6118_v21  ;;  %v419_v21 = vld [vmem:[%s11128_s1 + $0xbd8] sm:$0xff]  ;;  %v465_v58 = vld [vmem:[%s11128_s1 + $0xd48] sm:$0xff] }
  0xa2   :  { %6153 = vmatprep.subr.bf16.mxu0 %v6152_v23  ;;  %v6202_v23 = vpack.c.bf16 %v401_v17, %v400_v15  ;;  %v6204_v28 = vpack.c.bf16 %v419_v21, %v418_v20  ;;  %v6220_v15 = vpack.c.bf16 %v443_v7, %v442_v6  ;;  %v427_v17 = vld [vmem:[%s11128_s1 + $0xc18] sm:$0xff]  ;;  %v444_v21 = vld [vmem:[%s11128_s1 + $0xca0] sm:$0xff] }
  0xa3   :  { %6151 = vmatpush3.bf16.msra.mxu1 %v6150_v22  ;;  %v6170_v22 = vpack.c.bf16 %v369_v14, %v368_v13  ;;  %v6218_v13 = vpack.c.bf16 %v425_v2, %v424_v1  ;;  %v459_v20 = vld [vmem:[%s11128_s1 + $0xd18] sm:$0xff]  ;;  %v6236_v1 = vpack.c.bf16 %v451_v60, %v450_v59  ;;  %v434_v2 = vld [vmem:[%s11128_s1 + $0xc50] sm:$0xff]  ;;  %v452_v7 = vld [vmem:[%s11128_s1 + $0xce0] sm:$0xff] }
  0xa4   :  { %6185 = vmatprep.subr.bf16.mxu1 %v6184_v27  ;;  %2288 = vmatmul.mubr.f32.vlgmr.msra.gmra.mrb[8].mxu0 %v7993_v54  ;;  %v364_v54 = vld [vmem:[%s11128_s1 + $0xa20] sm:$0xff]  ;;  %v402_v27 = vld [vmem:[%s11128_s1 + $0xb50] sm:$0xff]  ;;  %v467_v6 = vld [vmem:[%s11128_s1 + $0xd58] sm:$0xff] }
  0xa5   :  { %6155 = vmatpush3.bf16.msra.mxu0 %v6154_v35  ;;  %2427 = vmatprep.mubr.f32.mxu0 %v1366_v46  ;;  %v6162_v61 = vpack.c.bf16 %v365_v32, %v364_v54  ;;  %v421_v35 = vld [vmem:[%s11128_s1 + $0xbe8] sm:$0xff]  ;;  %v391_v46 = vld [vmem:[%s11128_s1 + $0xaf8] sm:$0xff]  ;;  %v374_v54 = vld [vmem:[%s11128_s1 + $0xa70] sm:$0xff] }
  0xa6   :  { %2358 = vmatmul.mubr.f32.vlgmr.msra.gmra.mrb[8].mxu1 %v8002_v57  ;;  %6157 = vmatprep.subr.bf16.mxu0 %v6156_v52  ;;  %v397_v57 = vld [vmem:[%s11128_s1 + $0xb28] sm:$0xff]  ;;  %v6206_v52 = vpack.c.bf16 %v403_v29, %v402_v27  ;;  %v6208_v42 = vpack.c.bf16 %v421_v35, %v420_v43  ;;  %v375_v32 = vld [vmem:[%s11128_s1 + $0xa78] sm:$0xff]  ;;  %v446_v35 = vld [vmem:[%s11128_s1 + $0xcb0] sm:$0xff] }
  0xa7   :  { %6187 = vmatpush3.bf16.msra.mxu1 %v6186_v36  ;;  %2497 = vmatprep.mubr.f32.mxu1 %v1367_v49  ;;  %v6194_v62 = vpack.c.bf16 %v397_v57, %v396_v55  ;;  %v6174_v36 = vpack.c.bf16 %v371_v26, %v370_v25  ;;  %v6178_v49 = vpack.c.bf16 %v373_v39, %v372_v38  ;;  %v406_v55 = vld [vmem:[%s11128_s1 + $0xb70] sm:$0xff]  ;;  %v407_v57 = vld [vmem:[%s11128_s1 + $0xb78] sm:$0xff]  ;;  %v477_v25 = vld [vmem:[%s11128_s1 + $0xda8] sm:$0xff] }
  0xa8   :  { %6189 = vmatprep.subr.bf16.mxu1 %v6188_v40  ;;  %v404_v40 = vld [vmem:[%s11128_s1 + $0xb60] sm:$0xff]  ;;  %v522_v59 = vld [vmem:[%s11128_s1 + $0xf10] sm:$0xff] }
  0xa9   :  { %6159 = vmatpush3.bf16.msra.mxu0 %v6158_v50  ;;  %v27_v50 = vld [vmem:[%s11127_s0 + $0x30] sm:$0xff] }
  0xaa   :  { %6161 = vmatprep.subr.bf16.mxu0 %v6160_v53  ;;  %v6180_v53 = vpack.c.bf16 %v391_v46, %v390_v45  ;;  %v8407_v8 = vrot.slane %v27_v50, %v7285_v10  ;;  %v462_v45 = vld [vmem:[%s11128_s1 + $0xd30] sm:$0xff] }
  0xab   :  { %6191 = vmatpush3.bf16.msra.mxu1 %v6190_v51  ;;  %v6210_v51 = vpack.c.bf16 %v405_v44, %v404_v40  ;;  %v431_v44 = vld [vmem:[%s11128_s1 + $0xc38] sm:$0xff] }
  0xac   :  { %6193 = vmatprep.subr.bf16.mxu1 %v6192_v56  ;;  %v6212_v56 = vpack.c.bf16 %v423_v48, %v422_v47  ;;  %v463_v47 = vld [vmem:[%s11128_s1 + $0xd38] sm:$0xff]  ;;  %v448_v48 = vld [vmem:[%s11128_s1 + $0xcc0] sm:$0xff] }
  0xad   :  { %6163 = vmatpush3.bf16.msra.mxu0 %v6162_v61  ;;  %v1368_v61 = vcombine.high %v27_v50, %v27_v50  ;;  %v480_v50 = vld [vmem:[%s11128_s1 + $0xdc0] sm:$0xff] }
  0xae   :  { %6165 = vmatprep.subr.bf16.mxu0 %v6164_v63  ;;  %v6214_v63 = vpack.c.bf16 %v407_v57, %v406_v55  ;;  %v432_v55 = vld [vmem:[%s11128_s1 + $0xc40] sm:$0xff] }
  0xaf   :  { %6195 = vmatpush3.bf16.msra.mxu1 %v6194_v62  ;;  %v6182_v62 = vpack.c.bf16 %v375_v32, %v374_v54  ;;  %v6262_v54 = vpack.c.bf16 %v463_v47, %v462_v45  ;;  %v464_v57 = vld [vmem:[%s11128_s1 + $0xd40] sm:$0xff]  ;;  %v489_v45 = vld [vmem:[%s11128_s1 + $0xe08] sm:$0xff] }
  0xb0   :  { %6197 = vmatprep.subr.bf16.mxu1 %v6196_v3  ;;  %v456_v3 = vld [vmem:[%s11128_s1 + $0xd00] sm:$0xff] }
  0xb1   :  { %6167 = vmatpush3.bf16.msra.mxu0 %v6166_v9  ;;  %v474_v9 = vld [vmem:[%s11128_s1 + $0xd90] sm:$0xff]  ;;  %v6250_v14 = vpack.c.bf16 %v457_v5, %v456_v3  ;;  %v435_v3 = vld [vmem:[%s11128_s1 + $0xc58] sm:$0xff] }
  0xb2   :  { %6169 = vmatprep.subr.bf16.mxu0 %v6168_v11  ;;  %v8416_v11 = vrot.slane %v1368_v61, %v7285_v10  ;;  %v482_v61 = vld [vmem:[%s11128_s1 + $0xdd0] sm:$0xff] }
  0xb3   :  { %6199 = vmatpush3.bf16.msra.mxu1 %v6198_v12  ;;  %v475_v12 = vld [vmem:[%s11128_s1 + $0xd98] sm:$0xff] }
  0xb4   :  { %6201 = vmatprep.subr.bf16.mxu1 %v6200_v16  ;;  %v426_v16 = vld [vmem:[%s11128_s1 + $0xc10] sm:$0xff]  ;;  %v6252_v19 = vpack.c.bf16 %v475_v12, %v474_v9  ;;  %v1384_v26 = vcombine.high %v8416_v11, %v8416_v11  ;;  %v453_v9 = vld [vmem:[%s11128_s1 + $0xce8] sm:$0xff]  ;;  %v484_v12 = vld [vmem:[%s11128_s1 + $0xde0] sm:$0xff] }
  0xb5   :  { %6171 = vmatpush3.bf16.msra.mxu0 %v6170_v22  ;;  %v445_v22 = vld [vmem:[%s11128_s1 + $0xca8] sm:$0xff]  ;;  %v6222_v27 = vpack.c.bf16 %v427_v17, %v426_v16  ;;  %v6240_v16 = vpack.c.bf16 %v453_v9, %v452_v7  ;;  %v436_v17 = vld [vmem:[%s11128_s1 + $0xc60] sm:$0xff] }
  0xb6   :  { %6173 = vmatprep.subr.bf16.mxu0 %v6172_v24  ;;  %v476_v24 = vld [vmem:[%s11128_s1 + $0xda0] sm:$0xff]  ;;  %v6224_v29 = vpack.c.bf16 %v445_v22, %v444_v21  ;;  %v469_v21 = vld [vmem:[%s11128_s1 + $0xd68] sm:$0xff]  ;;  %v454_v22 = vld [vmem:[%s11128_s1 + $0xcf0] sm:$0xff] }
  0xb7   :  { %6203 = vmatpush3.bf16.msra.mxu1 %v6202_v23  ;;  %v1383_v23 = vcombine.high %v8407_v8, %v8407_v8  ;;  %v6256_v43 = vpack.c.bf16 %v477_v25, %v476_v24  ;;  %v486_v24 = vld [vmem:[%s11128_s1 + $0xdf0] sm:$0xff]  ;;  %v487_v25 = vld [vmem:[%s11128_s1 + $0xdf8] sm:$0xff]  ;;  %v493_v7 = vld [vmem:[%s11128_s1 + $0xe28] sm:$0xff] }
  0xb8   :  { %6205 = vmatprep.subr.bf16.mxu1 %v6204_v28  ;;  %v6254_v28 = vpack.c.bf16 %v459_v20, %v458_v18  ;;  %v437_v18 = vld [vmem:[%s11128_s1 + $0xc68] sm:$0xff]  ;;  %v524_v9 = vld [vmem:[%s11128_s1 + $0xf20] sm:$0xff] }
  0xb9   :  { %6175 = vmatpush3.bf16.msra.mxu0 %v6174_v36  ;;  %v447_v36 = vld [vmem:[%s11128_s1 + $0xcb8] sm:$0xff] }
  0xba   :  { %6177 = vmatprep.subr.bf16.mxu0 %v6176_v37  ;;  %v479_v37 = vld [vmem:[%s11128_s1 + $0xdb8] sm:$0xff]  ;;  %v6228_v40 = vpack.c.bf16 %v447_v36, %v446_v35  ;;  %v504_v35 = vld [vmem:[%s11128_s1 + $0xe80] sm:$0xff]  ;;  %v505_v36 = vld [vmem:[%s11128_s1 + $0xe88] sm:$0xff] }
  0xbb   :  { %6207 = vmatpush3.bf16.msra.mxu1 %v6206_v52  ;;  %v478_v52 = vld [vmem:[%s11128_s1 + $0xdb0] sm:$0xff] }
  0xbc   :  { %6209 = vmatprep.subr.bf16.mxu1 %v6208_v42  ;;  %v430_v42 = vld [vmem:[%s11128_s1 + $0xc30] sm:$0xff]  ;;  %v6260_v46 = vpack.c.bf16 %v479_v37, %v478_v52  ;;  %v536_v52 = vld [vmem:[%s11128_s1 + $0xf80] sm:$0xff]  ;;  %v537_v37 = vld [vmem:[%s11128_s1 + $0xf88] sm:$0xff] }
  0xbd   :  { %6179 = vmatpush3.bf16.msra.mxu0 %v6178_v49  ;;  %v449_v49 = vld [vmem:[%s11128_s1 + $0xcc8] sm:$0xff]  ;;  %v6312_v47 = vpack.c.bf16 %v537_v37, %v536_v52  ;;  %v514_v52 = vld [vmem:[%s11128_s1 + $0xed0] sm:$0xff]  ;;  %v515_v37 = vld [vmem:[%s11128_s1 + $0xed8] sm:$0xff] }
  0xbe   :  { %6181 = vmatprep.subr.bf16.mxu0 %v6180_v53  ;;  %v6230_v53 = vpack.c.bf16 %v431_v44, %v430_v42  ;;  %v6232_v32 = vpack.c.bf16 %v449_v49, %v448_v48  ;;  %v6280_v42 = vpack.c.bf16 %v505_v36, %v504_v35  ;;  %v488_v44 = vld [vmem:[%s11128_s1 + $0xe00] sm:$0xff]  ;;  %v521_v48 = vld [vmem:[%s11128_s1 + $0xf08] sm:$0xff]  ;;  %v506_v49 = vld [vmem:[%s11128_s1 + $0xe90] sm:$0xff] }
  0xbf   :  { %6211 = vmatpush3.bf16.msra.mxu1 %v6210_v51  ;;  %v481_v51 = vld [vmem:[%s11128_s1 + $0xdc8] sm:$0xff] }
  0xc0   :  { %6213 = vmatprep.subr.bf16.mxu1 %v6212_v56  ;;  %v433_v56 = vld [vmem:[%s11128_s1 + $0xc48] sm:$0xff]  ;;  %v6264_v41 = vpack.c.bf16 %v481_v51, %v480_v50  ;;  %v507_v50 = vld [vmem:[%s11128_s1 + $0xe98] sm:$0xff] }
  0xc1   :  { %6183 = vmatpush3.bf16.msra.mxu0 %v6182_v62  ;;  %v483_v62 = vld [vmem:[%s11128_s1 + $0xdd8] sm:$0xff]  ;;  %v529_v36 = vld [vmem:[%s11128_s1 + $0xf48] sm:$0xff] }
  0xc2   :  { %6217 = vmatprep.subr.bf16.mxu0 %v6216_v0  ;;  %v6266_v0 = vpack.c.bf16 %v465_v58, %v464_v57  ;;  %v6268_v5 = vpack.c.bf16 %v483_v62, %v482_v61  ;;  %v6284_v57 = vpack.c.bf16 %v507_v50, %v506_v49  ;;  %v491_v58 = vld [vmem:[%s11128_s1 + $0xe18] sm:$0xff]  ;;  %v508_v62 = vld [vmem:[%s11128_s1 + $0xea0] sm:$0xff] }
  0xc3   :  { %6215 = vmatpush3.bf16.msra.mxu1 %v6214_v63  ;;  %v6234_v63 = vpack.c.bf16 %v433_v56, %v432_v55  ;;  %v6282_v55 = vpack.c.bf16 %v489_v45, %v488_v44  ;;  %v523_v61 = vld [vmem:[%s11128_s1 + $0xf18] sm:$0xff]  ;;  %v6300_v44 = vpack.c.bf16 %v515_v37, %v514_v52  ;;  %v498_v45 = vld [vmem:[%s11128_s1 + $0xe50] sm:$0xff]  ;;  %v516_v50 = vld [vmem:[%s11128_s1 + $0xee0] sm:$0xff] }
  0xc4   :  { %6249 = vmatprep.subr.bf16.mxu1 %v6248_v4  ;;  %2428 = vmatmul.mubr.f32.vlgmr.msra.gmra.mrb[10].mxu0 %v8200_v31  ;;  %v428_v31 = vld [vmem:[%s11128_s1 + $0xc20] sm:$0xff]  ;;  %v466_v4 = vld [vmem:[%s11128_s1 + $0xd50] sm:$0xff]  ;;  %v531_v49 = vld [vmem:[%s11128_s1 + $0xf58] sm:$0xff] }
  0xc5   :  { %6219 = vmatpush3.bf16.msra.mxu0 %v6218_v13  ;;  %2567 = vmatprep.mubr.f32.mxu0 %v1383_v23  ;;  %v6226_v38 = vpack.c.bf16 %v429_v30, %v428_v31  ;;  %v485_v13 = vld [vmem:[%s11128_s1 + $0xde8] sm:$0xff]  ;;  %v455_v23 = vld [vmem:[%s11128_s1 + $0xcf8] sm:$0xff]  ;;  %v438_v31 = vld [vmem:[%s11128_s1 + $0xc70] sm:$0xff] }
  0xc6   :  { %2498 = vmatmul.mubr.f32.vlgmr.msra.gmra.mrb[10].mxu1 %v8209_v34  ;;  %6221 = vmatprep.subr.bf16.mxu0 %v6220_v15  ;;  %v461_v34 = vld [vmem:[%s11128_s1 + $0xd28] sm:$0xff]  ;;  %v6270_v15 = vpack.c.bf16 %v467_v6, %v466_v4  ;;  %v6272_v20 = vpack.c.bf16 %v485_v13, %v484_v12  ;;  %v439_v30 = vld [vmem:[%s11128_s1 + $0xc78] sm:$0xff]  ;;  %v510_v13 = vld [vmem:[%s11128_s1 + $0xeb0] sm:$0xff] }
  0xc7   :  { %6251 = vmatpush3.bf16.msra.mxu1 %v6250_v14  ;;  %2637 = vmatprep.mubr.f32.mxu1 %v1384_v26  ;;  %v6258_v39 = vpack.c.bf16 %v461_v34, %v460_v33  ;;  %v6238_v14 = vpack.c.bf16 %v435_v3, %v434_v2  ;;  %v6242_v26 = vpack.c.bf16 %v437_v18, %v436_v17  ;;  %v470_v33 = vld [vmem:[%s11128_s1 + $0xd70] sm:$0xff]  ;;  %v471_v34 = vld [vmem:[%s11128_s1 + $0xd78] sm:$0xff]  ;;  %v541_v2 = vld [vmem:[%s11128_s1 + $0xfa8] sm:$0xff] }
  0xc8   :  { %6253 = vmatprep.subr.bf16.mxu1 %v6252_v19  ;;  %v468_v19 = vld [vmem:[%s11128_s1 + $0xd60] sm:$0xff]  ;;  %v602_v37 = vld [vmem:[%s11128_s1 + $0x1190] sm:$0xff] }
  0xc9   :  { %6223 = vmatpush3.bf16.msra.mxu0 %v6222_v27  ;;  %v28_v27 = vld [vmem:[%s11127_s0 + $0x38] sm:$0xff] }
  0xca   :  { %6225 = vmatprep.subr.bf16.mxu0 %v6224_v29  ;;  %v6244_v29 = vpack.c.bf16 %v455_v23, %v454_v22  ;;  %v8614_v51 = vrot.slane %v28_v27, %v7285_v10  ;;  %v526_v22 = vld [vmem:[%s11128_s1 + $0xf30] sm:$0xff] }
  0xcb   :  { %6255 = vmatpush3.bf16.msra.mxu1 %v6254_v28  ;;  %v6274_v28 = vpack.c.bf16 %v469_v21, %v468_v19  ;;  %v495_v21 = vld [vmem:[%s11128_s1 + $0xe38] sm:$0xff] }
  0xcc   :  { %6257 = vmatprep.subr.bf16.mxu1 %v6256_v43  ;;  %v6276_v43 = vpack.c.bf16 %v487_v25, %v486_v24  ;;  %v527_v24 = vld [vmem:[%s11128_s1 + $0xf38] sm:$0xff]  ;;  %v512_v25 = vld [vmem:[%s11128_s1 + $0xec0] sm:$0xff] }
  0xcd   :  { %6227 = vmatpush3.bf16.msra.mxu0 %v6226_v38  ;;  %v1385_v38 = vcombine.high %v28_v27, %v28_v27  ;;  %v544_v27 = vld [vmem:[%s11128_s1 + $0xfc0] sm:$0xff] }
  0xce   :  { %6229 = vmatprep.subr.bf16.mxu0 %v6228_v40  ;;  %v6278_v40 = vpack.c.bf16 %v471_v34, %v470_v33  ;;  %v496_v33 = vld [vmem:[%s11128_s1 + $0xe40] sm:$0xff] }
  0xcf   :  { %6259 = vmatpush3.bf16.msra.mxu1 %v6258_v39  ;;  %v6246_v39 = vpack.c.bf16 %v439_v30, %v438_v31  ;;  %v6326_v31 = vpack.c.bf16 %v527_v24, %v526_v22  ;;  %v528_v34 = vld [vmem:[%s11128_s1 + $0xf40] sm:$0xff]  ;;  %v569_v22 = vld [vmem:[%s11128_s1 + $0x1088] sm:$0xff] }
  0xd0   :  { %6261 = vmatprep.subr.bf16.mxu1 %v6260_v46  ;;  %v520_v46 = vld [vmem:[%s11128_s1 + $0xf00] sm:$0xff]  ;;  %v601_v24 = vld [vmem:[%s11128_s1 + $0x1188] sm:$0xff] }
  0xd1   :  { %6231 = vmatpush3.bf16.msra.mxu0 %v6230_v53  ;;  %v538_v53 = vld [vmem:[%s11128_s1 + $0xf90] sm:$0xff]  ;;  %v6314_v56 = vpack.c.bf16 %v521_v48, %v520_v46  ;;  %v499_v46 = vld [vmem:[%s11128_s1 + $0xe58] sm:$0xff] }
  0xd2   :  { %6233 = vmatprep.subr.bf16.mxu0 %v6232_v32  ;;  %v8623_v32 = vrot.slane %v1385_v38, %v7285_v10  ;;  %v546_v38 = vld [vmem:[%s11128_s1 + $0xfd0] sm:$0xff] }
  0xd3   :  { %6263 = vmatpush3.bf16.msra.mxu1 %v6262_v54  ;;  %v539_v54 = vld [vmem:[%s11128_s1 + $0xf98] sm:$0xff] }
  0xd4   :  { %6265 = vmatprep.subr.bf16.mxu1 %v6264_v41  ;;  %v490_v41 = vld [vmem:[%s11128_s1 + $0xe10] sm:$0xff]  ;;  %v6316_v60 = vpack.c.bf16 %v539_v54, %v538_v53  ;;  %v1401_v3 = vcombine.high %v8623_v32, %v8623_v32  ;;  %v517_v53 = vld [vmem:[%s11128_s1 + $0xee8] sm:$0xff]  ;;  %v548_v54 = vld [vmem:[%s11128_s1 + $0xfe0] sm:$0xff] }
  0xd5   :  { %6235 = vmatpush3.bf16.msra.mxu0 %v6234_v63  ;;  %v509_v63 = vld [vmem:[%s11128_s1 + $0xea8] sm:$0xff]  ;;  %v6286_v4 = vpack.c.bf16 %v491_v58, %v490_v41  ;;  %v6304_v41 = vpack.c.bf16 %v517_v53, %v516_v50  ;;  %v500_v58 = vld [vmem:[%s11128_s1 + $0xe60] sm:$0xff] }
  0xd6   :  { %6237 = vmatprep.subr.bf16.mxu0 %v6236_v1  ;;  %v540_v1 = vld [vmem:[%s11128_s1 + $0xfa0] sm:$0xff]  ;;  %v6288_v6 = vpack.c.bf16 %v509_v63, %v508_v62  ;;  %v533_v63 = vld [vmem:[%s11128_s1 + $0xf68] sm:$0xff] }
  0xd7   :  { %6267 = vmatpush3.bf16.msra.mxu1 %v6266_v0  ;;  %v1400_v0 = vcombine.high %v8614_v51, %v8614_v51  ;;  %v6320_v12 = vpack.c.bf16 %v541_v2, %v540_v1  ;;  %v519_v1 = vld [vmem:[%s11128_s1 + $0xef8] sm:$0xff]  ;;  %v4438_v2 = vld [vmem:[%s11129_s2] ss:$0 sm:$0xff]  ;;  %v573_v53 = vld [vmem:[%s11128_s1 + $0x10a8] sm:$0xff] }
  0xd8   :  { %6269 = vmatprep.subr.bf16.mxu1 %v6268_v5  ;;  %v6318_v5 = vpack.c.bf16 %v523_v61, %v522_v59  ;;  %v501_v59 = vld [vmem:[%s11128_s1 + $0xe68] sm:$0xff]  ;;  %v572_v50 = vld [vmem:[%s11128_s1 + $0x10a0] sm:$0xff] }
  0xd9   :  { %6239 = vmatpush3.bf16.msra.mxu0 %v6238_v14  ;;  %v511_v14 = vld [vmem:[%s11128_s1 + $0xeb8] sm:$0xff] }
  0xda   :  { %6241 = vmatprep.subr.bf16.mxu0 %v6240_v16  ;;  %v543_v16 = vld [vmem:[%s11128_s1 + $0xfb8] sm:$0xff]  ;;  %v6292_v19 = vpack.c.bf16 %v511_v14, %v510_v13 }
  0xdb   :  { %6271 = vmatpush3.bf16.msra.mxu1 %v6270_v15  ;;  %v542_v15 = vld [vmem:[%s11128_s1 + $0xfb0] sm:$0xff] }
  0xdc   :  { %6273 = vmatprep.subr.bf16.mxu1 %v6272_v20  ;;  %v494_v20 = vld [vmem:[%s11128_s1 + $0xe30] sm:$0xff]  ;;  %v6324_v23 = vpack.c.bf16 %v543_v16, %v542_v15  ;;  %v503_v16 = vld [vmem:[%s11128_s1 + $0xe78] sm:$0xff] }
  0xdd   :  { %6243 = vmatpush3.bf16.msra.mxu0 %v6242_v26  ;;  %v513_v26 = vld [vmem:[%s11128_s1 + $0xec8] sm:$0xff]  ;;  %v502_v15 = vld [vmem:[%s11128_s1 + $0xe70] sm:$0xff] }
  0xde   :  { %6245 = vmatprep.subr.bf16.mxu0 %v6244_v29  ;;  %v6294_v29 = vpack.c.bf16 %v495_v21, %v494_v20  ;;  %v6296_v30 = vpack.c.bf16 %v513_v26, %v512_v25  ;;  %v535_v20 = vld [vmem:[%s11128_s1 + $0xf78] sm:$0xff]  ;;  %v568_v21 = vld [vmem:[%s11128_s1 + $0x1080] sm:$0xff] }
  0xdf   :  { %6275 = vmatpush3.bf16.msra.mxu1 %v6274_v28  ;;  %v545_v28 = vld [vmem:[%s11128_s1 + $0xfc8] sm:$0xff] }
  0xe0   :  { %6277 = vmatprep.subr.bf16.mxu1 %v6276_v43  ;;  %v497_v43 = vld [vmem:[%s11128_s1 + $0xe48] sm:$0xff]  ;;  %v6328_v35 = vpack.c.bf16 %v545_v28, %v544_v27  ;;  %v6310_v27 = vpack.c.bf16 %v503_v16, %v502_v15 }
  0xe1   :  { %6247 = vmatpush3.bf16.msra.mxu0 %v6246_v39  ;;  %v547_v39 = vld [vmem:[%s11128_s1 + $0xfd8] sm:$0xff]  ;;  %v609_v15 = vld [vmem:[%s11128_s1 + $0x11c8] sm:$0xff] }
  0xe2   :  { %6281 = vmatprep.subr.bf16.mxu0 %v6280_v42  ;;  %v6330_v42 = vpack.c.bf16 %v529_v36, %v528_v34  ;;  %v6332_v48 = vpack.c.bf16 %v547_v39, %v546_v38  ;;  %v585_v34 = vld [vmem:[%s11128_s1 + $0x1108] sm:$0xff]  ;;  %v571_v36 = vld [vmem:[%s11128_s1 + $0x1098] sm:$0xff] }
  0xe3   :  { %6279 = vmatpush3.bf16.msra.mxu1 %v6278_v40  ;;  %v6298_v40 = vpack.c.bf16 %v497_v43, %v496_v33  ;;  %v584_v33 = vld [vmem:[%s11128_s1 + $0x1100] sm:$0xff]  ;;  %v603_v38 = vld [vmem:[%s11128_s1 + $0x1198] sm:$0xff] }
  0xe4   :  { %6313 = vmatprep.subr.bf16.mxu1 %v6312_v47  ;;  %2568 = vmatmul.mubr.f32.vlgmr.msra.gmra.mrb[12].mxu0 %v8407_v8  ;;  %v492_v8 = vld [vmem:[%s11128_s1 + $0xe20] sm:$0xff]  ;;  %v530_v47 = vld [vmem:[%s11128_s1 + $0xf50] sm:$0xff] }
  0xe5   :  { %6283 = vmatpush3.bf16.msra.mxu0 %v6282_v55  ;;  %2707 = vmatprep.mubr.f32.mxu0 %v1400_v0  ;;  %v6290_v17 = vpack.c.bf16 %v493_v7, %v492_v8  ;;  %v549_v55 = vld [vmem:[%s11128_s1 + $0xfe8] sm:$0xff]  ;;  %v518_v0 = vld [vmem:[%s11128_s1 + $0xef0] sm:$0xff] }
  0xe6   :  { %2638 = vmatmul.mubr.f32.vlgmr.msra.gmra.mrb[12].mxu1 %v8416_v11  ;;  %6285 = vmatprep.subr.bf16.mxu0 %v6284_v57  ;;  %v525_v11 = vld [vmem:[%s11128_s1 + $0xf28] sm:$0xff]  ;;  %v6334_v57 = vpack.c.bf16 %v531_v49, %v530_v47  ;;  %v6336_v62 = vpack.c.bf16 %v549_v55, %v548_v54  ;;  %v6308_v14 = vpack.c.bf16 %v519_v1, %v518_v0  ;;  %v586_v47 = vld [vmem:[%s11128_s1 + $0x1110] sm:$0xff]  ;;  %v587_v49 = vld [vmem:[%s11128_s1 + $0x1118] sm:$0xff] }
  0xe7   :  { %6315 = vmatpush3.bf16.msra.mxu1 %v6314_v56  ;;  %2777 = vmatprep.mubr.f32.mxu1 %v1401_v3  ;;  %v6322_v18 = vpack.c.bf16 %v525_v11, %v524_v9  ;;  %v6302_v56 = vpack.c.bf16 %v499_v46, %v498_v45  ;;  %v6306_v9 = vpack.c.bf16 %v501_v59, %v500_v58  ;;  %v554_v45 = vld [vmem:[%s11128_s1 + $0x1010] sm:$0xff]  ;;  %v555_v46 = vld [vmem:[%s11128_s1 + $0x1018] sm:$0xff]  ;;  %v604_v55 = vld [vmem:[%s11128_s1 + $0x11a0] sm:$0xff] }
  0xe8   :  { %6317 = vmatprep.subr.bf16.mxu1 %v6316_v60  ;;  %v532_v60 = vld [vmem:[%s11128_s1 + $0xf60] sm:$0xff]  ;;  %v6382_v58 = vpack.c.bf16 %v587_v49, %v586_v47  ;;  %v6352_v59 = vpack.c.bf16 %v573_v53, %v572_v50  ;;  %v575_v0 = vld [vmem:[%s11128_s1 + $0x10b8] sm:$0xff]  ;;  %v606_v1 = vld [vmem:[%s11128_s1 + $0x11b0] sm:$0xff] }
  0xe9   :  { %6287 = vmatpush3.bf16.msra.mxu0 %v6286_v4  ;;  %v6338_v13 = vpack.c.bf16 %v533_v63, %v532_v60  ;;  %v557_v60 = vld [vmem:[%s11128_s1 + $0x1028] sm:$0xff]  ;;  %v574_v63 = vld [vmem:[%s11128_s1 + $0x10b0] sm:$0xff] }
  0xea   :  { %6289 = vmatprep.subr.bf16.mxu0 %v6288_v6  ;;  %v551_v6 = vld [vmem:[%s11128_s1 + $0xff8] sm:$0xff] }
  0xeb   :  { %6319 = vmatpush3.bf16.msra.mxu1 %v6318_v5  ;;  %v550_v5 = vld [vmem:[%s11128_s1 + $0xff0] sm:$0xff] }
  0xec   :  { %6321 = vmatprep.subr.bf16.mxu1 %v6320_v12  ;;  %v29_v12 = vld [vmem:[%s11127_s0 + $0x40] sm:$0xff] }
  0xed   :  { %6291 = vmatpush3.bf16.msra.mxu0 %v6290_v17  ;;  %v534_v17 = vld [vmem:[%s11128_s1 + $0xf70] sm:$0xff]  ;;  %v1402_v25 = vcombine.high %v29_v12, %v29_v12  ;;  %v8826_v52 = vrot.slane %v29_v12, %v7285_v10  ;;  %v591_v12 = vld [vmem:[%s11128_s1 + $0x1138] sm:$0xff] }
  0xee   :  { %6293 = vmatprep.subr.bf16.mxu0 %v6292_v19  ;;  %v6340_v19 = vpack.c.bf16 %v551_v6, %v550_v5  ;;  %v6342_v28 = vpack.c.bf16 %v535_v20, %v534_v17  ;;  %v6356_v5 = vpack.c.bf16 %v575_v0, %v574_v63  ;;  %v558_v6 = vld [vmem:[%s11128_s1 + $0x1030] sm:$0xff]  ;;  %v560_v17 = vld [vmem:[%s11128_s1 + $0x1040] sm:$0xff]  ;;  %v561_v20 = vld [vmem:[%s11128_s1 + $0x1048] sm:$0xff] }
  0xef   :  { %6323 = vmatpush3.bf16.msra.mxu1 %v6322_v18  ;;  %v8835_v39 = vrot.slane %v1402_v25, %v7285_v10  ;;  %v1417_v54 = vcombine.high %v8826_v52, %v8826_v52 }
  0xf0   :  { %6325 = vmatprep.subr.bf16.mxu1 %v6324_v23  ;;  %v600_v23 = vld [vmem:[%s11128_s1 + $0x1180] sm:$0xff] }
  0xf1   :  { %6295 = vmatpush3.bf16.msra.mxu0 %v6294_v29  ;;  %v6344_v29 = vpack.c.bf16 %v569_v22, %v568_v21  ;;  %v6376_v43 = vpack.c.bf16 %v601_v24, %v600_v23  ;;  %v592_v21 = vld [vmem:[%s11128_s1 + $0x1140] sm:$0xff] }
  0xf2   :  { %6297 = vmatprep.subr.bf16.mxu0 %v6296_v30  ;;  %v553_v30 = vld [vmem:[%s11128_s1 + $0x1008] sm:$0xff] }
  0xf3   :  { %6327 = vmatpush3.bf16.msra.mxu1 %v6326_v31  ;;  %v552_v31 = vld [vmem:[%s11128_s1 + $0x1000] sm:$0xff] }
  0xf4   :  { %6329 = vmatprep.subr.bf16.mxu1 %v6328_v35  ;;  %v570_v35 = vld [vmem:[%s11128_s1 + $0x1090] sm:$0xff] }
  0xf5   :  { %6299 = vmatpush3.bf16.msra.mxu0 %v6298_v40  ;;  %v6346_v40 = vpack.c.bf16 %v553_v30, %v552_v31 }
  0xf6   :  { %6301 = vmatprep.subr.bf16.mxu0 %v6300_v44  ;;  %v6348_v44 = vpack.c.bf16 %v571_v36, %v570_v35 }
  0xf7   :  { %6331 = vmatpush3.bf16.msra.mxu1 %v6330_v42  ;;  %v4474_v61 = vpop.f32.mrb[0].mxu0  ;;  %v6378_v42 = vpack.c.bf16 %v585_v34, %v584_v33 }
  0xf8   :  { %6333 = vmatprep.subr.bf16.mxu1 %v6332_v48  ;;  %v4475_v3 = vpop.f32.mrb[1].mxu0  ;;  %v6380_v48 = vpack.c.bf16 %v603_v38, %v602_v37 }
  0xf9   :  { %v4509_v4 = vpop.f32.mrb[0].mxu1  ;;  %v4476_v8 = vadd.f32 %v4475_v3, %v4474_v61  ;;  %6303 = vmatpush3.bf16.msra.mxu0 %v6302_v56  ;;  %v605_v56 = vld [vmem:[%s11128_s1 + $0x11a8] sm:$0xff]  ;;  %v588_v61 = vld [vmem:[%s11128_s1 + $0x1120] sm:$0xff] }
  0xfa   :  { %v4510_v7 = vpop.f32.mrb[1].mxu1  ;;  %6305 = vmatprep.subr.bf16.mxu0 %v6304_v41  ;;  %v6350_v41 = vpack.c.bf16 %v555_v46, %v554_v45 }
  0xfb   :  { %v4511_v11 = vadd.f32 %v4510_v7, %v4509_v4  ;;  %6335 = vmatpush3.bf16.msra.mxu1 %v6334_v57  ;;  %v1730_v18 = vadd.f32 %v4476_v8, %v4438_v2  ;;  %v1418_v57 = vcombine.high %v8835_v39, %v8835_v39  ;;  %v607_v2 = vld [vmem:[%s11128_s1 + $0x11b8] sm:$0xff]  ;;  %v590_v7 = vld [vmem:[%s11128_s1 + $0x1130] sm:$0xff] }
  0xfc   :  { %6337 = vmatprep.subr.bf16.mxu1 %v6336_v62  ;;  %v6384_v62 = vpack.c.bf16 %v605_v56, %v604_v55  ;;  %v559_v8 = vld [vmem:[%s11128_s1 + $0x1038] sm:$0xff] }
  0xfd   :  { %v8805_v26 = vadd.f32 %v4511_v11, %v1730_v18  ;;  %6307 = vmatpush3.bf16.msra.mxu0 %v6306_v9  ;;  %v6388_v9 = vpack.c.bf16 %v607_v2, %v606_v1  ;;  %v576_v11 = vld [vmem:[%s11128_s1 + $0x10c0] sm:$0xff]  ;;  %v6358_v16 = vpack.c.bf16 %v559_v8, %v558_v6  ;;  %v6390_v18 = vpack.c.bf16 %v591_v12, %v590_v7 }
  0xfe   :  { %6309 = vmatprep.subr.bf16.mxu0 %v6308_v14  ;;  %v608_v14 = vld [vmem:[%s11128_s1 + $0x11c0] sm:$0xff] }
  0xff   :  { %6339 = vmatpush3.bf16.msra.mxu1 %v6338_v13  ;;  %v577_v13 = vld [vmem:[%s11128_s1 + $0x10c8] sm:$0xff] }
 0x100   :  { %6341 = vmatprep.subr.bf16.mxu1 %v6340_v19  ;;  %v6360_v19 = vpack.c.bf16 %v577_v13, %v576_v11 }
 0x101   :  { %6311 = vmatpush3.bf16.msra.mxu0 %v6310_v27 }
 0x102   :  { %6345 = vmatprep.subr.bf16.mxu0 %v6344_v29 }
 0x103   :  { %6343 = vmatpush3.bf16.msra.mxu1 %v6342_v28 }
 0x104   :  { %6377 = vmatprep.subr.bf16.mxu1 %v6376_v43  ;;  %2708 = vmatmul.mubr.f32.vlgmr.msra.gmra.mrb[14].mxu0 %v8614_v51  ;;  %v556_v51 = vld [vmem:[%s11128_s1 + $0x1020] sm:$0xff] }
 0x105   :  { %6347 = vmatpush3.bf16.msra.mxu0 %v6346_v40  ;;  %2847 = vmatprep.mubr.f32.mxu0 %v1417_v54  ;;  %v6354_v3 = vpack.c.bf16 %v557_v60, %v556_v51 }
 0x106   :  { %2778 = vmatmul.mubr.f32.vlgmr.msra.gmra.mrb[14].mxu1 %v8623_v32  ;;  %6349 = vmatprep.subr.bf16.mxu0 %v6348_v44  ;;  %v589_v32 = vld [vmem:[%s11128_s1 + $0x1128] sm:$0xff] }
 0x107   :  { %6379 = vmatpush3.bf16.msra.mxu1 %v6378_v42  ;;  %2917 = vmatprep.mubr.f32.mxu1 %v1418_v57  ;;  %v6386_v4 = vpack.c.bf16 %v589_v32, %v588_v61 }
 0x108   :  { %6381 = vmatprep.subr.bf16.mxu1 %v6380_v48 }
 0x109   :  { %6351 = vmatpush3.bf16.msra.mxu0 %v6350_v41 }
 0x10a   :  { %6353 = vmatprep.subr.bf16.mxu0 %v6352_v59 }
 0x10b   :  { %6383 = vmatpush3.bf16.msra.mxu1 %v6382_v58 }
 0x10c   :  { %6385 = vmatprep.subr.bf16.mxu1 %v6384_v62 }
 0x10d   :  { %6355 = vmatpush3.bf16.msra.mxu0 %v6354_v3 }
 0x10e   :  { %6357 = vmatprep.subr.bf16.mxu0 %v6356_v5 }
 0x10f   :  { %6387 = vmatpush3.bf16.msra.mxu1 %v6386_v4 }
 0x110   :  { %10 = vsyncpa [#allocation3], 0  ;;  %6389 = vmatprep.subr.bf16.mxu1 %v6388_v9  ;;  %v6392_v22 = vpack.c.bf16 %v609_v15, %v608_v14  ;;  %v593_v23 = vld [vmem:[%s11128_s1 + $0x1148] sm:$0xff]  ;;  %v578_v24 = vld [vmem:[%s11128_s1 + $0x10d0] sm:$0xff]  ;;  %v6362_v29 = vpack.c.bf16 %v561_v20, %v560_v17  ;;  %vm7108_vm0 = vmmov 0   ;;  %vm4348_vm1 = vcmask 1043456  }
 0x111   :  { %v579_v25 = vld [vmem:[%s11128_s1 + $0x10d8] sm:$0xff]  ;;  %v610_v27 = vld [vmem:[%s11128_s1 + $0x11d0] sm:$0xff]  ;;  %6359 = vmatpush3.bf16.msra.mxu0 %v6358_v16  ;;  %v6394_v31 = vpack.c.bf16 %v593_v23, %v592_v21  ;;  %v580_v37 = vld [vmem:[%s11128_s1 + $0x10e0] sm:$0xff]  ;;  %vm4344_vm2 = vcmask 818176   ;;  %s7110_s24 = smov [#allocation2]   ;;  %vm4422_vm3 = vcmask 17408  }
 0x112   :  { %v611_v28 = vld [vmem:[%s11128_s1 + $0x11d8] sm:$0xff]  ;;  %6361 = vmatprep.subr.bf16.mxu0 %v6360_v19  ;;  %v6364_v30 = vpack.c.bf16 %v579_v25, %v578_v24  ;;  %v562_v33 = vld [vmem:[%s11128_s1 + $0x1050] sm:$0xff]  ;;  %v581_v38 = vld [vmem:[%s11128_s1 + $0x10e8] sm:$0xff] }
 0x113   :  { %6391 = vmatpush3.bf16.msra.mxu1 %v6390_v18  ;;  %v563_v43 = vld [vmem:[%s11128_s1 + $0x1058] sm:$0xff]  ;;  %v594_v34 = vld [vmem:[%s11128_s1 + $0x1150] sm:$0xff]  ;;  %v6396_v35 = vpack.c.bf16 %v611_v28, %v610_v27  ;;  %v612_v40 = vld [vmem:[%s11128_s1 + $0x11e0] sm:$0xff]  ;;  %v6368_v46 = vpack.c.bf16 %v581_v38, %v580_v37 }
 0x114   :  { %6393 = vmatprep.subr.bf16.mxu1 %v6392_v22  ;;  %v595_v36 = vld [vmem:[%s11128_s1 + $0x1158] sm:$0xff]  ;;  %v613_v42 = vld [vmem:[%s11128_s1 + $0x11e8] sm:$0xff]  ;;  %v6366_v44 = vpack.c.bf16 %v563_v43, %v562_v33  ;;  %v564_v47 = vld [vmem:[%s11128_s1 + $0x1060] sm:$0xff] }
 0x115   :  { %6363 = vmatpush3.bf16.msra.mxu0 %v6362_v29  ;;  %v6398_v45 = vpack.c.bf16 %v595_v36, %v594_v34  ;;  %v565_v48 = vld [vmem:[%s11128_s1 + $0x1068] sm:$0xff]  ;;  %v596_v49 = vld [vmem:[%s11128_s1 + $0x1160] sm:$0xff]  ;;  %v6400_v53 = vpack.c.bf16 %v613_v42, %v612_v40  ;;  %v582_v55 = vld [vmem:[%s11128_s1 + $0x10f0] sm:$0xff] }
 0x116   :  { %6365 = vmatprep.subr.bf16.mxu0 %v6364_v30  ;;  %v597_v54 = vld [vmem:[%s11128_s1 + $0x1168] sm:$0xff]  ;;  %v583_v56 = vld [vmem:[%s11128_s1 + $0x10f8] sm:$0xff]  ;;  %v614_v58 = vld [vmem:[%s11128_s1 + $0x11f0] sm:$0xff]  ;;  %v6370_v61 = vpack.c.bf16 %v565_v48, %v564_v47 }
 0x117   :  { %6395 = vmatpush3.bf16.msra.mxu1 %v6394_v31  ;;  %v4544_v50 = vpop.f32.mrb[2].mxu0  ;;  %v615_v59 = vld [vmem:[%s11128_s1 + $0x11f8] sm:$0xff]  ;;  %v30_v62 = vld [vmem:[%s11127_s0 + $0x48] sm:$0xff]  ;;  %v6402_v63 = vpack.c.bf16 %v597_v54, %v596_v49  ;;  %v6372_v0 = vpack.c.bf16 %v583_v56, %v582_v55  ;;  %v566_v1 = vld [vmem:[%s11128_s1 + $0x1070] sm:$0xff] }
 0x118   :  { %6397 = vmatprep.subr.bf16.mxu1 %v6396_v35  ;;  %v4545_v57 = vpop.f32.mrb[3].mxu0  ;;  %v567_v2 = vld [vmem:[%s11128_s1 + $0x1078] sm:$0xff]  ;;  %v598_v3 = vld [vmem:[%s11128_s1 + $0x1170] sm:$0xff]  ;;  %v6404_v5 = vpack.c.bf16 %v615_v59, %v614_v58  ;;  %v632_v8 = vld [vmem:[%s11128_s1 + $0x1280] sm:$0xff]  ;;  %v1419_v12 = vcombine.high %v30_v62, %v30_v62  ;;  %v9036_v23 = vrot.slane %v30_v62, %v7285_v10 }
 0x119   :  { %v4579_v41 = vpop.f32.mrb[2].mxu1  ;;  %v4546_v51 = vadd.f32 %v4545_v57, %v4544_v50  ;;  %6367 = vmatpush3.bf16.msra.mxu0 %v6366_v44  ;;  %v599_v6 = vld [vmem:[%s11128_s1 + $0x1178] sm:$0xff]  ;;  %v633_v7 = vld [vmem:[%s11128_s1 + $0x1288] sm:$0xff]  ;;  %v664_v9 = vld [vmem:[%s11128_s1 + $0x1380] sm:$0xff]  ;;  %v6374_v13 = vpack.c.bf16 %v567_v2, %v566_v1 }
 0x11a   :  { %v4580_v60 = vpop.f32.mrb[3].mxu1  ;;  %6369 = vmatprep.subr.bf16.mxu0 %v6368_v46  ;;  %v6406_v14 = vpack.c.bf16 %v599_v6, %v598_v3  ;;  %v6408_v15 = vpack.c.bf16 %v633_v7, %v632_v8  ;;  %v616_v16 = vld [vmem:[%s11128_s1 + $0x1200] sm:$0xff]  ;;  %v617_v17 = vld [vmem:[%s11128_s1 + $0x1208] sm:$0xff]  ;;  %v634_v21 = vld [vmem:[%s11128_s1 + $0x1290] sm:$0xff]  ;;  %v9045_v27 = vrot.slane %v1419_v12, %v7285_v10  ;;  %v1434_v38 = vcombine.high %v9036_v23, %v9036_v23 }
 0x11b   :  { %v4581_v32 = vadd.f32 %v4580_v60, %v4579_v41  ;;  %6399 = vmatpush3.bf16.msra.mxu1 %v6398_v45  ;;  %v1870_v4 = vadd.f32 %v4546_v51, %v8805_v26  ;;  %v665_v26 = vld [vmem:[%s11128_s1 + $0x1388] sm:$0xff]  ;;  %v648_v18 = vld [vmem:[%s11128_s1 + $0x1300] sm:$0xff]  ;;  %v635_v22 = vld [vmem:[%s11128_s1 + $0x1298] sm:$0xff]  ;;  %v6410_v28 = vpack.c.bf16 %v617_v17, %v616_v16 }
 0x11c   :  { %6401 = vmatprep.subr.bf16.mxu1 %v6400_v53  ;;  %v6440_v19 = vpack.c.bf16 %v665_v26, %v664_v9  ;;  %v649_v20 = vld [vmem:[%s11128_s1 + $0x1308] sm:$0xff]  ;;  %v666_v24 = vld [vmem:[%s11128_s1 + $0x1390] sm:$0xff]  ;;  %v667_v25 = vld [vmem:[%s11128_s1 + $0x1398] sm:$0xff]  ;;  %v6412_v31 = vpack.c.bf16 %v635_v22, %v634_v21  ;;  %v1435_v44 = vcombine.high %v9045_v27, %v9045_v27 }
 0x11d   :  { %v9015_v11 = vadd.f32 %v4581_v32, %v1870_v4  ;;  %6371 = vmatpush3.bf16.msra.mxu0 %v6370_v61  ;;  %v6442_v29 = vpack.c.bf16 %v649_v20, %v648_v18  ;;  %v618_v30 = vld [vmem:[%s11128_s1 + $0x1210] sm:$0xff]  ;;  %v619_v33 = vld [vmem:[%s11128_s1 + $0x1218] sm:$0xff]  ;;  %v6444_v34 = vpack.c.bf16 %v667_v25, %v666_v24  ;;  %v636_v36 = vld [vmem:[%s11128_s1 + $0x12a0] sm:$0xff] }
 0x11e   :  { %6373 = vmatprep.subr.bf16.mxu0 %v6372_v0  ;;  %v650_v43 = vld [vmem:[%s11128_s1 + $0x1310] sm:$0xff]  ;;  %v651_v35 = vld [vmem:[%s11128_s1 + $0x1318] sm:$0xff]  ;;  %v637_v37 = vld [vmem:[%s11128_s1 + $0x12a8] sm:$0xff]  ;;  %v6414_v45 = vpack.c.bf16 %v619_v33, %v618_v30 }
 0x11f   :  { %6403 = vmatpush3.bf16.msra.mxu1 %v6402_v63  ;;  %v668_v40 = vld [vmem:[%s11128_s1 + $0x13a0] sm:$0xff]  ;;  %v669_v42 = vld [vmem:[%s11128_s1 + $0x13a8] sm:$0xff]  ;;  %v6446_v46 = vpack.c.bf16 %v651_v35, %v650_v43  ;;  %v6416_v47 = vpack.c.bf16 %v637_v37, %v636_v36  ;;  %v638_v53 = vld [vmem:[%s11128_s1 + $0x12b0] sm:$0xff] }
 0x120   :  { %6405 = vmatprep.subr.bf16.mxu1 %v6404_v5  ;;  %v621_v48 = vld [vmem:[%s11128_s1 + $0x1228] sm:$0xff]  ;;  %v652_v49 = vld [vmem:[%s11128_s1 + $0x1320] sm:$0xff]  ;;  %v6448_v50 = vpack.c.bf16 %v669_v42, %v668_v40  ;;  %v639_v54 = vld [vmem:[%s11128_s1 + $0x12b8] sm:$0xff] }
 0x121   :  { %6375 = vmatpush3.bf16.msra.mxu0 %v6374_v13  ;;  %v670_v55 = vld [vmem:[%s11128_s1 + $0x13b0] sm:$0xff]  ;;  %v671_v56 = vld [vmem:[%s11128_s1 + $0x13b8] sm:$0xff]  ;;  %v6420_v58 = vpack.c.bf16 %v639_v54, %v638_v53  ;;  %v640_v32 = vld [vmem:[%s11128_s1 + $0x12c0] sm:$0xff] }
 0x122   :  { %6409 = vmatprep.subr.bf16.mxu0 %v6408_v15  ;;  %v622_v59 = vld [vmem:[%s11128_s1 + $0x1230] sm:$0xff]  ;;  %v623_v51 = vld [vmem:[%s11128_s1 + $0x1238] sm:$0xff]  ;;  %v6452_v61 = vpack.c.bf16 %v671_v56, %v670_v55  ;;  %v641_v63 = vld [vmem:[%s11128_s1 + $0x12c8] sm:$0xff] }
 0x123   :  { %6407 = vmatpush3.bf16.msra.mxu1 %v6406_v14  ;;  %v654_v60 = vld [vmem:[%s11128_s1 + $0x1330] sm:$0xff]  ;;  %v655_v62 = vld [vmem:[%s11128_s1 + $0x1338] sm:$0xff]  ;;  %v672_v0 = vld [vmem:[%s11128_s1 + $0x13c0] sm:$0xff]  ;;  %v6422_v2 = vpack.c.bf16 %v623_v51, %v622_v59  ;;  %v6424_v4 = vpack.c.bf16 %v641_v63, %v640_v32 }
 0x124   :  { %6441 = vmatprep.subr.bf16.mxu1 %v6440_v19  ;;  %2848 = vmatmul.mubr.f32.vlgmr.msra.gmra.mrb[16].mxu0 %v8826_v52  ;;  %v620_v52 = vld [vmem:[%s11128_s1 + $0x1220] sm:$0xff]  ;;  %v673_v1 = vld [vmem:[%s11128_s1 + $0x13c8] sm:$0xff]  ;;  %v6454_v3 = vpack.c.bf16 %v655_v62, %v654_v60  ;;  %v642_v26 = vld [vmem:[%s11128_s1 + $0x12d0] sm:$0xff] }
 0x125   :  { %6411 = vmatpush3.bf16.msra.mxu0 %v6410_v28  ;;  %2987 = vmatprep.mubr.f32.mxu0 %v1434_v38  ;;  %v6418_v57 = vpack.c.bf16 %v621_v48, %v620_v52  ;;  %v624_v5 = vld [vmem:[%s11128_s1 + $0x1240] sm:$0xff]  ;;  %v625_v6 = vld [vmem:[%s11128_s1 + $0x1248] sm:$0xff]  ;;  %v6456_v7 = vpack.c.bf16 %v673_v1, %v672_v0  ;;  %v643_v12 = vld [vmem:[%s11128_s1 + $0x12d8] sm:$0xff] }
 0x126   :  { %2918 = vmatmul.mubr.f32.vlgmr.msra.gmra.mrb[16].mxu1 %v8835_v39  ;;  %6413 = vmatprep.subr.bf16.mxu0 %v6412_v31  ;;  %v653_v39 = vld [vmem:[%s11128_s1 + $0x1328] sm:$0xff]  ;;  %v656_v8 = vld [vmem:[%s11128_s1 + $0x1340] sm:$0xff]  ;;  %v674_v13 = vld [vmem:[%s11128_s1 + $0x13d0] sm:$0xff]  ;;  %v6426_v15 = vpack.c.bf16 %v625_v6, %v624_v5  ;;  %v6428_v17 = vpack.c.bf16 %v643_v12, %v642_v26 }
 0x127   :  { %6443 = vmatpush3.bf16.msra.mxu1 %v6442_v29  ;;  %3057 = vmatprep.mubr.f32.mxu1 %v1435_v44  ;;  %v6450_v41 = vpack.c.bf16 %v653_v39, %v652_v49  ;;  %v657_v9 = vld [vmem:[%s11128_s1 + $0x1348] sm:$0xff]  ;;  %v675_v14 = vld [vmem:[%s11128_s1 + $0x13d8] sm:$0xff]  ;;  %v626_v18 = vld [vmem:[%s11128_s1 + $0x1250] sm:$0xff] }
 0x128   :  { %6445 = vmatprep.subr.bf16.mxu1 %v6444_v34  ;;  %v6458_v16 = vpack.c.bf16 %v657_v9, %v656_v8  ;;  %v627_v19 = vld [vmem:[%s11128_s1 + $0x1258] sm:$0xff]  ;;  %v658_v20 = vld [vmem:[%s11128_s1 + $0x1350] sm:$0xff]  ;;  %v6460_v21 = vpack.c.bf16 %v675_v14, %v674_v13  ;;  %v644_v24 = vld [vmem:[%s11128_s1 + $0x12e0] sm:$0xff] }
 0x129   :  { %6415 = vmatpush3.bf16.msra.mxu0 %v6414_v45  ;;  %v659_v22 = vld [vmem:[%s11128_s1 + $0x1358] sm:$0xff]  ;;  %v645_v25 = vld [vmem:[%s11128_s1 + $0x12e8] sm:$0xff]  ;;  %v676_v28 = vld [vmem:[%s11128_s1 + $0x13e0] sm:$0xff]  ;;  %v6430_v31 = vpack.c.bf16 %v627_v19, %v626_v18 }
 0x12a   :  { %6417 = vmatprep.subr.bf16.mxu0 %v6416_v47  ;;  %v677_v29 = vld [vmem:[%s11128_s1 + $0x13e8] sm:$0xff]  ;;  %v6462_v30 = vpack.c.bf16 %v659_v22, %v658_v20  ;;  %v6432_v33 = vpack.c.bf16 %v645_v25, %v644_v24  ;;  %v628_v43 = vld [vmem:[%s11128_s1 + $0x1260] sm:$0xff]  ;;  %v646_v40 = vld [vmem:[%s11128_s1 + $0x12f0] sm:$0xff] }
 0x12b   :  { %6447 = vmatpush3.bf16.msra.mxu1 %v6446_v46  ;;  %v629_v34 = vld [vmem:[%s11128_s1 + $0x1268] sm:$0xff]  ;;  %v660_v35 = vld [vmem:[%s11128_s1 + $0x1360] sm:$0xff]  ;;  %v6464_v37 = vpack.c.bf16 %v677_v29, %v676_v28  ;;  %v647_v42 = vld [vmem:[%s11128_s1 + $0x12f8] sm:$0xff] }
 0x12c   :  { %6449 = vmatprep.subr.bf16.mxu1 %v6448_v50  ;;  %v661_v38 = vld [vmem:[%s11128_s1 + $0x1368] sm:$0xff]  ;;  %v678_v46 = vld [vmem:[%s11128_s1 + $0x13f0] sm:$0xff]  ;;  %v679_v47 = vld [vmem:[%s11128_s1 + $0x13f8] sm:$0xff]  ;;  %v6434_v49 = vpack.c.bf16 %v629_v34, %v628_v43  ;;  %v6436_v54 = vpack.c.bf16 %v647_v42, %v646_v40 }
 0x12d   :  { %6419 = vmatpush3.bf16.msra.mxu0 %v6418_v57  ;;  %v31_v50 = vld [vmem:[%s11127_s0 + $0x50] sm:$0xff]  ;;  %v6466_v53 = vpack.c.bf16 %v661_v38, %v660_v35  ;;  %v631_v56 = vld [vmem:[%s11128_s1 + $0x1278] sm:$0xff]  ;;  %v696_v51 = vld [vmem:[%s11128_s1 + $0x1480] sm:$0xff] }
 0x12e   :  { %6421 = vmatprep.subr.bf16.mxu0 %v6420_v58  ;;  %v630_v55 = vld [vmem:[%s11128_s1 + $0x1270] sm:$0xff]  ;;  %v6468_v58 = vpack.c.bf16 %v679_v47, %v678_v46  ;;  %v663_v59 = vld [vmem:[%s11128_s1 + $0x1378] sm:$0xff]  ;;  %v697_v60 = vld [vmem:[%s11128_s1 + $0x1488] sm:$0xff]  ;;  %v1436_v62 = vcombine.high %v31_v50, %v31_v50  ;;  %v9246_v9 = vrot.slane %v31_v50, %v7285_v10 }
 0x12f   :  { %6451 = vmatpush3.bf16.msra.mxu1 %v6450_v41  ;;  %v662_v57 = vld [vmem:[%s11128_s1 + $0x1370] sm:$0xff]  ;;  %v6438_v63 = vpack.c.bf16 %v631_v56, %v630_v55  ;;  %v6472_v1 = vpack.c.bf16 %v697_v60, %v696_v51  ;;  %v713_v6 = vld [vmem:[%s11128_s1 + $0x1508] sm:$0xff]  ;;  %v731_v12 = vld [vmem:[%s11128_s1 + $0x1598] sm:$0xff] }
 0x130   :  { %6453 = vmatprep.subr.bf16.mxu1 %v6452_v61  ;;  %v728_v61 = vld [vmem:[%s11128_s1 + $0x1580] sm:$0xff]  ;;  %v6470_v0 = vpack.c.bf16 %v663_v59, %v662_v57  ;;  %v698_v8 = vld [vmem:[%s11128_s1 + $0x1490] sm:$0xff]  ;;  %v9255_v13 = vrot.slane %v1436_v62, %v7285_v10  ;;  %v683_v18 = vld [vmem:[%s11128_s1 + $0x1418] sm:$0xff]  ;;  %v1451_v25 = vcombine.high %v9246_v9, %v9246_v9 }
 0x131   :  { %6423 = vmatpush3.bf16.msra.mxu0 %v6422_v2  ;;  %v680_v2 = vld [vmem:[%s11128_s1 + $0x1400] sm:$0xff]  ;;  %v730_v26 = vld [vmem:[%s11128_s1 + $0x1590] sm:$0xff]  ;;  %v701_v24 = vld [vmem:[%s11128_s1 + $0x14a8] sm:$0xff] }
 0x132   :  { %6425 = vmatprep.subr.bf16.mxu0 %v6424_v4  ;;  %v712_v4 = vld [vmem:[%s11128_s1 + $0x1500] sm:$0xff]  ;;  %v714_v19 = vld [vmem:[%s11128_s1 + $0x1510] sm:$0xff]  ;;  %v6508_v20 = vpack.c.bf16 %v731_v12, %v730_v26  ;;  %v733_v29 = vld [vmem:[%s11128_s1 + $0x15a8] sm:$0xff] }
 0x133   :  { %6455 = vmatpush3.bf16.msra.mxu1 %v6454_v3  ;;  %v681_v3 = vld [vmem:[%s11128_s1 + $0x1408] sm:$0xff]  ;;  %v700_v22 = vld [vmem:[%s11128_s1 + $0x14a0] sm:$0xff]  ;;  %v703_v38 = vld [vmem:[%s11128_s1 + $0x14b8] sm:$0xff] }
 0x134   :  { %6457 = vmatprep.subr.bf16.mxu1 %v6456_v7  ;;  %v699_v7 = vld [vmem:[%s11128_s1 + $0x1498] sm:$0xff]  ;;  %v6474_v14 = vpack.c.bf16 %v681_v3, %v680_v2  ;;  %v732_v28 = vld [vmem:[%s11128_s1 + $0x15a0] sm:$0xff]  ;;  %v6480_v43 = vpack.c.bf16 %v701_v24, %v700_v22  ;;  %v685_v34 = vld [vmem:[%s11128_s1 + $0x1428] sm:$0xff] }
 0x135   :  { %6427 = vmatpush3.bf16.msra.mxu0 %v6426_v15  ;;  %v6506_v15 = vpack.c.bf16 %v713_v6, %v712_v4  ;;  %v716_v35 = vld [vmem:[%s11128_s1 + $0x1520] sm:$0xff]  ;;  %v734_v40 = vld [vmem:[%s11128_s1 + $0x15b0] sm:$0xff]  ;;  %v735_v42 = vld [vmem:[%s11128_s1 + $0x15b8] sm:$0xff] }
 0x136   :  { %6429 = vmatprep.subr.bf16.mxu0 %v6428_v17  ;;  %v682_v17 = vld [vmem:[%s11128_s1 + $0x1410] sm:$0xff]  ;;  %v719_v50 = vld [vmem:[%s11128_s1 + $0x1538] sm:$0xff]  ;;  %v737_v55 = vld [vmem:[%s11128_s1 + $0x15c8] sm:$0xff] }
 0x137   :  { %6459 = vmatpush3.bf16.msra.mxu1 %v6458_v16  ;;  %v4614_v36 = vpop.f32.mrb[4].mxu0  ;;  %v6476_v16 = vpack.c.bf16 %v699_v7, %v698_v8  ;;  %v686_v47 = vld [vmem:[%s11128_s1 + $0x1430] sm:$0xff]  ;;  %v689_v59 = vld [vmem:[%s11128_s1 + $0x1448] sm:$0xff]  ;;  %v720_v51 = vld [vmem:[%s11128_s1 + $0x1540] sm:$0xff] }
 0x138   :  { %6461 = vmatprep.subr.bf16.mxu1 %v6460_v21  ;;  %v4615_v44 = vpop.f32.mrb[5].mxu0  ;;  %v715_v21 = vld [vmem:[%s11128_s1 + $0x1518] sm:$0xff]  ;;  %v690_v4 = vld [vmem:[%s11128_s1 + $0x1450] sm:$0xff]  ;;  %v708_v26 = vld [vmem:[%s11128_s1 + $0x14e0] sm:$0xff] }
 0x139   :  { %v4649_v45 = vpop.f32.mrb[4].mxu1  ;;  %v4616_v52 = vadd.f32 %v4615_v44, %v4614_v36  ;;  %6431 = vmatpush3.bf16.msra.mxu0 %v6430_v31  ;;  %v1452_v31 = vcombine.high %v9255_v13, %v9255_v13  ;;  %v6512_v36 = vpack.c.bf16 %v733_v29, %v732_v28  ;;  %v707_v62 = vld [vmem:[%s11128_s1 + $0x14d8] sm:$0xff]  ;;  %v722_v6 = vld [vmem:[%s11128_s1 + $0x1550] sm:$0xff]  ;;  %v709_v12 = vld [vmem:[%s11128_s1 + $0x14e8] sm:$0xff] }
 0x13a   :  { %v4650_v48 = vpop.f32.mrb[5].mxu1  ;;  %6433 = vmatprep.subr.bf16.mxu0 %v6432_v33  ;;  %v6510_v33 = vpack.c.bf16 %v715_v21, %v714_v19  ;;  %v723_v7 = vld [vmem:[%s11128_s1 + $0x1558] sm:$0xff]  ;;  %v692_v19 = vld [vmem:[%s11128_s1 + $0x1460] sm:$0xff]  ;;  %v710_v28 = vld [vmem:[%s11128_s1 + $0x14f0] sm:$0xff] }
 0x13b   :  { %v4651_v39 = vadd.f32 %v4650_v48, %v4649_v45  ;;  %6463 = vmatpush3.bf16.msra.mxu1 %v6462_v30  ;;  %v2010_v41 = vadd.f32 %v4616_v52, %v9015_v11  ;;  %v729_v11 = vld [vmem:[%s11128_s1 + $0x1588] sm:$0xff]  ;;  %v6478_v30 = vpack.c.bf16 %v683_v18, %v682_v17  ;;  %v687_v52 = vld [vmem:[%s11128_s1 + $0x1438] sm:$0xff]  ;;  %v718_v48 = vld [vmem:[%s11128_s1 + $0x1530] sm:$0xff]  ;;  %v6526_v17 = vpack.c.bf16 %v723_v7, %v722_v6 }
 0x13c   :  { %6465 = vmatprep.subr.bf16.mxu1 %v6464_v37  ;;  %v6504_v5 = vpack.c.bf16 %v729_v11, %v728_v61  ;;  %v702_v37 = vld [vmem:[%s11128_s1 + $0x14b0] sm:$0xff]  ;;  %v6486_v56 = vpack.c.bf16 %v687_v52, %v686_v47  ;;  %v6518_v57 = vpack.c.bf16 %v719_v50, %v718_v48  ;;  %v721_v61 = vld [vmem:[%s11128_s1 + $0x1548] sm:$0xff]  ;;  %v6496_v18 = vpack.c.bf16 %v709_v12, %v708_v26  ;;  %v724_v21 = vld [vmem:[%s11128_s1 + $0x1560] sm:$0xff] }
 0x13d   :  { %v9225_v32 = vadd.f32 %v4651_v39, %v2010_v41  ;;  %6435 = vmatpush3.bf16.msra.mxu0 %v6434_v49  ;;  %v6484_v46 = vpack.c.bf16 %v703_v38, %v702_v37  ;;  %v6516_v49 = vpack.c.bf16 %v735_v42, %v734_v40  ;;  %v704_v39 = vld [vmem:[%s11128_s1 + $0x14c0] sm:$0xff]  ;;  %v706_v11 = vld [vmem:[%s11128_s1 + $0x14d0] sm:$0xff]  ;;  %v6522_v2 = vpack.c.bf16 %v721_v61, %v720_v51  ;;  %v711_v29 = vld [vmem:[%s11128_s1 + $0x14f8] sm:$0xff] }
 0x13e   :  { %6437 = vmatprep.subr.bf16.mxu0 %v6436_v54  ;;  %v736_v54 = vld [vmem:[%s11128_s1 + $0x15c0] sm:$0xff]  ;;  %v6492_v3 = vpack.c.bf16 %v707_v62, %v706_v11  ;;  %v6500_v38 = vpack.c.bf16 %v711_v29, %v710_v28  ;;  %v694_v40 = vld [vmem:[%s11128_s1 + $0x1470] sm:$0xff]  ;;  %v695_v42 = vld [vmem:[%s11128_s1 + $0x1478] sm:$0xff] }
 0x13f   :  { %6467 = vmatpush3.bf16.msra.mxu1 %v6466_v53  ;;  %v705_v53 = vld [vmem:[%s11128_s1 + $0x14c8] sm:$0xff]  ;;  %v6520_v60 = vpack.c.bf16 %v737_v55, %v736_v54  ;;  %v727_v47 = vld [vmem:[%s11128_s1 + $0x1578] sm:$0xff]  ;;  %v760_v52 = vld [vmem:[%s11128_s1 + $0x1680] sm:$0xff] }
 0x140   :  { %6469 = vmatprep.subr.bf16.mxu1 %v6468_v58  ;;  %v6488_v41 = vpack.c.bf16 %v705_v53, %v704_v39  ;;  %v688_v58 = vld [vmem:[%s11128_s1 + $0x1440] sm:$0xff]  ;;  %v761_v48 = vld [vmem:[%s11128_s1 + $0x1688] sm:$0xff]  ;;  %v6502_v53 = vpack.c.bf16 %v695_v42, %v694_v40  ;;  %v762_v51 = vld [vmem:[%s11128_s1 + $0x1690] sm:$0xff] }
 0x141   :  { %6439 = vmatpush3.bf16.msra.mxu0 %v6438_v63  ;;  %v738_v63 = vld [vmem:[%s11128_s1 + $0x15d0] sm:$0xff]  ;;  %v6536_v55 = vpack.c.bf16 %v761_v48, %v760_v52  ;;  %v795_v62 = vld [vmem:[%s11128_s1 + $0x1798] sm:$0xff]  ;;  %v764_v7 = vld [vmem:[%s11128_s1 + $0x16a0] sm:$0xff] }
 0x142   :  { %6473 = vmatprep.subr.bf16.mxu0 %v6472_v1  ;;  %v6490_v1 = vpack.c.bf16 %v689_v59, %v688_v58  ;;  %v777_v59 = vld [vmem:[%s11128_s1 + $0x1708] sm:$0xff]  ;;  %v794_v11 = vld [vmem:[%s11128_s1 + $0x1790] sm:$0xff]  ;;  %v799_v29 = vld [vmem:[%s11128_s1 + $0x17b8] sm:$0xff] }
 0x143   :  { %6471 = vmatpush3.bf16.msra.mxu1 %v6470_v0  ;;  %v739_v0 = vld [vmem:[%s11128_s1 + $0x15d8] sm:$0xff]  ;;  %v6572_v6 = vpack.c.bf16 %v795_v62, %v794_v11  ;;  %v765_v26 = vld [vmem:[%s11128_s1 + $0x16a8] sm:$0xff]  ;;  %v798_v28 = vld [vmem:[%s11128_s1 + $0x17b0] sm:$0xff] }
 0x144   :  { %6505 = vmatprep.subr.bf16.mxu1 %v6504_v5  ;;  %2988 = vmatmul.mubr.f32.vlgmr.msra.gmra.mrb[18].mxu0 %v9036_v23  ;;  %v684_v23 = vld [vmem:[%s11128_s1 + $0x1420] sm:$0xff]  ;;  %v691_v5 = vld [vmem:[%s11128_s1 + $0x1458] sm:$0xff]  ;;  %v6524_v8 = vpack.c.bf16 %v739_v0, %v738_v63  ;;  %v801_v40 = vld [vmem:[%s11128_s1 + $0x17c8] sm:$0xff] }
 0x145   :  { %6475 = vmatpush3.bf16.msra.mxu0 %v6474_v14  ;;  %3127 = vmatprep.mubr.f32.mxu0 %v1451_v25  ;;  %v6482_v44 = vpack.c.bf16 %v685_v34, %v684_v23  ;;  %v740_v14 = vld [vmem:[%s11128_s1 + $0x15e0] sm:$0xff]  ;;  %v725_v25 = vld [vmem:[%s11128_s1 + $0x1568] sm:$0xff] }
 0x146   :  { %3058 = vmatmul.mubr.f32.vlgmr.msra.gmra.mrb[18].mxu1 %v9045_v27  ;;  %6477 = vmatprep.subr.bf16.mxu0 %v6476_v16  ;;  %v717_v27 = vld [vmem:[%s11128_s1 + $0x1528] sm:$0xff]  ;;  %v6494_v16 = vpack.c.bf16 %v691_v5, %v690_v4  ;;  %v6530_v37 = vpack.c.bf16 %v725_v25, %v724_v21  ;;  %v747_v4 = vld [vmem:[%s11128_s1 + $0x1618] sm:$0xff]  ;;  %v778_v5 = vld [vmem:[%s11128_s1 + $0x1710] sm:$0xff] }
 0x147   :  { %6507 = vmatpush3.bf16.msra.mxu1 %v6506_v15  ;;  %3197 = vmatprep.mubr.f32.mxu1 %v1452_v31  ;;  %v6514_v45 = vpack.c.bf16 %v717_v27, %v716_v35  ;;  %v741_v15 = vld [vmem:[%s11128_s1 + $0x15e8] sm:$0xff]  ;;  %v780_v21 = vld [vmem:[%s11128_s1 + $0x1720] sm:$0xff]  ;;  %v767_v25 = vld [vmem:[%s11128_s1 + $0x16b8] sm:$0xff] }
 0x148   :  { %6509 = vmatprep.subr.bf16.mxu1 %v6508_v20  ;;  %v693_v20 = vld [vmem:[%s11128_s1 + $0x1468] sm:$0xff]  ;;  %v6528_v24 = vpack.c.bf16 %v741_v15, %v740_v14  ;;  %v796_v14 = vld [vmem:[%s11128_s1 + $0x17a0] sm:$0xff] }
 0x149   :  { %6479 = vmatpush3.bf16.msra.mxu0 %v6478_v30  ;;  %v6498_v35 = vpack.c.bf16 %v693_v20, %v692_v19  ;;  %v797_v15 = vld [vmem:[%s11128_s1 + $0x17a8] sm:$0xff]  ;;  %v6544_v19 = vpack.c.bf16 %v765_v26, %v764_v7  ;;  %v784_v52 = vld [vmem:[%s11128_s1 + $0x1740] sm:$0xff] }
 0x14a   :  { %6481 = vmatprep.subr.bf16.mxu0 %v6480_v43  ;;  %v743_v43 = vld [vmem:[%s11128_s1 + $0x15f8] sm:$0xff]  ;;  %v749_v20 = vld [vmem:[%s11128_s1 + $0x1628] sm:$0xff]  ;;  %v772_v11 = vld [vmem:[%s11128_s1 + $0x16e0] sm:$0xff] }
 0x14b   :  { %6511 = vmatpush3.bf16.msra.mxu1 %v6510_v33  ;;  %v742_v33 = vld [vmem:[%s11128_s1 + $0x15f0] sm:$0xff]  ;;  %v773_v62 = vld [vmem:[%s11128_s1 + $0x16e8] sm:$0xff] }
 0x14c   :  { %6513 = vmatprep.subr.bf16.mxu1 %v6512_v36  ;;  %v32_v36 = vld [vmem:[%s11127_s0 + $0x58] sm:$0xff] }
 0x14d   :  { %6483 = vmatpush3.bf16.msra.mxu0 %v6482_v44  ;;  %v726_v44 = vld [vmem:[%s11128_s1 + $0x1570] sm:$0xff]  ;;  %v1453_v50 = vcombine.high %v32_v36, %v32_v36  ;;  %v9456_v61 = vrot.slane %v32_v36, %v7285_v10  ;;  %v783_v36 = vld [vmem:[%s11128_s1 + $0x1738] sm:$0xff] }
 0x14e   :  { %6485 = vmatprep.subr.bf16.mxu0 %v6484_v46  ;;  %v6532_v46 = vpack.c.bf16 %v743_v43, %v742_v33  ;;  %v6534_v54 = vpack.c.bf16 %v727_v47, %v726_v44  ;;  %v750_v43 = vld [vmem:[%s11128_s1 + $0x1630] sm:$0xff]  ;;  %v753_v47 = vld [vmem:[%s11128_s1 + $0x1648] sm:$0xff] }
 0x14f   :  { %6515 = vmatpush3.bf16.msra.mxu1 %v6514_v45  ;;  %v9465_v63 = vrot.slane %v1453_v50, %v7285_v10  ;;  %v1468_v12 = vcombine.high %v9456_v61, %v9456_v61  ;;  %v771_v50 = vld [vmem:[%s11128_s1 + $0x16d8] sm:$0xff] }
 0x150   :  { %6517 = vmatprep.subr.bf16.mxu1 %v6516_v49  ;;  %v792_v49 = vld [vmem:[%s11128_s1 + $0x1780] sm:$0xff] }
 0x151   :  { %6487 = vmatpush3.bf16.msra.mxu0 %v6486_v56  ;;  %v744_v56 = vld [vmem:[%s11128_s1 + $0x1600] sm:$0xff] }
 0x152   :  { %6489 = vmatprep.subr.bf16.mxu0 %v6488_v41  ;;  %v776_v41 = vld [vmem:[%s11128_s1 + $0x1700] sm:$0xff] }
 0x153   :  { %6519 = vmatpush3.bf16.msra.mxu1 %v6518_v57  ;;  %v745_v57 = vld [vmem:[%s11128_s1 + $0x1608] sm:$0xff] }
 0x154   :  { %6521 = vmatprep.subr.bf16.mxu1 %v6520_v60  ;;  %v763_v60 = vld [vmem:[%s11128_s1 + $0x1698] sm:$0xff]  ;;  %v6538_v0 = vpack.c.bf16 %v745_v57, %v744_v56 }
 0x155   :  { %6491 = vmatpush3.bf16.msra.mxu0 %v6490_v1  ;;  %v6570_v1 = vpack.c.bf16 %v777_v59, %v776_v41  ;;  %v754_v41 = vld [vmem:[%s11128_s1 + $0x1650] sm:$0xff] }
 0x156   :  { %6493 = vmatprep.subr.bf16.mxu0 %v6492_v3  ;;  %v746_v3 = vld [vmem:[%s11128_s1 + $0x1610] sm:$0xff] }
 0x157   :  { %6523 = vmatpush3.bf16.msra.mxu1 %v6522_v2  ;;  %v4684_v22 = vpop.f32.mrb[6].mxu0  ;;  %v6540_v2 = vpack.c.bf16 %v763_v60, %v762_v51  ;;  %v786_v59 = vld [vmem:[%s11128_s1 + $0x1750] sm:$0xff]  ;;  %v787_v60 = vld [vmem:[%s11128_s1 + $0x1758] sm:$0xff] }
 0x158   :  { %6525 = vmatprep.subr.bf16.mxu1 %v6524_v8  ;;  %v4685_v31 = vpop.f32.mrb[7].mxu0  ;;  %v779_v8 = vld [vmem:[%s11128_s1 + $0x1718] sm:$0xff] }
 0x159   :  { %v4719_v30 = vpop.f32.mrb[6].mxu1  ;;  %v4686_v23 = vadd.f32 %v4685_v31, %v4684_v22  ;;  %6495 = vmatpush3.bf16.msra.mxu0 %v6494_v16  ;;  %v1469_v16 = vcombine.high %v9465_v63, %v9465_v63  ;;  %v6576_v22 = vpack.c.bf16 %v797_v15, %v796_v14  ;;  %v774_v14 = vld [vmem:[%s11128_s1 + $0x16f0] sm:$0xff]  ;;  %v775_v15 = vld [vmem:[%s11128_s1 + $0x16f8] sm:$0xff] }
 0x15a   :  { %v4720_v34 = vpop.f32.mrb[7].mxu1  ;;  %6497 = vmatprep.subr.bf16.mxu0 %v6496_v18  ;;  %v6574_v18 = vpack.c.bf16 %v779_v8, %v778_v5  ;;  %v756_v5 = vld [vmem:[%s11128_s1 + $0x1660] sm:$0xff] }
 0x15b   :  { %v4721_v27 = vadd.f32 %v4720_v34, %v4719_v30  ;;  %6527 = vmatpush3.bf16.msra.mxu1 %v6526_v17  ;;  %v2150_v45 = vadd.f32 %v4686_v23, %v9225_v32  ;;  %v793_v32 = vld [vmem:[%s11128_s1 + $0x1788] sm:$0xff]  ;;  %v6542_v17 = vpack.c.bf16 %v747_v4, %v746_v3  ;;  %v751_v23 = vld [vmem:[%s11128_s1 + $0x1638] sm:$0xff]  ;;  %v782_v34 = vld [vmem:[%s11128_s1 + $0x1730] sm:$0xff]  ;;  %v6590_v3 = vpack.c.bf16 %v787_v60, %v786_v59 }
 0x15c   :  { %6529 = vmatprep.subr.bf16.mxu1 %v6528_v24  ;;  %v6568_v58 = vpack.c.bf16 %v793_v32, %v792_v49  ;;  %v766_v24 = vld [vmem:[%s11128_s1 + $0x16b0] sm:$0xff]  ;;  %v6550_v42 = vpack.c.bf16 %v751_v23, %v750_v43  ;;  %v6582_v44 = vpack.c.bf16 %v783_v36, %v782_v34  ;;  %v785_v49 = vld [vmem:[%s11128_s1 + $0x1748] sm:$0xff]  ;;  %v6560_v4 = vpack.c.bf16 %v773_v62, %v772_v11  ;;  %v788_v8 = vld [vmem:[%s11128_s1 + $0x1760] sm:$0xff] }
 0x15d   :  { %v9435_v39 = vadd.f32 %v4721_v27, %v2150_v45  ;;  %6499 = vmatpush3.bf16.msra.mxu0 %v6498_v35  ;;  %v6548_v33 = vpack.c.bf16 %v767_v25, %v766_v24  ;;  %v6580_v35 = vpack.c.bf16 %v799_v29, %v798_v28  ;;  %v768_v27 = vld [vmem:[%s11128_s1 + $0x16c0] sm:$0xff]  ;;  %v770_v32 = vld [vmem:[%s11128_s1 + $0x16d0] sm:$0xff]  ;;  %v6586_v56 = vpack.c.bf16 %v785_v49, %v784_v52  ;;  %v759_v29 = vld [vmem:[%s11128_s1 + $0x1678] sm:$0xff] }
 0x15e   :  { %6501 = vmatprep.subr.bf16.mxu0 %v6500_v38  ;;  %v800_v38 = vld [vmem:[%s11128_s1 + $0x17c0] sm:$0xff]  ;;  %v6556_v57 = vpack.c.bf16 %v771_v50, %v770_v32  ;;  %v6564_v25 = vpack.c.bf16 %v775_v15, %v774_v14  ;;  %v758_v28 = vld [vmem:[%s11128_s1 + $0x1670] sm:$0xff]  ;;  %v791_v43 = vld [vmem:[%s11128_s1 + $0x1778] sm:$0xff] }
 0x15f   :  { %6531 = vmatpush3.bf16.msra.mxu1 %v6530_v37  ;;  %v769_v37 = vld [vmem:[%s11128_s1 + $0x16c8] sm:$0xff]  ;;  %v6584_v48 = vpack.c.bf16 %v801_v40, %v800_v38  ;;  %v824_v23 = vld [vmem:[%s11128_s1 + $0x1880] sm:$0xff]  ;;  %v826_v52 = vld [vmem:[%s11128_s1 + $0x1890] sm:$0xff] }
 0x160   :  { %6533 = vmatprep.subr.bf16.mxu1 %v6532_v46  ;;  %v6552_v45 = vpack.c.bf16 %v769_v37, %v768_v27  ;;  %v752_v46 = vld [vmem:[%s11128_s1 + $0x1640] sm:$0xff]  ;;  %v825_v34 = vld [vmem:[%s11128_s1 + $0x1888] sm:$0xff]  ;;  %v6566_v37 = vpack.c.bf16 %v759_v29, %v758_v28  ;;  %v858_v32 = vld [vmem:[%s11128_s1 + $0x1990] sm:$0xff] }
 0x161   :  { %6503 = vmatpush3.bf16.msra.mxu0 %v6502_v53  ;;  %v802_v53 = vld [vmem:[%s11128_s1 + $0x17d0] sm:$0xff]  ;;  %v6600_v40 = vpack.c.bf16 %v825_v34, %v824_v23  ;;  %v859_v50 = vld [vmem:[%s11128_s1 + $0x1998] sm:$0xff]  ;;  %v828_v60 = vld [vmem:[%s11128_s1 + $0x18a0] sm:$0xff] }
 0x162   :  { %6537 = vmatprep.subr.bf16.mxu0 %v6536_v55  ;;  %v6554_v55 = vpack.c.bf16 %v753_v47, %v752_v46  ;;  %v841_v47 = vld [vmem:[%s11128_s1 + $0x1908] sm:$0xff]  ;;  %v6636_v59 = vpack.c.bf16 %v859_v50, %v858_v32  ;;  %v862_v14 = vld [vmem:[%s11128_s1 + $0x19b0] sm:$0xff]  ;;  %v863_v15 = vld [vmem:[%s11128_s1 + $0x19b8] sm:$0xff] }
 0x163   :  { %6535 = vmatpush3.bf16.msra.mxu1 %v6534_v54  ;;  %v803_v54 = vld [vmem:[%s11128_s1 + $0x17d8] sm:$0xff]  ;;  %v829_v11 = vld [vmem:[%s11128_s1 + $0x18a8] sm:$0xff]  ;;  %v848_v23 = vld [vmem:[%s11128_s1 + $0x1940] sm:$0xff] }
 0x164   :  { %6569 = vmatprep.subr.bf16.mxu1 %v6568_v58  ;;  %3128 = vmatmul.mubr.f32.vlgmr.msra.gmra.mrb[20].mxu0 %v9246_v9  ;;  %v748_v9 = vld [vmem:[%s11128_s1 + $0x1620] sm:$0xff]  ;;  %v755_v58 = vld [vmem:[%s11128_s1 + $0x1658] sm:$0xff]  ;;  %v6588_v51 = vpack.c.bf16 %v803_v54, %v802_v53  ;;  %v865_v28 = vld [vmem:[%s11128_s1 + $0x19c8] sm:$0xff] }
 0x165   :  { %6539 = vmatpush3.bf16.msra.mxu0 %v6538_v0  ;;  %3267 = vmatprep.mubr.f32.mxu0 %v1468_v12  ;;  %v6546_v31 = vpack.c.bf16 %v749_v20, %v748_v9  ;;  %v804_v0 = vld [vmem:[%s11128_s1 + $0x17e0] sm:$0xff]  ;;  %v789_v12 = vld [vmem:[%s11128_s1 + $0x1768] sm:$0xff] }
 0x166   :  { %3198 = vmatmul.mubr.f32.vlgmr.msra.gmra.mrb[20].mxu1 %v9255_v13  ;;  %6541 = vmatprep.subr.bf16.mxu0 %v6540_v2  ;;  %v781_v13 = vld [vmem:[%s11128_s1 + $0x1728] sm:$0xff]  ;;  %v6558_v2 = vpack.c.bf16 %v755_v58, %v754_v41  ;;  %v6594_v24 = vpack.c.bf16 %v789_v12, %v788_v8  ;;  %v811_v41 = vld [vmem:[%s11128_s1 + $0x1818] sm:$0xff]  ;;  %v842_v58 = vld [vmem:[%s11128_s1 + $0x1910] sm:$0xff] }
 0x167   :  { %6571 = vmatpush3.bf16.msra.mxu1 %v6570_v1  ;;  %3337 = vmatprep.mubr.f32.mxu1 %v1469_v16  ;;  %v6578_v30 = vpack.c.bf16 %v781_v13, %v780_v21  ;;  %v805_v1 = vld [vmem:[%s11128_s1 + $0x17e8] sm:$0xff]  ;;  %v844_v8 = vld [vmem:[%s11128_s1 + $0x1920] sm:$0xff]  ;;  %v831_v12 = vld [vmem:[%s11128_s1 + $0x18b8] sm:$0xff] }
 0x168   :  { %6573 = vmatprep.subr.bf16.mxu1 %v6572_v6  ;;  %v757_v6 = vld [vmem:[%s11128_s1 + $0x1668] sm:$0xff]  ;;  %v6592_v26 = vpack.c.bf16 %v805_v1, %v804_v0  ;;  %v860_v0 = vld [vmem:[%s11128_s1 + $0x19a0] sm:$0xff] }
 0x169   :  { %6543 = vmatpush3.bf16.msra.mxu0 %v6542_v17  ;;  %v6562_v21 = vpack.c.bf16 %v757_v6, %v756_v5  ;;  %v861_v1 = vld [vmem:[%s11128_s1 + $0x19a8] sm:$0xff]  ;;  %v6608_v5 = vpack.c.bf16 %v829_v11, %v828_v60  ;;  %v836_v32 = vld [vmem:[%s11128_s1 + $0x18e0] sm:$0xff] }
 0x16a   :  { %6545 = vmatprep.subr.bf16.mxu0 %v6544_v19  ;;  %v807_v19 = vld [vmem:[%s11128_s1 + $0x17f8] sm:$0xff]  ;;  %v813_v6 = vld [vmem:[%s11128_s1 + $0x1828] sm:$0xff] }
 0x16b   :  { %6575 = vmatpush3.bf16.msra.mxu1 %v6574_v18  ;;  %v806_v18 = vld [vmem:[%s11128_s1 + $0x17f0] sm:$0xff]  ;;  %v837_v50 = vld [vmem:[%s11128_s1 + $0x18e8] sm:$0xff] }
 0x16c   :  { %6577 = vmatprep.subr.bf16.mxu1 %v6576_v22  ;;  %v33_v22 = vld [vmem:[%s11127_s0 + $0x60] sm:$0xff] }
 0x16d   :  { %6547 = vmatpush3.bf16.msra.mxu0 %v6546_v31  ;;  %v790_v31 = vld [vmem:[%s11128_s1 + $0x1770] sm:$0xff]  ;;  %v1470_v36 = vcombine.high %v33_v22, %v33_v22  ;;  %v9666_v49 = vrot.slane %v33_v22, %v7285_v10  ;;  %v847_v22 = vld [vmem:[%s11128_s1 + $0x1938] sm:$0xff] }
 0x16e   :  { %6549 = vmatprep.subr.bf16.mxu0 %v6548_v33  ;;  %v6596_v33 = vpack.c.bf16 %v807_v19, %v806_v18  ;;  %v6598_v38 = vpack.c.bf16 %v791_v43, %v790_v31  ;;  %v814_v19 = vld [vmem:[%s11128_s1 + $0x1830] sm:$0xff]  ;;  %v817_v43 = vld [vmem:[%s11128_s1 + $0x1848] sm:$0xff] }
 0x16f   :  { %6579 = vmatpush3.bf16.msra.mxu1 %v6578_v30  ;;  %v9675_v53 = vrot.slane %v1470_v36, %v7285_v10  ;;  %v1485_v62 = vcombine.high %v9666_v49, %v9666_v49  ;;  %v835_v36 = vld [vmem:[%s11128_s1 + $0x18d8] sm:$0xff] }
 0x170   :  { %6581 = vmatprep.subr.bf16.mxu1 %v6580_v35  ;;  %v856_v35 = vld [vmem:[%s11128_s1 + $0x1980] sm:$0xff] }
 0x171   :  { %6551 = vmatpush3.bf16.msra.mxu0 %v6550_v42  ;;  %v808_v42 = vld [vmem:[%s11128_s1 + $0x1800] sm:$0xff] }
 0x172   :  { %6553 = vmatprep.subr.bf16.mxu0 %v6552_v45  ;;  %v840_v45 = vld [vmem:[%s11128_s1 + $0x1900] sm:$0xff] }
 0x173   :  { %6583 = vmatpush3.bf16.msra.mxu1 %v6582_v44  ;;  %v809_v44 = vld [vmem:[%s11128_s1 + $0x1808] sm:$0xff] }
 0x174   :  { %6585 = vmatprep.subr.bf16.mxu1 %v6584_v48  ;;  %v827_v48 = vld [vmem:[%s11128_s1 + $0x1898] sm:$0xff]  ;;  %v6602_v54 = vpack.c.bf16 %v809_v44, %v808_v42 }
 0x175   :  { %6555 = vmatpush3.bf16.msra.mxu0 %v6554_v55  ;;  %v6634_v55 = vpack.c.bf16 %v841_v47, %v840_v45  ;;  %v818_v45 = vld [vmem:[%s11128_s1 + $0x1850] sm:$0xff] }
 0x176   :  { %6557 = vmatprep.subr.bf16.mxu0 %v6556_v57  ;;  %v810_v57 = vld [vmem:[%s11128_s1 + $0x1810] sm:$0xff] }
 0x177   :  { %6587 = vmatpush3.bf16.msra.mxu1 %v6586_v56  ;;  %v4754_v7 = vpop.f32.mrb[8].mxu0  ;;  %v6604_v56 = vpack.c.bf16 %v827_v48, %v826_v52  ;;  %v850_v47 = vld [vmem:[%s11128_s1 + $0x1950] sm:$0xff]  ;;  %v851_v48 = vld [vmem:[%s11128_s1 + $0x1958] sm:$0xff] }
 0x178   :  { %6589 = vmatprep.subr.bf16.mxu1 %v6588_v51  ;;  %v4755_v16 = vpop.f32.mrb[9].mxu0  ;;  %v843_v51 = vld [vmem:[%s11128_s1 + $0x1918] sm:$0xff] }
 0x179   :  { %v4789_v17 = vpop.f32.mrb[8].mxu1  ;;  %v4756_v9 = vadd.f32 %v4755_v16, %v4754_v7  ;;  %6559 = vmatpush3.bf16.msra.mxu0 %v6558_v2  ;;  %v1486_v2 = vcombine.high %v9675_v53, %v9675_v53  ;;  %v6640_v7 = vpack.c.bf16 %v861_v1, %v860_v0  ;;  %v838_v0 = vld [vmem:[%s11128_s1 + $0x18f0] sm:$0xff]  ;;  %v839_v1 = vld [vmem:[%s11128_s1 + $0x18f8] sm:$0xff] }
 0x17a   :  { %v4790_v20 = vpop.f32.mrb[9].mxu1  ;;  %6561 = vmatprep.subr.bf16.mxu0 %v6560_v4  ;;  %v6638_v4 = vpack.c.bf16 %v843_v51, %v842_v58  ;;  %v820_v58 = vld [vmem:[%s11128_s1 + $0x1860] sm:$0xff] }
 0x17b   :  { %v4791_v13 = vadd.f32 %v4790_v20, %v4789_v17  ;;  %6591 = vmatpush3.bf16.msra.mxu1 %v6590_v3  ;;  %v2290_v30 = vadd.f32 %v4756_v9, %v9435_v39  ;;  %v857_v39 = vld [vmem:[%s11128_s1 + $0x1988] sm:$0xff]  ;;  %v6606_v3 = vpack.c.bf16 %v811_v41, %v810_v57  ;;  %v815_v9 = vld [vmem:[%s11128_s1 + $0x1838] sm:$0xff]  ;;  %v846_v20 = vld [vmem:[%s11128_s1 + $0x1930] sm:$0xff]  ;;  %v6654_v57 = vpack.c.bf16 %v851_v48, %v850_v47 }
 0x17c   :  { %6593 = vmatprep.subr.bf16.mxu1 %v6592_v26  ;;  %v6632_v46 = vpack.c.bf16 %v857_v39, %v856_v35  ;;  %v830_v26 = vld [vmem:[%s11128_s1 + $0x18b0] sm:$0xff]  ;;  %v6614_v29 = vpack.c.bf16 %v815_v9, %v814_v19  ;;  %v6646_v31 = vpack.c.bf16 %v847_v22, %v846_v20  ;;  %v849_v35 = vld [vmem:[%s11128_s1 + $0x1948] sm:$0xff]  ;;  %v6624_v41 = vpack.c.bf16 %v837_v50, %v836_v32  ;;  %v852_v51 = vld [vmem:[%s11128_s1 + $0x1960] sm:$0xff] }
 0x17d   :  { %v9645_v27 = vadd.f32 %v4791_v13, %v2290_v30  ;;  %6563 = vmatpush3.bf16.msra.mxu0 %v6562_v21  ;;  %v6612_v18 = vpack.c.bf16 %v831_v12, %v830_v26  ;;  %v6644_v21 = vpack.c.bf16 %v863_v15, %v862_v14  ;;  %v832_v13 = vld [vmem:[%s11128_s1 + $0x18c0] sm:$0xff]  ;;  %v834_v39 = vld [vmem:[%s11128_s1 + $0x18d0] sm:$0xff]  ;;  %v6650_v42 = vpack.c.bf16 %v849_v35, %v848_v23  ;;  %v823_v15 = vld [vmem:[%s11128_s1 + $0x1878] sm:$0xff] }
 0x17e   :  { %6565 = vmatprep.subr.bf16.mxu0 %v6564_v25  ;;  %v864_v25 = vld [vmem:[%s11128_s1 + $0x19c0] sm:$0xff]  ;;  %v6620_v44 = vpack.c.bf16 %v835_v36, %v834_v39  ;;  %v6628_v12 = vpack.c.bf16 %v839_v1, %v838_v0  ;;  %v822_v14 = vld [vmem:[%s11128_s1 + $0x1870] sm:$0xff]  ;;  %v855_v19 = vld [vmem:[%s11128_s1 + $0x1978] sm:$0xff] }
 0x17f   :  { %6595 = vmatpush3.bf16.msra.mxu1 %v6594_v24  ;;  %v833_v24 = vld [vmem:[%s11128_s1 + $0x18c8] sm:$0xff]  ;;  %v6648_v34 = vpack.c.bf16 %v865_v28, %v864_v25  ;;  %v888_v9 = vld [vmem:[%s11128_s1 + $0x1a80] sm:$0xff]  ;;  %v890_v23 = vld [vmem:[%s11128_s1 + $0x1a90] sm:$0xff] }
 0x180   :  { %6597 = vmatprep.subr.bf16.mxu1 %v6596_v33  ;;  %v6616_v30 = vpack.c.bf16 %v833_v24, %v832_v13  ;;  %v816_v33 = vld [vmem:[%s11128_s1 + $0x1840] sm:$0xff]  ;;  %v889_v20 = vld [vmem:[%s11128_s1 + $0x1a88] sm:$0xff]  ;;  %v6630_v24 = vpack.c.bf16 %v823_v15, %v822_v14  ;;  %v922_v39 = vld [vmem:[%s11128_s1 + $0x1b90] sm:$0xff] }
 0x181   :  { %6567 = vmatpush3.bf16.msra.mxu0 %v6566_v37  ;;  %v866_v37 = vld [vmem:[%s11128_s1 + $0x19d0] sm:$0xff]  ;;  %v6664_v28 = vpack.c.bf16 %v889_v20, %v888_v9  ;;  %v923_v36 = vld [vmem:[%s11128_s1 + $0x1b98] sm:$0xff]  ;;  %v892_v48 = vld [vmem:[%s11128_s1 + $0x1aa0] sm:$0xff] }
 0x182   :  { %6601 = vmatprep.subr.bf16.mxu0 %v6600_v40  ;;  %v6618_v40 = vpack.c.bf16 %v817_v43, %v816_v33  ;;  %v905_v43 = vld [vmem:[%s11128_s1 + $0x1b08] sm:$0xff]  ;;  %v6700_v47 = vpack.c.bf16 %v923_v36, %v922_v39  ;;  %v926_v0 = vld [vmem:[%s11128_s1 + $0x1bb0] sm:$0xff]  ;;  %v927_v1 = vld [vmem:[%s11128_s1 + $0x1bb8] sm:$0xff] }
 0x183   :  { %6599 = vmatpush3.bf16.msra.mxu1 %v6598_v38  ;;  %v867_v38 = vld [vmem:[%s11128_s1 + $0x19d8] sm:$0xff]  ;;  %v893_v32 = vld [vmem:[%s11128_s1 + $0x1aa8] sm:$0xff]  ;;  %v912_v9 = vld [vmem:[%s11128_s1 + $0x1b40] sm:$0xff] }
 0x184   :  { %6633 = vmatprep.subr.bf16.mxu1 %v6632_v46  ;;  %3268 = vmatmul.mubr.f32.vlgmr.msra.gmra.mrb[22].mxu0 %v9456_v61  ;;  %v812_v61 = vld [vmem:[%s11128_s1 + $0x1820] sm:$0xff]  ;;  %v819_v46 = vld [vmem:[%s11128_s1 + $0x1858] sm:$0xff]  ;;  %v6652_v52 = vpack.c.bf16 %v867_v38, %v866_v37  ;;  %v929_v14 = vld [vmem:[%s11128_s1 + $0x1bc8] sm:$0xff] }
 0x185   :  { %6603 = vmatpush3.bf16.msra.mxu0 %v6602_v54  ;;  %3407 = vmatprep.mubr.f32.mxu0 %v1485_v62  ;;  %v6610_v16 = vpack.c.bf16 %v813_v6, %v812_v61  ;;  %v868_v54 = vld [vmem:[%s11128_s1 + $0x19e0] sm:$0xff]  ;;  %v853_v62 = vld [vmem:[%s11128_s1 + $0x1968] sm:$0xff] }
 0x186   :  { %3338 = vmatmul.mubr.f32.vlgmr.msra.gmra.mrb[22].mxu1 %v9465_v63  ;;  %6605 = vmatprep.subr.bf16.mxu0 %v6604_v56  ;;  %v845_v63 = vld [vmem:[%s11128_s1 + $0x1928] sm:$0xff]  ;;  %v6622_v56 = vpack.c.bf16 %v819_v46, %v818_v45  ;;  %v6658_v26 = vpack.c.bf16 %v853_v62, %v852_v51  ;;  %v875_v45 = vld [vmem:[%s11128_s1 + $0x1a18] sm:$0xff]  ;;  %v906_v46 = vld [vmem:[%s11128_s1 + $0x1b10] sm:$0xff] }
 0x187   :  { %6635 = vmatpush3.bf16.msra.mxu1 %v6634_v55  ;;  %3477 = vmatprep.mubr.f32.mxu1 %v1486_v2  ;;  %v6642_v17 = vpack.c.bf16 %v845_v63, %v844_v8  ;;  %v869_v55 = vld [vmem:[%s11128_s1 + $0x19e8] sm:$0xff]  ;;  %v908_v51 = vld [vmem:[%s11128_s1 + $0x1b20] sm:$0xff]  ;;  %v895_v62 = vld [vmem:[%s11128_s1 + $0x1ab8] sm:$0xff] }
 0x188   :  { %6637 = vmatprep.subr.bf16.mxu1 %v6636_v59  ;;  %v821_v59 = vld [vmem:[%s11128_s1 + $0x1868] sm:$0xff]  ;;  %v6656_v11 = vpack.c.bf16 %v869_v55, %v868_v54  ;;  %v924_v54 = vld [vmem:[%s11128_s1 + $0x1ba0] sm:$0xff] }
 0x189   :  { %6607 = vmatpush3.bf16.msra.mxu0 %v6606_v3  ;;  %v6626_v8 = vpack.c.bf16 %v821_v59, %v820_v58  ;;  %v925_v55 = vld [vmem:[%s11128_s1 + $0x1ba8] sm:$0xff]  ;;  %v6672_v58 = vpack.c.bf16 %v893_v32, %v892_v48  ;;  %v900_v39 = vld [vmem:[%s11128_s1 + $0x1ae0] sm:$0xff] }
 0x18a   :  { %6609 = vmatprep.subr.bf16.mxu0 %v6608_v5  ;;  %v871_v5 = vld [vmem:[%s11128_s1 + $0x19f8] sm:$0xff]  ;;  %v877_v59 = vld [vmem:[%s11128_s1 + $0x1a28] sm:$0xff] }
 0x18b   :  { %6639 = vmatpush3.bf16.msra.mxu1 %v6638_v4  ;;  %v870_v4 = vld [vmem:[%s11128_s1 + $0x19f0] sm:$0xff]  ;;  %v901_v36 = vld [vmem:[%s11128_s1 + $0x1ae8] sm:$0xff] }
 0x18c   :  { %6641 = vmatprep.subr.bf16.mxu1 %v6640_v7  ;;  %v34_v7 = vld [vmem:[%s11127_s0 + $0x68] sm:$0xff] }
 0x18d   :  { %6611 = vmatpush3.bf16.msra.mxu0 %v6610_v16  ;;  %v854_v16 = vld [vmem:[%s11128_s1 + $0x1970] sm:$0xff]  ;;  %v1487_v22 = vcombine.high %v34_v7, %v34_v7  ;;  %v9876_v35 = vrot.slane %v34_v7, %v7285_v10  ;;  %v911_v7 = vld [vmem:[%s11128_s1 + $0x1b38] sm:$0xff] }
 0x18e   :  { %6613 = vmatprep.subr.bf16.mxu0 %v6612_v18  ;;  %v6660_v18 = vpack.c.bf16 %v871_v5, %v870_v4  ;;  %v6662_v25 = vpack.c.bf16 %v855_v19, %v854_v16  ;;  %v878_v5 = vld [vmem:[%s11128_s1 + $0x1a30] sm:$0xff]  ;;  %v881_v19 = vld [vmem:[%s11128_s1 + $0x1a48] sm:$0xff] }
 0x18f   :  { %6643 = vmatpush3.bf16.msra.mxu1 %v6642_v17  ;;  %v9885_v37 = vrot.slane %v1487_v22, %v7285_v10  ;;  %v1502_v50 = vcombine.high %v9876_v35, %v9876_v35  ;;  %v899_v22 = vld [vmem:[%s11128_s1 + $0x1ad8] sm:$0xff] }
 0x190   :  { %6645 = vmatprep.subr.bf16.mxu1 %v6644_v21  ;;  %v920_v21 = vld [vmem:[%s11128_s1 + $0x1b80] sm:$0xff] }
 0x191   :  { %6615 = vmatpush3.bf16.msra.mxu0 %v6614_v29  ;;  %v872_v29 = vld [vmem:[%s11128_s1 + $0x1a00] sm:$0xff] }
 0x192   :  { %6617 = vmatprep.subr.bf16.mxu0 %v6616_v30  ;;  %v904_v30 = vld [vmem:[%s11128_s1 + $0x1b00] sm:$0xff] }
 0x193   :  { %6647 = vmatpush3.bf16.msra.mxu1 %v6646_v31  ;;  %v873_v31 = vld [vmem:[%s11128_s1 + $0x1a08] sm:$0xff] }
 0x194   :  { %6649 = vmatprep.subr.bf16.mxu1 %v6648_v34  ;;  %v891_v34 = vld [vmem:[%s11128_s1 + $0x1a98] sm:$0xff]  ;;  %v6666_v38 = vpack.c.bf16 %v873_v31, %v872_v29 }
 0x195   :  { %6619 = vmatpush3.bf16.msra.mxu0 %v6618_v40  ;;  %v6698_v40 = vpack.c.bf16 %v905_v43, %v904_v30  ;;  %v882_v30 = vld [vmem:[%s11128_s1 + $0x1a50] sm:$0xff] }
 0x196   :  { %6621 = vmatprep.subr.bf16.mxu0 %v6620_v44  ;;  %v874_v44 = vld [vmem:[%s11128_s1 + $0x1a10] sm:$0xff] }
 0x197   :  { %6651 = vmatpush3.bf16.msra.mxu1 %v6650_v42  ;;  %v4824_v60 = vpop.f32.mrb[10].mxu0  ;;  %v6668_v42 = vpack.c.bf16 %v891_v34, %v890_v23  ;;  %v914_v43 = vld [vmem:[%s11128_s1 + $0x1b50] sm:$0xff]  ;;  %v915_v34 = vld [vmem:[%s11128_s1 + $0x1b58] sm:$0xff] }
 0x198   :  { %6653 = vmatprep.subr.bf16.mxu1 %v6652_v52  ;;  %v4825_v2 = vpop.f32.mrb[11].mxu0  ;;  %v907_v52 = vld [vmem:[%s11128_s1 + $0x1b18] sm:$0xff] }
 0x199   :  { %v4859_v3 = vpop.f32.mrb[10].mxu1  ;;  %v4826_v61 = vadd.f32 %v4825_v2, %v4824_v60  ;;  %6623 = vmatpush3.bf16.msra.mxu0 %v6622_v56  ;;  %v1503_v56 = vcombine.high %v9885_v37, %v9885_v37  ;;  %v6704_v60 = vpack.c.bf16 %v925_v55, %v924_v54  ;;  %v902_v54 = vld [vmem:[%s11128_s1 + $0x1af0] sm:$0xff]  ;;  %v903_v55 = vld [vmem:[%s11128_s1 + $0x1af8] sm:$0xff] }
 0x19a   :  { %v4860_v6 = vpop.f32.mrb[11].mxu1  ;;  %6625 = vmatprep.subr.bf16.mxu0 %v6624_v41  ;;  %v6702_v41 = vpack.c.bf16 %v907_v52, %v906_v46  ;;  %v884_v46 = vld [vmem:[%s11128_s1 + $0x1a60] sm:$0xff] }
 0x19b   :  { %v4861_v63 = vadd.f32 %v4860_v6, %v4859_v3  ;;  %6655 = vmatpush3.bf16.msra.mxu1 %v6654_v57  ;;  %v2430_v17 = vadd.f32 %v4826_v61, %v9645_v27  ;;  %v921_v27 = vld [vmem:[%s11128_s1 + $0x1b88] sm:$0xff]  ;;  %v6670_v57 = vpack.c.bf16 %v875_v45, %v874_v44  ;;  %v879_v61 = vld [vmem:[%s11128_s1 + $0x1a38] sm:$0xff]  ;;  %v910_v6 = vld [vmem:[%s11128_s1 + $0x1b30] sm:$0xff]  ;;  %v6718_v44 = vpack.c.bf16 %v915_v34, %v914_v43 }
 0x19c   :  { %6657 = vmatprep.subr.bf16.mxu1 %v6656_v11  ;;  %v6696_v33 = vpack.c.bf16 %v921_v27, %v920_v21  ;;  %v894_v11 = vld [vmem:[%s11128_s1 + $0x1ab0] sm:$0xff]  ;;  %v6678_v15 = vpack.c.bf16 %v879_v61, %v878_v5  ;;  %v6710_v16 = vpack.c.bf16 %v911_v7, %v910_v6  ;;  %v913_v21 = vld [vmem:[%s11128_s1 + $0x1b48] sm:$0xff]  ;;  %v6688_v45 = vpack.c.bf16 %v901_v36, %v900_v39  ;;  %v916_v52 = vld [vmem:[%s11128_s1 + $0x1b60] sm:$0xff] }
 0x19d   :  { %v9855_v13 = vadd.f32 %v4861_v63, %v2430_v17  ;;  %6627 = vmatpush3.bf16.msra.mxu0 %v6626_v8  ;;  %v6676_v4 = vpack.c.bf16 %v895_v62, %v894_v11  ;;  %v6708_v8 = vpack.c.bf16 %v927_v1, %v926_v0  ;;  %v896_v63 = vld [vmem:[%s11128_s1 + $0x1ac0] sm:$0xff]  ;;  %v898_v27 = vld [vmem:[%s11128_s1 + $0x1ad0] sm:$0xff]  ;;  %v6714_v29 = vpack.c.bf16 %v913_v21, %v912_v9  ;;  %v887_v1 = vld [vmem:[%s11128_s1 + $0x1a78] sm:$0xff] }
 0x19e   :  { %6629 = vmatprep.subr.bf16.mxu0 %v6628_v12  ;;  %v928_v12 = vld [vmem:[%s11128_s1 + $0x1bc0] sm:$0xff]  ;;  %v6684_v31 = vpack.c.bf16 %v899_v22, %v898_v27  ;;  %v6692_v62 = vpack.c.bf16 %v903_v55, %v902_v54  ;;  %v886_v0 = vld [vmem:[%s11128_s1 + $0x1a70] sm:$0xff]  ;;  %v919_v5 = vld [vmem:[%s11128_s1 + $0x1b78] sm:$0xff] }
 0x19f   :  { %6659 = vmatpush3.bf16.msra.mxu1 %v6658_v26  ;;  %v897_v26 = vld [vmem:[%s11128_s1 + $0x1ac8] sm:$0xff]  ;;  %v6712_v20 = vpack.c.bf16 %v929_v14, %v928_v12  ;;  %v952_v61 = vld [vmem:[%s11128_s1 + $0x1c80] sm:$0xff]  ;;  %v954_v9 = vld [vmem:[%s11128_s1 + $0x1c90] sm:$0xff] }
 0x1a0   :  { %6661 = vmatprep.subr.bf16.mxu1 %v6660_v18  ;;  %v6680_v17 = vpack.c.bf16 %v897_v26, %v896_v63  ;;  %v880_v18 = vld [vmem:[%s11128_s1 + $0x1a40] sm:$0xff]  ;;  %v953_v6 = vld [vmem:[%s11128_s1 + $0x1c88] sm:$0xff]  ;;  %v6694_v26 = vpack.c.bf16 %v887_v1, %v886_v0  ;;  %v986_v27 = vld [vmem:[%s11128_s1 + $0x1d90] sm:$0xff] }
 0x1a1   :  { %6631 = vmatpush3.bf16.msra.mxu0 %v6630_v24  ;;  %v930_v24 = vld [vmem:[%s11128_s1 + $0x1bd0] sm:$0xff]  ;;  %v6728_v14 = vpack.c.bf16 %v953_v6, %v952_v61  ;;  %v987_v22 = vld [vmem:[%s11128_s1 + $0x1d98] sm:$0xff]  ;;  %v956_v34 = vld [vmem:[%s11128_s1 + $0x1ca0] sm:$0xff] }
 0x1a2   :  { %6665 = vmatprep.subr.bf16.mxu0 %v6664_v28  ;;  %v6682_v28 = vpack.c.bf16 %v881_v19, %v880_v18  ;;  %v969_v19 = vld [vmem:[%s11128_s1 + $0x1d08] sm:$0xff]  ;;  %v6764_v43 = vpack.c.bf16 %v987_v22, %v986_v27  ;;  %v990_v54 = vld [vmem:[%s11128_s1 + $0x1db0] sm:$0xff]  ;;  %v991_v55 = vld [vmem:[%s11128_s1 + $0x1db8] sm:$0xff] }
 0x1a3   :  { %6663 = vmatpush3.bf16.msra.mxu1 %v6662_v25  ;;  %v931_v25 = vld [vmem:[%s11128_s1 + $0x1bd8] sm:$0xff]  ;;  %v957_v39 = vld [vmem:[%s11128_s1 + $0x1ca8] sm:$0xff]  ;;  %v976_v61 = vld [vmem:[%s11128_s1 + $0x1d40] sm:$0xff] }
 0x1a4   :  { %6697 = vmatprep.subr.bf16.mxu1 %v6696_v33  ;;  %3408 = vmatmul.mubr.f32.vlgmr.msra.gmra.mrb[24].mxu0 %v9666_v49  ;;  %v876_v49 = vld [vmem:[%s11128_s1 + $0x1a20] sm:$0xff]  ;;  %v883_v33 = vld [vmem:[%s11128_s1 + $0x1a58] sm:$0xff]  ;;  %v6716_v23 = vpack.c.bf16 %v931_v25, %v930_v24  ;;  %v993_v0 = vld [vmem:[%s11128_s1 + $0x1dc8] sm:$0xff] }
 0x1a5   :  { %6667 = vmatpush3.bf16.msra.mxu0 %v6666_v38  ;;  %3547 = vmatprep.mubr.f32.mxu0 %v1502_v50  ;;  %v6674_v2 = vpack.c.bf16 %v877_v59, %v876_v49  ;;  %v932_v38 = vld [vmem:[%s11128_s1 + $0x1be0] sm:$0xff]  ;;  %v917_v50 = vld [vmem:[%s11128_s1 + $0x1b68] sm:$0xff] }
 0x1a6   :  { %3478 = vmatmul.mubr.f32.vlgmr.msra.gmra.mrb[24].mxu1 %v9675_v53  ;;  %6669 = vmatprep.subr.bf16.mxu0 %v6668_v42  ;;  %v909_v53 = vld [vmem:[%s11128_s1 + $0x1b28] sm:$0xff]  ;;  %v6686_v42 = vpack.c.bf16 %v883_v33, %v882_v30  ;;  %v6722_v11 = vpack.c.bf16 %v917_v50, %v916_v52  ;;  %v939_v30 = vld [vmem:[%s11128_s1 + $0x1c18] sm:$0xff]  ;;  %v970_v33 = vld [vmem:[%s11128_s1 + $0x1d10] sm:$0xff] }
 0x1a7   :  { %6699 = vmatpush3.bf16.msra.mxu1 %v6698_v40  ;;  %3617 = vmatprep.mubr.f32.mxu1 %v1503_v56  ;;  %v6706_v3 = vpack.c.bf16 %v909_v53, %v908_v51  ;;  %v933_v40 = vld [vmem:[%s11128_s1 + $0x1be8] sm:$0xff]  ;;  %v972_v52 = vld [vmem:[%s11128_s1 + $0x1d20] sm:$0xff]  ;;  %v959_v50 = vld [vmem:[%s11128_s1 + $0x1cb8] sm:$0xff] }
 0x1a8   :  { %6701 = vmatprep.subr.bf16.mxu1 %v6700_v47  ;;  %v885_v47 = vld [vmem:[%s11128_s1 + $0x1a68] sm:$0xff]  ;;  %v6720_v32 = vpack.c.bf16 %v933_v40, %v932_v38  ;;  %v988_v38 = vld [vmem:[%s11128_s1 + $0x1da0] sm:$0xff] }
 0x1a9   :  { %6671 = vmatpush3.bf16.msra.mxu0 %v6670_v57  ;;  %v6690_v51 = vpack.c.bf16 %v885_v47, %v884_v46  ;;  %v989_v40 = vld [vmem:[%s11128_s1 + $0x1da8] sm:$0xff]  ;;  %v6736_v46 = vpack.c.bf16 %v957_v39, %v956_v34  ;;  %v964_v27 = vld [vmem:[%s11128_s1 + $0x1ce0] sm:$0xff] }
 0x1aa   :  { %6673 = vmatprep.subr.bf16.mxu0 %v6672_v58  ;;  %v935_v58 = vld [vmem:[%s11128_s1 + $0x1bf8] sm:$0xff]  ;;  %v941_v47 = vld [vmem:[%s11128_s1 + $0x1c28] sm:$0xff] }
 0x1ab   :  { %6703 = vmatpush3.bf16.msra.mxu1 %v6702_v41  ;;  %v934_v41 = vld [vmem:[%s11128_s1 + $0x1bf0] sm:$0xff]  ;;  %v965_v22 = vld [vmem:[%s11128_s1 + $0x1ce8] sm:$0xff] }
 0x1ac   :  { %6705 = vmatprep.subr.bf16.mxu1 %v6704_v60  ;;  %v35_v60 = vld [vmem:[%s11127_s0 + $0x70] sm:$0xff] }
 0x1ad   :  { %6675 = vmatpush3.bf16.msra.mxu0 %v6674_v2  ;;  %v918_v2 = vld [vmem:[%s11128_s1 + $0x1b70] sm:$0xff]  ;;  %v1504_v7 = vcombine.high %v35_v60, %v35_v60  ;;  %v10086_v21 = vrot.slane %v35_v60, %v7285_v10  ;;  %v975_v60 = vld [vmem:[%s11128_s1 + $0x1d38] sm:$0xff] }
 0x1ae   :  { %6677 = vmatprep.subr.bf16.mxu0 %v6676_v4  ;;  %v6724_v4 = vpack.c.bf16 %v935_v58, %v934_v41  ;;  %v6726_v12 = vpack.c.bf16 %v919_v5, %v918_v2  ;;  %v942_v58 = vld [vmem:[%s11128_s1 + $0x1c30] sm:$0xff]  ;;  %v945_v5 = vld [vmem:[%s11128_s1 + $0x1c48] sm:$0xff] }
 0x1af   :  { %6707 = vmatpush3.bf16.msra.mxu1 %v6706_v3  ;;  %v10095_v24 = vrot.slane %v1504_v7, %v7285_v10  ;;  %v1519_v36 = vcombine.high %v10086_v21, %v10086_v21  ;;  %v963_v7 = vld [vmem:[%s11128_s1 + $0x1cd8] sm:$0xff] }
 0x1b0   :  { %6709 = vmatprep.subr.bf16.mxu1 %v6708_v8  ;;  %v984_v8 = vld [vmem:[%s11128_s1 + $0x1d80] sm:$0xff] }
 0x1b1   :  { %6679 = vmatpush3.bf16.msra.mxu0 %v6678_v15  ;;  %v936_v15 = vld [vmem:[%s11128_s1 + $0x1c00] sm:$0xff] }
 0x1b2   :  { %6681 = vmatprep.subr.bf16.mxu0 %v6680_v17  ;;  %v968_v17 = vld [vmem:[%s11128_s1 + $0x1d00] sm:$0xff] }
 0x1b3   :  { %6711 = vmatpush3.bf16.msra.mxu1 %v6710_v16  ;;  %v937_v16 = vld [vmem:[%s11128_s1 + $0x1c08] sm:$0xff] }
 0x1b4   :  { %6713 = vmatprep.subr.bf16.mxu1 %v6712_v20  ;;  %v955_v20 = vld [vmem:[%s11128_s1 + $0x1c98] sm:$0xff]  ;;  %v6730_v25 = vpack.c.bf16 %v937_v16, %v936_v15 }
 0x1b5   :  { %6683 = vmatpush3.bf16.msra.mxu0 %v6682_v28  ;;  %v6762_v28 = vpack.c.bf16 %v969_v19, %v968_v17  ;;  %v946_v17 = vld [vmem:[%s11128_s1 + $0x1c50] sm:$0xff] }
 0x1b6   :  { %6685 = vmatprep.subr.bf16.mxu0 %v6684_v31  ;;  %v938_v31 = vld [vmem:[%s11128_s1 + $0x1c10] sm:$0xff] }
 0x1b7   :  { %6715 = vmatpush3.bf16.msra.mxu1 %v6714_v29  ;;  %v4894_v48 = vpop.f32.mrb[12].mxu0  ;;  %v6732_v29 = vpack.c.bf16 %v955_v20, %v954_v9  ;;  %v978_v19 = vld [vmem:[%s11128_s1 + $0x1d50] sm:$0xff]  ;;  %v979_v20 = vld [vmem:[%s11128_s1 + $0x1d58] sm:$0xff] }
 0x1b8   :  { %6717 = vmatprep.subr.bf16.mxu1 %v6716_v23  ;;  %v4895_v56 = vpop.f32.mrb[13].mxu0  ;;  %v971_v23 = vld [vmem:[%s11128_s1 + $0x1d18] sm:$0xff] }
 0x1b9   :  { %v4929_v57 = vpop.f32.mrb[12].mxu1  ;;  %v4896_v49 = vadd.f32 %v4895_v56, %v4894_v48  ;;  %6687 = vmatpush3.bf16.msra.mxu0 %v6686_v42  ;;  %v1520_v42 = vcombine.high %v10095_v24, %v10095_v24  ;;  %v6768_v48 = vpack.c.bf16 %v989_v40, %v988_v38  ;;  %v966_v38 = vld [vmem:[%s11128_s1 + $0x1cf0] sm:$0xff]  ;;  %v967_v40 = vld [vmem:[%s11128_s1 + $0x1cf8] sm:$0xff] }
 0x1ba   :  { %v4930_v59 = vpop.f32.mrb[13].mxu1  ;;  %6689 = vmatprep.subr.bf16.mxu0 %v6688_v45  ;;  %v6766_v45 = vpack.c.bf16 %v971_v23, %v970_v33  ;;  %v948_v33 = vld [vmem:[%s11128_s1 + $0x1c60] sm:$0xff] }
 0x1bb   :  { %v4931_v53 = vadd.f32 %v4930_v59, %v4929_v57  ;;  %6719 = vmatpush3.bf16.msra.mxu1 %v6718_v44  ;;  %v2570_v3 = vadd.f32 %v4896_v49, %v9855_v13  ;;  %v985_v13 = vld [vmem:[%s11128_s1 + $0x1d88] sm:$0xff]  ;;  %v6734_v44 = vpack.c.bf16 %v939_v30, %v938_v31  ;;  %v943_v49 = vld [vmem:[%s11128_s1 + $0x1c38] sm:$0xff]  ;;  %v974_v59 = vld [vmem:[%s11128_s1 + $0x1d30] sm:$0xff]  ;;  %v6782_v31 = vpack.c.bf16 %v979_v20, %v978_v19 }
 0x1bc   :  { %6721 = vmatprep.subr.bf16.mxu1 %v6720_v32  ;;  %v6760_v18 = vpack.c.bf16 %v985_v13, %v984_v8  ;;  %v958_v32 = vld [vmem:[%s11128_s1 + $0x1cb0] sm:$0xff]  ;;  %v6742_v1 = vpack.c.bf16 %v943_v49, %v942_v58  ;;  %v6774_v2 = vpack.c.bf16 %v975_v60, %v974_v59  ;;  %v977_v8 = vld [vmem:[%s11128_s1 + $0x1d48] sm:$0xff]  ;;  %v6752_v30 = vpack.c.bf16 %v965_v22, %v964_v27  ;;  %v980_v23 = vld [vmem:[%s11128_s1 + $0x1d60] sm:$0xff] }
 0x1bd   :  { %v10065_v63 = vadd.f32 %v4931_v53, %v2570_v3  ;;  %6691 = vmatpush3.bf16.msra.mxu0 %v6690_v51  ;;  %v6740_v41 = vpack.c.bf16 %v959_v50, %v958_v32  ;;  %v6772_v51 = vpack.c.bf16 %v991_v55, %v990_v54  ;;  %v960_v53 = vld [vmem:[%s11128_s1 + $0x1cc0] sm:$0xff]  ;;  %v962_v13 = vld [vmem:[%s11128_s1 + $0x1cd0] sm:$0xff]  ;;  %v6778_v15 = vpack.c.bf16 %v977_v8, %v976_v61  ;;  %v951_v55 = vld [vmem:[%s11128_s1 + $0x1c78] sm:$0xff] }
 0x1be   :  { %6693 = vmatprep.subr.bf16.mxu0 %v6692_v62  ;;  %v992_v62 = vld [vmem:[%s11128_s1 + $0x1dc0] sm:$0xff]  ;;  %v6748_v16 = vpack.c.bf16 %v963_v7, %v962_v13  ;;  %v6756_v50 = vpack.c.bf16 %v967_v40, %v966_v38  ;;  %v950_v54 = vld [vmem:[%s11128_s1 + $0x1c70] sm:$0xff]  ;;  %v983_v58 = vld [vmem:[%s11128_s1 + $0x1d78] sm:$0xff] }
 0x1bf   :  { %6723 = vmatpush3.bf16.msra.mxu1 %v6722_v11  ;;  %v961_v11 = vld [vmem:[%s11128_s1 + $0x1cc8] sm:$0xff]  ;;  %v6776_v6 = vpack.c.bf16 %v993_v0, %v992_v62  ;;  %v1016_v49 = vld [vmem:[%s11128_s1 + $0x1e80] sm:$0xff]  ;;  %v1018_v61 = vld [vmem:[%s11128_s1 + $0x1e90] sm:$0xff] }
 0x1c0   :  { %6725 = vmatprep.subr.bf16.mxu1 %v6724_v4  ;;  %v6744_v3 = vpack.c.bf16 %v961_v11, %v960_v53  ;;  %v944_v4 = vld [vmem:[%s11128_s1 + $0x1c40] sm:$0xff]  ;;  %v1017_v59 = vld [vmem:[%s11128_s1 + $0x1e88] sm:$0xff]  ;;  %v6758_v11 = vpack.c.bf16 %v951_v55, %v950_v54  ;;  %v1050_v13 = vld [vmem:[%s11128_s1 + $0x1f90] sm:$0xff] }
 0x1c1   :  { %6695 = vmatpush3.bf16.msra.mxu0 %v6694_v26  ;;  %v994_v26 = vld [vmem:[%s11128_s1 + $0x1dd0] sm:$0xff]  ;;  %v6792_v0 = vpack.c.bf16 %v1017_v59, %v1016_v49  ;;  %v1051_v7 = vld [vmem:[%s11128_s1 + $0x1f98] sm:$0xff]  ;;  %v1020_v20 = vld [vmem:[%s11128_s1 + $0x1ea0] sm:$0xff] }
 0x1c2   :  { %6729 = vmatprep.subr.bf16.mxu0 %v6728_v14  ;;  %v6746_v14 = vpack.c.bf16 %v945_v5, %v944_v4  ;;  %v1033_v5 = vld [vmem:[%s11128_s1 + $0x1f08] sm:$0xff]  ;;  %v6828_v19 = vpack.c.bf16 %v1051_v7, %v1050_v13  ;;  %v1054_v38 = vld [vmem:[%s11128_s1 + $0x1fb0] sm:$0xff]  ;;  %v1055_v40 = vld [vmem:[%s11128_s1 + $0x1fb8] sm:$0xff] }
 0x1c3   :  { %6727 = vmatpush3.bf16.msra.mxu1 %v6726_v12  ;;  %v995_v12 = vld [vmem:[%s11128_s1 + $0x1dd8] sm:$0xff]  ;;  %v1021_v27 = vld [vmem:[%s11128_s1 + $0x1ea8] sm:$0xff]  ;;  %v1040_v49 = vld [vmem:[%s11128_s1 + $0x1f40] sm:$0xff] }
 0x1c4   :  { %6761 = vmatprep.subr.bf16.mxu1 %v6760_v18  ;;  %3548 = vmatmul.mubr.f32.vlgmr.msra.gmra.mrb[26].mxu0 %v9876_v35  ;;  %v940_v35 = vld [vmem:[%s11128_s1 + $0x1c20] sm:$0xff]  ;;  %v947_v18 = vld [vmem:[%s11128_s1 + $0x1c58] sm:$0xff]  ;;  %v6780_v9 = vpack.c.bf16 %v995_v12, %v994_v26  ;;  %v1057_v54 = vld [vmem:[%s11128_s1 + $0x1fc8] sm:$0xff] }
 0x1c5   :  { %6731 = vmatpush3.bf16.msra.mxu0 %v6730_v25  ;;  %3687 = vmatprep.mubr.f32.mxu0 %v1519_v36  ;;  %v6738_v56 = vpack.c.bf16 %v941_v47, %v940_v35  ;;  %v996_v25 = vld [vmem:[%s11128_s1 + $0x1de0] sm:$0xff]  ;;  %v981_v36 = vld [vmem:[%s11128_s1 + $0x1d68] sm:$0xff] }
 0x1c6   :  { %3618 = vmatmul.mubr.f32.vlgmr.msra.gmra.mrb[26].mxu1 %v9885_v37  ;;  %6733 = vmatprep.subr.bf16.mxu0 %v6732_v29  ;;  %v973_v37 = vld [vmem:[%s11128_s1 + $0x1d28] sm:$0xff]  ;;  %v6750_v29 = vpack.c.bf16 %v947_v18, %v946_v17  ;;  %v6786_v32 = vpack.c.bf16 %v981_v36, %v980_v23  ;;  %v1003_v17 = vld [vmem:[%s11128_s1 + $0x1e18] sm:$0xff]  ;;  %v1034_v18 = vld [vmem:[%s11128_s1 + $0x1f10] sm:$0xff] }
 0x1c7   :  { %6763 = vmatpush3.bf16.msra.mxu1 %v6762_v28  ;;  %3757 = vmatprep.mubr.f32.mxu1 %v1520_v42  ;;  %v6770_v57 = vpack.c.bf16 %v973_v37, %v972_v52  ;;  %v997_v28 = vld [vmem:[%s11128_s1 + $0x1de8] sm:$0xff]  ;;  %v1036_v23 = vld [vmem:[%s11128_s1 + $0x1f20] sm:$0xff]  ;;  %v1023_v36 = vld [vmem:[%s11128_s1 + $0x1eb8] sm:$0xff] }
 0x1c8   :  { %6765 = vmatprep.subr.bf16.mxu1 %v6764_v43  ;;  %v949_v43 = vld [vmem:[%s11128_s1 + $0x1c68] sm:$0xff]  ;;  %v6784_v39 = vpack.c.bf16 %v997_v28, %v996_v25  ;;  %v1052_v25 = vld [vmem:[%s11128_s1 + $0x1fa0] sm:$0xff] }
 0x1c9   :  { %6735 = vmatpush3.bf16.msra.mxu0 %v6734_v44  ;;  %v6754_v52 = vpack.c.bf16 %v949_v43, %v948_v33  ;;  %v1053_v28 = vld [vmem:[%s11128_s1 + $0x1fa8] sm:$0xff]  ;;  %v6800_v33 = vpack.c.bf16 %v1021_v27, %v1020_v20  ;;  %v1028_v13 = vld [vmem:[%s11128_s1 + $0x1ee0] sm:$0xff] }
 0x1ca   :  { %6737 = vmatprep.subr.bf16.mxu0 %v6736_v46  ;;  %v999_v46 = vld [vmem:[%s11128_s1 + $0x1df8] sm:$0xff]  ;;  %v1005_v43 = vld [vmem:[%s11128_s1 + $0x1e28] sm:$0xff] }
 0x1cb   :  { %6767 = vmatpush3.bf16.msra.mxu1 %v6766_v45  ;;  %v998_v45 = vld [vmem:[%s11128_s1 + $0x1df0] sm:$0xff]  ;;  %v1029_v7 = vld [vmem:[%s11128_s1 + $0x1ee8] sm:$0xff] }
 0x1cc   :  { %6769 = vmatprep.subr.bf16.mxu1 %v6768_v48  ;;  %v36_v48 = vld [vmem:[%s11127_s0 + $0x78] sm:$0xff] }
 0x1cd   :  { %6739 = vmatpush3.bf16.msra.mxu0 %v6738_v56  ;;  %v982_v56 = vld [vmem:[%s11128_s1 + $0x1d70] sm:$0xff]  ;;  %v1521_v60 = vcombine.high %v36_v48, %v36_v48  ;;  %v10296_v8 = vrot.slane %v36_v48, %v7285_v10  ;;  %v1039_v48 = vld [vmem:[%s11128_s1 + $0x1f38] sm:$0xff] }
 0x1ce   :  { %6741 = vmatprep.subr.bf16.mxu0 %v6740_v41  ;;  %v6788_v41 = vpack.c.bf16 %v999_v46, %v998_v45  ;;  %v6790_v62 = vpack.c.bf16 %v983_v58, %v982_v56  ;;  %v1006_v46 = vld [vmem:[%s11128_s1 + $0x1e30] sm:$0xff]  ;;  %v1009_v58 = vld [vmem:[%s11128_s1 + $0x1e48] sm:$0xff] }
 0x1cf   :  { %6771 = vmatpush3.bf16.msra.mxu1 %v6770_v57  ;;  %v10305_v26 = vrot.slane %v1521_v60, %v7285_v10  ;;  %v1536_v22 = vcombine.high %v10296_v8, %v10296_v8  ;;  %v1027_v60 = vld [vmem:[%s11128_s1 + $0x1ed8] sm:$0xff] }
 0x1d0   :  { %6773 = vmatprep.subr.bf16.mxu1 %v6772_v51  ;;  %v1048_v51 = vld [vmem:[%s11128_s1 + $0x1f80] sm:$0xff] }
 0x1d1   :  { %6743 = vmatpush3.bf16.msra.mxu0 %v6742_v1  ;;  %v1000_v1 = vld [vmem:[%s11128_s1 + $0x1e00] sm:$0xff] }
 0x1d2   :  { %6745 = vmatprep.subr.bf16.mxu0 %v6744_v3  ;;  %v1032_v3 = vld [vmem:[%s11128_s1 + $0x1f00] sm:$0xff] }
 0x1d3   :  { %6775 = vmatpush3.bf16.msra.mxu1 %v6774_v2  ;;  %v1001_v2 = vld [vmem:[%s11128_s1 + $0x1e08] sm:$0xff] }
 0x1d4   :  { %6777 = vmatprep.subr.bf16.mxu1 %v6776_v6  ;;  %v1019_v6 = vld [vmem:[%s11128_s1 + $0x1e98] sm:$0xff]  ;;  %v6794_v12 = vpack.c.bf16 %v1001_v2, %v1000_v1 }
 0x1d5   :  { %6747 = vmatpush3.bf16.msra.mxu0 %v6746_v14  ;;  %v6826_v14 = vpack.c.bf16 %v1033_v5, %v1032_v3  ;;  %v1010_v3 = vld [vmem:[%s11128_s1 + $0x1e50] sm:$0xff] }
 0x1d6   :  { %6749 = vmatprep.subr.bf16.mxu0 %v6748_v16  ;;  %v1002_v16 = vld [vmem:[%s11128_s1 + $0x1e10] sm:$0xff] }
 0x1d7   :  { %6779 = vmatpush3.bf16.msra.mxu1 %v6778_v15  ;;  %v4964_v34 = vpop.f32.mrb[14].mxu0  ;;  %v6796_v15 = vpack.c.bf16 %v1019_v6, %v1018_v61  ;;  %v1042_v5 = vld [vmem:[%s11128_s1 + $0x1f50] sm:$0xff]  ;;  %v1043_v6 = vld [vmem:[%s11128_s1 + $0x1f58] sm:$0xff] }
 0x1d8   :  { %6781 = vmatprep.subr.bf16.mxu1 %v6780_v9  ;;  %v4965_v42 = vpop.f32.mrb[15].mxu0  ;;  %v1035_v9 = vld [vmem:[%s11128_s1 + $0x1f18] sm:$0xff] }
 0x1d9   :  { %v4999_v44 = vpop.f32.mrb[14].mxu1  ;;  %v4966_v35 = vadd.f32 %v4965_v42, %v4964_v34  ;;  %6751 = vmatpush3.bf16.msra.mxu0 %v6750_v29  ;;  %v1537_v29 = vcombine.high %v10305_v26, %v10305_v26  ;;  %v6832_v34 = vpack.c.bf16 %v1053_v28, %v1052_v25  ;;  %v1030_v25 = vld [vmem:[%s11128_s1 + $0x1ef0] sm:$0xff]  ;;  %v1031_v28 = vld [vmem:[%s11128_s1 + $0x1ef8] sm:$0xff] }
 0x1da   :  { %v5000_v47 = vpop.f32.mrb[15].mxu1  ;;  %6753 = vmatprep.subr.bf16.mxu0 %v6752_v30  ;;  %v6830_v30 = vpack.c.bf16 %v1035_v9, %v1034_v18  ;;  %v1012_v18 = vld [vmem:[%s11128_s1 + $0x1e60] sm:$0xff] }
 0x1db   :  { %v5001_v37 = vadd.f32 %v5000_v47, %v4999_v44  ;;  %6783 = vmatpush3.bf16.msra.mxu1 %v6782_v31  ;;  %v2710_v57 = vadd.f32 %v4966_v35, %v10065_v63  ;;  %v1049_v63 = vld [vmem:[%s11128_s1 + $0x1f88] sm:$0xff]  ;;  %v6798_v31 = vpack.c.bf16 %v1003_v17, %v1002_v16  ;;  %v1007_v35 = vld [vmem:[%s11128_s1 + $0x1e38] sm:$0xff]  ;;  %v1038_v47 = vld [vmem:[%s11128_s1 + $0x1f30] sm:$0xff]  ;;  %v6846_v16 = vpack.c.bf16 %v1043_v6, %v1042_v5 }
 0x1dc   :  { %6785 = vmatprep.subr.bf16.mxu1 %v6784_v39  ;;  %v6824_v4 = vpack.c.bf16 %v1049_v63, %v1048_v51  ;;  %v1022_v39 = vld [vmem:[%s11128_s1 + $0x1eb0] sm:$0xff]  ;;  %v6806_v55 = vpack.c.bf16 %v1007_v35, %v1006_v46  ;;  %v6838_v56 = vpack.c.bf16 %v1039_v48, %v1038_v47  ;;  %v1041_v51 = vld [vmem:[%s11128_s1 + $0x1f48] sm:$0xff]  ;;  %v6816_v17 = vpack.c.bf16 %v1029_v7, %v1028_v13  ;;  %v1044_v9 = vld [vmem:[%s11128_s1 + $0x1f60] sm:$0xff] }
 0x1dd   :  { %v10275_v53 = vadd.f32 %v5001_v37, %v2710_v57  ;;  %6755 = vmatpush3.bf16.msra.mxu0 %v6754_v52  ;;  %v6804_v45 = vpack.c.bf16 %v1023_v36, %v1022_v39  ;;  %v6836_v52 = vpack.c.bf16 %v1055_v40, %v1054_v38  ;;  %v1024_v37 = vld [vmem:[%s11128_s1 + $0x1ec0] sm:$0xff]  ;;  %v1026_v63 = vld [vmem:[%s11128_s1 + $0x1ed0] sm:$0xff]  ;;  %v6842_v1 = vpack.c.bf16 %v1041_v51, %v1040_v49  ;;  %v1015_v40 = vld [vmem:[%s11128_s1 + $0x1e78] sm:$0xff] }
 0x1de   :  { %6757 = vmatprep.subr.bf16.mxu0 %v6756_v50  ;;  %v1056_v50 = vld [vmem:[%s11128_s1 + $0x1fc0] sm:$0xff]  ;;  %v6812_v2 = vpack.c.bf16 %v1027_v60, %v1026_v63  ;;  %v6820_v36 = vpack.c.bf16 %v1031_v28, %v1030_v25  ;;  %v1014_v38 = vld [vmem:[%s11128_s1 + $0x1e70] sm:$0xff]  ;;  %v1047_v46 = vld [vmem:[%s11128_s1 + $0x1f78] sm:$0xff] }
 0x1df   :  { %6787 = vmatpush3.bf16.msra.mxu1 %v6786_v32  ;;  %v1025_v32 = vld [vmem:[%s11128_s1 + $0x1ec8] sm:$0xff]  ;;  %v6840_v59 = vpack.c.bf16 %v1057_v54, %v1056_v50  ;;  %v1080_v35 = vld [vmem:[%s11128_s1 + $0x2080] sm:$0xff]  ;;  %v1082_v49 = vld [vmem:[%s11128_s1 + $0x2090] sm:$0xff] }
 0x1e0   :  { %6789 = vmatprep.subr.bf16.mxu1 %v6788_v41  ;;  %v6808_v57 = vpack.c.bf16 %v1025_v32, %v1024_v37  ;;  %v1008_v41 = vld [vmem:[%s11128_s1 + $0x1e40] sm:$0xff]  ;;  %v1081_v47 = vld [vmem:[%s11128_s1 + $0x2088] sm:$0xff]  ;;  %v6822_v32 = vpack.c.bf16 %v1015_v40, %v1014_v38  ;;  %v1114_v63 = vld [vmem:[%s11128_s1 + $0x2190] sm:$0xff] }
 0x1e1   :  { %6759 = vmatpush3.bf16.msra.mxu0 %v6758_v11  ;;  %v1058_v11 = vld [vmem:[%s11128_s1 + $0x1fd0] sm:$0xff]  ;;  %v6856_v54 = vpack.c.bf16 %v1081_v47, %v1080_v35  ;;  %v1115_v60 = vld [vmem:[%s11128_s1 + $0x2198] sm:$0xff]  ;;  %v1084_v6 = vld [vmem:[%s11128_s1 + $0x20a0] sm:$0xff] }
 0x1e2   :  { %6793 = vmatprep.subr.bf16.mxu0 %v6792_v0  ;;  %v6810_v0 = vpack.c.bf16 %v1009_v58, %v1008_v41  ;;  %v1097_v58 = vld [vmem:[%s11128_s1 + $0x2108] sm:$0xff]  ;;  %v6892_v5 = vpack.c.bf16 %v1115_v60, %v1114_v63  ;;  %v1118_v25 = vld [vmem:[%s11128_s1 + $0x21b0] sm:$0xff]  ;;  %v1119_v28 = vld [vmem:[%s11128_s1 + $0x21b8] sm:$0xff] }
 0x1e3   :  { %6791 = vmatpush3.bf16.msra.mxu1 %v6790_v62  ;;  %v1059_v62 = vld [vmem:[%s11128_s1 + $0x1fd8] sm:$0xff]  ;;  %v1085_v13 = vld [vmem:[%s11128_s1 + $0x20a8] sm:$0xff]  ;;  %v1104_v35 = vld [vmem:[%s11128_s1 + $0x2140] sm:$0xff] }
 0x1e4   :  { %6825 = vmatprep.subr.bf16.mxu1 %v6824_v4  ;;  %3688 = vmatmul.mubr.f32.vlgmr.msra.gmra.mrb[28].mxu0 %v10086_v21  ;;  %v1004_v21 = vld [vmem:[%s11128_s1 + $0x1e20] sm:$0xff]  ;;  %v1011_v4 = vld [vmem:[%s11128_s1 + $0x1e58] sm:$0xff]  ;;  %v6844_v61 = vpack.c.bf16 %v1059_v62, %v1058_v11  ;;  %v1121_v38 = vld [vmem:[%s11128_s1 + $0x21c8] sm:$0xff] }
 0x1e5   :  { %6795 = vmatpush3.bf16.msra.mxu0 %v6794_v12  ;;  %3827 = vmatprep.mubr.f32.mxu0 %v1536_v22  ;;  %v6802_v42 = vpack.c.bf16 %v1005_v43, %v1004_v21  ;;  %v1060_v12 = vld [vmem:[%s11128_s1 + $0x1fe0] sm:$0xff]  ;;  %v1045_v22 = vld [vmem:[%s11128_s1 + $0x1f68] sm:$0xff] }
 0x1e6   :  { %3758 = vmatmul.mubr.f32.vlgmr.msra.gmra.mrb[28].mxu1 %v10095_v24  ;;  %6797 = vmatprep.subr.bf16.mxu0 %v6796_v15  ;;  %v1037_v24 = vld [vmem:[%s11128_s1 + $0x1f28] sm:$0xff]  ;;  %v6814_v15 = vpack.c.bf16 %v1011_v4, %v1010_v3  ;;  %v6850_v39 = vpack.c.bf16 %v1045_v22, %v1044_v9  ;;  %v1067_v3 = vld [vmem:[%s11128_s1 + $0x2018] sm:$0xff]  ;;  %v1098_v4 = vld [vmem:[%s11128_s1 + $0x2110] sm:$0xff] }
 0x1e7   :  { %6827 = vmatpush3.bf16.msra.mxu1 %v6826_v14  ;;  %3897 = vmatprep.mubr.f32.mxu1 %v1537_v29  ;;  %v6834_v44 = vpack.c.bf16 %v1037_v24, %v1036_v23  ;;  %v1061_v14 = vld [vmem:[%s11128_s1 + $0x1fe8] sm:$0xff]  ;;  %v1100_v9 = vld [vmem:[%s11128_s1 + $0x2120] sm:$0xff]  ;;  %v1087_v22 = vld [vmem:[%s11128_s1 + $0x20b8] sm:$0xff] }
 0x1e8   :  { %6829 = vmatprep.subr.bf16.mxu1 %v6828_v19  ;;  %v1013_v19 = vld [vmem:[%s11128_s1 + $0x1e68] sm:$0xff]  ;;  %v6848_v27 = vpack.c.bf16 %v1061_v14, %v1060_v12  ;;  %v1116_v12 = vld [vmem:[%s11128_s1 + $0x21a0] sm:$0xff] }
 0x1e9   :  { %6799 = vmatpush3.bf16.msra.mxu0 %v6798_v31  ;;  %v6818_v23 = vpack.c.bf16 %v1013_v19, %v1012_v18  ;;  %v1117_v14 = vld [vmem:[%s11128_s1 + $0x21a8] sm:$0xff]  ;;  %v6864_v18 = vpack.c.bf16 %v1085_v13, %v1084_v6  ;;  %v1092_v63 = vld [vmem:[%s11128_s1 + $0x20e0] sm:$0xff] }
 0x1ea   :  { %6801 = vmatprep.subr.bf16.mxu0 %v6800_v33  ;;  %v1063_v33 = vld [vmem:[%s11128_s1 + $0x1ff8] sm:$0xff]  ;;  %v1069_v19 = vld [vmem:[%s11128_s1 + $0x2028] sm:$0xff] }
 0x1eb   :  { %6831 = vmatpush3.bf16.msra.mxu1 %v6830_v30  ;;  %v1062_v30 = vld [vmem:[%s11128_s1 + $0x1ff0] sm:$0xff]  ;;  %v1093_v60 = vld [vmem:[%s11128_s1 + $0x20e8] sm:$0xff] }
 0x1ec   :  { %6833 = vmatprep.subr.bf16.mxu1 %v6832_v34  ;;  %v37_v34 = vld [vmem:[%s11127_s0 + $0x80] sm:$0xff] }
 0x1ed   :  { %6803 = vmatpush3.bf16.msra.mxu0 %v6802_v42  ;;  %v1046_v42 = vld [vmem:[%s11128_s1 + $0x1f70] sm:$0xff]  ;;  %v1538_v48 = vcombine.high %v37_v34, %v37_v34  ;;  %v10506_v51 = vrot.slane %v37_v34, %v7285_v10  ;;  %v1103_v34 = vld [vmem:[%s11128_s1 + $0x2138] sm:$0xff] }
 0x1ee   :  { %6805 = vmatprep.subr.bf16.mxu0 %v6804_v45  ;;  %v6852_v45 = vpack.c.bf16 %v1063_v33, %v1062_v30  ;;  %v6854_v50 = vpack.c.bf16 %v1047_v46, %v1046_v42  ;;  %v1070_v33 = vld [vmem:[%s11128_s1 + $0x2030] sm:$0xff]  ;;  %v1073_v46 = vld [vmem:[%s11128_s1 + $0x2048] sm:$0xff] }
 0x1ef   :  { %6835 = vmatpush3.bf16.msra.mxu1 %v6834_v44  ;;  %v10515_v11 = vrot.slane %v1538_v48, %v7285_v10  ;;  %v1553_v7 = vcombine.high %v10506_v51, %v10506_v51  ;;  %v1091_v48 = vld [vmem:[%s11128_s1 + $0x20d8] sm:$0xff] }
 0x1f0   :  { %6837 = vmatprep.subr.bf16.mxu1 %v6836_v52  ;;  %v1112_v52 = vld [vmem:[%s11128_s1 + $0x2180] sm:$0xff] }
 0x1f1   :  { %6807 = vmatpush3.bf16.msra.mxu0 %v6806_v55  ;;  %v1064_v55 = vld [vmem:[%s11128_s1 + $0x2000] sm:$0xff] }
 0x1f2   :  { %6809 = vmatprep.subr.bf16.mxu0 %v6808_v57  ;;  %v1096_v57 = vld [vmem:[%s11128_s1 + $0x2100] sm:$0xff] }
 0x1f3   :  { %6839 = vmatpush3.bf16.msra.mxu1 %v6838_v56  ;;  %v1065_v56 = vld [vmem:[%s11128_s1 + $0x2008] sm:$0xff] }
 0x1f4   :  { %6841 = vmatprep.subr.bf16.mxu1 %v6840_v59  ;;  %v1083_v59 = vld [vmem:[%s11128_s1 + $0x2098] sm:$0xff]  ;;  %v6858_v62 = vpack.c.bf16 %v1065_v56, %v1064_v55 }
 0x1f5   :  { %6811 = vmatpush3.bf16.msra.mxu0 %v6810_v0  ;;  %v6890_v0 = vpack.c.bf16 %v1097_v58, %v1096_v57  ;;  %v1074_v57 = vld [vmem:[%s11128_s1 + $0x2050] sm:$0xff] }
 0x1f6   :  { %6813 = vmatprep.subr.bf16.mxu0 %v6812_v2  ;;  %v1066_v2 = vld [vmem:[%s11128_s1 + $0x2010] sm:$0xff] }
 0x1f7   :  { %6843 = vmatpush3.bf16.msra.mxu1 %v6842_v1  ;;  %v5034_v20 = vpop.f32.mrb[16].mxu0  ;;  %v6860_v1 = vpack.c.bf16 %v1083_v59, %v1082_v49  ;;  %v1106_v58 = vld [vmem:[%s11128_s1 + $0x2150] sm:$0xff]  ;;  %v1107_v59 = vld [vmem:[%s11128_s1 + $0x2158] sm:$0xff] }
 0x1f8   :  { %6845 = vmatprep.subr.bf16.mxu1 %v6844_v61  ;;  %v5035_v29 = vpop.f32.mrb[17].mxu0  ;;  %v1099_v61 = vld [vmem:[%s11128_s1 + $0x2118] sm:$0xff] }
 0x1f9   :  { %v5069_v31 = vpop.f32.mrb[16].mxu1  ;;  %v5036_v21 = vadd.f32 %v5035_v29, %v5034_v20  ;;  %6815 = vmatpush3.bf16.msra.mxu0 %v6814_v15  ;;  %v1554_v15 = vcombine.high %v10515_v11, %v10515_v11  ;;  %v6896_v20 = vpack.c.bf16 %v1117_v14, %v1116_v12  ;;  %v1094_v12 = vld [vmem:[%s11128_s1 + $0x20f0] sm:$0xff]  ;;  %v1095_v14 = vld [vmem:[%s11128_s1 + $0x20f8] sm:$0xff] }
 0x1fa   :  { %v5070_v43 = vpop.f32.mrb[17].mxu1  ;;  %6817 = vmatprep.subr.bf16.mxu0 %v6816_v17  ;;  %v6894_v17 = vpack.c.bf16 %v1099_v61, %v1098_v4  ;;  %v1076_v4 = vld [vmem:[%s11128_s1 + $0x2060] sm:$0xff] }
 0x1fb   :  { %v5071_v24 = vadd.f32 %v5070_v43, %v5069_v31  ;;  %6847 = vmatpush3.bf16.msra.mxu1 %v6846_v16  ;;  %v2850_v44 = vadd.f32 %v5036_v21, %v10275_v53  ;;  %v1113_v53 = vld [vmem:[%s11128_s1 + $0x2188] sm:$0xff]  ;;  %v6862_v16 = vpack.c.bf16 %v1067_v3, %v1066_v2  ;;  %v1071_v21 = vld [vmem:[%s11128_s1 + $0x2038] sm:$0xff]  ;;  %v1102_v43 = vld [vmem:[%s11128_s1 + $0x2130] sm:$0xff]  ;;  %v6910_v2 = vpack.c.bf16 %v1107_v59, %v1106_v58 }
 0x1fc   :  { %6849 = vmatprep.subr.bf16.mxu1 %v6848_v27  ;;  %v6888_v41 = vpack.c.bf16 %v1113_v53, %v1112_v52  ;;  %v1086_v27 = vld [vmem:[%s11128_s1 + $0x20b0] sm:$0xff]  ;;  %v6870_v40 = vpack.c.bf16 %v1071_v21, %v1070_v33  ;;  %v6902_v42 = vpack.c.bf16 %v1103_v34, %v1102_v43  ;;  %v1105_v52 = vld [vmem:[%s11128_s1 + $0x2148] sm:$0xff]  ;;  %v6880_v3 = vpack.c.bf16 %v1093_v60, %v1092_v63  ;;  %v1108_v61 = vld [vmem:[%s11128_s1 + $0x2160] sm:$0xff] }
 0x1fd   :  { %v10485_v37 = vadd.f32 %v5071_v24, %v2850_v44  ;;  %6819 = vmatpush3.bf16.msra.mxu0 %v6818_v23  ;;  %v6868_v30 = vpack.c.bf16 %v1087_v22, %v1086_v27  ;;  %v6900_v23 = vpack.c.bf16 %v1119_v28, %v1118_v25  ;;  %v1088_v24 = vld [vmem:[%s11128_s1 + $0x20c0] sm:$0xff]  ;;  %v1090_v53 = vld [vmem:[%s11128_s1 + $0x20d0] sm:$0xff]  ;;  %v6906_v55 = vpack.c.bf16 %v1105_v52, %v1104_v35  ;;  %v1079_v28 = vld [vmem:[%s11128_s1 + $0x2078] sm:$0xff] }
 0x1fe   :  { %6821 = vmatprep.subr.bf16.mxu0 %v6820_v36  ;;  %v1120_v36 = vld [vmem:[%s11128_s1 + $0x21c0] sm:$0xff]  ;;  %v6876_v56 = vpack.c.bf16 %v1091_v48, %v1090_v53  ;;  %v6884_v22 = vpack.c.bf16 %v1095_v14, %v1094_v12  ;;  %v1078_v25 = vld [vmem:[%s11128_s1 + $0x2070] sm:$0xff]  ;;  %v1111_v33 = vld [vmem:[%s11128_s1 + $0x2178] sm:$0xff] }
 0x1ff   :  { %6851 = vmatpush3.bf16.msra.mxu1 %v6850_v39  ;;  %v1089_v39 = vld [vmem:[%s11128_s1 + $0x20c8] sm:$0xff]  ;;  %v6904_v47 = vpack.c.bf16 %v1121_v38, %v1120_v36  ;;  %v1144_v21 = vld [vmem:[%s11128_s1 + $0x2280] sm:$0xff]  ;;  %v1146_v35 = vld [vmem:[%s11128_s1 + $0x2290] sm:$0xff] }
 0x200   :  { %6853 = vmatprep.subr.bf16.mxu1 %v6852_v45  ;;  %v6872_v44 = vpack.c.bf16 %v1089_v39, %v1088_v24  ;;  %v1072_v45 = vld [vmem:[%s11128_s1 + $0x2040] sm:$0xff]  ;;  %v1145_v43 = vld [vmem:[%s11128_s1 + $0x2288] sm:$0xff]  ;;  %v6886_v39 = vpack.c.bf16 %v1079_v28, %v1078_v25  ;;  %v1178_v53 = vld [vmem:[%s11128_s1 + $0x2390] sm:$0xff] }
 0x201   :  { %6823 = vmatpush3.bf16.msra.mxu0 %v6822_v32  ;;  %v1122_v32 = vld [vmem:[%s11128_s1 + $0x21d0] sm:$0xff]  ;;  %v6920_v38 = vpack.c.bf16 %v1145_v43, %v1144_v21  ;;  %v1179_v48 = vld [vmem:[%s11128_s1 + $0x2398] sm:$0xff]  ;;  %v1148_v59 = vld [vmem:[%s11128_s1 + $0x22a0] sm:$0xff] }
 0x202   :  { %6857 = vmatprep.subr.bf16.mxu0 %v6856_v54  ;;  %v6874_v54 = vpack.c.bf16 %v1073_v46, %v1072_v45  ;;  %v1161_v46 = vld [vmem:[%s11128_s1 + $0x2308] sm:$0xff]  ;;  %v6956_v58 = vpack.c.bf16 %v1179_v48, %v1178_v53  ;;  %v1182_v12 = vld [vmem:[%s11128_s1 + $0x23b0] sm:$0xff]  ;;  %v1183_v14 = vld [vmem:[%s11128_s1 + $0x23b8] sm:$0xff] }
 0x203   :  { %6855 = vmatpush3.bf16.msra.mxu1 %v6854_v50  ;;  %v1123_v50 = vld [vmem:[%s11128_s1 + $0x21d8] sm:$0xff]  ;;  %v1149_v63 = vld [vmem:[%s11128_s1 + $0x22a8] sm:$0xff]  ;;  %v1168_v21 = vld [vmem:[%s11128_s1 + $0x2340] sm:$0xff] }
 0x204   :  { %6889 = vmatprep.subr.bf16.mxu1 %v6888_v41  ;;  %3828 = vmatmul.mubr.f32.vlgmr.msra.gmra.mrb[30].mxu0 %v10296_v8  ;;  %v1068_v8 = vld [vmem:[%s11128_s1 + $0x2020] sm:$0xff]  ;;  %v1075_v41 = vld [vmem:[%s11128_s1 + $0x2058] sm:$0xff]  ;;  %v6908_v49 = vpack.c.bf16 %v1123_v50, %v1122_v32  ;;  %v1185_v25 = vld [vmem:[%s11128_s1 + $0x23c8] sm:$0xff] }
 0x205   :  { %6859 = vmatpush3.bf16.msra.mxu0 %v6858_v62  ;;  %3967 = vmatprep.mubr.f32.mxu0 %v1553_v7  ;;  %v6866_v29 = vpack.c.bf16 %v1069_v19, %v1068_v8  ;;  %v1124_v62 = vld [vmem:[%s11128_s1 + $0x21e0] sm:$0xff]  ;;  %v1109_v7 = vld [vmem:[%s11128_s1 + $0x2168] sm:$0xff] }
 0x206   :  { %3898 = vmatmul.mubr.f32.vlgmr.msra.gmra.mrb[30].mxu1 %v10305_v26  ;;  %6861 = vmatprep.subr.bf16.mxu0 %v6860_v1  ;;  %v1101_v26 = vld [vmem:[%s11128_s1 + $0x2128] sm:$0xff]  ;;  %v6878_v1 = vpack.c.bf16 %v1075_v41, %v1074_v57  ;;  %v6914_v27 = vpack.c.bf16 %v1109_v7, %v1108_v61  ;;  %v1131_v57 = vld [vmem:[%s11128_s1 + $0x2218] sm:$0xff]  ;;  %v1162_v41 = vld [vmem:[%s11128_s1 + $0x2310] sm:$0xff] }
 0x207   :  { %6891 = vmatpush3.bf16.msra.mxu1 %v6890_v0  ;;  %4037 = vmatprep.mubr.f32.mxu1 %v1554_v15  ;;  %v6898_v31 = vpack.c.bf16 %v1101_v26, %v1100_v9  ;;  %v1125_v0 = vld [vmem:[%s11128_s1 + $0x21e8] sm:$0xff]  ;;  %v1164_v61 = vld [vmem:[%s11128_s1 + $0x2320] sm:$0xff]  ;;  %v1151_v7 = vld [vmem:[%s11128_s1 + $0x22b8] sm:$0xff] }
 0x208   :  { %6893 = vmatprep.subr.bf16.mxu1 %v6892_v5  ;;  %v1077_v5 = vld [vmem:[%s11128_s1 + $0x2068] sm:$0xff]  ;;  %v6912_v13 = vpack.c.bf16 %v1125_v0, %v1124_v62  ;;  %v1180_v62 = vld [vmem:[%s11128_s1 + $0x23a0] sm:$0xff] }
 0x209   :  { %6863 = vmatpush3.bf16.msra.mxu0 %v6862_v16  ;;  %v6882_v9 = vpack.c.bf16 %v1077_v5, %v1076_v4  ;;  %v1181_v0 = vld [vmem:[%s11128_s1 + $0x23a8] sm:$0xff]  ;;  %v6928_v4 = vpack.c.bf16 %v1149_v63, %v1148_v59  ;;  %v1156_v53 = vld [vmem:[%s11128_s1 + $0x22e0] sm:$0xff] }
 0x20a   :  { %6865 = vmatprep.subr.bf16.mxu0 %v6864_v18  ;;  %v1127_v18 = vld [vmem:[%s11128_s1 + $0x21f8] sm:$0xff]  ;;  %v1133_v5 = vld [vmem:[%s11128_s1 + $0x2228] sm:$0xff] }
 0x20b   :  { %6895 = vmatpush3.bf16.msra.mxu1 %v6894_v17  ;;  %v1126_v17 = vld [vmem:[%s11128_s1 + $0x21f0] sm:$0xff]  ;;  %v1157_v48 = vld [vmem:[%s11128_s1 + $0x22e8] sm:$0xff] }
 0x20c   :  { %6897 = vmatprep.subr.bf16.mxu1 %v6896_v20  ;;  %v38_v20 = vld [vmem:[%s11127_s0 + $0x88] sm:$0xff] }
 0x20d   :  { %6867 = vmatpush3.bf16.msra.mxu0 %v6866_v29  ;;  %v1110_v29 = vld [vmem:[%s11128_s1 + $0x2170] sm:$0xff]  ;;  %v1555_v34 = vcombine.high %v38_v20, %v38_v20  ;;  %v10716_v52 = vrot.slane %v38_v20, %v7285_v10  ;;  %v1167_v20 = vld [vmem:[%s11128_s1 + $0x2338] sm:$0xff] }
 0x20e   :  { %6869 = vmatprep.subr.bf16.mxu0 %v6868_v30  ;;  %v6916_v30 = vpack.c.bf16 %v1127_v18, %v1126_v17  ;;  %v6918_v36 = vpack.c.bf16 %v1111_v33, %v1110_v29  ;;  %v1134_v18 = vld [vmem:[%s11128_s1 + $0x2230] sm:$0xff]  ;;  %v1137_v33 = vld [vmem:[%s11128_s1 + $0x2248] sm:$0xff] }
 0x20f   :  { %6899 = vmatpush3.bf16.msra.mxu1 %v6898_v31  ;;  %v10725_v32 = vrot.slane %v1555_v34, %v7285_v10  ;;  %v1570_v60 = vcombine.high %v10716_v52, %v10716_v52  ;;  %v1155_v34 = vld [vmem:[%s11128_s1 + $0x22d8] sm:$0xff] }
 0x210   :  { %6901 = vmatprep.subr.bf16.mxu1 %v6900_v23  ;;  %v1176_v23 = vld [vmem:[%s11128_s1 + $0x2380] sm:$0xff] }
 0x211   :  { %6871 = vmatpush3.bf16.msra.mxu0 %v6870_v40  ;;  %v1128_v40 = vld [vmem:[%s11128_s1 + $0x2200] sm:$0xff] }
 0x212   :  { %6873 = vmatprep.subr.bf16.mxu0 %v6872_v44  ;;  %v1160_v44 = vld [vmem:[%s11128_s1 + $0x2300] sm:$0xff] }
 0x213   :  { %6903 = vmatpush3.bf16.msra.mxu1 %v6902_v42  ;;  %v1129_v42 = vld [vmem:[%s11128_s1 + $0x2208] sm:$0xff] }
 0x214   :  { %6905 = vmatprep.subr.bf16.mxu1 %v6904_v47  ;;  %v1147_v47 = vld [vmem:[%s11128_s1 + $0x2298] sm:$0xff]  ;;  %v6922_v50 = vpack.c.bf16 %v1129_v42, %v1128_v40 }
 0x215   :  { %6875 = vmatpush3.bf16.msra.mxu0 %v6874_v54  ;;  %v6954_v54 = vpack.c.bf16 %v1161_v46, %v1160_v44  ;;  %v1138_v44 = vld [vmem:[%s11128_s1 + $0x2250] sm:$0xff] }
 0x216   :  { %6877 = vmatprep.subr.bf16.mxu0 %v6876_v56  ;;  %v1130_v56 = vld [vmem:[%s11128_s1 + $0x2210] sm:$0xff] }
 0x217   :  { %6907 = vmatpush3.bf16.msra.mxu1 %v6906_v55  ;;  %v5104_v6 = vpop.f32.mrb[18].mxu0  ;;  %v6924_v55 = vpack.c.bf16 %v1147_v47, %v1146_v35  ;;  %v1170_v46 = vld [vmem:[%s11128_s1 + $0x2350] sm:$0xff]  ;;  %v1171_v47 = vld [vmem:[%s11128_s1 + $0x2358] sm:$0xff] }
 0x218   :  { %6909 = vmatprep.subr.bf16.mxu1 %v6908_v49  ;;  %v5105_v15 = vpop.f32.mrb[19].mxu0  ;;  %v1163_v49 = vld [vmem:[%s11128_s1 + $0x2318] sm:$0xff] }
 0x219   :  { %v5139_v16 = vpop.f32.mrb[18].mxu1  ;;  %v5106_v8 = vadd.f32 %v5105_v15, %v5104_v6  ;;  %6879 = vmatpush3.bf16.msra.mxu0 %v6878_v1  ;;  %v1571_v1 = vcombine.high %v10725_v32, %v10725_v32  ;;  %v6960_v6 = vpack.c.bf16 %v1181_v0, %v1180_v62  ;;  %v1158_v62 = vld [vmem:[%s11128_s1 + $0x22f0] sm:$0xff]  ;;  %v1159_v0 = vld [vmem:[%s11128_s1 + $0x22f8] sm:$0xff] }
 0x21a   :  { %v5140_v19 = vpop.f32.mrb[19].mxu1  ;;  %6881 = vmatprep.subr.bf16.mxu0 %v6880_v3  ;;  %v6958_v3 = vpack.c.bf16 %v1163_v49, %v1162_v41  ;;  %v1140_v41 = vld [vmem:[%s11128_s1 + $0x2260] sm:$0xff] }
 0x21b   :  { %v5141_v26 = vadd.f32 %v5140_v19, %v5139_v16  ;;  %6911 = vmatpush3.bf16.msra.mxu1 %v6910_v2  ;;  %v2990_v31 = vadd.f32 %v5106_v8, %v10485_v37  ;;  %v1177_v37 = vld [vmem:[%s11128_s1 + $0x2388] sm:$0xff]  ;;  %v6926_v2 = vpack.c.bf16 %v1131_v57, %v1130_v56  ;;  %v1135_v8 = vld [vmem:[%s11128_s1 + $0x2238] sm:$0xff]  ;;  %v1166_v19 = vld [vmem:[%s11128_s1 + $0x2330] sm:$0xff]  ;;  %v6974_v56 = vpack.c.bf16 %v1171_v47, %v1170_v46 }
 0x21c   :  { %6913 = vmatprep.subr.bf16.mxu1 %v6912_v13  ;;  %v6952_v45 = vpack.c.bf16 %v1177_v37, %v1176_v23  ;;  %v1150_v13 = vld [vmem:[%s11128_s1 + $0x22b0] sm:$0xff]  ;;  %v6934_v28 = vpack.c.bf16 %v1135_v8, %v1134_v18  ;;  %v6966_v29 = vpack.c.bf16 %v1167_v20, %v1166_v19  ;;  %v1169_v23 = vld [vmem:[%s11128_s1 + $0x2348] sm:$0xff]  ;;  %v6944_v57 = vpack.c.bf16 %v1157_v48, %v1156_v53  ;;  %v1172_v49 = vld [vmem:[%s11128_s1 + $0x2360] sm:$0xff] }
 0x21d   :  { %v10695_v24 = vadd.f32 %v5141_v26, %v2990_v31  ;;  %6883 = vmatpush3.bf16.msra.mxu0 %v6882_v9  ;;  %v6932_v17 = vpack.c.bf16 %v1151_v7, %v1150_v13  ;;  %v6964_v9 = vpack.c.bf16 %v1183_v14, %v1182_v12  ;;  %v1152_v26 = vld [vmem:[%s11128_s1 + $0x22c0] sm:$0xff]  ;;  %v1154_v37 = vld [vmem:[%s11128_s1 + $0x22d0] sm:$0xff]  ;;  %v6970_v40 = vpack.c.bf16 %v1169_v23, %v1168_v21  ;;  %v1143_v12 = vld [vmem:[%s11128_s1 + $0x2278] sm:$0xff] }
 0x21e   :  { %6885 = vmatprep.subr.bf16.mxu0 %v6884_v22  ;;  %v1184_v22 = vld [vmem:[%s11128_s1 + $0x23c0] sm:$0xff]  ;;  %v6940_v42 = vpack.c.bf16 %v1155_v34, %v1154_v37  ;;  %v6948_v13 = vpack.c.bf16 %v1159_v0, %v1158_v62  ;;  %v1142_v7 = vld [vmem:[%s11128_s1 + $0x2270] sm:$0xff]  ;;  %v1209_v8 = vld [vmem:[%s11128_s1 + $0x2488] sm:$0xff] }
 0x21f   :  { %6915 = vmatpush3.bf16.msra.mxu1 %v6914_v27  ;;  %v1153_v27 = vld [vmem:[%s11128_s1 + $0x22c8] sm:$0xff]  ;;  %v6968_v43 = vpack.c.bf16 %v1185_v25, %v1184_v22  ;;  %v1174_v14 = vld [vmem:[%s11128_s1 + $0x2370] sm:$0xff]  ;;  %v1208_v18 = vld [vmem:[%s11128_s1 + $0x2480] sm:$0xff] }
 0x220   :  { %6917 = vmatprep.subr.bf16.mxu1 %v6916_v30  ;;  %v6936_v31 = vpack.c.bf16 %v1153_v27, %v1152_v26  ;;  %v1136_v30 = vld [vmem:[%s11128_s1 + $0x2240] sm:$0xff]  ;;  %v10899_v19 = vld [vmem:[%s11127_s0 + $0x90] sm:$0x3f]  ;;  %v6984_v26 = vpack.c.bf16 %v1209_v8, %v1208_v18  ;;  %v1193_v22 = vld [vmem:[%s11128_s1 + $0x2408] sm:$0xff] }
 0x221   :  { %6887 = vmatpush3.bf16.msra.mxu0 %v6886_v39  ;;  %v1186_v39 = vld [vmem:[%s11128_s1 + $0x23d0] sm:$0xff]  ;;  %v1192_v27 = vld [vmem:[%s11128_s1 + $0x2400] sm:$0xff]  ;;  %v1195_v23 = vld [vmem:[%s11128_s1 + $0x2418] sm:$0xff] }
 0x222   :  { %6921 = vmatprep.subr.bf16.mxu0 %v6920_v38  ;;  %v6938_v38 = vpack.c.bf16 %v1137_v33, %v1136_v30  ;;  %v1210_v25 = vld [vmem:[%s11128_s1 + $0x2490] sm:$0xff]  ;;  %v10923_v30 = vrot.slane %v10899_v19, %v7285_v10  ;;  %v6986_v33 = vpack.c.bf16 %v1193_v22, %v1192_v27  ;;  %v1212_v34 = vld [vmem:[%s11128_s1 + $0x24a0] sm:$0xff]  ;;  %v1229_v48 = vld [vmem:[%s11128_s1 + $0x2528] sm:$0xff] }
 0x223   :  { %6919 = vmatpush3.bf16.msra.mxu1 %v6918_v36  ;;  %v1187_v36 = vld [vmem:[%s11128_s1 + $0x23d8] sm:$0xff]  ;;  %v1196_v46 = vld [vmem:[%s11128_s1 + $0x2420] sm:$0xff] }
 0x224   :  { %6953 = vmatprep.subr.bf16.mxu1 %v6952_v45  ;;  %3968 = vmatmul.mubr.f32.vlgmr.msra.gmra.mrb[32].mxu0 %v10506_v51  ;;  %v1132_v51 = vld [vmem:[%s11128_s1 + $0x2220] sm:$0xff]  ;;  %v1139_v45 = vld [vmem:[%s11128_s1 + $0x2258] sm:$0xff]  ;;  %v6972_v35 = vpack.c.bf16 %v1187_v36, %v1186_v39  ;;  %v7107_v39 = vmov 0.0|0.0   ;;  %v1213_v36 = vld [vmem:[%s11128_s1 + $0x24a8] sm:$0xff] }
 0x225   :  { %6923 = vmatpush3.bf16.msra.mxu0 %v6922_v50  ;;  %4107 = vmatprep.mubr.f32.mxu0 %v1570_v60  ;;  %v6930_v15 = vpack.c.bf16 %v1133_v5, %v1132_v51  ;;  %v1188_v50 = vld [vmem:[%s11128_s1 + $0x23e0] sm:$0xff]  ;;  %v1173_v60 = vld [vmem:[%s11128_s1 + $0x2368] sm:$0xff]  ;;  %v1223_v22 = vld [vmem:[%s11128_s1 + $0x24f8] sm:$0xff] }
 0x226   :  { %4038 = vmatmul.mubr.f32.vlgmr.msra.gmra.mrb[32].mxu1 %v10515_v11  ;;  %6925 = vmatprep.subr.bf16.mxu0 %v6924_v55  ;;  %v1165_v11 = vld [vmem:[%s11128_s1 + $0x2328] sm:$0xff]  ;;  %v6942_v55 = vpack.c.bf16 %v1139_v45, %v1138_v44  ;;  %v6992_v45 = vpack.c.bf16 %v1213_v36, %v1212_v34  ;;  %v1228_v53 = vld [vmem:[%s11128_s1 + $0x2520] sm:$0xff]  ;;  %v1206_v34 = vld [vmem:[%s11128_s1 + $0x2470] sm:$0xff] }
 0x227   :  { %6955 = vmatpush3.bf16.msra.mxu1 %v6954_v54  ;;  %4177 = vmatprep.mubr.f32.mxu1 %v1571_v1  ;;  %v6962_v16 = vpack.c.bf16 %v1165_v11, %v1164_v61  ;;  %v1189_v54 = vld [vmem:[%s11128_s1 + $0x23e8] sm:$0xff]  ;;  %v6978_v11 = vpack.c.bf16 %v1173_v60, %v1172_v49  ;;  %v1200_v0 = vld [vmem:[%s11128_s1 + $0x2440] sm:$0xff]  ;;  %v1207_v36 = vld [vmem:[%s11128_s1 + $0x2478] sm:$0xff] }
 0x228   :  { %6957 = vmatprep.subr.bf16.mxu1 %v6956_v58  ;;  %v1141_v58 = vld [vmem:[%s11128_s1 + $0x2268] sm:$0xff]  ;;  %v6976_v63 = vpack.c.bf16 %v1189_v54, %v1188_v50  ;;  %v7109_v50 = vmov 0.0   ;;  %v1204_v8 = vld [vmem:[%s11128_s1 + $0x2460] sm:$0xff] }
 0x229   :  { %6927 = vmatpush3.bf16.msra.mxu0 %v6926_v2  ;;  %v6946_v61 = vpack.c.bf16 %v1141_v58, %v1140_v41  ;;  %v7023_v41 = vpack.c.bf16 %v1229_v48, %v1228_v53  ;;  %v1216_v58 = vld [vmem:[%s11128_s1 + $0x24c0] sm:$0xff]  ;;  %v1217_v49 = vld [vmem:[%s11128_s1 + $0x24c8] sm:$0xff] }
 0x22a   :  { %6929 = vmatprep.subr.bf16.mxu0 %v6928_v4  ;;  %v1191_v4 = vld [vmem:[%s11128_s1 + $0x23f8] sm:$0xff]  ;;  %v7000_v62 = vpack.c.bf16 %v1217_v49, %v1216_v58 }
 0x22b   :  { %6959 = vmatpush3.bf16.msra.mxu1 %v6958_v3  ;;  %v1190_v3 = vld [vmem:[%s11128_s1 + $0x23f0] sm:$0xff] }
 0x22c   :  { %6961 = vmatprep.subr.bf16.mxu1 %v6960_v6 }
 0x22d   :  { %6931 = vmatpush3.bf16.msra.mxu0 %v6930_v15 }
 0x22e   :  { %6933 = vmatprep.subr.bf16.mxu0 %v6932_v17  ;;  %v1175_v17 = vld [vmem:[%s11128_s1 + $0x2378] sm:$0xff] }
 0x22f   :  { %6963 = vmatpush3.bf16.msra.mxu1 %v6962_v16  ;;  %v6980_v16 = vpack.c.bf16 %v1191_v4, %v1190_v3  ;;  %v6982_v20 = vpack.c.bf16 %v1175_v17, %v1174_v14  ;;  %v1218_v3 = vld [vmem:[%s11128_s1 + $0x24d0] sm:$0xff]  ;;  %v1219_v4 = vld [vmem:[%s11128_s1 + $0x24d8] sm:$0xff]  ;;  %v1221_v14 = vld [vmem:[%s11128_s1 + $0x24e8] sm:$0xff] }
 0x230   :  { %6965 = vmatprep.subr.bf16.mxu1 %v6964_v9  ;;  %v6950_v9 = vpack.c.bf16 %v1143_v12, %v1142_v7  ;;  %v1220_v12 = vld [vmem:[%s11128_s1 + $0x24e0] sm:$0xff] }
 0x231   :  { %6935 = vmatpush3.bf16.msra.mxu0 %v6934_v28  ;;  %v1211_v28 = vld [vmem:[%s11128_s1 + $0x2498] sm:$0xff]  ;;  %v7008_v18 = vpack.c.bf16 %v1221_v14, %v1220_v12 }
 0x232   :  { %6937 = vmatprep.subr.bf16.mxu0 %v6936_v31  ;;  %v1225_v31 = vld [vmem:[%s11128_s1 + $0x2508] sm:$0xff]  ;;  %v6988_v21 = vpack.c.bf16 %v1211_v28, %v1210_v25  ;;  %v1236_v25 = vld [vmem:[%s11128_s1 + $0x2560] sm:$0xff] }
 0x233   :  { %6967 = vmatpush3.bf16.msra.mxu1 %v6966_v29  ;;  %v1224_v29 = vld [vmem:[%s11128_s1 + $0x2500] sm:$0xff]  ;;  %v1237_v28 = vld [vmem:[%s11128_s1 + $0x2568] sm:$0xff] }
 0x234   :  { %6969 = vmatprep.subr.bf16.mxu1 %v6968_v43  ;;  %v1194_v43 = vld [vmem:[%s11128_s1 + $0x2410] sm:$0xff]  ;;  %v7017_v37 = vpack.c.bf16 %v1225_v31, %v1224_v29 }
 0x235   :  { %6939 = vmatpush3.bf16.msra.mxu0 %v6938_v38  ;;  %v1226_v38 = vld [vmem:[%s11128_s1 + $0x2510] sm:$0xff]  ;;  %v6990_v44 = vpack.c.bf16 %v1195_v23, %v1194_v43 }
 0x236   :  { %6941 = vmatprep.subr.bf16.mxu0 %v6940_v42  ;;  %v1587_v42 = vcombine.high %v10923_v30, %v10923_v30 }
 0x237   :  { %6971 = vmatpush3.bf16.msra.mxu1 %v6970_v40  ;;  %v5174_v59 = vpop.f32.mrb[20].mxu0  ;;  %v1227_v40 = vld [vmem:[%s11128_s1 + $0x2518] sm:$0xff] }
 0x238   :  { %6973 = vmatprep.subr.bf16.mxu1 %v6972_v35  ;;  %v5175_v1 = vpop.f32.mrb[21].mxu0  ;;  %v1197_v35 = vld [vmem:[%s11128_s1 + $0x2428] sm:$0xff]  ;;  %v7020_v47 = vpack.c.bf16 %v1227_v40, %v1226_v38  ;;  %v7035_v38 = vpack.c.bf16 %v1237_v28, %v1236_v25  ;;  %v4336_v25 = vld [vmem:[%s11130_s3 + $0x60] sm:$0xf] }
 0x239   :  { %v5209_v2 = vpop.f32.mrb[20].mxu1  ;;  %v5176_v51 = vadd.f32 %v5175_v1, %v5174_v59  ;;  %6943 = vmatpush3.bf16.msra.mxu0 %v6942_v55  ;;  %v6994_v54 = vpack.c.bf16 %v1197_v35, %v1196_v46  ;;  %v1230_v59 = vld [vmem:[%s11128_s1 + $0x2530] sm:$0xff]  ;;  %v1201_v1 = vld [vmem:[%s11128_s1 + $0x2448] sm:$0xff]  ;;  %v7014_v46 = vpack.c.bf16 %v1207_v36, %v1206_v34  ;;  %v1572_v35 = vcombine.high %v10899_v19, %v10899_v19 }
 0x23a   :  { %v5210_v5 = vpop.f32.mrb[21].mxu1  ;;  %6945 = vmatprep.subr.bf16.mxu0 %v6944_v57  ;;  %v1199_v57 = vld [vmem:[%s11128_s1 + $0x2438] sm:$0xff] }
 0x23b   :  { %v5211_v6 = vadd.f32 %v5210_v5, %v5209_v2  ;;  %6975 = vmatpush3.bf16.msra.mxu1 %v6974_v56  ;;  %v3130_v15 = vadd.f32 %v5176_v51, %v10695_v24  ;;  %v1198_v56 = vld [vmem:[%s11128_s1 + $0x2430] sm:$0xff]  ;;  %v1232_v51 = vld [vmem:[%s11128_s1 + $0x2540] sm:$0xff]  ;;  %v1233_v5 = vld [vmem:[%s11128_s1 + $0x2548] sm:$0xff] }
 0x23c   :  { %6977 = vmatprep.subr.bf16.mxu1 %v6976_v63  ;;  %v1231_v63 = vld [vmem:[%s11128_s1 + $0x2538] sm:$0xff]  ;;  %v6998_v60 = vpack.c.bf16 %v1199_v57, %v1198_v56  ;;  %v7029_v7 = vpack.c.bf16 %v1233_v5, %v1232_v51  ;;  %v4329_v51 = vld [vmem:[%s11130_s3 + $0x28] sm:$0xff] }
 0x23d   :  { %v10901_v24 = vadd.f32 %v5211_v6, %v3130_v15  ;;  %6947 = vmatpush3.bf16.msra.mxu0 %v6946_v61  ;;  %v7026_v2 = vpack.c.bf16 %v1231_v63, %v1230_v59  ;;  %v7002_v61 = vpack.c.bf16 %v1201_v1, %v1200_v0  ;;  %v7004_v6 = vpack.c.bf16 %v1219_v4, %v1218_v3  ;;  %v1234_v15 = vld [vmem:[%s11128_s1 + $0x2550] sm:$0xff]  ;;  %v4328_v4 = vld [vmem:[%s11130_s3 + $0x20] sm:$0xff] }
 0x23e   :  { %6949 = vmatprep.subr.bf16.mxu0 %v6948_v13  ;;  %v1203_v13 = vld [vmem:[%s11128_s1 + $0x2458] sm:$0xff]  ;;  %v4326_v0 = vld [vmem:[%s11130_s3 + $0x10] sm:$0xff]  ;;  %v7047_v5 = vpack.c.bf16 %v4329_v51, %v4328_v4 }
 0x23f   :  { %6979 = vmatpush3.bf16.msra.mxu1 %v6978_v11  ;;  %v1202_v11 = vld [vmem:[%s11128_s1 + $0x2450] sm:$0xff] }
 0x240   :  { %6981 = vmatprep.subr.bf16.mxu1 %v6980_v16  ;;  %v1235_v16 = vld [vmem:[%s11128_s1 + $0x2558] sm:$0xff]  ;;  %v7006_v17 = vpack.c.bf16 %v1203_v13, %v1202_v11  ;;  %v4332_v13 = vld [vmem:[%s11130_s3 + $0x40] sm:$0xff] }
 0x241   :  { %6951 = vmatpush3.bf16.msra.mxu0 %v6950_v9  ;;  %v1205_v9 = vld [vmem:[%s11128_s1 + $0x2468] sm:$0xff] }
 0x242   :  { %6985 = vmatprep.subr.bf16.mxu0 %v6984_v26  ;;  %v1222_v26 = vld [vmem:[%s11128_s1 + $0x24f0] sm:$0xff]  ;;  %v7010_v43 = vpack.c.bf16 %v1205_v9, %v1204_v8  ;;  %v4335_v9 = vld [vmem:[%s11130_s3 + $0x58] sm:$0xff] }
 0x243   :  { %6983 = vmatpush3.bf16.msra.mxu1 %v6982_v20  ;;  %v7032_v20 = vpack.c.bf16 %v1235_v16, %v1234_v15  ;;  %v4334_v8 = vld [vmem:[%s11130_s3 + $0x50] sm:$0xff] }
 0x244   :  { %7016 = vmatprep.subr.bf16.mxu1 %v7107_v39  ;;  %4108 = vmatmul.mubr.f32.vlgmr.msra.gmra.mrb[34].mxu0 %v10716_v52  ;;  %v1214_v52 = vld [vmem:[%s11128_s1 + $0x24b0] sm:$0xff] }
 0x245   :  { %6987 = vmatpush3.bf16.msra.mxu0 %v6986_v33  ;;  %4247 = vmatprep.mubr.f32.mxu0 %v1587_v42  ;;  %v1238_v42 = vld [vmem:[%s11128_s1 + $0x2570] sm:$0xff] }
 0x246   :  { %4178 = vmatmul.mubr.f32.vlgmr.msra.gmra.mrb[34].mxu1 %v10725_v32  ;;  %6989 = vmatprep.subr.bf16.mxu0 %v6988_v21  ;;  %v1215_v32 = vld [vmem:[%s11128_s1 + $0x24b8] sm:$0xff] }
 0x247   :  { %7018 = vmatpush3.bf16.msra.mxu1 %v7017_v37  ;;  %5800 = vmatprep.mubr.msk.f32.mxu1 %vm7108_vm0, %v7109_v50  ;;  %v6996_v55 = vpack.c.bf16 %v1215_v32, %v1214_v52  ;;  %v7012_v37 = vpack.c.bf16 %v1223_v22, %v1222_v26  ;;  %v7056_v26 = vpack.c.bf16 %v4335_v9, %v4334_v8 }
 0x248   :  { %7019 = vmatprep.subr.bf16.mxu1 %v7107_v39 }
 0x249   :  { %6991 = vmatpush3.bf16.msra.mxu0 %v6990_v44  ;;  %v1239_v44 = vld [vmem:[%s11128_s1 + $0x2578] sm:$0xff]  ;;  %s4430_s1 = sshll.u32 %s7110_s24, 4  ;;  %s4431_s1 = int_to_ptr.vmem [resolvable:$true] %s4430_s1 }
 0x24a   :  { %6993 = vmatprep.subr.bf16.mxu0 %v6992_v45  ;;  %s7082_s25 = scalar_lea.vmem %s4431_s1, 32  ;;  %p7087_p1 = scmp.lt.s32.totalorder %s4431_s1, %s4431_s1 }
 0x24b   :  { %7021 = vmatpush3.bf16.msra.mxu1 %v7020_v47  ;;  %v7038_v47 = vpack.c.bf16 %v1239_v44, %v1238_v42  ;;  %p7083_p0 = scmp.ne.s32.totalorder %s4431_s1, %s7082_s25  ;;  %p7088_p2 = scmp.lt.s32.totalorder %s7082_s25, %s7082_s25 }
 0x24c   :  { %7022 = vmatprep.subr.bf16.mxu1 %v7107_v39 }
 0x24d   :  { %6995 = vmatpush3.bf16.msra.mxu0 %v6994_v54  ;;  %p7089_p3 = por %p7088_p2, %p7087_p1 }
 0x24e   :  { %6997 = vmatprep.subr.bf16.mxu0 %v6996_v55 }
 0x24f   :  { %7024 = vmatpush3.bf16.msra.mxu1 %v7023_v41  ;;  %p7090_p4 = pnand %p7089_p3, %p7083_p0 }
 0x250   :  { %7025 = vmatprep.subr.bf16.mxu1 %v7107_v39 }
 0x251   :  { %6999 = vmatpush3.bf16.msra.mxu0 %v6998_v60  ;;  %v4324_v60 = vld [vmem:[%s11130_s3] sm:$0xff] }
 0x252   :  { %7001 = vmatprep.subr.bf16.mxu0 %v7000_v62  ;;  %v4325_v62 = vld [vmem:[%s11130_s3 + $0x8] sm:$0xff] }
 0x253   :  { %7027 = vmatpush3.bf16.msra.mxu1 %v7026_v2  ;;  %v7041_v1 = vpack.c.bf16 %v4325_v62, %v4324_v60  ;;  %v4327_v2 = vld [vmem:[%s11130_s3 + $0x18] sm:$0xff] }
 0x254   :  { %7028 = vmatprep.subr.bf16.mxu1 %v7107_v39  ;;  %v7044_v3 = vpack.c.bf16 %v4327_v2, %v4326_v0 }
 0x255   :  { %7003 = vmatpush3.bf16.msra.mxu0 %v7002_v61  ;;  %v4330_v61 = vld [vmem:[%s11130_s3 + $0x30] sm:$0xff] }
 0x256   :  { %7005 = vmatprep.subr.bf16.mxu0 %v7004_v6  ;;  %v4331_v6 = vld [vmem:[%s11130_s3 + $0x38] sm:$0xff] }
 0x257   :  { %7030 = vmatpush3.bf16.msra.mxu1 %v7029_v7  ;;  %v5244_v27 = vpop.f32.mrb[22].mxu0  ;;  %v7050_v11 = vpack.c.bf16 %v4331_v6, %v4330_v61  ;;  %v4333_v7 = vld [vmem:[%s11130_s3 + $0x48] sm:$0xff] }
 0x258   :  { %7031 = vmatprep.subr.bf16.mxu1 %v7107_v39  ;;  %v5245_v29 = vpop.f32.mrb[23].mxu0  ;;  %v7053_v12 = vpack.c.bf16 %v4333_v7, %v4332_v13 }
 0x259   :  { %v5279_v31 = vpop.f32.mrb[22].mxu1  ;;  %v5246_v33 = vadd.f32 %v5245_v29, %v5244_v27  ;;  %7007 = vmatpush3.bf16.msra.mxu0 %v7006_v17 }
 0x25a   :  { %v5280_v21 = vpop.f32.mrb[23].mxu1  ;;  %7009 = vmatprep.subr.bf16.mxu0 %v7008_v18 }
 0x25b   :  { %v5281_v23 = vadd.f32 %v5280_v21, %v5279_v31  ;;  %7033 = vmatpush3.bf16.msra.mxu1 %v7032_v20  ;;  %v3270_v40 = vadd.f32 %v5246_v33, %v10901_v24  ;;  %v1586_v24 = vrot.slane %v1572_v35, %v7285_v10 }
 0x25c   :  { %7034 = vmatprep.subr.bf16.mxu1 %v7107_v39 }
 0x25d   :  { %v3340_v45 = vadd.f32 %v5281_v23, %v3270_v40  ;;  %7011 = vmatpush3.bf16.msra.mxu0 %v7010_v43 }
 0x25e   :  { %7013 = vmatprep.subr.bf16.mxu0 %v7012_v37 }
 0x25f   :  { %7036 = vmatpush3.bf16.msra.mxu1 %v7035_v38 }
 0x260   :  { %7037 = vmatprep.subr.bf16.mxu1 %v7107_v39 }
 0x261   :  { %7015 = vmatpush3.bf16.msra.mxu0 %v7014_v46 }
 0x262   :  { %7040 = vmatprep.subr.bf16.mxu0 %v7107_v39 }
 0x263   :  { %7039 = vmatpush3.bf16.msra.mxu1 %v7038_v47 }
 0x264   :  { %4248 = vmatmul.mubr.f32.vlgmr.msra.gmra.mrb[36].mxu0 %v10923_v30 }
 0x265   :  { %5829 = vmatprep.mubr.msk.f32.mxu0 %vm7108_vm0, %v7109_v50  ;;  %7042 = vmatpush3.bf16.msra.mxu0 %v7041_v1 }
 0x266   :  { %5801 = vmatmul.mubr.f32.vlgmr.msra.gmra.mrb[36].mxu1 %v1586_v24  ;;  %7043 = vmatprep.subr.bf16.mxu0 %v7107_v39 }
 0x269   :  { %7045 = vmatpush3.bf16.msra.mxu0 %v7044_v3 }
 0x26a   :  { %7046 = vmatprep.subr.bf16.mxu0 %v7107_v39 }
 0x26d   :  { %7048 = vmatpush3.bf16.msra.mxu0 %v7047_v5 }
 0x26e   :  { %7049 = vmatprep.subr.bf16.mxu0 %v7107_v39 }
 0x271   :  { %7051 = vmatpush3.bf16.msra.mxu0 %v7050_v11 }
 0x272   :  { %7052 = vmatprep.subr.bf16.mxu0 %v7107_v39 }
 0x275   :  { %7054 = vmatpush3.bf16.msra.mxu0 %v7053_v12 }
 0x276   :  { %7055 = vmatprep.subr.bf16.mxu0 %v7107_v39 }
 0x277   :  { %v5314_v52 = vpop.f32.mrb[24].mxu0 }
 0x278   :  { %v5315_v32 = vpop.f32.mrb[25].mxu0 }
 0x279   :  { %v5349_v19 = vpop.f32.mrb[24].mxu1  ;;  %v5316_v53 = vadd.f32 %v5315_v32, %v5314_v52  ;;  %7057 = vmatpush3.bf16.msra.mxu0 %v7056_v26 }
 0x27a   :  { %v5350_v48 = vpop.f32.mrb[25].mxu1  ;;  %5827 = vmatprep.subr.mxu0 %v7109_v50 }
 0x27b   :  { %v5351_v54 = vadd.f32 %v5350_v48, %v5349_v19  ;;  %v3410_v55 = vadd.f32 %v5316_v53, %v3340_v45 }
 0x27d   :  { %v3480_v56 = vadd.f32 %v5351_v54, %v3410_v55  ;;  %5828 = vmatpush3.msk.msra.mxu0 %vm4348_vm1, %v4336_v25 }
 0x297   :  { %v5384_v57 = vpop.f32.mrb[26].mxu0 }
 0x298   :  { %v5385_v41 = vpop.f32.mrb[27].mxu0 }
 0x299   :  { %v5419_v10 = vpop.f32.mrb[26].mxu1  ;;  %v5386_v58 = vadd.f32 %v5385_v41, %v5384_v57 }
 0x29a   :  { %v5420_v49 = vpop.f32.mrb[27].mxu1 }
 0x29b   :  { %v5421_v59 = vadd.f32 %v5420_v49, %v5419_v10  ;;  %v3550_v63 = vadd.f32 %v5386_v58, %v3480_v56  ;;  %v4439_v58 = vld [vmem:[%s11131_s4] ss:$0 sm:$0xff] }
 0x29d   :  { %v3620_v30 = vadd.f32 %v5421_v59, %v3550_v63 }
 0x2b7   :  { %v5454_v14 = vpop.f32.mrb[28].mxu0 }
 0x2b8   :  { %v5455_v15 = vpop.f32.mrb[29].mxu0 }
 0x2b9   :  { %v5489_v16 = vpop.f32.mrb[28].mxu1  ;;  %v5456_v17 = vadd.f32 %v5455_v15, %v5454_v14 }
 0x2ba   :  { %v5490_v18 = vpop.f32.mrb[29].mxu1 }
 0x2bb   :  { %v5491_v20 = vadd.f32 %v5490_v18, %v5489_v16  ;;  %v3690_v27 = vadd.f32 %v5456_v17, %v3620_v30 }
 0x2bd   :  { %v3760_v22 = vadd.f32 %v5491_v20, %v3690_v27 }
 0x2d7   :  { %v5524_v39 = vpop.f32.mrb[30].mxu0 }
 0x2d8   :  { %v5525_v28 = vpop.f32.mrb[31].mxu0 }
 0x2d9   :  { %v5559_v29 = vpop.f32.mrb[30].mxu1  ;;  %v5526_v31 = vadd.f32 %v5525_v28, %v5524_v39 }
 0x2da   :  { %v5560_v33 = vpop.f32.mrb[31].mxu1 }
 0x2db   :  { %v5561_v21 = vadd.f32 %v5560_v33, %v5559_v29  ;;  %v3830_v43 = vadd.f32 %v5526_v31, %v3760_v22 }
 0x2dd   :  { %v3900_v23 = vadd.f32 %v5561_v21, %v3830_v43 }
 0x2f7   :  { %v5594_v37 = vpop.f32.mrb[32].mxu0 }
 0x2f8   :  { %v5595_v34 = vpop.f32.mrb[33].mxu0 }
 0x2f9   :  { %v5629_v36 = vpop.f32.mrb[32].mxu1  ;;  %v5596_v38 = vadd.f32 %v5595_v34, %v5594_v37 }
 0x2fa   :  { %v5630_v40 = vpop.f32.mrb[33].mxu1 }
 0x2fb   :  { %v5631_v50 = vadd.f32 %v5630_v40, %v5629_v36  ;;  %v3970_v42 = vadd.f32 %v5596_v38, %v3900_v23 }
 0x2fd   :  { %v4040_v44 = vadd.f32 %v5631_v50, %v3970_v42 }
 0x317   :  { %v5664_v45 = vpop.f32.mrb[34].mxu0 }
 0x318   :  { %v5665_v46 = vpop.f32.mrb[35].mxu0 }
 0x319   :  { %v5699_v35 = vpop.f32.mrb[34].mxu1  ;;  %v5666_v47 = vadd.f32 %v5665_v46, %v5664_v45 }
 0x31a   :  { %v5700_v24 = vpop.f32.mrb[35].mxu1 }
 0x31b   :  { %v5701_v52 = vadd.f32 %v5700_v24, %v5699_v35  ;;  %v4110_v32 = vadd.f32 %v5666_v47, %v4040_v44 }
 0x31d   :  { %v4180_v19 = vadd.f32 %v5701_v52, %v4110_v32 }
 0x337   :  { %v5734_v53 = vpop.f32.mrb[36].mxu0 }
 0x338   :  { %v5735_v48 = vpop.f32.mrb[37].mxu0 }
 0x339   :  { %v4319_v54 = vpop.f32.mrb[36].mxu1  ;;  %v5736_v55 = vadd.f32 %v5735_v48, %v5734_v53 }
 0x33a   :  { %v5802_v56 = vpop.f32.mrb[37].mxu1 }
 0x33b   :  { %v4250_v57 = vadd.f32 %v5736_v55, %v4180_v19 }
 0x33d   :  { %v4320_v41 = vadd.f32 %v4319_v54, %v4250_v57 }
 0x33f   :  { %v4323_v10 = vmax.f32 %v4320_v41, 0.0 }
 0x341   :  { %5830 = vmatmul.mubr.msk.f32.vlgmr.msra.gmra.mrb[38].mxu0 %vm4344_vm2, %v4323_v10 }
 0x414   :  { %v4418_v49 = vpop.f32.mrb[38].mxu0 }
 0x415   :  { %v4419_v59 = vadd.f32 %v4439_v58, %v4418_v49  ;;  %v5831_v63 = vpop.f32.mrb[39].mxu0 }
 0x417   :  { %4423 = vst.msk [vmem:[#allocation2] sm:$0x3] %vm4422_vm3, %v4419_v59 }
 0x418   :  { %7093 = shalt.err (!%p7090_p4)
}
 0x419   :  { %s7094_s28 = scalar_lea.hbm %s11132_s5, 32 }
 0x41a   :  { %p7095_p5 = scmp.ne.s32.totalorder %s11132_s5, %s7094_s28  ;;  %p7098_p6 = scmp.lt.u32.totalorder %s7094_s28, %s11132_s5 }
 0x41c   :  { %p7100_p7 = pnand %p7098_p6, %p7095_p5 }
 0x41e   :  { %7103 = shalt.err (!%p7100_p7)
}
 0x41f   :  { %4433 = dma.vmem_to_hbm [thread:$0]  %s4431_s1, 32, %s11132_s5, [#allocation3]  }
 0x420   :  { %7104 = dma.done.wait [#allocation3], 32  }
 0x421   :  { %7105 = vsyncadd [#allocation3], 4294967264 }
 0x422   :  { %4437 = vsyncpa [#allocation3], 1 }

// kernel: simple_cnn_forward.2
= control target key start
LH: loop header
LB: loop body
LE: loop exit
PB: predicated region body
PF: predicated region fallthrough
CT: control target
= control target key end

     0   :  { %8 = vsyncpa [#allocation3], 0  ;;  %s20405_s0 = inlined_call_operand.vmem [shape: f32[2,752,8], index: 0, kind: input, shape index: {}]   ;;  %s20406_s1 = inlined_call_operand.hbm [shape: f32[24,64], index: 1, kind: input, shape index: {}]   ;;  %s20407_s2 = inlined_call_operand.hbm [shape: f32[1,64], index: 2, kind: input, shape index: {}]   ;;  %s20408_s3 = inlined_call_operand.vmem [shape: f32[2,150,64], index: 3, kind: output, shape index: {}]  }
   0x1   :  { %9 = vsyncpa [#allocation5], 0  ;;  %s16792_s12 = smov 0  }
   0x2 LB: > { %s16798_s13 = sadd.s32 4294967295, %s16765_s12   ;;  %p15381_p0 = scmp.ge.s32.totalorder %s16765_s12, 1  ;;  %s16765_s12 = sphi %s16792_s12, %s15_s12  }
   0x3   : > { %p114_p1 = scmp.lt.s32.totalorder %s16765_s12, 3  ;;  %s16767_s14 = smov [#allocation2]  }
   0x4   : > { %s126_s15 = sshll.u32 %s16767_s14, 4  ;;  %p20409_p3 = scmp.eq.s32.totalorder %s16798_s13, 0  ;;  %s127_s15 = int_to_ptr.vmem [resolvable:$true] %s126_s15 }
   0x5   : > { %p16802_p2 = pnand %p15381_p0, %p114_p1  ;;  %s16768_s17 = smov [#allocation4]  }
   0x6   : > { %s140_s18 = sshll.u32 %s16768_s17, 4  ;;  %s16695_s22 = scalar_lea.hbm %s20406_s1, 384  ;;  %s16815_s18 = int_to_ptr.vmem [resolvable:$true] %s140_s18 }
   0x7   : > { %s20411_s16 = scalar_select %p16802_p2, 1, 0 }
   0x8   : > { %p16664_p4 = pneg %p16802_p2  ;;  %p16696_p6 = scmp.ne.s32.totalorder %s20406_s1, %s16695_s22 }
   0x9   : > { %p16702_p10 = scmp.lt.u32.totalorder %s16695_s22, %s20406_s1 }
   0xa   : > { %p16811_p5 = pnand %p20409_p3, %p16664_p4 }
   0xc   : > { %p16697_p7 = pneg %p16811_p5 }
   0xe   : > { %p16698_p8 = pnand %p16697_p7, %p16696_p6 }
  0x10   : > { %p16699_p9 = pneg %p16698_p8 }
  0x12   : > { %p16704_p11 = pnand %p16702_p10, %p16699_p9 }
  0x14   : > { %16707 = shalt.err (!%p16704_p11)
}
  0x15   : > { %s16708_s27 = scalar_lea.vmem %s127_s15, 384  ;;  %p16716_p1 = scmp.lt.s32.totalorder %s127_s15, %s127_s15 }
  0x16   : > { %p16709_p12 = scmp.ne.s32.totalorder %s127_s15, %s16708_s27  ;;  %p16717_p4 = scmp.lt.s32.totalorder %s16708_s27, %s16708_s27 }
  0x18   : > { %p16711_p13 = pnand %p16709_p12, %p16697_p7  ;;  %p16718_p3 = por %p16717_p4, %p16716_p1 }
  0x1a   : > { %p16712_p0 = pneg %p16711_p13 }
  0x1c   : > { %p16719_p2 = pnand %p16718_p3, %p16712_p0 }
  0x1e   : > { %16722 = shalt.err (!%p16719_p2)
}
  0x1f   : > { %s16769_s28 = smov 128   ;;  %s16770_s29 = smov 8  }
  0x20   : > { %16667 = dma.hbm_to_vmem [thread:$0]  (!%p16811_p5), %s20406_s1, 384, %s127_s15, [#allocation3], %s16769_s28, %s16769_s28, %s16770_s29  }
  0x21   : > { %s16723_s7 = scalar_lea.hbm %s20407_s2, 16 }
  0x22   : > { %p16724_p6 = scmp.ne.s32.totalorder %s20407_s2, %s16723_s7  ;;  %p16730_p8 = scmp.lt.u32.totalorder %s16723_s7, %s20407_s2 }
  0x24   : > { %p16726_p2 = pnand %p16724_p6, %p16697_p7 }
  0x26   : > { %p16727_p3 = pneg %p16726_p2 }
  0x28   : > { %p16732_p9 = pnand %p16730_p8, %p16727_p3 }
  0x2a   : > { %16735 = shalt.err (!%p16732_p9)
}
  0x2b   : > { %s16736_s14 = scalar_lea.vmem %s16815_s18, 16  ;;  %s16743_s15 = scalar_lea.vmem %s16815_s18, 32 }
  0x2c   : > { %p16737_p10 = scmp.ne.s32.totalorder %s16815_s18, %s16736_s14  ;;  %p16744_p13 = scmp.lt.s32.totalorder %s16815_s18, %s16815_s18 }
  0x2d   : > { %p16745_p0 = scmp.lt.s32.totalorder %s16743_s15, %s16736_s14 }
  0x2e   : > { %p16739_p11 = pnand %p16737_p10, %p16697_p7 }
  0x2f   : > { %p16746_p1 = por %p16745_p0, %p16744_p13 }
  0x30   : > { %p16740_p12 = pneg %p16739_p11 }
  0x32   : > { %p16747_p4 = pnand %p16746_p1, %p16740_p12 }
  0x34   : > { %16750 = shalt.err (!%p16747_p4)
}
  0x35   : > { %16670 = dma.hbm_to_vmem [thread:$0]  (!%p16811_p5), %s20407_s2, 16, %s16815_s18, [#allocation5]  }
  0x36   : > { %p20413_p6 = scmp.ne.s32.totalorder %s20411_s16, 0 }
  0x38   : > { %161 = sbr.rel (%p20413_p6) target bundleno = 1377 (0x561), region = 32 }
  0x3f   : > { %p20414_p7 = scmp.eq.s32.totalorder %s16798_s13, 0 }
  0x41   : > { %16756 = dma.done.wait (%p20414_p7), [#allocation3], 384   ;;  %p20415_p2 = pmov %p20414_p7 }
  0x43   : > { %16758 = vsyncadd (%p20415_p2), [#allocation3], 4294966912  ;;  %p20416_p3 = pmov %p20415_p2 }
  0x44   : > { %p20417_p8 = pmov %p20415_p2 }
  0x45   : > { %16760 = dma.done.wait (%p20416_p3), [#allocation5], 16  }
  0x46   : > { %16762 = vsyncadd (%p20417_p8), [#allocation5], 4294967280  ;;  %p189_p9 = scmp.lt.s32.totalorder %s16798_s13, 1  ;;  %vm389_vm0 = vcmask 64512   ;;  %v388_v0 = vld [vmem:[#allocation2 + $0x8] sm:$0xff]  ;;  %v293_v1 = vld [vmem:[#allocation2] sm:$0xff] }
  0x47   : > { %16035 = vmatprep.subr.mxu1 %v388_v0  ;;  %16178 = vmatprep.subr.mxu0 %v293_v1  ;;  %v2118_v6 = vld [vmem:[#allocation2 + $0x10] sm:$0xff]  ;;  %vm13923_vm1 = vcmask 520192   ;;  %vm15124_vm2 = vcmask 1041409   ;;  %vm15126_vm3 = vcmask 1042434   ;;  %vm15128_vm4 = vcmask 1043459  }
  0x48   : > { %s20469_s13 = smov (!%p189_p9, %s16798_s13), 1  ;;  %16036 = vmatpush3.msra.mxu1 %v388_v0  ;;  %16179 = vmatpush3.msra.mxu0 %v293_v1  ;;  %vm15130_vm5 = vcmask 1044484   ;;  %vm15132_vm6 = vcmask 1045509   ;;  %vm15134_vm7 = vcmask 1046534   ;;  %vm15136_vm8 = vcmask 1047559  }
  0x49   : > { %s16654_s16 = smul.u32 752, %s20469_s13  ;;  %16321 = vmatprep.subr.mxu0 %v2118_v6  ;;  %16464 = vmatprep.subr.mxu1 %v293_v1  ;;  %vm15281_vm9 = vcmask 523264   ;;  %vm15300_vm10 = vcmask 521216  }
  0x4a   : > { %s16655_s22 = smul.u32 152, %s20469_s13 }
  0x4b   : > { %s16883_s21 = scalar_lea.vmem %s20405_s0, %s16654_s16 }
  0x4c   : > { %v294_v2 = vld [vmem:[%s16883_s21 + $0x1] sm:$0xff]  ;;  %v295_v4 = vld [vmem:[%s16883_s21 + $0x9] sm:$0xff]  ;;  %v296_v7 = vld [vmem:[%s16883_s21 + $0x11] sm:$0xff]  ;;  %s17767_s24 = scalar_lea.vmem %s20408_s3, %s16655_s22 }
  0x4d   : > { %v199_v3 = vld [vmem:[%s16883_s21] sm:$0xff]  ;;  %v200_v5 = vld [vmem:[%s16883_s21 + $0x8] sm:$0xff]  ;;  %16037 = vmatprep.mubr.msk.f32.mxu1 %vm389_vm0, %v294_v2  ;;  %v201_v8 = vld [vmem:[%s16883_s21 + $0x10] sm:$0xff] }
  0x4e   : > { %16180 = vmatprep.mubr.msk.f32.mxu0 %vm389_vm0, %v199_v3  ;;  %16038 = vmatmul.mubr.msk.f32.vlgmr.msra.gmra.mrb[0].mxu1 %vm389_vm0, %v295_v4  ;;  %v297_v9 = vld [vmem:[%s16883_s21 + $0x19] sm:$0xff]  ;;  %v298_v11 = vld [vmem:[%s16883_s21 + $0x21] sm:$0xff]  ;;  %v299_v13 = vld [vmem:[%s16883_s21 + $0x29] sm:$0xff] }
  0x4f   : > { %16181 = vmatmul.mubr.msk.f32.vlgmr.msra.gmra.mrb[0].mxu0 %vm389_vm0, %v200_v5  ;;  %16040 = vmatprep.mubr.msk.f32.mxu1 %vm389_vm0, %v296_v7  ;;  %v202_v10 = vld [vmem:[%s16883_s21 + $0x18] sm:$0xff]  ;;  %v203_v12 = vld [vmem:[%s16883_s21 + $0x20] sm:$0xff]  ;;  %v204_v14 = vld [vmem:[%s16883_s21 + $0x28] sm:$0xff] }
  0x50   : > { %16322 = vmatpush3.msra.mxu0 %v2118_v6  ;;  %16183 = vmatprep.mubr.msk.f32.mxu0 %vm389_vm0, %v201_v8  ;;  %v300_v15 = vld [vmem:[%s16883_s21 + $0x31] sm:$0xff]  ;;  %v301_v17 = vld [vmem:[%s16883_s21 + $0x39] sm:$0xff]  ;;  %v302_v19 = vld [vmem:[%s16883_s21 + $0x41] sm:$0xff] }
  0x51   : > { %16465 = vmatpush3.msra.mxu1 %v293_v1  ;;  %v205_v16 = vld [vmem:[%s16883_s21 + $0x30] sm:$0xff]  ;;  %v206_v18 = vld [vmem:[%s16883_s21 + $0x38] sm:$0xff]  ;;  %v207_v20 = vld [vmem:[%s16883_s21 + $0x40] sm:$0xff] }
  0x52   : > { %16041 = vmatmul.mubr.msk.f32.gmra.mrb[2].mxu1 %vm389_vm0, %v297_v9  ;;  %v303_v21 = vld [vmem:[%s16883_s21 + $0x49] sm:$0xff]  ;;  %v304_v23 = vld [vmem:[%s16883_s21 + $0x51] sm:$0xff]  ;;  %v305_v25 = vld [vmem:[%s16883_s21 + $0x59] sm:$0xff] }
  0x53   : > { %16184 = vmatmul.mubr.msk.f32.gmra.mrb[2].mxu0 %vm389_vm0, %v202_v10  ;;  %16043 = vmatprep.mubr.msk.f32.mxu1 %vm389_vm0, %v298_v11  ;;  %v208_v22 = vld [vmem:[%s16883_s21 + $0x48] sm:$0xff]  ;;  %v209_v24 = vld [vmem:[%s16883_s21 + $0x50] sm:$0xff]  ;;  %v210_v26 = vld [vmem:[%s16883_s21 + $0x58] sm:$0xff] }
  0x54   : > { %16186 = vmatprep.mubr.msk.f32.mxu0 %vm389_vm0, %v203_v12  ;;  %v306_v27 = vld [vmem:[%s16883_s21 + $0x61] sm:$0xff]  ;;  %v307_v29 = vld [vmem:[%s16883_s21 + $0x69] sm:$0xff]  ;;  %v308_v31 = vld [vmem:[%s16883_s21 + $0x71] sm:$0xff] }
  0x55   : > { %v211_v28 = vld [vmem:[%s16883_s21 + $0x60] sm:$0xff]  ;;  %v212_v30 = vld [vmem:[%s16883_s21 + $0x68] sm:$0xff]  ;;  %v213_v32 = vld [vmem:[%s16883_s21 + $0x70] sm:$0xff] }
  0x56   : > { %16044 = vmatmul.mubr.msk.f32.gmra.mrb[4].mxu1 %vm389_vm0, %v299_v13  ;;  %v309_v33 = vld [vmem:[%s16883_s21 + $0x79] sm:$0xff]  ;;  %v310_v35 = vld [vmem:[%s16883_s21 + $0x81] sm:$0xff]  ;;  %v311_v37 = vld [vmem:[%s16883_s21 + $0x89] sm:$0xff] }
  0x57   : > { %16187 = vmatmul.mubr.msk.f32.gmra.mrb[4].mxu0 %vm389_vm0, %v204_v14  ;;  %16046 = vmatprep.mubr.msk.f32.mxu1 %vm389_vm0, %v300_v15  ;;  %v214_v34 = vld [vmem:[%s16883_s21 + $0x78] sm:$0xff]  ;;  %v215_v36 = vld [vmem:[%s16883_s21 + $0x80] sm:$0xff]  ;;  %v216_v38 = vld [vmem:[%s16883_s21 + $0x88] sm:$0xff] }
  0x58   : > { %16189 = vmatprep.mubr.msk.f32.mxu0 %vm389_vm0, %v205_v16  ;;  %v312_v39 = vld [vmem:[%s16883_s21 + $0x91] sm:$0xff]  ;;  %v313_v41 = vld [vmem:[%s16883_s21 + $0x99] sm:$0xff]  ;;  %v314_v43 = vld [vmem:[%s16883_s21 + $0xa1] sm:$0xff] }
  0x59   : > { %v217_v40 = vld [vmem:[%s16883_s21 + $0x90] sm:$0xff]  ;;  %v218_v42 = vld [vmem:[%s16883_s21 + $0x98] sm:$0xff]  ;;  %v219_v44 = vld [vmem:[%s16883_s21 + $0xa0] sm:$0xff] }
  0x5a   : > { %16047 = vmatmul.mubr.msk.f32.gmra.mrb[6].mxu1 %vm389_vm0, %v301_v17  ;;  %v315_v45 = vld [vmem:[%s16883_s21 + $0xa9] sm:$0xff]  ;;  %v316_v47 = vld [vmem:[%s16883_s21 + $0xb1] sm:$0xff]  ;;  %v317_v49 = vld [vmem:[%s16883_s21 + $0xb9] sm:$0xff] }
  0x5b   : > { %16190 = vmatmul.mubr.msk.f32.gmra.mrb[6].mxu0 %vm389_vm0, %v206_v18  ;;  %16049 = vmatprep.mubr.msk.f32.mxu1 %vm389_vm0, %v302_v19  ;;  %v220_v46 = vld [vmem:[%s16883_s21 + $0xa8] sm:$0xff]  ;;  %v221_v48 = vld [vmem:[%s16883_s21 + $0xb0] sm:$0xff]  ;;  %v222_v50 = vld [vmem:[%s16883_s21 + $0xb8] sm:$0xff] }
  0x5c   : > { %16192 = vmatprep.mubr.msk.f32.mxu0 %vm389_vm0, %v207_v20  ;;  %v318_v51 = vld [vmem:[%s16883_s21 + $0xc1] sm:$0xff]  ;;  %v319_v53 = vld [vmem:[%s16883_s21 + $0xc9] sm:$0xff]  ;;  %v320_v55 = vld [vmem:[%s16883_s21 + $0xd1] sm:$0xff] }
  0x5d   : > { %v223_v52 = vld [vmem:[%s16883_s21 + $0xc0] sm:$0xff]  ;;  %v224_v54 = vld [vmem:[%s16883_s21 + $0xc8] sm:$0xff]  ;;  %v225_v56 = vld [vmem:[%s16883_s21 + $0xd0] sm:$0xff] }
  0x5e   : > { %16050 = vmatmul.mubr.msk.f32.gmra.mrb[8].mxu1 %vm389_vm0, %v303_v21  ;;  %v321_v57 = vld [vmem:[%s16883_s21 + $0xd9] sm:$0xff]  ;;  %v322_v59 = vld [vmem:[%s16883_s21 + $0xe1] sm:$0xff]  ;;  %v323_v61 = vld [vmem:[%s16883_s21 + $0xe9] sm:$0xff] }
  0x5f   : > { %16193 = vmatmul.mubr.msk.f32.gmra.mrb[8].mxu0 %vm389_vm0, %v208_v22  ;;  %16052 = vmatprep.mubr.msk.f32.mxu1 %vm389_vm0, %v304_v23  ;;  %v226_v58 = vld [vmem:[%s16883_s21 + $0xd8] sm:$0xff]  ;;  %v227_v60 = vld [vmem:[%s16883_s21 + $0xe0] sm:$0xff]  ;;  %v228_v62 = vld [vmem:[%s16883_s21 + $0xe8] sm:$0xff] }
  0x60   : > { %16195 = vmatprep.mubr.msk.f32.mxu0 %vm389_vm0, %v209_v24  ;;  %v324_v63 = vld [vmem:[%s16883_s21 + $0xf1] sm:$0xff]  ;;  %v325_v1 = vld [vmem:[%s16883_s21 + $0xf9] sm:$0xff]  ;;  %v326_v3 = vld [vmem:[%s16883_s21 + $0x101] sm:$0xff] }
  0x61   : > { %v229_v0 = vld [vmem:[%s16883_s21 + $0xf0] sm:$0xff]  ;;  %v230_v2 = vld [vmem:[%s16883_s21 + $0xf8] sm:$0xff]  ;;  %v231_v4 = vld [vmem:[%s16883_s21 + $0x100] sm:$0xff] }
  0x62   : > { %16053 = vmatmul.mubr.msk.f32.gmra.mrb[10].mxu1 %vm389_vm0, %v305_v25  ;;  %v327_v5 = vld [vmem:[%s16883_s21 + $0x109] sm:$0xff]  ;;  %v328_v7 = vld [vmem:[%s16883_s21 + $0x111] sm:$0xff]  ;;  %v329_v9 = vld [vmem:[%s16883_s21 + $0x119] sm:$0xff] }
  0x63   : > { %16196 = vmatmul.mubr.msk.f32.gmra.mrb[10].mxu0 %vm389_vm0, %v210_v26  ;;  %16055 = vmatprep.mubr.msk.f32.mxu1 %vm389_vm0, %v306_v27  ;;  %v232_v6 = vld [vmem:[%s16883_s21 + $0x108] sm:$0xff]  ;;  %v233_v8 = vld [vmem:[%s16883_s21 + $0x110] sm:$0xff]  ;;  %v234_v10 = vld [vmem:[%s16883_s21 + $0x118] sm:$0xff] }
  0x64   : > { %16198 = vmatprep.mubr.msk.f32.mxu0 %vm389_vm0, %v211_v28  ;;  %v330_v11 = vld [vmem:[%s16883_s21 + $0x121] sm:$0xff]  ;;  %v331_v13 = vld [vmem:[%s16883_s21 + $0x129] sm:$0xff]  ;;  %v332_v15 = vld [vmem:[%s16883_s21 + $0x131] sm:$0xff] }
  0x65   : > { %v235_v12 = vld [vmem:[%s16883_s21 + $0x120] sm:$0xff]  ;;  %v236_v14 = vld [vmem:[%s16883_s21 + $0x128] sm:$0xff]  ;;  %v237_v16 = vld [vmem:[%s16883_s21 + $0x130] sm:$0xff] }
  0x66   : > { %16056 = vmatmul.mubr.msk.f32.gmra.mrb[12].mxu1 %vm389_vm0, %v307_v29  ;;  %v333_v17 = vld [vmem:[%s16883_s21 + $0x139] sm:$0xff]  ;;  %v334_v19 = vld [vmem:[%s16883_s21 + $0x141] sm:$0xff]  ;;  %v335_v21 = vld [vmem:[%s16883_s21 + $0x149] sm:$0xff] }
  0x67   : > { %16199 = vmatmul.mubr.msk.f32.gmra.mrb[12].mxu0 %vm389_vm0, %v212_v30  ;;  %16058 = vmatprep.mubr.msk.f32.mxu1 %vm389_vm0, %v308_v31  ;;  %v238_v18 = vld [vmem:[%s16883_s21 + $0x138] sm:$0xff]  ;;  %v239_v20 = vld [vmem:[%s16883_s21 + $0x140] sm:$0xff]  ;;  %v240_v22 = vld [vmem:[%s16883_s21 + $0x148] sm:$0xff] }
  0x68   : > { %16201 = vmatprep.mubr.msk.f32.mxu0 %vm389_vm0, %v213_v32  ;;  %v336_v23 = vld [vmem:[%s16883_s21 + $0x151] sm:$0xff]  ;;  %v337_v25 = vld [vmem:[%s16883_s21 + $0x159] sm:$0xff]  ;;  %v338_v27 = vld [vmem:[%s16883_s21 + $0x161] sm:$0xff] }
  0x69   : > { %v241_v24 = vld [vmem:[%s16883_s21 + $0x150] sm:$0xff]  ;;  %v242_v26 = vld [vmem:[%s16883_s21 + $0x158] sm:$0xff]  ;;  %v243_v28 = vld [vmem:[%s16883_s21 + $0x160] sm:$0xff] }
  0x6a   : > { %16059 = vmatmul.mubr.msk.f32.gmra.mrb[14].mxu1 %vm389_vm0, %v309_v33  ;;  %v339_v29 = vld [vmem:[%s16883_s21 + $0x169] sm:$0xff]  ;;  %v340_v31 = vld [vmem:[%s16883_s21 + $0x171] sm:$0xff]  ;;  %v341_v33 = vld [vmem:[%s16883_s21 + $0x179] sm:$0xff] }
  0x6b   : > { %16202 = vmatmul.mubr.msk.f32.gmra.mrb[14].mxu0 %vm389_vm0, %v214_v34  ;;  %16061 = vmatprep.mubr.msk.f32.mxu1 %vm389_vm0, %v310_v35  ;;  %v244_v30 = vld [vmem:[%s16883_s21 + $0x168] sm:$0xff]  ;;  %v245_v32 = vld [vmem:[%s16883_s21 + $0x170] sm:$0xff]  ;;  %v246_v34 = vld [vmem:[%s16883_s21 + $0x178] sm:$0xff] }
  0x6c   : > { %16204 = vmatprep.mubr.msk.f32.mxu0 %vm389_vm0, %v215_v36  ;;  %v342_v35 = vld [vmem:[%s16883_s21 + $0x181] sm:$0xff] }
  0x6d   : > { %v2024_v36 = vld [vmem:[%s16883_s21 + $0x2] sm:$0xff] }
  0x6e   : > { %16062 = vmatmul.mubr.msk.f32.gmra.mrb[16].mxu1 %vm389_vm0, %v311_v37  ;;  %v343_v37 = vld [vmem:[%s16883_s21 + $0x189] sm:$0xff] }
  0x6f   : > { %16205 = vmatmul.mubr.msk.f32.gmra.mrb[16].mxu0 %vm389_vm0, %v216_v38  ;;  %16064 = vmatprep.mubr.msk.f32.mxu1 %vm389_vm0, %v312_v39  ;;  %v2025_v38 = vld [vmem:[%s16883_s21 + $0xa] sm:$0xff] }
  0x70   : > { %16207 = vmatprep.mubr.msk.f32.mxu0 %vm389_vm0, %v217_v40  ;;  %v344_v39 = vld [vmem:[%s16883_s21 + $0x191] sm:$0xff] }
  0x71   : > { %v2026_v40 = vld [vmem:[%s16883_s21 + $0x12] sm:$0xff] }
  0x72   : > { %16065 = vmatmul.mubr.msk.f32.gmra.mrb[18].mxu1 %vm389_vm0, %v313_v41  ;;  %v345_v41 = vld [vmem:[%s16883_s21 + $0x199] sm:$0xff] }
  0x73   : > { %16208 = vmatmul.mubr.msk.f32.gmra.mrb[18].mxu0 %vm389_vm0, %v218_v42  ;;  %16067 = vmatprep.mubr.msk.f32.mxu1 %vm389_vm0, %v314_v43  ;;  %v2027_v42 = vld [vmem:[%s16883_s21 + $0x1a] sm:$0xff] }
  0x74   : > { %16210 = vmatprep.mubr.msk.f32.mxu0 %vm389_vm0, %v219_v44  ;;  %v346_v43 = vld [vmem:[%s16883_s21 + $0x1a1] sm:$0xff] }
  0x75   : > { %v2028_v44 = vld [vmem:[%s16883_s21 + $0x22] sm:$0xff] }
  0x76   : > { %16068 = vmatmul.mubr.msk.f32.gmra.mrb[20].mxu1 %vm389_vm0, %v315_v45  ;;  %v347_v45 = vld [vmem:[%s16883_s21 + $0x1a9] sm:$0xff] }
  0x77   : > { %16211 = vmatmul.mubr.msk.f32.gmra.mrb[20].mxu0 %vm389_vm0, %v220_v46  ;;  %16070 = vmatprep.mubr.msk.f32.mxu1 %vm389_vm0, %v316_v47  ;;  %v2029_v46 = vld [vmem:[%s16883_s21 + $0x2a] sm:$0xff] }
  0x78   : > { %16213 = vmatprep.mubr.msk.f32.mxu0 %vm389_vm0, %v221_v48  ;;  %v348_v47 = vld [vmem:[%s16883_s21 + $0x1b1] sm:$0xff] }
  0x79   : > { %v2030_v48 = vld [vmem:[%s16883_s21 + $0x32] sm:$0xff] }
  0x7a   : > { %16071 = vmatmul.mubr.msk.f32.gmra.mrb[22].mxu1 %vm389_vm0, %v317_v49  ;;  %v349_v49 = vld [vmem:[%s16883_s21 + $0x1b9] sm:$0xff] }
  0x7b   : > { %16214 = vmatmul.mubr.msk.f32.gmra.mrb[22].mxu0 %vm389_vm0, %v222_v50  ;;  %16073 = vmatprep.mubr.msk.f32.mxu1 %vm389_vm0, %v318_v51  ;;  %v2031_v50 = vld [vmem:[%s16883_s21 + $0x3a] sm:$0xff] }
  0x7c   : > { %16216 = vmatprep.mubr.msk.f32.mxu0 %vm389_vm0, %v223_v52  ;;  %v350_v51 = vld [vmem:[%s16883_s21 + $0x1c1] sm:$0xff] }
  0x7d   : > { %v2032_v52 = vld [vmem:[%s16883_s21 + $0x42] sm:$0xff] }
  0x7e   : > { %16074 = vmatmul.mubr.msk.f32.gmra.mrb[24].mxu1 %vm389_vm0, %v319_v53  ;;  %v351_v53 = vld [vmem:[%s16883_s21 + $0x1c9] sm:$0xff] }
  0x7f   : > { %16217 = vmatmul.mubr.msk.f32.gmra.mrb[24].mxu0 %vm389_vm0, %v224_v54  ;;  %16076 = vmatprep.mubr.msk.f32.mxu1 %vm389_vm0, %v320_v55  ;;  %v2033_v54 = vld [vmem:[%s16883_s21 + $0x4a] sm:$0xff] }
  0x80   : > { %16219 = vmatprep.mubr.msk.f32.mxu0 %vm389_vm0, %v225_v56  ;;  %v352_v55 = vld [vmem:[%s16883_s21 + $0x1d1] sm:$0xff] }
  0x81   : > { %v2034_v56 = vld [vmem:[%s16883_s21 + $0x52] sm:$0xff] }
  0x82   : > { %16077 = vmatmul.mubr.msk.f32.gmra.mrb[26].mxu1 %vm389_vm0, %v321_v57  ;;  %v353_v57 = vld [vmem:[%s16883_s21 + $0x1d9] sm:$0xff] }
  0x83   : > { %16220 = vmatmul.mubr.msk.f32.gmra.mrb[26].mxu0 %vm389_vm0, %v226_v58  ;;  %16079 = vmatprep.mubr.msk.f32.mxu1 %vm389_vm0, %v322_v59  ;;  %v2035_v58 = vld [vmem:[%s16883_s21 + $0x5a] sm:$0xff] }
  0x84   : > { %16222 = vmatprep.mubr.msk.f32.mxu0 %vm389_vm0, %v227_v60  ;;  %v354_v59 = vld [vmem:[%s16883_s21 + $0x1e1] sm:$0xff] }
  0x85   : > { %v2036_v60 = vld [vmem:[%s16883_s21 + $0x62] sm:$0xff] }
  0x86   : > { %16080 = vmatmul.mubr.msk.f32.gmra.mrb[28].mxu1 %vm389_vm0, %v323_v61  ;;  %v355_v61 = vld [vmem:[%s16883_s21 + $0x1e9] sm:$0xff] }
  0x87   : > { %16223 = vmatmul.mubr.msk.f32.gmra.mrb[28].mxu0 %vm389_vm0, %v228_v62  ;;  %16082 = vmatprep.mubr.msk.f32.mxu1 %vm389_vm0, %v324_v63  ;;  %v2037_v62 = vld [vmem:[%s16883_s21 + $0x6a] sm:$0xff] }
  0x88   : > { %16225 = vmatprep.mubr.msk.f32.mxu0 %vm389_vm0, %v229_v0  ;;  %v356_v63 = vld [vmem:[%s16883_s21 + $0x1f1] sm:$0xff] }
  0x89   : > { %v2038_v0 = vld [vmem:[%s16883_s21 + $0x72] sm:$0xff] }
  0x8a   : > { %16083 = vmatmul.mubr.msk.f32.gmra.mrb[30].mxu1 %vm389_vm0, %v325_v1  ;;  %v357_v1 = vld [vmem:[%s16883_s21 + $0x1f9] sm:$0xff] }
  0x8b   : > { %16226 = vmatmul.mubr.msk.f32.gmra.mrb[30].mxu0 %vm389_vm0, %v230_v2  ;;  %16085 = vmatprep.mubr.msk.f32.mxu1 %vm389_vm0, %v326_v3  ;;  %v2039_v2 = vld [vmem:[%s16883_s21 + $0x7a] sm:$0xff] }
  0x8c   : > { %16228 = vmatprep.mubr.msk.f32.mxu0 %vm389_vm0, %v231_v4  ;;  %v358_v3 = vld [vmem:[%s16883_s21 + $0x201] sm:$0xff] }
  0x8d   : > { %v2040_v4 = vld [vmem:[%s16883_s21 + $0x82] sm:$0xff] }
  0x8e   : > { %16086 = vmatmul.mubr.msk.f32.gmra.mrb[32].mxu1 %vm389_vm0, %v327_v5  ;;  %v359_v5 = vld [vmem:[%s16883_s21 + $0x209] sm:$0xff] }
  0x8f   : > { %16229 = vmatmul.mubr.msk.f32.gmra.mrb[32].mxu0 %vm389_vm0, %v232_v6  ;;  %16088 = vmatprep.mubr.msk.f32.mxu1 %vm389_vm0, %v328_v7  ;;  %v2041_v6 = vld [vmem:[%s16883_s21 + $0x8a] sm:$0xff] }
  0x90   : > { %16231 = vmatprep.mubr.msk.f32.mxu0 %vm389_vm0, %v233_v8  ;;  %v360_v7 = vld [vmem:[%s16883_s21 + $0x211] sm:$0xff] }
  0x91   : > { %v2042_v8 = vld [vmem:[%s16883_s21 + $0x92] sm:$0xff] }
  0x92   : > { %16089 = vmatmul.mubr.msk.f32.gmra.mrb[34].mxu1 %vm389_vm0, %v329_v9  ;;  %v361_v9 = vld [vmem:[%s16883_s21 + $0x219] sm:$0xff] }
  0x93   : > { %16232 = vmatmul.mubr.msk.f32.gmra.mrb[34].mxu0 %vm389_vm0, %v234_v10  ;;  %16091 = vmatprep.mubr.msk.f32.mxu1 %vm389_vm0, %v330_v11  ;;  %v2043_v10 = vld [vmem:[%s16883_s21 + $0x9a] sm:$0xff] }
  0x94   : > { %16234 = vmatprep.mubr.msk.f32.mxu0 %vm389_vm0, %v235_v12  ;;  %v362_v11 = vld [vmem:[%s16883_s21 + $0x221] sm:$0xff] }
  0x95   : > { %v2044_v12 = vld [vmem:[%s16883_s21 + $0xa2] sm:$0xff] }
  0x96   : > { %16092 = vmatmul.mubr.msk.f32.gmra.mrb[36].mxu1 %vm389_vm0, %v331_v13  ;;  %v363_v13 = vld [vmem:[%s16883_s21 + $0x229] sm:$0xff] }
  0x97   : > { %16235 = vmatmul.mubr.msk.f32.gmra.mrb[36].mxu0 %vm389_vm0, %v236_v14  ;;  %16094 = vmatprep.mubr.msk.f32.mxu1 %vm389_vm0, %v332_v15  ;;  %v2045_v14 = vld [vmem:[%s16883_s21 + $0xaa] sm:$0xff] }
  0x98   : > { %16237 = vmatprep.mubr.msk.f32.mxu0 %vm389_vm0, %v237_v16  ;;  %v364_v15 = vld [vmem:[%s16883_s21 + $0x231] sm:$0xff] }
  0x99   : > { %v2046_v16 = vld [vmem:[%s16883_s21 + $0xb2] sm:$0xff] }
  0x9a   : > { %16095 = vmatmul.mubr.msk.f32.gmra.mrb[38].mxu1 %vm389_vm0, %v333_v17  ;;  %v365_v17 = vld [vmem:[%s16883_s21 + $0x239] sm:$0xff] }
  0x9b   : > { %16238 = vmatmul.mubr.msk.f32.gmra.mrb[38].mxu0 %vm389_vm0, %v238_v18  ;;  %16097 = vmatprep.mubr.msk.f32.mxu1 %vm389_vm0, %v334_v19  ;;  %v2047_v18 = vld [vmem:[%s16883_s21 + $0xba] sm:$0xff] }
  0x9c   : > { %16240 = vmatprep.mubr.msk.f32.mxu0 %vm389_vm0, %v239_v20  ;;  %v366_v19 = vld [vmem:[%s16883_s21 + $0x241] sm:$0xff] }
  0x9d   : > { %v2048_v20 = vld [vmem:[%s16883_s21 + $0xc2] sm:$0xff] }
  0x9e   : > { %16098 = vmatmul.mubr.msk.f32.gmra.mrb[40].mxu1 %vm389_vm0, %v335_v21  ;;  %v367_v21 = vld [vmem:[%s16883_s21 + $0x249] sm:$0xff] }
  0x9f   : > { %16241 = vmatmul.mubr.msk.f32.gmra.mrb[40].mxu0 %vm389_vm0, %v240_v22  ;;  %16100 = vmatprep.mubr.msk.f32.mxu1 %vm389_vm0, %v336_v23  ;;  %v2049_v22 = vld [vmem:[%s16883_s21 + $0xca] sm:$0xff] }
  0xa0   : > { %16243 = vmatprep.mubr.msk.f32.mxu0 %vm389_vm0, %v241_v24  ;;  %v368_v23 = vld [vmem:[%s16883_s21 + $0x251] sm:$0xff] }
  0xa1   : > { %v2050_v24 = vld [vmem:[%s16883_s21 + $0xd2] sm:$0xff] }
  0xa2   : > { %16101 = vmatmul.mubr.msk.f32.gmra.mrb[42].mxu1 %vm389_vm0, %v337_v25  ;;  %v369_v25 = vld [vmem:[%s16883_s21 + $0x259] sm:$0xff] }
  0xa3   : > { %16244 = vmatmul.mubr.msk.f32.gmra.mrb[42].mxu0 %vm389_vm0, %v242_v26  ;;  %16103 = vmatprep.mubr.msk.f32.mxu1 %vm389_vm0, %v338_v27  ;;  %v2051_v26 = vld [vmem:[%s16883_s21 + $0xda] sm:$0xff] }
  0xa4   : > { %16246 = vmatprep.mubr.msk.f32.mxu0 %vm389_vm0, %v243_v28  ;;  %v370_v27 = vld [vmem:[%s16883_s21 + $0x261] sm:$0xff] }
  0xa5   : > { %v2052_v28 = vld [vmem:[%s16883_s21 + $0xe2] sm:$0xff] }
  0xa6   : > { %16104 = vmatmul.mubr.msk.f32.gmra.mrb[44].mxu1 %vm389_vm0, %v339_v29  ;;  %v371_v29 = vld [vmem:[%s16883_s21 + $0x269] sm:$0xff] }
  0xa7   : > { %16247 = vmatmul.mubr.msk.f32.gmra.mrb[44].mxu0 %vm389_vm0, %v244_v30  ;;  %16106 = vmatprep.mubr.msk.f32.mxu1 %vm389_vm0, %v340_v31  ;;  %v2053_v30 = vld [vmem:[%s16883_s21 + $0xea] sm:$0xff] }
  0xa8   : > { %16249 = vmatprep.mubr.msk.f32.mxu0 %vm389_vm0, %v245_v32  ;;  %v372_v31 = vld [vmem:[%s16883_s21 + $0x271] sm:$0xff] }
  0xa9   : > { %v2054_v32 = vld [vmem:[%s16883_s21 + $0xf2] sm:$0xff] }
  0xaa   : > { %16107 = vmatmul.mubr.msk.f32.gmra.mrb[46].mxu1 %vm389_vm0, %v341_v33  ;;  %v373_v33 = vld [vmem:[%s16883_s21 + $0x279] sm:$0xff] }
  0xab   : > { %16250 = vmatmul.mubr.msk.f32.gmra.mrb[46].mxu0 %vm389_vm0, %v246_v34  ;;  %16109 = vmatprep.mubr.msk.f32.mxu1 %vm389_vm0, %v342_v35  ;;  %v2055_v34 = vld [vmem:[%s16883_s21 + $0xfa] sm:$0xff] }
  0xac   : > { %16323 = vmatprep.mubr.msk.f32.mxu0 %vm389_vm0, %v2024_v36  ;;  %v374_v35 = vld [vmem:[%s16883_s21 + $0x281] sm:$0xff] }
  0xad   : > { %v2056_v36 = vld [vmem:[%s16883_s21 + $0x102] sm:$0xff] }
  0xae   : > { %16110 = vmatmul.mubr.msk.f32.gmra.mrb[48].mxu1 %vm389_vm0, %v343_v37  ;;  %v375_v37 = vld [vmem:[%s16883_s21 + $0x289] sm:$0xff] }
  0xaf   : > { %16324 = vmatmul.mubr.msk.f32.vlgmr.msra.gmra.mrb[0].mxu0 %vm389_vm0, %v2025_v38  ;;  %16112 = vmatprep.mubr.msk.f32.mxu1 %vm389_vm0, %v344_v39  ;;  %v2057_v38 = vld [vmem:[%s16883_s21 + $0x10a] sm:$0xff] }
  0xb0   : > { %16326 = vmatprep.mubr.msk.f32.mxu0 %vm389_vm0, %v2026_v40  ;;  %v376_v39 = vld [vmem:[%s16883_s21 + $0x291] sm:$0xff] }
  0xb1   : > { %v2058_v40 = vld [vmem:[%s16883_s21 + $0x112] sm:$0xff] }
  0xb2   : > { %16113 = vmatmul.mubr.msk.f32.gmra.mrb[50].mxu1 %vm389_vm0, %v345_v41  ;;  %v377_v41 = vld [vmem:[%s16883_s21 + $0x299] sm:$0xff] }
  0xb3   : > { %16327 = vmatmul.mubr.msk.f32.gmra.mrb[2].mxu0 %vm389_vm0, %v2027_v42  ;;  %16115 = vmatprep.mubr.msk.f32.mxu1 %vm389_vm0, %v346_v43  ;;  %v2059_v42 = vld [vmem:[%s16883_s21 + $0x11a] sm:$0xff] }
  0xb4   : > { %16329 = vmatprep.mubr.msk.f32.mxu0 %vm389_vm0, %v2028_v44  ;;  %v378_v43 = vld [vmem:[%s16883_s21 + $0x2a1] sm:$0xff] }
  0xb5   : > { %v2060_v44 = vld [vmem:[%s16883_s21 + $0x122] sm:$0xff] }
  0xb6   : > { %16116 = vmatmul.mubr.msk.f32.gmra.mrb[52].mxu1 %vm389_vm0, %v347_v45  ;;  %v379_v45 = vld [vmem:[%s16883_s21 + $0x2a9] sm:$0xff] }
  0xb7   : > { %16330 = vmatmul.mubr.msk.f32.gmra.mrb[4].mxu0 %vm389_vm0, %v2029_v46  ;;  %16118 = vmatprep.mubr.msk.f32.mxu1 %vm389_vm0, %v348_v47  ;;  %v2061_v46 = vld [vmem:[%s16883_s21 + $0x12a] sm:$0xff] }
  0xb8   : > { %16332 = vmatprep.mubr.msk.f32.mxu0 %vm389_vm0, %v2030_v48  ;;  %v380_v47 = vld [vmem:[%s16883_s21 + $0x2b1] sm:$0xff] }
  0xb9   : > { %v2062_v48 = vld [vmem:[%s16883_s21 + $0x132] sm:$0xff] }
  0xba   : > { %16119 = vmatmul.mubr.msk.f32.gmra.mrb[54].mxu1 %vm389_vm0, %v349_v49  ;;  %v381_v49 = vld [vmem:[%s16883_s21 + $0x2b9] sm:$0xff] }
  0xbb   : > { %16333 = vmatmul.mubr.msk.f32.gmra.mrb[6].mxu0 %vm389_vm0, %v2031_v50  ;;  %16121 = vmatprep.mubr.msk.f32.mxu1 %vm389_vm0, %v350_v51  ;;  %v2063_v50 = vld [vmem:[%s16883_s21 + $0x13a] sm:$0xff] }
  0xbc   : > { %16335 = vmatprep.mubr.msk.f32.mxu0 %vm389_vm0, %v2032_v52  ;;  %v382_v51 = vld [vmem:[%s16883_s21 + $0x2c1] sm:$0xff] }
  0xbd   : > { %v2064_v52 = vld [vmem:[%s16883_s21 + $0x142] sm:$0xff] }
  0xbe   : > { %16122 = vmatmul.mubr.msk.f32.gmra.mrb[56].mxu1 %vm389_vm0, %v351_v53  ;;  %v383_v53 = vld [vmem:[%s16883_s21 + $0x2c9] sm:$0xff] }
  0xbf   : > { %16336 = vmatmul.mubr.msk.f32.gmra.mrb[8].mxu0 %vm389_vm0, %v2033_v54  ;;  %16124 = vmatprep.mubr.msk.f32.mxu1 %vm389_vm0, %v352_v55  ;;  %v2065_v54 = vld [vmem:[%s16883_s21 + $0x14a] sm:$0xff] }
  0xc0   : > { %16338 = vmatprep.mubr.msk.f32.mxu0 %vm389_vm0, %v2034_v56  ;;  %v384_v55 = vld [vmem:[%s16883_s21 + $0x2d1] sm:$0xff] }
  0xc1   : > { %v2066_v56 = vld [vmem:[%s16883_s21 + $0x152] sm:$0xff] }
  0xc2   : > { %16125 = vmatmul.mubr.msk.f32.gmra.mrb[58].mxu1 %vm389_vm0, %v353_v57  ;;  %v385_v57 = vld [vmem:[%s16883_s21 + $0x2d9] sm:$0xff] }
  0xc3   : > { %16339 = vmatmul.mubr.msk.f32.gmra.mrb[10].mxu0 %vm389_vm0, %v2035_v58  ;;  %16127 = vmatprep.mubr.msk.f32.mxu1 %vm389_vm0, %v354_v59  ;;  %v2067_v58 = vld [vmem:[%s16883_s21 + $0x15a] sm:$0xff] }
  0xc4   : > { %16341 = vmatprep.mubr.msk.f32.mxu0 %vm389_vm0, %v2036_v60  ;;  %v386_v59 = vld [vmem:[%s16883_s21 + $0x2e1] sm:$0xff] }
  0xc5   : > { %v2068_v60 = vld [vmem:[%s16883_s21 + $0x162] sm:$0xff] }
  0xc6   : > { %16128 = vmatmul.mubr.msk.f32.gmra.mrb[60].mxu1 %vm389_vm0, %v355_v61  ;;  %v387_v61 = vld [vmem:[%s16883_s21 + $0x2e9] sm:$0x3f] }
  0xc7   : > { %16342 = vmatmul.mubr.msk.f32.gmra.mrb[12].mxu0 %vm389_vm0, %v2037_v62  ;;  %16130 = vmatprep.mubr.msk.f32.mxu1 %vm389_vm0, %v356_v63  ;;  %v2069_v62 = vld [vmem:[%s16883_s21 + $0x16a] sm:$0xff]  ;;  %v247_v63 = vld [vmem:[%s16883_s21 + $0x180] sm:$0xff] }
  0xc8   : > { %16344 = vmatprep.mubr.msk.f32.mxu0 %vm389_vm0, %v2038_v0  ;;  %v2070_v0 = vld [vmem:[%s16883_s21 + $0x172] sm:$0xff] }
  0xca   : > { %16131 = vmatmul.mubr.msk.f32.gmra.mrb[62].mxu1 %vm389_vm0, %v357_v1  ;;  %v248_v1 = vld [vmem:[%s16883_s21 + $0x188] sm:$0xff] }
  0xcb   : > { %16345 = vmatmul.mubr.msk.f32.gmra.mrb[14].mxu0 %vm389_vm0, %v2039_v2  ;;  %16133 = vmatprep.mubr.msk.f32.mxu1 %vm389_vm0, %v358_v3  ;;  %v2071_v2 = vld [vmem:[%s16883_s21 + $0x17a] sm:$0xff]  ;;  %v249_v3 = vld [vmem:[%s16883_s21 + $0x190] sm:$0xff] }
  0xcc   : > { %16347 = vmatprep.mubr.msk.f32.mxu0 %vm389_vm0, %v2040_v4  ;;  %v2072_v4 = vld [vmem:[%s16883_s21 + $0x182] sm:$0xff] }
  0xce   : > { %16134 = vmatmul.mubr.msk.f32.gmra.mrb[64].mxu1 %vm389_vm0, %v359_v5  ;;  %v250_v5 = vld [vmem:[%s16883_s21 + $0x198] sm:$0xff] }
  0xcf   : > { %16348 = vmatmul.mubr.msk.f32.gmra.mrb[16].mxu0 %vm389_vm0, %v2041_v6  ;;  %16136 = vmatprep.mubr.msk.f32.mxu1 %vm389_vm0, %v360_v7  ;;  %v2073_v6 = vld [vmem:[%s16883_s21 + $0x18a] sm:$0xff]  ;;  %v251_v7 = vld [vmem:[%s16883_s21 + $0x1a0] sm:$0xff] }
  0xd0   : > { %16350 = vmatprep.mubr.msk.f32.mxu0 %vm389_vm0, %v2042_v8  ;;  %v2074_v8 = vld [vmem:[%s16883_s21 + $0x192] sm:$0xff] }
  0xd2   : > { %16137 = vmatmul.mubr.msk.f32.gmra.mrb[66].mxu1 %vm389_vm0, %v361_v9  ;;  %v252_v9 = vld [vmem:[%s16883_s21 + $0x1a8] sm:$0xff] }
  0xd3   : > { %16351 = vmatmul.mubr.msk.f32.gmra.mrb[18].mxu0 %vm389_vm0, %v2043_v10  ;;  %16139 = vmatprep.mubr.msk.f32.mxu1 %vm389_vm0, %v362_v11  ;;  %v2075_v10 = vld [vmem:[%s16883_s21 + $0x19a] sm:$0xff]  ;;  %v253_v11 = vld [vmem:[%s16883_s21 + $0x1b0] sm:$0xff] }
  0xd4   : > { %16353 = vmatprep.mubr.msk.f32.mxu0 %vm389_vm0, %v2044_v12  ;;  %v2076_v12 = vld [vmem:[%s16883_s21 + $0x1a2] sm:$0xff] }
  0xd6   : > { %16140 = vmatmul.mubr.msk.f32.gmra.mrb[68].mxu1 %vm389_vm0, %v363_v13  ;;  %v254_v13 = vld [vmem:[%s16883_s21 + $0x1b8] sm:$0xff] }
  0xd7   : > { %16354 = vmatmul.mubr.msk.f32.gmra.mrb[20].mxu0 %vm389_vm0, %v2045_v14  ;;  %16142 = vmatprep.mubr.msk.f32.mxu1 %vm389_vm0, %v364_v15  ;;  %v2077_v14 = vld [vmem:[%s16883_s21 + $0x1aa] sm:$0xff]  ;;  %v255_v15 = vld [vmem:[%s16883_s21 + $0x1c0] sm:$0xff] }
  0xd8   : > { %16356 = vmatprep.mubr.msk.f32.mxu0 %vm389_vm0, %v2046_v16  ;;  %v2078_v16 = vld [vmem:[%s16883_s21 + $0x1b2] sm:$0xff] }
  0xda   : > { %16143 = vmatmul.mubr.msk.f32.gmra.mrb[70].mxu1 %vm389_vm0, %v365_v17  ;;  %v256_v17 = vld [vmem:[%s16883_s21 + $0x1c8] sm:$0xff] }
  0xdb   : > { %16357 = vmatmul.mubr.msk.f32.gmra.mrb[22].mxu0 %vm389_vm0, %v2047_v18  ;;  %16145 = vmatprep.mubr.msk.f32.mxu1 %vm389_vm0, %v366_v19  ;;  %v2079_v18 = vld [vmem:[%s16883_s21 + $0x1ba] sm:$0xff]  ;;  %v257_v19 = vld [vmem:[%s16883_s21 + $0x1d0] sm:$0xff] }
  0xdc   : > { %16359 = vmatprep.mubr.msk.f32.mxu0 %vm389_vm0, %v2048_v20  ;;  %v2080_v20 = vld [vmem:[%s16883_s21 + $0x1c2] sm:$0xff] }
  0xde   : > { %16146 = vmatmul.mubr.msk.f32.gmra.mrb[72].mxu1 %vm389_vm0, %v367_v21  ;;  %v258_v21 = vld [vmem:[%s16883_s21 + $0x1d8] sm:$0xff] }
  0xdf   : > { %16360 = vmatmul.mubr.msk.f32.gmra.mrb[24].mxu0 %vm389_vm0, %v2049_v22  ;;  %16148 = vmatprep.mubr.msk.f32.mxu1 %vm389_vm0, %v368_v23  ;;  %v2081_v22 = vld [vmem:[%s16883_s21 + $0x1ca] sm:$0xff]  ;;  %v259_v23 = vld [vmem:[%s16883_s21 + $0x1e0] sm:$0xff] }
  0xe0   : > { %16362 = vmatprep.mubr.msk.f32.mxu0 %vm389_vm0, %v2050_v24  ;;  %v2082_v24 = vld [vmem:[%s16883_s21 + $0x1d2] sm:$0xff] }
  0xe2   : > { %16149 = vmatmul.mubr.msk.f32.gmra.mrb[74].mxu1 %vm389_vm0, %v369_v25  ;;  %v260_v25 = vld [vmem:[%s16883_s21 + $0x1e8] sm:$0xff] }
  0xe3   : > { %16363 = vmatmul.mubr.msk.f32.gmra.mrb[26].mxu0 %vm389_vm0, %v2051_v26  ;;  %16151 = vmatprep.mubr.msk.f32.mxu1 %vm389_vm0, %v370_v27  ;;  %v2083_v26 = vld [vmem:[%s16883_s21 + $0x1da] sm:$0xff]  ;;  %v261_v27 = vld [vmem:[%s16883_s21 + $0x1f0] sm:$0xff] }
  0xe4   : > { %16365 = vmatprep.mubr.msk.f32.mxu0 %vm389_vm0, %v2052_v28  ;;  %v2084_v28 = vld [vmem:[%s16883_s21 + $0x1e2] sm:$0xff] }
  0xe6   : > { %16152 = vmatmul.mubr.msk.f32.gmra.mrb[76].mxu1 %vm389_vm0, %v371_v29 }
  0xe7   : > { %16366 = vmatmul.mubr.msk.f32.gmra.mrb[28].mxu0 %vm389_vm0, %v2053_v30  ;;  %16154 = vmatprep.mubr.msk.f32.mxu1 %vm389_vm0, %v372_v31  ;;  %v262_v31 = vld [vmem:[%s16883_s21 + $0x1f8] sm:$0xff] }
  0xe8   : > { %16368 = vmatprep.mubr.msk.f32.mxu0 %vm389_vm0, %v2054_v32  ;;  %v2085_v32 = vld [vmem:[%s16883_s21 + $0x1ea] sm:$0xff] }
  0xea   : > { %16155 = vmatmul.mubr.msk.f32.gmra.mrb[78].mxu1 %vm389_vm0, %v373_v33  ;;  %v263_v33 = vld [vmem:[%s16883_s21 + $0x200] sm:$0xff] }
  0xeb   : > { %16369 = vmatmul.mubr.msk.f32.gmra.mrb[30].mxu0 %vm389_vm0, %v2055_v34  ;;  %16157 = vmatprep.mubr.msk.f32.mxu1 %vm389_vm0, %v374_v35  ;;  %v2086_v34 = vld [vmem:[%s16883_s21 + $0x1f2] sm:$0xff] }
  0xec   : > { %16371 = vmatprep.mubr.msk.f32.mxu0 %vm389_vm0, %v2056_v36 }
  0xee   : > { %16158 = vmatmul.mubr.msk.f32.gmra.mrb[80].mxu1 %vm389_vm0, %v375_v37  ;;  %v264_v37 = vld [vmem:[%s16883_s21 + $0x208] sm:$0xff] }
  0xef   : > { %16372 = vmatmul.mubr.msk.f32.gmra.mrb[32].mxu0 %vm389_vm0, %v2057_v38  ;;  %16160 = vmatprep.mubr.msk.f32.mxu1 %vm389_vm0, %v376_v39  ;;  %v2087_v38 = vld [vmem:[%s16883_s21 + $0x1fa] sm:$0xff]  ;;  %v265_v39 = vld [vmem:[%s16883_s21 + $0x210] sm:$0xff] }
  0xf0   : > { %16374 = vmatprep.mubr.msk.f32.mxu0 %vm389_vm0, %v2058_v40  ;;  %v2088_v40 = vld [vmem:[%s16883_s21 + $0x202] sm:$0xff] }
  0xf2   : > { %16161 = vmatmul.mubr.msk.f32.gmra.mrb[82].mxu1 %vm389_vm0, %v377_v41 }
  0xf3   : > { %16375 = vmatmul.mubr.msk.f32.gmra.mrb[34].mxu0 %vm389_vm0, %v2059_v42  ;;  %16163 = vmatprep.mubr.msk.f32.mxu1 %vm389_vm0, %v378_v43  ;;  %v266_v43 = vld [vmem:[%s16883_s21 + $0x218] sm:$0xff] }
  0xf4   : > { %16377 = vmatprep.mubr.msk.f32.mxu0 %vm389_vm0, %v2060_v44  ;;  %v2089_v44 = vld [vmem:[%s16883_s21 + $0x20a] sm:$0xff] }
  0xf6   : > { %16164 = vmatmul.mubr.msk.f32.gmra.mrb[84].mxu1 %vm389_vm0, %v379_v45  ;;  %v267_v45 = vld [vmem:[%s16883_s21 + $0x220] sm:$0xff] }
  0xf7   : > { %16378 = vmatmul.mubr.msk.f32.gmra.mrb[36].mxu0 %vm389_vm0, %v2061_v46  ;;  %16166 = vmatprep.mubr.msk.f32.mxu1 %vm389_vm0, %v380_v47  ;;  %v2090_v46 = vld [vmem:[%s16883_s21 + $0x212] sm:$0xff] }
  0xf8   : > { %16380 = vmatprep.mubr.msk.f32.mxu0 %vm389_vm0, %v2062_v48 }
  0xfa   : > { %16167 = vmatmul.mubr.msk.f32.gmra.mrb[86].mxu1 %vm389_vm0, %v381_v49  ;;  %v268_v49 = vld [vmem:[%s16883_s21 + $0x228] sm:$0xff] }
  0xfb   : > { %16381 = vmatmul.mubr.msk.f32.gmra.mrb[38].mxu0 %vm389_vm0, %v2063_v50  ;;  %16169 = vmatprep.mubr.msk.f32.mxu1 %vm389_vm0, %v382_v51  ;;  %v2091_v50 = vld [vmem:[%s16883_s21 + $0x21a] sm:$0xff]  ;;  %v269_v51 = vld [vmem:[%s16883_s21 + $0x230] sm:$0xff] }
  0xfc   : > { %16383 = vmatprep.mubr.msk.f32.mxu0 %vm389_vm0, %v2064_v52  ;;  %v2092_v52 = vld [vmem:[%s16883_s21 + $0x222] sm:$0xff] }
  0xfe   : > { %16170 = vmatmul.mubr.msk.f32.gmra.mrb[88].mxu1 %vm389_vm0, %v383_v53 }
  0xff   : > { %16384 = vmatmul.mubr.msk.f32.gmra.mrb[40].mxu0 %vm389_vm0, %v2065_v54  ;;  %16172 = vmatprep.mubr.msk.f32.mxu1 %vm389_vm0, %v384_v55  ;;  %v270_v55 = vld [vmem:[%s16883_s21 + $0x238] sm:$0xff] }
 0x100   : > { %16386 = vmatprep.mubr.msk.f32.mxu0 %vm389_vm0, %v2066_v56  ;;  %v2093_v56 = vld [vmem:[%s16883_s21 + $0x22a] sm:$0xff] }
 0x102   : > { %16173 = vmatmul.mubr.msk.f32.gmra.mrb[90].mxu1 %vm389_vm0, %v385_v57  ;;  %v271_v57 = vld [vmem:[%s16883_s21 + $0x240] sm:$0xff] }
 0x103   : > { %16387 = vmatmul.mubr.msk.f32.gmra.mrb[42].mxu0 %vm389_vm0, %v2067_v58  ;;  %16175 = vmatprep.mubr.msk.f32.mxu1 %vm389_vm0, %v386_v59  ;;  %v2094_v58 = vld [vmem:[%s16883_s21 + $0x232] sm:$0xff] }
 0x104   : > { %16389 = vmatprep.mubr.msk.f32.mxu0 %vm389_vm0, %v2068_v60 }
 0x106   : > { %16176 = vmatmul.mubr.msk.f32.gmra.mrb[92].mxu1 %vm389_vm0, %v387_v61  ;;  %v272_v61 = vld [vmem:[%s16883_s21 + $0x248] sm:$0xff] }
 0x107   : > { %16390 = vmatmul.mubr.msk.f32.gmra.mrb[44].mxu0 %vm389_vm0, %v2069_v62  ;;  %16252 = vmatprep.mubr.msk.f32.mxu1 %vm389_vm0, %v247_v63  ;;  %v2095_v62 = vld [vmem:[%s16883_s21 + $0x23a] sm:$0xff]  ;;  %v273_v63 = vld [vmem:[%s16883_s21 + $0x250] sm:$0xff] }
 0x108   : > { %16392 = vmatprep.mubr.msk.f32.mxu0 %vm389_vm0, %v2070_v0  ;;  %v2096_v0 = vld [vmem:[%s16883_s21 + $0x242] sm:$0xff] }
 0x10a   : > { %16253 = vmatmul.mubr.msk.f32.vlgmr.msra.gmra.mrb[48].mxu1 %vm389_vm0, %v248_v1 }
 0x10b   : > { %16393 = vmatmul.mubr.msk.f32.gmra.mrb[46].mxu0 %vm389_vm0, %v2071_v2  ;;  %16255 = vmatprep.mubr.msk.f32.mxu1 %vm389_vm0, %v249_v3  ;;  %v274_v3 = vld [vmem:[%s16883_s21 + $0x258] sm:$0xff] }
 0x10c   : > { %16395 = vmatprep.mubr.msk.f32.mxu0 %vm389_vm0, %v2072_v4  ;;  %v2097_v4 = vld [vmem:[%s16883_s21 + $0x24a] sm:$0xff] }
 0x10e   : > { %16256 = vmatmul.mubr.msk.f32.gmra.mrb[50].mxu1 %vm389_vm0, %v250_v5  ;;  %v275_v5 = vld [vmem:[%s16883_s21 + $0x260] sm:$0xff] }
 0x10f   : > { %16396 = vmatmul.mubr.msk.f32.gmra.mrb[48].mxu0 %vm389_vm0, %v2073_v6  ;;  %16258 = vmatprep.mubr.msk.f32.mxu1 %vm389_vm0, %v251_v7  ;;  %v2098_v6 = vld [vmem:[%s16883_s21 + $0x252] sm:$0xff] }
 0x110   : > { %16398 = vmatprep.mubr.msk.f32.mxu0 %vm389_vm0, %v2074_v8 }
 0x112   : > { %16259 = vmatmul.mubr.msk.f32.gmra.mrb[52].mxu1 %vm389_vm0, %v252_v9  ;;  %v276_v9 = vld [vmem:[%s16883_s21 + $0x268] sm:$0xff] }
 0x113   : > { %16399 = vmatmul.mubr.msk.f32.gmra.mrb[50].mxu0 %vm389_vm0, %v2075_v10  ;;  %16261 = vmatprep.mubr.msk.f32.mxu1 %vm389_vm0, %v253_v11  ;;  %v2099_v10 = vld [vmem:[%s16883_s21 + $0x25a] sm:$0xff]  ;;  %v277_v11 = vld [vmem:[%s16883_s21 + $0x270] sm:$0xff] }
 0x114   : > { %16401 = vmatprep.mubr.msk.f32.mxu0 %vm389_vm0, %v2076_v12  ;;  %v2100_v12 = vld [vmem:[%s16883_s21 + $0x262] sm:$0xff] }
 0x116   : > { %16262 = vmatmul.mubr.msk.f32.gmra.mrb[54].mxu1 %vm389_vm0, %v254_v13 }
 0x117   : > { %16402 = vmatmul.mubr.msk.f32.gmra.mrb[52].mxu0 %vm389_vm0, %v2077_v14  ;;  %16264 = vmatprep.mubr.msk.f32.mxu1 %vm389_vm0, %v255_v15  ;;  %v278_v15 = vld [vmem:[%s16883_s21 + $0x278] sm:$0xff] }
 0x118   : > { %16404 = vmatprep.mubr.msk.f32.mxu0 %vm389_vm0, %v2078_v16  ;;  %v2101_v16 = vld [vmem:[%s16883_s21 + $0x26a] sm:$0xff] }
 0x11a   : > { %16265 = vmatmul.mubr.msk.f32.gmra.mrb[56].mxu1 %vm389_vm0, %v256_v17  ;;  %v279_v17 = vld [vmem:[%s16883_s21 + $0x280] sm:$0xff] }
 0x11b   : > { %16405 = vmatmul.mubr.msk.f32.gmra.mrb[54].mxu0 %vm389_vm0, %v2079_v18  ;;  %16267 = vmatprep.mubr.msk.f32.mxu1 %vm389_vm0, %v257_v19  ;;  %v2102_v18 = vld [vmem:[%s16883_s21 + $0x272] sm:$0xff] }
 0x11c   : > { %16407 = vmatprep.mubr.msk.f32.mxu0 %vm389_vm0, %v2080_v20 }
 0x11e   : > { %16268 = vmatmul.mubr.msk.f32.gmra.mrb[58].mxu1 %vm389_vm0, %v258_v21  ;;  %v280_v21 = vld [vmem:[%s16883_s21 + $0x288] sm:$0xff] }
 0x11f   : > { %16408 = vmatmul.mubr.msk.f32.gmra.mrb[56].mxu0 %vm389_vm0, %v2081_v22  ;;  %16270 = vmatprep.mubr.msk.f32.mxu1 %vm389_vm0, %v259_v23  ;;  %v2103_v22 = vld [vmem:[%s16883_s21 + $0x27a] sm:$0xff]  ;;  %v281_v23 = vld [vmem:[%s16883_s21 + $0x290] sm:$0xff] }
 0x120   : > { %16410 = vmatprep.mubr.msk.f32.mxu0 %vm389_vm0, %v2082_v24  ;;  %v2104_v24 = vld [vmem:[%s16883_s21 + $0x282] sm:$0xff] }
 0x121   : > { %v17317_v29 = vpop.f32.mrb[0].mxu1 }
 0x122   : > { %16271 = vmatmul.mubr.msk.f32.gmra.mrb[60].mxu1 %vm389_vm0, %v260_v25  ;;  %v17321_v30 = vpop.f32.mrb[1].mxu1 }
 0x123   : > { %16411 = vmatmul.mubr.msk.f32.gmra.mrb[58].mxu0 %vm389_vm0, %v2083_v26  ;;  %16273 = vmatprep.mubr.msk.f32.mxu1 %vm389_vm0, %v261_v27  ;;  %v282_v27 = vld [vmem:[%s16883_s21 + $0x298] sm:$0xff] }
 0x124   : > { %16413 = vmatprep.mubr.msk.f32.mxu0 %vm389_vm0, %v2084_v28  ;;  %v2105_v28 = vld [vmem:[%s16883_s21 + $0x28a] sm:$0xff] }
 0x125   : > { %v17329_v35 = vpop.f32.mrb[2].mxu1 }
 0x126   : > { %16274 = vmatmul.mubr.msk.f32.gmra.mrb[62].mxu1 %vm389_vm0, %v262_v31  ;;  %v17333_v36 = vpop.f32.mrb[3].mxu1  ;;  %v283_v31 = vld [vmem:[%s16883_s21 + $0x2a0] sm:$0xff] }
 0x127   : > { %16414 = vmatmul.mubr.msk.f32.gmra.mrb[60].mxu0 %vm389_vm0, %v2085_v32  ;;  %16276 = vmatprep.mubr.msk.f32.mxu1 %vm389_vm0, %v263_v33  ;;  %v2106_v32 = vld [vmem:[%s16883_s21 + $0x292] sm:$0xff] }
 0x128   : > { %16416 = vmatprep.mubr.msk.f32.mxu0 %vm389_vm0, %v2086_v34 }
 0x129   : > { %v17341_v41 = vpop.f32.mrb[4].mxu1 }
 0x12a   : > { %16277 = vmatmul.mubr.msk.f32.gmra.mrb[64].mxu1 %vm389_vm0, %v264_v37  ;;  %v17345_v42 = vpop.f32.mrb[5].mxu1  ;;  %v284_v37 = vld [vmem:[%s16883_s21 + $0x2a8] sm:$0xff] }
 0x12b   : > { %16417 = vmatmul.mubr.msk.f32.gmra.mrb[62].mxu0 %vm389_vm0, %v2087_v38  ;;  %16279 = vmatprep.mubr.msk.f32.mxu1 %vm389_vm0, %v265_v39  ;;  %v2107_v38 = vld [vmem:[%s16883_s21 + $0x29a] sm:$0xff]  ;;  %v285_v39 = vld [vmem:[%s16883_s21 + $0x2b0] sm:$0xff] }
 0x12c   : > { %16419 = vmatprep.mubr.msk.f32.mxu0 %vm389_vm0, %v2088_v40  ;;  %v2108_v40 = vld [vmem:[%s16883_s21 + $0x2a2] sm:$0xff] }
 0x12d   : > { %v17353_v47 = vpop.f32.mrb[6].mxu1 }
 0x12e   : > { %16280 = vmatmul.mubr.msk.f32.gmra.mrb[66].mxu1 %vm389_vm0, %v266_v43  ;;  %v17357_v48 = vpop.f32.mrb[7].mxu1 }
 0x12f   : > { %16420 = vmatmul.mubr.msk.f32.gmra.mrb[64].mxu0 %vm389_vm0, %v2089_v44  ;;  %16282 = vmatprep.mubr.msk.f32.mxu1 %vm389_vm0, %v267_v45  ;;  %v286_v45 = vld [vmem:[%s16883_s21 + $0x2b8] sm:$0xff] }
 0x130   : > { %16422 = vmatprep.mubr.msk.f32.mxu0 %vm389_vm0, %v2090_v46  ;;  %v2109_v46 = vld [vmem:[%s16883_s21 + $0x2aa] sm:$0xff] }
 0x131   : > { %v17365_v53 = vpop.f32.mrb[8].mxu1 }
 0x132   : > { %16283 = vmatmul.mubr.msk.f32.gmra.mrb[68].mxu1 %vm389_vm0, %v268_v49  ;;  %v17369_v54 = vpop.f32.mrb[9].mxu1  ;;  %v287_v49 = vld [vmem:[%s16883_s21 + $0x2c0] sm:$0xff] }
 0x133   : > { %16423 = vmatmul.mubr.msk.f32.gmra.mrb[66].mxu0 %vm389_vm0, %v2091_v50  ;;  %16285 = vmatprep.mubr.msk.f32.mxu1 %vm389_vm0, %v269_v51  ;;  %v2110_v50 = vld [vmem:[%s16883_s21 + $0x2b2] sm:$0xff] }
 0x134   : > { %16425 = vmatprep.mubr.msk.f32.mxu0 %vm389_vm0, %v2092_v52 }
 0x135   : > { %v17377_v59 = vpop.f32.mrb[10].mxu1 }
 0x136   : > { %16286 = vmatmul.mubr.msk.f32.gmra.mrb[70].mxu1 %vm389_vm0, %v270_v55  ;;  %v17381_v60 = vpop.f32.mrb[11].mxu1  ;;  %v288_v55 = vld [vmem:[%s16883_s21 + $0x2c8] sm:$0xff] }
 0x137   : > { %16426 = vmatmul.mubr.msk.f32.gmra.mrb[68].mxu0 %vm389_vm0, %v2093_v56  ;;  %16288 = vmatprep.mubr.msk.f32.mxu1 %vm389_vm0, %v271_v57  ;;  %v2111_v56 = vld [vmem:[%s16883_s21 + $0x2ba] sm:$0xff]  ;;  %v289_v57 = vld [vmem:[%s16883_s21 + $0x2d0] sm:$0xff] }
 0x138   : > { %16428 = vmatprep.mubr.msk.f32.mxu0 %vm389_vm0, %v2094_v58  ;;  %v2112_v58 = vld [vmem:[%s16883_s21 + $0x2c2] sm:$0xff] }
 0x139   : > { %v17389_v1 = vpop.f32.mrb[12].mxu1 }
 0x13a   : > { %16289 = vmatmul.mubr.msk.f32.gmra.mrb[72].mxu1 %vm389_vm0, %v272_v61  ;;  %v17393_v2 = vpop.f32.mrb[13].mxu1 }
 0x13b   : > { %16429 = vmatmul.mubr.msk.f32.gmra.mrb[70].mxu0 %vm389_vm0, %v2095_v62  ;;  %16291 = vmatprep.mubr.msk.f32.mxu1 %vm389_vm0, %v273_v63  ;;  %v290_v63 = vld [vmem:[%s16883_s21 + $0x2d8] sm:$0xff] }
 0x13c   : > { %16431 = vmatprep.mubr.msk.f32.mxu0 %vm389_vm0, %v2096_v0  ;;  %v2113_v0 = vld [vmem:[%s16883_s21 + $0x2ca] sm:$0xff] }
 0x13d   : > { %v17401_v7 = vpop.f32.mrb[14].mxu1 }
 0x13e   : > { %16292 = vmatmul.mubr.msk.f32.gmra.mrb[74].mxu1 %vm389_vm0, %v274_v3  ;;  %v17405_v8 = vpop.f32.mrb[15].mxu1  ;;  %v291_v3 = vld [vmem:[%s16883_s21 + $0x2e0] sm:$0xff] }
 0x13f   : > { %16432 = vmatmul.mubr.msk.f32.gmra.mrb[72].mxu0 %vm389_vm0, %v2097_v4  ;;  %16294 = vmatprep.mubr.msk.f32.mxu1 %vm389_vm0, %v275_v5  ;;  %v2114_v4 = vld [vmem:[%s16883_s21 + $0x2d2] sm:$0xff] }
 0x140   : > { %16434 = vmatprep.mubr.msk.f32.mxu0 %vm389_vm0, %v2098_v6 }
 0x141   : > { %v17413_v13 = vpop.f32.mrb[16].mxu1 }
 0x142   : > { %16295 = vmatmul.mubr.msk.f32.gmra.mrb[76].mxu1 %vm389_vm0, %v276_v9  ;;  %v17417_v14 = vpop.f32.mrb[17].mxu1  ;;  %v292_v9 = vld [vmem:[%s16883_s21 + $0x2e8] sm:$0x3f] }
 0x143   : > { %16435 = vmatmul.mubr.msk.f32.gmra.mrb[74].mxu0 %vm389_vm0, %v2099_v10  ;;  %16297 = vmatprep.mubr.msk.f32.mxu1 %vm389_vm0, %v277_v11  ;;  %v2115_v10 = vld [vmem:[%s16883_s21 + $0x2da] sm:$0xff]  ;;  %v2116_v11 = vld [vmem:[%s16883_s21 + $0x2e2] sm:$0xff] }
 0x144   : > { %16437 = vmatprep.mubr.msk.f32.mxu0 %vm389_vm0, %v2100_v12 }
 0x145   : > { %v17425_v19 = vpop.f32.mrb[18].mxu1 }
 0x146   : > { %16298 = vmatmul.mubr.msk.f32.gmra.mrb[78].mxu1 %vm389_vm0, %v278_v15  ;;  %v17429_v20 = vpop.f32.mrb[19].mxu1 }
 0x147   : > { %16438 = vmatmul.mubr.msk.f32.gmra.mrb[76].mxu0 %vm389_vm0, %v2101_v16  ;;  %16300 = vmatprep.mubr.msk.f32.mxu1 %vm389_vm0, %v279_v17  ;;  %v2117_v16 = vld [vmem:[%s16883_s21 + $0x2ea] sm:$0x3f] }
 0x148   : > { %16440 = vmatprep.mubr.msk.f32.mxu0 %vm389_vm0, %v2102_v18 }
 0x149   : > { %v17437_v25 = vpop.f32.mrb[20].mxu1 }
 0x14a   : > { %16301 = vmatmul.mubr.msk.f32.gmra.mrb[80].mxu1 %vm389_vm0, %v280_v21  ;;  %v17441_v26 = vpop.f32.mrb[21].mxu1 }
 0x14b   : > { %16441 = vmatmul.mubr.msk.f32.gmra.mrb[78].mxu0 %vm389_vm0, %v2103_v22  ;;  %16303 = vmatprep.mubr.msk.f32.mxu1 %vm389_vm0, %v281_v23 }
 0x14c   : > { %16443 = vmatprep.mubr.msk.f32.mxu0 %vm389_vm0, %v2104_v24 }
 0x14d   : > { %v17449_v33 = vpop.f32.mrb[22].mxu1 }
 0x14e   : > { %16304 = vmatmul.mubr.msk.f32.gmra.mrb[82].mxu1 %vm389_vm0, %v282_v27  ;;  %v17453_v34 = vpop.f32.mrb[23].mxu1 }
 0x14f   : > { %16444 = vmatmul.mubr.msk.f32.gmra.mrb[80].mxu0 %vm389_vm0, %v2105_v28  ;;  %20418 = vst [vmem:[#allocation8_spill] sm:$0xff] %v17453_v34  ;;  %16306 = vmatprep.mubr.msk.f32.mxu1 %vm389_vm0, %v283_v31 }
 0x150   : > { %16446 = vmatprep.mubr.msk.f32.mxu0 %vm389_vm0, %v2106_v32 }
 0x151   : > { %v17461_v43 = vpop.f32.mrb[24].mxu1 }
 0x152   : > { %20419 = vst [vmem:[#allocation9_spill] sm:$0xff] %v17461_v43  ;;  %16307 = vmatmul.mubr.msk.f32.gmra.mrb[84].mxu1 %vm389_vm0, %v284_v37  ;;  %v17465_v44 = vpop.f32.mrb[25].mxu1 }
 0x153   : > { %16447 = vmatmul.mubr.msk.f32.gmra.mrb[82].mxu0 %vm389_vm0, %v2107_v38  ;;  %20420 = vst [vmem:[#allocation10_spill] sm:$0xff] %v17465_v44  ;;  %16309 = vmatprep.mubr.msk.f32.mxu1 %vm389_vm0, %v285_v39  ;;  %v16771_v39 = vmov 1966171168  }
 0x154   : > { %16449 = vmatprep.mubr.msk.f32.mxu0 %vm389_vm0, %v2108_v40  ;;  %v3321_v40 = vunpack.c.l.s4 %v16771_v39 }
 0x155   : > { %v17473_v51 = vpop.f32.mrb[26].mxu1 }
 0x156   : > { %20421 = vst [vmem:[#allocation11_spill] sm:$0xff] %v17473_v51  ;;  %16310 = vmatmul.mubr.msk.f32.gmra.mrb[86].mxu1 %vm389_vm0, %v286_v45  ;;  %v17477_v52 = vpop.f32.mrb[27].mxu1  ;;  %v3323_v45 = vlaneseq }
 0x157   : > { %16450 = vmatmul.mubr.msk.f32.gmra.mrb[84].mxu0 %vm389_vm0, %v2109_v46  ;;  %20422 = vst [vmem:[#allocation12_spill] sm:$0xff] %v17477_v52  ;;  %16312 = vmatprep.mubr.msk.f32.mxu1 %vm389_vm0, %v287_v49 }
 0x158   : > { %16452 = vmatprep.mubr.msk.f32.mxu0 %vm389_vm0, %v2110_v50  ;;  %v3322_v50 = vunpack.c.0.s8 %v3321_v40 }
 0x159   : > { %v17485_v61 = vpop.f32.mrb[28].mxu1 }
 0x15a   : > { %20423 = vst [vmem:[#allocation13_spill] sm:$0xff] %v17485_v61  ;;  %16313 = vmatmul.mubr.msk.f32.gmra.mrb[88].mxu1 %vm389_vm0, %v288_v55  ;;  %v17489_v62 = vpop.f32.mrb[29].mxu1  ;;  %v3324_v55 = vshrl.u32 %v3323_v45, 7 }
 0x15b   : > { %16453 = vmatmul.mubr.msk.f32.gmra.mrb[86].mxu0 %vm389_vm0, %v2111_v56  ;;  %20424 = vst [vmem:[#allocation14_spill] sm:$0xff] %v17489_v62  ;;  %16315 = vmatprep.mubr.msk.f32.mxu1 %vm389_vm0, %v289_v57  ;;  %v17545_v57 = vld [vmem:[#allocation4] ss:$0 sm:$0xff] }
 0x15c   : > { %16455 = vmatprep.mubr.msk.f32.mxu0 %vm389_vm0, %v2112_v58 }
 0x15d   : > { %v17497_v5 = vpop.f32.mrb[30].mxu1 }
 0x15e   : > { %20425 = vst [vmem:[#allocation15_spill] sm:$0xff] %v17497_v5  ;;  %16316 = vmatmul.mubr.msk.f32.gmra.mrb[90].mxu1 %vm389_vm0, %v290_v63  ;;  %v17501_v6 = vpop.f32.mrb[31].mxu1 }
 0x15f   : > { %16456 = vmatmul.mubr.msk.f32.gmra.mrb[88].mxu0 %vm389_vm0, %v2113_v0  ;;  %20426 = vst [vmem:[#allocation16_spill] sm:$0xff] %v17501_v6  ;;  %16318 = vmatprep.mubr.msk.f32.mxu1 %vm389_vm0, %v291_v3 }
 0x160   : > { %16458 = vmatprep.mubr.msk.f32.mxu0 %vm389_vm0, %v2114_v4  ;;  %v17550_v4 = vsub.s32 %v3322_v50, %v3324_v55 }
 0x161   : > { %v17508_v12 = vpop.f32.mrb[32].mxu1 }
 0x162   : > { %20427 = vst [vmem:[#allocation17_spill] sm:$0xff] %v17508_v12  ;;  %16319 = vmatmul.mubr.msk.f32.gmra.mrb[92].mxu1 %vm389_vm0, %v292_v9  ;;  %v17512_v15 = vpop.f32.mrb[33].mxu1 }
 0x163   : > { %16459 = vmatmul.mubr.msk.f32.gmra.mrb[90].mxu0 %vm389_vm0, %v2115_v10  ;;  %20428 = vst [vmem:[#allocation18_spill] sm:$0xff] %v17512_v15 }
 0x164   : > { %16461 = vmatprep.mubr.msk.f32.mxu0 %vm389_vm0, %v2116_v11 }
 0x165   : > { %v17516_v17 = vpop.f32.mrb[34].mxu1 }
 0x166   : > { %20429 = vst [vmem:[#allocation19_spill] sm:$0xff] %v17516_v17  ;;  %v17519_v18 = vpop.f32.mrb[35].mxu1 }
 0x167   : > { %16462 = vmatmul.mubr.msk.f32.gmra.mrb[92].mxu0 %vm389_vm0, %v2117_v16  ;;  %20430 = vst [vmem:[#allocation20_spill] sm:$0xff] %v17519_v18 }
 0x169   : > { %v17521_v21 = vpop.f32.mrb[36].mxu1 }
 0x16a   : > { %20431 = vst [vmem:[#allocation21_spill] sm:$0xff] %v17521_v21  ;;  %v17523_v22 = vpop.f32.mrb[37].mxu1 }
 0x16b   : > { %20432 = vst [vmem:[#allocation22_spill] sm:$0xff] %v17523_v22 }
 0x16d   : > { %v17525_v23 = vpop.f32.mrb[38].mxu1 }
 0x16e   : > { %20433 = vst [vmem:[#allocation23_spill] sm:$0xff] %v17525_v23  ;;  %v17527_v24 = vpop.f32.mrb[39].mxu1 }
 0x16f   : > { %20434 = vst [vmem:[#allocation24_spill] sm:$0xff] %v17527_v24 }
 0x171   : > { %v17529_v27 = vpop.f32.mrb[40].mxu1 }
 0x172   : > { %20435 = vst [vmem:[#allocation25_spill] sm:$0xff] %v17529_v27  ;;  %v17531_v28 = vpop.f32.mrb[41].mxu1 }
 0x173   : > { %20436 = vst [vmem:[#allocation26_spill] sm:$0xff] %v17531_v28 }
 0x175   : > { %v17533_v31 = vpop.f32.mrb[42].mxu1 }
 0x176   : > { %20437 = vst [vmem:[#allocation27_spill] sm:$0xff] %v17533_v31  ;;  %v17535_v32 = vpop.f32.mrb[43].mxu1 }
 0x177   : > { %20438 = vst [vmem:[#allocation28_spill] sm:$0xff] %v17535_v32 }
 0x179   : > { %v17537_v37 = vpop.f32.mrb[44].mxu1 }
 0x17a   : > { %20439 = vst [vmem:[#allocation29_spill] sm:$0xff] %v17537_v37  ;;  %v17539_v38 = vpop.f32.mrb[45].mxu1 }
 0x17b   : > { %20440 = vst [vmem:[#allocation30_spill] sm:$0xff] %v17539_v38 }
 0x17d   : > { %v17541_v46 = vpop.f32.mrb[46].mxu1 }
 0x17e   : > { %20441 = vst [vmem:[#allocation31_spill] sm:$0xff] %v17541_v46  ;;  %v17543_v49 = vpop.f32.mrb[47].mxu1 }
 0x17f   : > { %20442 = vst [vmem:[#allocation32_spill] sm:$0xff] %v17543_v49 }
 0x182   : > { %v16325_v56 = vpop.f32.mrb[0].mxu0 }
 0x183   : > { %v16466_v58 = vadd.f32 %v16325_v56, %v17317_v29  ;;  %v2467_v63 = vpop.f32.mrb[1].mxu0 }
 0x184   : > { %v16467_v0 = vadd.f32 %v2467_v63, %v17321_v30 }
 0x185   : > { %v3038_v3 = vadd.f32 %v16466_v58, %v17545_v57 }
 0x186   : > { %v3037_v9 = vadd.f32 %v16467_v0, %v17545_v57  ;;  %v16328_v10 = vpop.f32.mrb[2].mxu0 }
 0x187   : > { %v3132_v11 = vmax.f32 %v3038_v3, 0.0  ;;  %v16468_v16 = vadd.f32 %v16328_v10, %v17329_v35  ;;  %v2477_v39 = vpop.f32.mrb[3].mxu0 }
 0x188   : > { %v3131_v40 = vmax.f32 %v3037_v9, 0.0  ;;  %v16469_v45 = vadd.f32 %v2477_v39, %v17333_v36 }
 0x189   : > { %v3368_v49 = vcombine.high %v3132_v11, %v3132_v11  ;;  %v3375_v29 = vrot.slane %v3132_v11, %v17550_v4  ;;  %v3040_v56 = vadd.f32 %v16468_v16, %v17545_v57 }
 0x18a   : > { %v3319_v30 = vcombine.high %v3131_v40, %v3131_v40  ;;  %v3326_v58 = vrot.slane %v3131_v40, %v17550_v4  ;;  %v3039_v50 = vadd.f32 %v16469_v45, %v17545_v57  ;;  %v17559_v55 = vpop.f32.mrb[4].mxu0 }
 0x18b   : > { %v3382_v63 = vrot.slane %v3368_v49, %v17550_v4  ;;  %v3383_v0 = vcombine.high %v3375_v29, %v3375_v29  ;;  %v3391_v35 = vrot.slane %v3375_v29, %v17550_v4  ;;  %v3134_v3 = vmax.f32 %v3040_v56, 0.0  ;;  %v17563_v9 = vpop.f32.mrb[5].mxu0 }
 0x18c   : > { %v3333_v36 = vrot.slane %v3319_v30, %v17550_v4  ;;  %v3334_v10 = vcombine.high %v3326_v58, %v3326_v58  ;;  %v3342_v11 = vrot.slane %v3326_v58, %v17550_v4  ;;  %v17567_v16 = vmax.f32 %v3039_v50, 0.0 }
 0x18d   : > { %v3384_v39 = vcombine.high %v3382_v63, %v3382_v63  ;;  %v3398_v40 = vrot.slane %v3382_v63, %v17550_v4  ;;  %v3405_v45 = vrot.slane %v3383_v0, %v17550_v4  ;;  %v3466_v46 = vcombine.high %v3134_v3, %v3134_v3 }
 0x18e   : > { %v3335_v49 = vcombine.high %v3333_v36, %v3333_v36  ;;  %v3349_v38 = vrot.slane %v3333_v36, %v17550_v4  ;;  %v3356_v29 = vrot.slane %v3334_v10, %v17550_v4  ;;  %v3473_v56 = vrot.slane %v3134_v3, %v17550_v4  ;;  %v17574_v37 = vpop.f32.mrb[6].mxu0 }
 0x18f   : > { %v17577_v30 = vrot.slane %v3384_v39, %v17550_v4  ;;  %v3414_v58 = vcombine.high %v3398_v40, %v3398_v40  ;;  %v7984_v50 = vrot.slane %v3405_v45, %v17550_v4  ;;  %v15674_v32 = vcombine.high %v3391_v35, %v3405_v45  ;;  %v17580_v63 = vpop.f32.mrb[7].mxu0 }
 0x190   : > { %v3363_v0 = vrot.slane %v3335_v49, %v17550_v4  ;;  %v3365_v31 = vcombine.high %v3349_v38, %v3349_v38  ;;  %v7923_v36 = vcombine.low %v3342_v11, %v3356_v29  ;;  %v15673_v28 = vcombine.high %v3342_v11, %v3356_v29 }
 0x191   : > { %v7999_v10 = vrot.slane %v7984_v50, %v17550_v4  ;;  %v8002_v3 = vcombine.low %v3398_v40, %v17577_v30  ;;  %v8009_v27 = vrot.slane %v15674_v32, %v17550_v4  ;;  %v8023_v39 = vrot.slane %v3414_v58, %v17550_v4 }
 0x192   : > { %v3367_v24 = vcombine.high %v3363_v0, %v3363_v0  ;;  %v7931_v23 = vrot.slane %v7923_v36, %v17550_v4  ;;  %v7938_v45 = vrot.slane %v15673_v28, %v17550_v4  ;;  %v7945_v22 = vrot.slane %v3349_v38, %v17550_v4  ;;  %v17590_v21 = vpop.f32.mrb[8].mxu0 }
 0x193   : > { %v8016_v49 = vrot.slane %v8002_v3, %v17550_v4  ;;  %v8038_v11 = vrot.slane %v8023_v39, %v17550_v4  ;;  %v7962_v29 = vcombine.low %v3363_v0, %v3365_v31  ;;  %v3480_v40 = vrot.slane %v3466_v46, %v17550_v4  ;;  %v17595_v50 = vpop.f32.mrb[9].mxu0 }
 0x194   : > { %v7946_v32 = vcombine.low %v7931_v23, %v7938_v45  ;;  %v7960_v58 = vrot.slane %v7945_v22, %v17550_v4  ;;  %v7963_v18 = vcombine.low %v3367_v24, %v3391_v35  ;;  %v3481_v36 = vcombine.high %v3473_v56, %v3473_v56 }
 0x195   : > { %v8024_v17 = vcombine.low %v8009_v27, %v8016_v49  ;;  %v7970_v28 = vrot.slane %v7962_v29, %v17550_v4  ;;  %v3482_v38 = vcombine.high %v3480_v40, %v3480_v40  ;;  %v3489_v15 = vrot.slane %v3473_v56, %v17550_v4 }
 0x196   : > { %v7953_v3 = vrot.slane %v7946_v32, %v17550_v4  ;;  %v7977_v39 = vrot.slane %v7963_v18, %v17550_v4  ;;  %v3496_v31 = vrot.slane %v3480_v40, %v17550_v4  ;;  %v3503_v46 = vrot.slane %v3481_v36, %v17550_v4  ;;  %v17604_v0 = vpop.f32.mrb[10].mxu0 }
 0x197   : > { %v8031_v22 = vrot.slane %v8024_v17, %v17550_v4  ;;  %v3510_v23 = vrot.slane %v3482_v38, %v17550_v4  ;;  %v3511_v24 = vcombine.high %v3489_v15, %v3489_v15  ;;  %v8101_v27 = vrot.slane %v3489_v15, %v17550_v4  ;;  %v17609_v35 = vpop.f32.mrb[11].mxu0 }
 0x198   : > { %v7961_v56 = vcombine.low %v7953_v3, %v7960_v58  ;;  %v7985_v45 = vcombine.low %v7970_v28, %v7977_v39  ;;  %v3513_v49 = vcombine.high %v3503_v46, %v3503_v46  ;;  %v3416_v18 = vcombine.high %v17577_v30, %v17577_v30 }
 0x199   : > { %v8039_v29 = vcombine.low %v8031_v22, %v8038_v11  ;;  %v17614_v40 = vrot.slane %v8101_v27, %v17550_v4  ;;  %v8118_v32 = vcombine.low %v3503_v46, %v3511_v24  ;;  %v8140_v17 = vrot.slane %v3510_v23, %v17550_v4 }
 0x19a   : > { %v7992_v36 = vrot.slane %v7985_v45, %v17550_v4  ;;  %v13924_v38 = vsel %vm13923_vm1, %v7961_v56, -inf  ;;  %v8119_v15 = vcombine.low %v3513_v49, %v3496_v31  ;;  %v15676_v12 = vcombine.high %v3496_v31, %v3510_v23  ;;  %v17619_v6 = vpop.f32.mrb[12].mxu0 }
 0x19b   : > { %v13938_v58 = vsel %vm13923_vm1, %v8039_v29, -inf  ;;  %v13925_v28 = vrot.slane %v13924_v38, 4  ;;  %v8126_v30 = vrot.slane %v8118_v32, %v17550_v4  ;;  %v8155_v11 = vrot.slane %v8140_v17, %v17550_v4  ;;  %v17624_v3 = vpop.f32.mrb[13].mxu0 }
 0x19c   : > { %v13939_v39 = vrot.slane %v13938_v58, 4  ;;  %v8000_v46 = vcombine.low %v7992_v36, %v7999_v10  ;;  %v8133_v22 = vrot.slane %v8119_v15, %v17550_v4  ;;  %v17628_v24 = vrot.slane %v15676_v12, %v17550_v4 }
 0x19d   : > { %v13926_v27 = vmax.f32 %v13924_v38, %v13925_v28  ;;  %v3417_v31 = vcombine.high %v17567_v16, %v17567_v16  ;;  %v3424_v23 = vrot.slane %v17567_v16, %v17550_v4  ;;  %v16470_v56 = vadd.f32 %v17559_v55, %v17341_v41 }
 0x19e   : > { %v13940_v45 = vmax.f32 %v13938_v58, %v13939_v39  ;;  %v13931_v49 = vsel %vm13923_vm1, %v8000_v46, -inf  ;;  %v8141_v29 = vcombine.low %v8126_v30, %v8133_v22  ;;  %v16471_v10 = vadd.f32 %v17563_v9, %v17345_v42  ;;  %v17639_v32 = vpop.f32.mrb[14].mxu0 }
 0x19f   : > { %v13927_v12 = vrot.slane %v13926_v27, 2  ;;  %v13932_v17 = vrot.slane %v13931_v49, 4  ;;  %v3431_v36 = vrot.slane %v3417_v31, %v17550_v4  ;;  %v3432_v38 = vcombine.high %v3424_v23, %v3424_v23  ;;  %v17642_v15 = vpop.f32.mrb[15].mxu0 }
 0x1a0   : > { %v13941_v16 = vrot.slane %v13940_v45, 2  ;;  %v8148_v41 = vrot.slane %v8141_v29, %v17550_v4  ;;  %v3440_v55 = vrot.slane %v3424_v23, %v17550_v4  ;;  %v3042_v58 = vadd.f32 %v16470_v56, %v17545_v57 }
 0x1a1   : > { %v13928_v28 = vmax.f32 %v13926_v27, %v13927_v12  ;;  %v13933_v30 = vmax.f32 %v13931_v49, %v13932_v17  ;;  %v3433_v42 = vcombine.high %v3431_v36, %v3431_v36  ;;  %v3447_v9 = vrot.slane %v3431_v36, %v17550_v4 }
 0x1a2   : > { %v13942_v39 = vmax.f32 %v13940_v45, %v13941_v16  ;;  %v8156_v46 = vcombine.low %v8148_v41, %v8155_v11  ;;  %v3454_v22 = vrot.slane %v3432_v38, %v17550_v4  ;;  %v3462_v31 = vcombine.high %v3440_v55, %v3440_v55  ;;  %v17649_v5 = vpop.f32.mrb[16].mxu0 }
 0x1a3   : > { %v13929_v62 = vrot.slane %v13928_v28, 1  ;;  %v13934_v61 = vrot.slane %v13933_v30, 2  ;;  %v3461_v29 = vrot.slane %v3433_v42, %v17550_v4  ;;  %v8040_v23 = vcombine.low %v3416_v18, %v3440_v55  ;;  %v17652_v52 = vpop.f32.mrb[17].mxu0 }
 0x1a4   : > { %v13943_v27 = vrot.slane %v13942_v39, 1  ;;  %v13959_v56 = vsel %vm13923_vm1, %v8156_v46, -inf  ;;  %v3464_v49 = vcombine.high %v3454_v22, %v3454_v22  ;;  %v8041_v12 = vcombine.low %v3454_v22, %v3462_v31 }
 0x1a5   : > { %v13930_v17 = vmax.f32 %v13928_v28, %v13929_v62  ;;  %v13935_v45 = vmax.f32 %v13933_v30, %v13934_v61  ;;  %v13960_v11 = vrot.slane %v13959_v56, 4  ;;  %v8048_v36 = vrot.slane %v8040_v23, %v17550_v4 }
 0x1a6   : > { %v13944_v38 = vmax.f32 %v13942_v39, %v13943_v27  ;;  %v8055_v16 = vrot.slane %v8041_v12, %v17550_v4  ;;  %v8062_v41 = vrot.slane %v3464_v49, %v17550_v4  ;;  %v8079_v51 = vcombine.low %v3447_v9, %v3461_v29  ;;  %v17662_v31 = vpop.f32.mrb[18].mxu0 }
 0x1a7   : > { %v13936_v42 = vrot.slane %v13935_v45, 1  ;;  %v13961_v18 = vmax.f32 %v13959_v56, %v13960_v11  ;;  %v15675_v55 = vcombine.high %v3447_v9, %v3461_v29  ;;  %v3136_v44 = vmax.f32 %v3042_v58, 0.0 }
 0x1a8   : > { %v8063_v43 = vcombine.low %v8048_v36, %v8055_v16  ;;  %v8077_v46 = vrot.slane %v8062_v41, %v17550_v4  ;;  %v8087_v22 = vrot.slane %v8079_v51, %v17550_v4  ;;  %v3041_v61 = vadd.f32 %v16471_v10, %v17545_v57 }
 0x1a9   : > { %v13937_v62 = vmax.f32 %v13935_v45, %v13936_v42  ;;  %v13962_v28 = vrot.slane %v13961_v18, 2  ;;  %v8094_v30 = vrot.slane %v15675_v55, %v17550_v4  ;;  %v3564_v39 = vcombine.high %v3136_v44, %v3136_v44 }
 0x1aa   : > { %v8070_v23 = vrot.slane %v8063_v43, %v17550_v4  ;;  %v3571_v27 = vrot.slane %v3136_v44, %v17550_v4  ;;  %v3135_v9 = vmax.f32 %v3041_v61, 0.0  ;;  %v16472_v58 = vadd.f32 %v17574_v37, %v17353_v47 }
 0x1ab   : > { %v15125_v29 = vsel %vm15124_vm2, %v13937_v62, %v13930_v17  ;;  %v13963_v51 = vmax.f32 %v13961_v18, %v13962_v28  ;;  %v8102_v56 = vcombine.low %v8087_v22, %v8094_v30  ;;  %v3578_v10 = vrot.slane %v3564_v39, %v17550_v4 }
 0x1ac   : > { %v17671_v49 = vsel %vm15126_vm3, %v13944_v38, %v15125_v29  ;;  %v8078_v12 = vcombine.low %v8070_v23, %v8077_v46  ;;  %v3579_v45 = vcombine.high %v3571_v27, %v3571_v27  ;;  %v3587_v11 = vrot.slane %v3571_v27, %v17550_v4 }
 0x1ad   : > { %v13964_v43 = vrot.slane %v13963_v51, 1  ;;  %v8109_v44 = vrot.slane %v8102_v56, %v17550_v4  ;;  %v3580_v36 = vcombine.high %v3578_v10, %v3578_v10  ;;  %v3594_v16 = vrot.slane %v3578_v10, %v17550_v4 }
 0x1ae   : > { %v13945_v47 = vsel %vm13923_vm1, %v8078_v12, -inf  ;;  %v3601_v37 = vrot.slane %v3579_v45, %v17550_v4  ;;  %v3515_v17 = vcombine.high %v3135_v9, %v3135_v9  ;;  %v3522_v41 = vrot.slane %v3135_v9, %v17550_v4 }
 0x1af   : > { %v17679_v42 = vmax.f32 %v13963_v51, %v13964_v43  ;;  %v8117_v38 = vcombine.low %v8109_v44, %v17614_v40  ;;  %v13946_v18 = vrot.slane %v13945_v47, 4  ;;  %v17683_v55 = vrot.slane %v3580_v36, %v17550_v4  ;;  %v17691_v51 = vpop.f32.mrb[19].mxu0 }
 0x1b0   : > { %v3610_v46 = vcombine.high %v3594_v16, %v3594_v16  ;;  %v8235_v22 = vcombine.low %v3587_v11, %v3601_v37  ;;  %v15677_v61 = vcombine.high %v3587_v11, %v3601_v37  ;;  %v8257_v62 = vrot.slane %v3594_v16, %v17550_v4 }
 0x1b1   : > { %v13947_v28 = vmax.f32 %v13945_v47, %v13946_v18  ;;  %v13952_v30 = vsel %vm13923_vm1, %v8117_v38, -inf  ;;  %v3529_v39 = vrot.slane %v3515_v17, %v17550_v4  ;;  %v3530_v23 = vcombine.high %v3522_v41, %v3522_v41 }
 0x1b2   : > { %v13953_v27 = vrot.slane %v13952_v30, 4  ;;  %v8243_v9 = vrot.slane %v8235_v22, %v17550_v4  ;;  %v8250_v40 = vrot.slane %v15677_v61, %v17550_v4  ;;  %v8272_v29 = vrot.slane %v8257_v62, %v17550_v4 }
 0x1b3   : > { %v13948_v56 = vrot.slane %v13947_v28, 2  ;;  %v17694_v10 = vcombine.low %v17683_v55, %v3610_v46  ;;  %v3531_v12 = vcombine.high %v3529_v39, %v3529_v39  ;;  %v3538_v45 = vrot.slane %v3522_v41, %v17550_v4 }
 0x1b4   : > { %v13954_v11 = vmax.f32 %v13952_v30, %v13953_v27  ;;  %v8258_v43 = vcombine.low %v8243_v9, %v8250_v40  ;;  %v3545_v44 = vrot.slane %v3529_v39, %v17550_v4  ;;  %v3552_v36 = vrot.slane %v3530_v23, %v17550_v4 }
 0x1b5   : > { %v13949_v16 = vmax.f32 %v13947_v28, %v13948_v56  ;;  %v3559_v47 = vrot.slane %v3531_v12, %v17550_v4  ;;  %v3560_v37 = vcombine.high %v3538_v45, %v3538_v45  ;;  %v3044_v17 = vadd.f32 %v16472_v58, %v17545_v57 }
 0x1b6   : > { %v13955_v38 = vrot.slane %v13954_v11, 2  ;;  %v8265_v18 = vrot.slane %v8258_v43, %v17550_v4  ;;  %v3561_v46 = vcombine.high %v3545_v44, %v3545_v44  ;;  %v3562_v22 = vcombine.high %v3552_v36, %v3552_v36 }
 0x1b7   : > { %v13950_v61 = vrot.slane %v13949_v16, 1  ;;  %v3563_v41 = vcombine.high %v3559_v47, %v3559_v47  ;;  %v8158_v62 = vcombine.low %v3538_v45, %v3552_v36  ;;  %v8179_v30 = vrot.slane %v3560_v37, %v17550_v4 }
 0x1b8   : > { %v13956_v39 = vmax.f32 %v13954_v11, %v13955_v38  ;;  %v8273_v27 = vcombine.low %v8265_v18, %v8272_v29  ;;  %v8196_v23 = vcombine.low %v3562_v22, %v3545_v44  ;;  %v8197_v9 = vcombine.low %v3559_v47, %v3561_v46 }
 0x1b9   : > { %v13951_v28 = vmax.f32 %v13949_v16, %v13950_v61  ;;  %v8172_v40 = vrot.slane %v8158_v62, %v17550_v4  ;;  %v8194_v56 = vrot.slane %v8179_v30, %v17550_v4  ;;  %v8218_v58 = vrot.slane %v3563_v41, %v17550_v4 }
 0x1ba   : > { %v13957_v12 = vrot.slane %v13956_v39, 1  ;;  %v13980_v43 = vsel %vm13923_vm1, %v8273_v27, -inf  ;;  %v8204_v34 = vrot.slane %v8196_v23, %v17550_v4  ;;  %v8211_v45 = vrot.slane %v8197_v9, %v17550_v4 }
 0x1bb   : > { %v15129_v11 = vsel %vm15128_vm4, %v13951_v28, %v17671_v49  ;;  %v13981_v29 = vrot.slane %v13980_v43, 4  ;;  %v8180_v44 = vcombine.low %v17628_v24, %v8172_v40  ;;  %v8233_v36 = vrot.slane %v8218_v58, %v17550_v4 }
 0x1bc   : > { %v13958_v16 = vmax.f32 %v13956_v39, %v13957_v12  ;;  %v8219_v47 = vcombine.low %v8204_v34, %v8211_v45  ;;  %v3138_v37 = vmax.f32 %v3044_v17, 0.0  ;;  %v16473_v38 = vadd.f32 %v17580_v63, %v17357_v48 }
 0x1bd   : > { %v13982_v18 = vmax.f32 %v13980_v43, %v13981_v29  ;;  %v8187_v46 = vrot.slane %v8180_v44, %v17550_v4  ;;  %v3612_v22 = vcombine.high %v17683_v55, %v17683_v55  ;;  %v8282_v49 = vrot.slane %v17694_v10, %v17550_v4  ;;  %v17737_v43 = vpop.f32.mrb[20].mxu0 }
 0x1be   : > { %v15131_v61 = vsel %vm15130_vm5, %v13958_v16, %v15129_v11  ;;  %v8226_v24 = vrot.slane %v8219_v47, %v17550_v4  ;;  %v3662_v41 = vcombine.high %v3138_v37, %v3138_v37  ;;  %v3669_v34 = vrot.slane %v3138_v37, %v17550_v4 }
 0x1bf   : > { %v13983_v17 = vrot.slane %v13982_v18, 2  ;;  %v8195_v62 = vcombine.low %v8187_v46, %v8194_v56  ;;  %v17725_v48 = vsel %vm15132_vm6, %v17679_v42, %v15131_v61  ;;  %v3043_v63 = vadd.f32 %v16473_v38, %v17545_v57 }
 0x1c0   : > { %v8234_v30 = vcombine.low %v8226_v24, %v8233_v36  ;;  %v3676_v55 = vrot.slane %v3662_v41, %v17550_v4  ;;  %v3677_v39 = vcombine.high %v3669_v34, %v3669_v34  ;;  %v17730_v27 = vrot.slane %v3669_v34, %v17550_v4 }
 0x1c1   : > { %v13984_v23 = vmax.f32 %v13982_v18, %v13983_v17  ;;  %v13966_v9 = vsel %vm13923_vm1, %v8195_v62, -inf  ;;  %v3137_v28 = vmax.f32 %v3043_v63, 0.0  ;;  %v16474_v40 = vadd.f32 %v17590_v21, %v17365_v53 }
 0x1c2   : > { %v13967_v56 = vrot.slane %v13966_v9, 4  ;;  %v13973_v42 = vsel %vm13923_vm1, %v8234_v30, -inf  ;;  %v3678_v58 = vcombine.high %v3676_v55, %v3676_v55  ;;  %v3692_v12 = vrot.slane %v3676_v55, %v17550_v4 }
 0x1c3   : > { %v13985_v45 = vrot.slane %v13984_v23, 1  ;;  %v13974_v11 = vrot.slane %v13973_v42, 4  ;;  %v3699_v29 = vrot.slane %v3677_v39, %v17550_v4  ;;  %v3707_v44 = vcombine.high %v17730_v27, %v17730_v27 }
 0x1c4   : > { %v13968_v36 = vmax.f32 %v13966_v9, %v13967_v56  ;;  %v3706_v53 = vrot.slane %v3678_v58, %v17550_v4  ;;  %v3613_v21 = vcombine.high %v3137_v28, %v3137_v28  ;;  %v3620_v16 = vrot.slane %v3137_v28, %v17550_v4  ;;  %v17753_v9 = vpop.f32.mrb[21].mxu0 }
 0x1c5   : > { %v17744_v47 = vmax.f32 %v13984_v23, %v13985_v45  ;;  %v13975_v37 = vmax.f32 %v13973_v42, %v13974_v11  ;;  %v3709_v38 = vcombine.high %v3699_v29, %v3699_v29  ;;  %v8353_v18 = vcombine.low %v3699_v29, %v3707_v44 }
 0x1c6   : > { %v13969_v46 = vrot.slane %v13968_v36, 2  ;;  %v8391_v61 = vcombine.low %v3692_v12, %v3706_v53  ;;  %v15679_v24 = vcombine.high %v3692_v12, %v3706_v53  ;;  %v3627_v41 = vrot.slane %v3613_v21, %v17550_v4 }
 0x1c7   : > { %v13976_v34 = vrot.slane %v13975_v37, 2  ;;  %v8367_v17 = vrot.slane %v8353_v18, %v17550_v4  ;;  %v17749_v62 = vrot.slane %v3709_v38, %v17550_v4  ;;  %v3628_v63 = vcombine.high %v3620_v16, %v3620_v16 }
 0x1c8   : > { %v13970_v30 = vmax.f32 %v13968_v36, %v13969_v46  ;;  %v8399_v55 = vrot.slane %v8391_v61, %v17550_v4  ;;  %v8406_v39 = vrot.slane %v15679_v24, %v17550_v4  ;;  %v3629_v23 = vcombine.high %v3627_v41, %v3627_v41 }
 0x1c9   : > { %v13977_v28 = vmax.f32 %v13975_v37, %v13976_v34  ;;  %v8389_v56 = vrot.slane %v17749_v62, %v17550_v4  ;;  %v3636_v42 = vrot.slane %v3620_v16, %v17550_v4  ;;  %v3643_v58 = vrot.slane %v3627_v41, %v17550_v4 }
 0x1ca   : > { %v13971_v12 = vrot.slane %v13970_v30, 1  ;;  %v8414_v45 = vcombine.low %v8399_v55, %v8406_v39  ;;  %v3650_v11 = vrot.slane %v3628_v63, %v17550_v4  ;;  %v3657_v29 = vrot.slane %v3629_v23, %v17550_v4 }
 0x1cb   : > { %v13978_v44 = vrot.slane %v13977_v28, 1  ;;  %v3659_v36 = vcombine.high %v3643_v58, %v3643_v58  ;;  %v8275_v53 = vcombine.low %v3612_v22, %v3636_v42  ;;  %v3046_v21 = vadd.f32 %v16474_v40, %v17545_v57 }
 0x1cc   : > { %v13972_v38 = vmax.f32 %v13970_v30, %v13971_v12  ;;  %v3661_v37 = vcombine.high %v3657_v29, %v3657_v29  ;;  %v8296_v18 = vrot.slane %v3650_v11, %v17550_v4  ;;  %v15678_v46 = vcombine.high %v3636_v42, %v3650_v11 }
 0x1cd   : > { %v13979_v16 = vmax.f32 %v13977_v28, %v13978_v44  ;;  %v8289_v61 = vrot.slane %v8275_v53, %v17550_v4  ;;  %v8314_v24 = vcombine.low %v3643_v58, %v3657_v29  ;;  %v8335_v41 = vrot.slane %v3659_v36, %v17550_v4 }
 0x1ce   : > { %v15135_v22 = vsel %vm15134_vm7, %v13972_v38, %v17725_v48  ;;  %v8311_v40 = vrot.slane %v8296_v18, %v17550_v4  ;;  %v8321_v34 = vrot.slane %v15678_v46, %v17550_v4  ;;  %v8352_v62 = vcombine.low %v3661_v37, %v17730_v27  ;;  %v17808_v37 = vpop.f32.mrb[22].mxu0 }
 0x1cf   : > { %v15137_v63 = vsel %vm15136_vm8, %v13979_v16, %v15135_v22  ;;  %v8297_v30 = vcombine.low %v8282_v49, %v8289_v61  ;;  %v8328_v55 = vrot.slane %v8314_v24, %v17550_v4  ;;  %v8350_v39 = vrot.slane %v8335_v41, %v17550_v4 }
 0x1d0   : > { %15282 = vst.msk [vmem:[%s17767_s24] sm:$0xff] %vm15281_vm9, %v15137_v63  ;;  %v8360_v48 = vrot.slane %v8352_v62, %v17550_v4  ;;  %v3140_v23 = vmax.f32 %v3046_v21, 0.0  ;;  %v16475_v28 = vadd.f32 %v17595_v50, %v17369_v54  ;;  %v17788_v27 = vrot.slane %v8414_v45, %v17550_v4 }
 0x1d1   : > { %v8304_v42 = vrot.slane %v8297_v30, %v17550_v4  ;;  %v8336_v58 = vcombine.low %v8321_v34, %v8328_v55  ;;  %v16476_v10 = vadd.f32 %v17604_v0, %v17377_v59  ;;  %v16477_v49 = vadd.f32 %v17609_v35, %v17381_v60 }
 0x1d2   : > { %v8375_v12 = vcombine.low %v8360_v48, %v8367_v17  ;;  %v3760_v11 = vcombine.high %v3140_v23, %v3140_v23  ;;  %v3767_v29 = vrot.slane %v3140_v23, %v17550_v4  ;;  %v3045_v44 = vadd.f32 %v16475_v28, %v17545_v57 }
 0x1d3   : > { %v8312_v36 = vcombine.low %v8304_v42, %v8311_v40  ;;  %v8343_v54 = vrot.slane %v8336_v58, %v17550_v4  ;;  %v3048_v50 = vadd.f32 %v16476_v10, %v17545_v57  ;;  %v17800_v45 = vadd.f32 %v16477_v49, %v17545_v57 }
 0x1d4   : > { %v8382_v53 = vrot.slane %v8375_v12, %v17550_v4  ;;  %v3774_v59 = vrot.slane %v3760_v11, %v17550_v4  ;;  %v3775_v0 = vcombine.high %v3767_v29, %v3767_v29  ;;  %v3783_v60 = vrot.slane %v3767_v29, %v17550_v4 }
 0x1d5   : > { %v8351_v35 = vcombine.low %v8343_v54, %v8350_v39  ;;  %v13987_v17 = vsel %vm13923_vm1, %v8312_v36, -inf  ;;  %v3139_v21 = vmax.f32 %v3045_v44, 0.0  ;;  %v17806_v38 = vmax.f32 %v3048_v50, 0.0 }
 0x1d6   : > { %v8390_v18 = vcombine.low %v8382_v53, %v8389_v56  ;;  %v13988_v46 = vrot.slane %v13987_v17, 4  ;;  %v3776_v16 = vcombine.high %v3774_v59, %v3774_v59  ;;  %v3790_v61 = vrot.slane %v3774_v59, %v17550_v4 }
 0x1d7   : > { %v13994_v24 = vsel %vm13923_vm1, %v8351_v35, -inf  ;;  %v3797_v41 = vrot.slane %v3775_v0, %v17550_v4  ;;  %v3805_v22 = vcombine.high %v3783_v60, %v3783_v60  ;;  %v3711_v40 = vcombine.high %v3139_v21, %v3139_v21 }
 0x1d8   : > { %v13989_v34 = vmax.f32 %v13987_v17, %v13988_v46  ;;  %v13995_v62 = vrot.slane %v13994_v24, 4  ;;  %v14001_v63 = vsel %vm13923_vm1, %v8390_v18, -inf  ;;  %v3804_v30 = vrot.slane %v3776_v16, %v17550_v4 }
 0x1d9   : > { %v14002_v55 = vrot.slane %v14001_v63, 4  ;;  %v3806_v39 = vcombine.high %v3790_v61, %v3790_v61  ;;  %v3807_v48 = vcombine.high %v3797_v41, %v3797_v41  ;;  %v8470_v56 = vcombine.low %v3783_v60, %v3797_v41  ;;  %v17828_v41 = vpop.f32.mrb[23].mxu0 }
 0x1da   : > { %v13990_v23 = vrot.slane %v13989_v34, 2  ;;  %v13996_v28 = vmax.f32 %v13994_v24, %v13995_v62  ;;  %v3808_v42 = vcombine.high %v3804_v30, %v3804_v30  ;;  %v17816_v58 = vrot.slane %v3805_v22, %v17550_v4 }
 0x1db   : > { %v14003_v10 = vmax.f32 %v14001_v63, %v14002_v55  ;;  %v8484_v49 = vrot.slane %v8470_v56, %v17550_v4  ;;  %v8508_v12 = vcombine.low %v3807_v48, %v3790_v61  ;;  %v8509_v11 = vcombine.low %v3804_v30, %v3806_v39 }
 0x1dc   : > { %v13991_v29 = vmax.f32 %v13989_v34, %v13990_v23  ;;  %v13997_v44 = vrot.slane %v13996_v28, 2  ;;  %v8506_v36 = vrot.slane %v17816_v58, %v17550_v4  ;;  %v8530_v54 = vrot.slane %v3808_v42, %v17550_v4 }
 0x1dd   : > { %v14004_v50 = vrot.slane %v14003_v10, 2  ;;  %v8516_v53 = vrot.slane %v8508_v12, %v17550_v4  ;;  %v8523_v59 = vrot.slane %v8509_v11, %v17550_v4  ;;  %v3718_v0 = vrot.slane %v3139_v21, %v17550_v4 }
 0x1de   : > { %v13992_v60 = vrot.slane %v13991_v29, 1  ;;  %v13998_v35 = vmax.f32 %v13996_v28, %v13997_v44  ;;  %v8545_v17 = vrot.slane %v8530_v54, %v17550_v4  ;;  %v3725_v18 = vrot.slane %v3711_v40, %v17550_v4 }
 0x1df   : > { %v14005_v46 = vmax.f32 %v14003_v10, %v14004_v50  ;;  %v8531_v16 = vcombine.low %v8516_v53, %v8523_v59  ;;  %v3726_v61 = vcombine.high %v3718_v0, %v3718_v0  ;;  %v3734_v24 = vrot.slane %v3718_v0, %v17550_v4 }
 0x1e0   : > { %v13993_v22 = vmax.f32 %v13991_v29, %v13992_v60  ;;  %v13999_v34 = vrot.slane %v13998_v35, 1  ;;  %v3727_v62 = vcombine.high %v3725_v18, %v3725_v18  ;;  %v3741_v63 = vrot.slane %v3725_v18, %v17550_v4 }
 0x1e1   : > { %v14006_v30 = vrot.slane %v14005_v46, 1  ;;  %v8538_v21 = vrot.slane %v8531_v16, %v17550_v4  ;;  %v3748_v55 = vrot.slane %v3726_v61, %v17550_v4  ;;  %v3756_v39 = vcombine.high %v3734_v24, %v3734_v24 }
 0x1e2   : > { %v14000_v48 = vmax.f32 %v13998_v35, %v13999_v34  ;;  %v15138_v40 = vsel %vm15124_vm2, %v13993_v22, %v17744_v47  ;;  %v3755_v56 = vrot.slane %v3727_v62, %v17550_v4  ;;  %v8413_v23 = vrot.slane %v3734_v24, %v17550_v4 }
 0x1e3   : > { %v14007_v28 = vmax.f32 %v14005_v46, %v14006_v30  ;;  %v8546_v42 = vcombine.low %v8538_v21, %v8545_v17  ;;  %v3758_v10 = vcombine.high %v3748_v55, %v3748_v55  ;;  %v8430_v12 = vcombine.low %v3748_v55, %v3756_v39 }
 0x1e4   : > { %v15139_v11 = vsel %vm15126_vm3, %v14000_v48, %v15138_v40  ;;  %v8428_v29 = vrot.slane %v8413_v23, %v17550_v4  ;;  %v8452_v44 = vrot.slane %v3755_v56, %v17550_v4  ;;  %v15680_v54 = vcombine.high %v3741_v63, %v3755_v56 }
 0x1e5   : > { %v14029_v50 = vsel %vm13923_vm1, %v8546_v42, -inf  ;;  %v8431_v53 = vcombine.low %v3758_v10, %v3741_v63  ;;  %v8438_v47 = vrot.slane %v8430_v12, %v17550_v4  ;;  %v17843_v59 = vsel %vm15128_vm4, %v14007_v28, %v15139_v11 }
 0x1e6   : > { %v14030_v0 = vrot.slane %v14029_v50, 4  ;;  %v8429_v60 = vcombine.low %v17788_v27, %v8428_v29  ;;  %v8467_v35 = vrot.slane %v8452_v44, %v17550_v4  ;;  %v8477_v17 = vrot.slane %v15680_v54, %v17550_v4 }
 0x1e7   : > { %v8445_v18 = vrot.slane %v8431_v53, %v17550_v4  ;;  %v3858_v46 = vcombine.high %v17806_v38, %v17806_v38  ;;  %v3865_v16 = vrot.slane %v17806_v38, %v17550_v4  ;;  %v3141_v61 = vmax.f32 %v17800_v45, 0.0  ;;  %v17875_v53 = vpop.f32.mrb[24].mxu0 }
 0x1e8   : > { %v14031_v24 = vmax.f32 %v14029_v50, %v14030_v0  ;;  %v8492_v22 = vcombine.low %v8477_v17, %v8484_v49  ;;  %v14008_v34 = vsel %vm13923_vm1, %v8429_v60, -inf  ;;  %v16478_v27 = vadd.f32 %v17619_v6, %v17389_v1 }
 0x1e9   : > { %v8453_v62 = vcombine.low %v8438_v47, %v8445_v18  ;;  %v14009_v63 = vrot.slane %v14008_v34, 4  ;;  %v3872_v30 = vrot.slane %v3858_v46, %v17550_v4  ;;  %v3873_v21 = vcombine.high %v3865_v16, %v3865_v16 }
 0x1ea   : > { %v14032_v55 = vrot.slane %v14031_v24, 2  ;;  %v8499_v39 = vrot.slane %v8492_v22, %v17550_v4  ;;  %v17860_v48 = vrot.slane %v3865_v16, %v17550_v4  ;;  %v3809_v38 = vcombine.high %v3141_v61, %v3141_v61 }
 0x1eb   : > { %v8460_v45 = vrot.slane %v8453_v62, %v17550_v4  ;;  %v14010_v49 = vmax.f32 %v14008_v34, %v14009_v63  ;;  %v3874_v40 = vcombine.high %v3872_v30, %v3872_v30  ;;  %v3888_v56 = vrot.slane %v3872_v30, %v17550_v4  ;;  %v17887_v30 = vpop.f32.mrb[25].mxu0 }
 0x1ec   : > { %v14033_v23 = vmax.f32 %v14031_v24, %v14032_v55  ;;  %v8507_v1 = vcombine.low %v8499_v39, %v8506_v36  ;;  %v3895_v6 = vrot.slane %v3873_v21, %v17550_v4  ;;  %v3816_v28 = vrot.slane %v3141_v61, %v17550_v4 }
 0x1ed   : > { %v8468_v42 = vcombine.low %v8460_v45, %v8467_v35  ;;  %v14011_v10 = vrot.slane %v14010_v49, 2  ;;  %v17870_v12 = vrot.slane %v3874_v40, %v17550_v4  ;;  %v3904_v11 = vcombine.high %v3888_v56, %v3888_v56 }
 0x1ee   : > { %v14034_v29 = vrot.slane %v14033_v23, 1  ;;  %v14022_v44 = vsel %vm13923_vm1, %v8507_v1, -inf  ;;  %v8608_v54 = vrot.slane %v3895_v6, %v17550_v4  ;;  %v15682_v50 = vcombine.high %v17860_v48, %v3895_v6 }
 0x1ef   : > { %v14012_v58 = vmax.f32 %v14010_v49, %v14011_v10  ;;  %v14015_v36 = vsel %vm13923_vm1, %v8468_v42, -inf  ;;  %v14023_v47 = vrot.slane %v14022_v44, 4  ;;  %v8626_v0 = vcombine.low %v3888_v56, %v17870_v12 }
 0x1f0   : > { %v14035_v60 = vmax.f32 %v14033_v23, %v14034_v29  ;;  %v14016_v35 = vrot.slane %v14015_v36, 4  ;;  %v17880_v17 = vrot.slane %v8608_v54, %v17550_v4  ;;  %v8633_v18 = vrot.slane %v15682_v50, %v17550_v4 }
 0x1f1   : > { %v14013_v46 = vrot.slane %v14012_v58, 1  ;;  %v14024_v16 = vmax.f32 %v14022_v44, %v14023_v47  ;;  %v8640_v61 = vrot.slane %v8626_v0, %v17550_v4  ;;  %v8647_v24 = vrot.slane %v3904_v11, %v17550_v4 }
 0x1f2   : > { %v14017_v22 = vmax.f32 %v14015_v36, %v14016_v35  ;;  %v3823_v34 = vrot.slane %v3809_v38, %v17550_v4  ;;  %v3824_v62 = vcombine.high %v3816_v28, %v3816_v28  ;;  %v3832_v63 = vrot.slane %v3816_v28, %v17550_v4 }
 0x1f3   : > { %v14014_v21 = vmax.f32 %v14012_v58, %v14013_v46  ;;  %v14025_v55 = vrot.slane %v14024_v16, 2  ;;  %v8648_v39 = vcombine.low %v8633_v18, %v8640_v61  ;;  %v8662_v45 = vrot.slane %v8647_v24, %v17550_v4 }
 0x1f4   : > { %v14018_v49 = vrot.slane %v14017_v22, 2  ;;  %v3825_v40 = vcombine.high %v3823_v34, %v3823_v34  ;;  %v3839_v56 = vrot.slane %v3823_v34, %v17550_v4  ;;  %v3846_v23 = vrot.slane %v3824_v62, %v17550_v4 }
 0x1f5   : > { %v14026_v1 = vmax.f32 %v14024_v16, %v14025_v55  ;;  %v15141_v38 = vsel %vm15130_vm5, %v14014_v21, %v17843_v59  ;;  %v8655_v6 = vrot.slane %v8648_v39, %v17550_v4  ;;  %v3050_v28 = vadd.f32 %v16478_v27, %v17545_v57 }
 0x1f6   : > { %v14019_v42 = vmax.f32 %v14017_v22, %v14018_v49  ;;  %v3853_v10 = vrot.slane %v3825_v40, %v17550_v4  ;;  %v3855_v11 = vcombine.high %v3839_v56, %v3839_v56  ;;  %v8547_v29 = vcombine.low %v3832_v63, %v3846_v23 }
 0x1f7   : > { %v14027_v44 = vrot.slane %v14026_v1, 1  ;;  %v8663_v54 = vcombine.low %v8655_v6, %v8662_v45  ;;  %v15681_v50 = vcombine.high %v3832_v63, %v3846_v23  ;;  %v8569_v58 = vrot.slane %v3839_v56, %v17550_v4 }
 0x1f8   : > { %v14020_v36 = vrot.slane %v14019_v42, 1  ;;  %v3857_v47 = vcombine.high %v3853_v10, %v3853_v10  ;;  %v8555_v0 = vrot.slane %v8547_v29, %v17550_v4  ;;  %v8586_v35 = vcombine.low %v3853_v10, %v3855_v11 }
 0x1f9   : > { %v14028_v59 = vmax.f32 %v14026_v1, %v14027_v44  ;;  %v14050_v18 = vsel %vm13923_vm1, %v8663_v54, -inf  ;;  %v8562_v57 = vrot.slane %v15681_v50, %v17550_v4  ;;  %v8584_v27 = vrot.slane %v8569_v58, %v17550_v4 }
 0x1fa   : > { %v14021_v46 = vmax.f32 %v14019_v42, %v14020_v36  ;;  %v14051_v16 = vrot.slane %v14050_v18, 4  ;;  %v8587_v61 = vcombine.low %v3857_v47, %v17860_v48  ;;  %v8594_v24 = vrot.slane %v8586_v35, %v17550_v4 }
 0x1fb   : > { %v8570_v22 = vcombine.low %v8555_v0, %v8562_v57  ;;  %v3144_v34 = vmax.f32 %v3050_v28, 0.0  ;;  %v16479_v62 = vadd.f32 %v17624_v3, %v17393_v2  ;;  %v3906_v63 = vcombine.high %v17870_v12, %v17870_v12  ;;  %v17915_v2 = vpop.f32.mrb[26].mxu0 }
 0x1fc   : > { %v15142_v21 = vsel %vm15132_vm6, %v14021_v46, %v15141_v38  ;;  %v14052_v55 = vmax.f32 %v14050_v18, %v14051_v16  ;;  %v8601_v39 = vrot.slane %v8587_v61, %v17550_v4  ;;  %v16480_v45 = vadd.f32 %v17639_v32, %v17401_v7  ;;  %v17918_v38 = vld [vmem:[#allocation4] ss:$0 sm:$0xff] }
 0x1fd   : > { %v15143_v48 = vsel %vm15134_vm7, %v14028_v59, %v15142_v21  ;;  %v8577_v49 = vrot.slane %v8570_v22, %v17550_v4  ;;  %v3956_v40 = vcombine.high %v3144_v34, %v3144_v34  ;;  %v3963_v56 = vrot.slane %v3144_v34, %v17550_v4  ;;  %v17938_v21 = vpop.f32.mrb[27].mxu0 }
 0x1fe   : > { %v15144_v3 = vsel %vm15136_vm8, %v14035_v60, %v15143_v48  ;;  %v14053_v23 = vrot.slane %v14052_v55, 2  ;;  %v8609_v1 = vcombine.low %v8594_v24, %v8601_v39  ;;  %v3049_v6 = vadd.f32 %v17918_v38, %v16479_v62 }
 0x1ff   : > { %15283 = vst.msk [vmem:[%s17767_s24 + $0x8] sm:$0xff] %vm15281_vm9, %v15144_v3  ;;  %v8585_v7 = vcombine.low %v8577_v49, %v8584_v27  ;;  %v3970_v32 = vrot.slane %v3956_v40, %v17550_v4  ;;  %v3971_v28 = vcombine.high %v3963_v56, %v3963_v56  ;;  %v3979_v42 = vrot.slane %v3963_v56, %v17550_v4 }
 0x200   : > { %v14054_v10 = vmax.f32 %v14052_v55, %v14053_v23  ;;  %v8616_v11 = vrot.slane %v8609_v1, %v17550_v4  ;;  %v3143_v29 = vmax.f32 %v3049_v6, 0.0  ;;  %v3052_v60 = vadd.f32 %v17918_v38, %v16480_v45 }
 0x201   : > { %v14036_v44 = vsel %vm13923_vm1, %v8585_v7, -inf  ;;  %v3972_v54 = vcombine.high %v3970_v32, %v3970_v32  ;;  %v3986_v50 = vrot.slane %v3970_v32, %v17550_v4  ;;  %v3993_v58 = vrot.slane %v3971_v28, %v17550_v4 }
 0x202   : > { %v14055_v36 = vrot.slane %v14054_v10, 1  ;;  %v8624_v47 = vcombine.low %v8616_v11, %v17880_v17  ;;  %v14037_v0 = vrot.slane %v14036_v44, 4  ;;  %v4001_v35 = vcombine.high %v3979_v42, %v3979_v42 }
 0x203   : > { %v4000_v59 = vrot.slane %v3972_v54, %v17550_v4  ;;  %v4003_v18 = vcombine.high %v3993_v58, %v3993_v58  ;;  %v8725_v57 = vrot.slane %v3979_v42, %v17550_v4  ;;  %v3907_v27 = vcombine.high %v3143_v29, %v3143_v29 }
 0x204   : > { %v14056_v46 = vmax.f32 %v14054_v10, %v14055_v36  ;;  %v14038_v16 = vmax.f32 %v14036_v44, %v14037_v0  ;;  %v14043_v61 = vsel %vm13923_vm1, %v8624_v47, -inf  ;;  %v8742_v24 = vcombine.low %v3993_v58, %v4001_v35 }
 0x205   : > { %v14044_v22 = vrot.slane %v14043_v61, 4  ;;  %v17935_v34 = vrot.slane %v8725_v57, %v17550_v4  ;;  %v8743_v62 = vcombine.low %v4003_v18, %v3986_v50  ;;  %v8764_v17 = vrot.slane %v4000_v59, %v17550_v4 }
 0x206   : > { %v14039_v55 = vrot.slane %v14038_v16, 2  ;;  %v8750_v39 = vrot.slane %v8742_v24, %v17550_v4  ;;  %v15684_v45 = vcombine.high %v3986_v50, %v4000_v59  ;;  %v3914_v48 = vrot.slane %v3143_v29, %v17550_v4 }
 0x207   : > { %v14045_v49 = vmax.f32 %v14043_v61, %v14044_v22  ;;  %v8757_v40 = vrot.slane %v8743_v62, %v17550_v4  ;;  %v8779_v56 = vrot.slane %v8764_v17, %v17550_v4  ;;  %v3921_v3 = vrot.slane %v3907_v27, %v17550_v4 }
 0x208   : > { %v14040_v23 = vmax.f32 %v14038_v16, %v14039_v55  ;;  %v17946_v1 = vrot.slane %v15684_v45, %v17550_v4  ;;  %v3922_v6 = vcombine.high %v3914_v48, %v3914_v48  ;;  %v3930_v7 = vrot.slane %v3914_v48, %v17550_v4 }
 0x209   : > { %v14046_v32 = vrot.slane %v14045_v49, 2  ;;  %v8765_v28 = vcombine.low %v8750_v39, %v8757_v40  ;;  %v3923_v42 = vcombine.high %v3921_v3, %v3921_v3  ;;  %v3937_v10 = vrot.slane %v3921_v3, %v17550_v4 }
 0x20a   : > { %v14041_v11 = vrot.slane %v14040_v23, 1  ;;  %v3944_v29 = vrot.slane %v3922_v6, %v17550_v4  ;;  %v3952_v44 = vcombine.high %v3930_v7, %v3930_v7  ;;  %v8664_v54 = vcombine.low %v3906_v63, %v3930_v7 }
 0x20b   : > { %v14047_v50 = vmax.f32 %v14045_v49, %v14046_v32  ;;  %v8772_v58 = vrot.slane %v8765_v28, %v17550_v4  ;;  %v3951_v36 = vrot.slane %v3923_v42, %v17550_v4  ;;  %v3146_v47 = vmax.f32 %v3052_v60, 0.0 }
 0x20c   : > { %v14042_v0 = vmax.f32 %v14040_v23, %v14041_v11  ;;  %v3954_v35 = vcombine.high %v3944_v29, %v3944_v29  ;;  %v8665_v59 = vcombine.low %v3944_v29, %v3952_v44  ;;  %v8672_v18 = vrot.slane %v8664_v54, %v17550_v4 }
 0x20d   : > { %v14048_v57 = vrot.slane %v14047_v50, 1  ;;  %v8780_v27 = vcombine.low %v8772_v58, %v8779_v56  ;;  %v8703_v16 = vcombine.low %v3937_v10, %v3951_v36  ;;  %v15683_v61 = vcombine.high %v3937_v10, %v3951_v36 }
 0x20e   : > { %v8679_v24 = vrot.slane %v8665_v59, %v17550_v4  ;;  %v8686_v12 = vrot.slane %v3954_v35, %v17550_v4  ;;  %v4054_v63 = vcombine.high %v3146_v47, %v3146_v47  ;;  %v4061_v22 = vrot.slane %v3146_v47, %v17550_v4  ;;  %v17982_v35 = vpop.f32.mrb[28].mxu0 }
 0x20f   : > { %v14049_v62 = vmax.f32 %v14047_v50, %v14048_v57  ;;  %v14071_v17 = vsel %vm13923_vm1, %v8780_v27, -inf  ;;  %v8711_v60 = vrot.slane %v8703_v16, %v17550_v4  ;;  %v8718_v55 = vrot.slane %v15683_v61, %v17550_v4 }
 0x210   : > { %v14072_v39 = vrot.slane %v14071_v17, 4  ;;  %v8687_v45 = vcombine.low %v8672_v18, %v8679_v24  ;;  %v8701_v48 = vrot.slane %v8686_v12, %v17550_v4  ;;  %v4068_v49 = vrot.slane %v4054_v63, %v17550_v4 }
 0x211   : > { %v15145_v40 = vsel %vm15124_vm2, %v14049_v62, %v14042_v0  ;;  %v8726_v56 = vcombine.low %v8711_v60, %v8718_v55  ;;  %v4069_v3 = vcombine.high %v4061_v22, %v4061_v22  ;;  %v4077_v23 = vrot.slane %v4061_v22, %v17550_v4 }
 0x212   : > { %v17968_v6 = vsel %vm15126_vm3, %v14056_v46, %v15145_v40  ;;  %v14073_v7 = vmax.f32 %v14071_v17, %v14072_v39  ;;  %v8694_v32 = vrot.slane %v8687_v45, %v17550_v4  ;;  %v4070_v28 = vcombine.high %v4068_v49, %v4068_v49  ;;  %v17995_v17 = vpop.f32.mrb[29].mxu0 }
 0x213   : > { %v8733_v42 = vrot.slane %v8726_v56, %v17550_v4  ;;  %v4084_v10 = vrot.slane %v4068_v49, %v17550_v4  ;;  %v4091_v11 = vrot.slane %v4069_v3, %v17550_v4  ;;  %v16481_v29 = vadd.f32 %v17642_v15, %v17405_v8 }
 0x214   : > { %v14074_v44 = vrot.slane %v14073_v7, 2  ;;  %v8702_v54 = vcombine.low %v8694_v32, %v8701_v48  ;;  %v17977_v50 = vrot.slane %v4070_v28, %v17550_v4  ;;  %v16482_v46 = vadd.f32 %v17649_v5, %v17413_v13 }
 0x215   : > { %v8741_v58 = vcombine.low %v8733_v42, %v17935_v34  ;;  %v4100_v36 = vcombine.high %v4084_v10, %v4084_v10  ;;  %v8859_v47 = vcombine.low %v4077_v23, %v4091_v11  ;;  %v15685_v0 = vcombine.high %v4077_v23, %v4091_v11 }
 0x216   : > { %v14075_v59 = vmax.f32 %v14073_v7, %v14074_v44  ;;  %v14057_v18 = vsel %vm13923_vm1, %v8702_v54, -inf  ;;  %v8881_v8 = vrot.slane %v4084_v10, %v17550_v4  ;;  %v3051_v15 = vadd.f32 %v17918_v38, %v16481_v29 }
 0x217   : > { %v14058_v57 = vrot.slane %v14057_v18, 4  ;;  %v14064_v27 = vsel %vm13923_vm1, %v8741_v58, -inf  ;;  %v8867_v16 = vrot.slane %v8859_v47, %v17550_v4  ;;  %v8874_v13 = vrot.slane %v15685_v0, %v17550_v4 }
 0x218   : > { %v14076_v5 = vrot.slane %v14075_v59, 1  ;;  %v14065_v34 = vrot.slane %v14064_v27, 4  ;;  %v8896_v61 = vrot.slane %v8881_v8, %v17550_v4  ;;  %v17992_v24 = vcombine.low %v17977_v50, %v4100_v36 }
 0x219   : > { %v14059_v12 = vmax.f32 %v14057_v18, %v14058_v57  ;;  %v8882_v63 = vcombine.low %v8867_v16, %v8874_v13  ;;  %v3145_v22 = vmax.f32 %v3051_v15, 0.0  ;;  %v3054_v62 = vadd.f32 %v17918_v38, %v16482_v46 }
 0x21a   : > { %v14077_v60 = vmax.f32 %v14075_v59, %v14076_v5  ;;  %v14066_v55 = vmax.f32 %v14064_v27, %v14065_v34  ;;  %v16483_v39 = vadd.f32 %v17652_v52, %v17417_v14  ;;  %v4102_v45 = vcombine.high %v17977_v50, %v17977_v50 }
 0x21b   : > { %v14060_v48 = vrot.slane %v14059_v12, 2  ;;  %v8889_v49 = vrot.slane %v8882_v63, %v17550_v4  ;;  %v4005_v40 = vcombine.high %v3145_v22, %v3145_v22  ;;  %v4012_v56 = vrot.slane %v3145_v22, %v17550_v4 }
 0x21c   : > { %v14067_v3 = vrot.slane %v14066_v55, 2  ;;  %v3148_v23 = vmax.f32 %v3054_v62, 0.0  ;;  %v3053_v7 = vadd.f32 %v17918_v38, %v16483_v39  ;;  %v8906_v32 = vrot.slane %v17992_v24, %v17550_v4 }
 0x21d   : > { %v14061_v28 = vmax.f32 %v14059_v12, %v14060_v48  ;;  %v8897_v42 = vcombine.low %v8889_v49, %v8896_v61  ;;  %v4019_v14 = vrot.slane %v4005_v40, %v17550_v4  ;;  %v4020_v52 = vcombine.high %v4012_v56, %v4012_v56 }
 0x21e   : > { %v14068_v10 = vmax.f32 %v14066_v55, %v14067_v3  ;;  %v4028_v11 = vrot.slane %v4012_v56, %v17550_v4  ;;  %v4152_v29 = vcombine.high %v3148_v23, %v3148_v23  ;;  %v4159_v44 = vrot.slane %v3148_v23, %v17550_v4 }
 0x21f   : > { %v14062_v54 = vrot.slane %v14061_v28, 1  ;;  %v14092_v46 = vsel %vm13923_vm1, %v8897_v42, -inf  ;;  %v4021_v58 = vcombine.high %v4019_v14, %v4019_v14  ;;  %v4035_v36 = vrot.slane %v4019_v14, %v17550_v4 }
 0x220   : > { %v14069_v47 = vrot.slane %v14068_v10, 1  ;;  %v14093_v0 = vrot.slane %v14092_v46, 4  ;;  %v4042_v59 = vrot.slane %v4020_v52, %v17550_v4  ;;  %v4050_v18 = vcombine.high %v4028_v11, %v4028_v11 }
 0x221   : > { %v14063_v8 = vmax.f32 %v14061_v28, %v14062_v54  ;;  %v4049_v15 = vrot.slane %v4021_v58, %v17550_v4  ;;  %v4051_v57 = vcombine.high %v4035_v36, %v4035_v36  ;;  %v4166_v27 = vrot.slane %v4152_v29, %v17550_v4  ;;  %v18032_v58 = vpop.f32.mrb[30].mxu0 }
 0x222   : > { %v14070_v16 = vmax.f32 %v14068_v10, %v14069_v47  ;;  %v14094_v13 = vmax.f32 %v14092_v46, %v14093_v0  ;;  %v4052_v5 = vcombine.high %v4042_v59, %v4042_v59  ;;  %v8782_v34 = vcombine.low %v4028_v11, %v4042_v59 }
 0x223   : > { %v15147_v61 = vsel %vm15128_vm4, %v14063_v8, %v17968_v6  ;;  %v4053_v12 = vcombine.high %v4049_v15, %v4049_v15  ;;  %v8803_v63 = vrot.slane %v4050_v18, %v17550_v4  ;;  %v8821_v22 = vcombine.low %v4049_v15, %v4051_v57 }
 0x224   : > { %v15148_v62 = vsel %vm15130_vm5, %v14070_v16, %v15147_v61  ;;  %v14095_v55 = vrot.slane %v14094_v13, 2  ;;  %v8796_v39 = vrot.slane %v8782_v34, %v17550_v4  ;;  %v8820_v48 = vcombine.low %v4052_v5, %v4035_v36 }
 0x225   : > { %v8818_v49 = vrot.slane %v8803_v63, %v17550_v4  ;;  %v8835_v40 = vrot.slane %v8821_v22, %v17550_v4  ;;  %v8842_v56 = vrot.slane %v4053_v12, %v17550_v4  ;;  %v18023_v3 = vsel %vm15132_vm6, %v14077_v60, %v15148_v62 }
 0x226   : > { %v14096_v6 = vmax.f32 %v14094_v13, %v14095_v55  ;;  %v8804_v23 = vcombine.low %v17946_v1, %v8796_v39  ;;  %v8828_v28 = vrot.slane %v8820_v48, %v17550_v4  ;;  %v4167_v42 = vcombine.high %v4159_v44, %v4159_v44 }
 0x227   : > { %v8857_v14 = vrot.slane %v8842_v56, %v17550_v4  ;;  %v4168_v52 = vcombine.high %v4166_v27, %v4166_v27  ;;  %v4175_v10 = vrot.slane %v4159_v44, %v17550_v4  ;;  %v4182_v11 = vrot.slane %v4166_v27, %v17550_v4 }
 0x228   : > { %v14097_v29 = vrot.slane %v14096_v6, 1  ;;  %v8811_v54 = vrot.slane %v8804_v23, %v17550_v4  ;;  %v8843_v46 = vcombine.low %v8828_v28, %v8835_v40  ;;  %v4189_v60 = vrot.slane %v4167_v42, %v17550_v4 }
 0x229   : > { %v4196_v1 = vrot.slane %v4168_v52, %v17550_v4  ;;  %v4197_v36 = vcombine.high %v4175_v10, %v4175_v10  ;;  %v3147_v47 = vmax.f32 %v3053_v7, 0.0  ;;  %v16484_v0 = vadd.f32 %v17662_v31, %v17425_v19 }
 0x22a   : > { %v18037_v59 = vmax.f32 %v14096_v6, %v14097_v29  ;;  %v8819_v44 = vcombine.low %v8811_v54, %v8818_v49  ;;  %v8850_v18 = vrot.slane %v8843_v46, %v17550_v4  ;;  %v4199_v8 = vcombine.high %v4189_v60, %v4189_v60  ;;  %v18072_v29 = vpop.f32.mrb[31].mxu0 }
 0x22b   : > { %v18040_v15 = vcombine.low %v4189_v60, %v4197_v36  ;;  %v9015_v57 = vcombine.low %v4182_v11, %v4196_v1  ;;  %v15687_v27 = vcombine.high %v4182_v11, %v4196_v1  ;;  %v4103_v16 = vcombine.high %v3147_v47, %v3147_v47 }
 0x22c   : > { %v8858_v13 = vcombine.low %v8850_v18, %v8857_v14  ;;  %v14078_v5 = vsel %vm13923_vm1, %v8819_v44, -inf  ;;  %v18044_v34 = vrot.slane %v4199_v8, %v17550_v4  ;;  %v4110_v7 = vrot.slane %v3147_v47, %v17550_v4 }
 0x22d   : > { %v14079_v19 = vrot.slane %v14078_v5, 4  ;;  %v8991_v31 = vrot.slane %v18040_v15, %v17550_v4  ;;  %v18050_v61 = vrot.slane %v9015_v57, %v17550_v4  ;;  %v18053_v12 = vrot.slane %v15687_v27, %v17550_v4 }
 0x22e   : > { %v14085_v63 = vsel %vm13923_vm1, %v8858_v13, -inf  ;;  %v9013_v22 = vrot.slane %v18044_v34, %v17550_v4  ;;  %v4117_v62 = vrot.slane %v4103_v16, %v17550_v4  ;;  %v4118_v55 = vcombine.high %v4110_v7, %v4110_v7 }
 0x22f   : > { %v14080_v39 = vmax.f32 %v14078_v5, %v14079_v19  ;;  %v14086_v48 = vrot.slane %v14085_v63, 4  ;;  %v9038_v49 = vcombine.low %v18050_v61, %v18053_v12  ;;  %v4126_v40 = vrot.slane %v4110_v7, %v17550_v4 }
 0x230   : > { %v4119_v56 = vcombine.high %v4117_v62, %v4117_v62  ;;  %v4133_v6 = vrot.slane %v4117_v62, %v17550_v4  ;;  %v4140_v23 = vrot.slane %v4118_v55, %v17550_v4  ;;  %v3056_v28 = vadd.f32 %v17918_v38, %v16484_v0 }
 0x231   : > { %v14081_v42 = vrot.slane %v14080_v39, 2  ;;  %v14087_v14 = vmax.f32 %v14085_v63, %v14086_v48  ;;  %v8899_v52 = vcombine.low %v4102_v45, %v4126_v40  ;;  %v18070_v11 = vadd.f32 %v17691_v51, %v17429_v20 }
 0x232   : > { %v4147_v54 = vrot.slane %v4119_v56, %v17550_v4  ;;  %v4149_v46 = vcombine.high %v4133_v6, %v4133_v6  ;;  %v8920_v60 = vrot.slane %v4140_v23, %v17550_v4  ;;  %v15686_v1 = vcombine.high %v4126_v40, %v4140_v23 }
 0x233   : > { %v14082_v36 = vmax.f32 %v14080_v39, %v14081_v42  ;;  %v14088_v47 = vrot.slane %v14087_v14, 2  ;;  %v8913_v0 = vrot.slane %v8899_v52, %v17550_v4  ;;  %v3150_v44 = vmax.f32 %v3056_v28, 0.0 }
 0x234   : > { %v4151_v18 = vcombine.high %v4147_v54, %v4147_v54  ;;  %v8935_v50 = vrot.slane %v8920_v60, %v17550_v4  ;;  %v8938_v45 = vcombine.low %v4133_v6, %v4147_v54  ;;  %v8945_v20 = vrot.slane %v15686_v1, %v17550_v4 }
 0x235   : > { %v14083_v51 = vrot.slane %v14082_v36, 1  ;;  %v14089_v8 = vmax.f32 %v14087_v14, %v14088_v47  ;;  %v8921_v15 = vcombine.low %v8906_v32, %v8913_v0  ;;  %v8959_v57 = vrot.slane %v4149_v46, %v17550_v4 }
 0x236   : > { %v8952_v27 = vrot.slane %v8938_v45, %v17550_v4  ;;  %v8976_v16 = vcombine.low %v4151_v18, %v4175_v10  ;;  %v4250_v13 = vcombine.high %v3150_v44, %v3150_v44  ;;  %v4257_v5 = vrot.slane %v3150_v44, %v17550_v4 }
 0x237   : > { %v14084_v7 = vmax.f32 %v14082_v36, %v14083_v51  ;;  %v14090_v19 = vrot.slane %v14089_v8, 1  ;;  %v8928_v63 = vrot.slane %v8921_v15, %v17550_v4  ;;  %v8974_v62 = vrot.slane %v8959_v57, %v17550_v4  ;;  %v18108_v51 = vpop.f32.mrb[32].mxu0 }
 0x238   : > { %v8960_v55 = vcombine.low %v8945_v20, %v8952_v27  ;;  %v8984_v39 = vrot.slane %v8976_v16, %v17550_v4  ;;  %v4264_v24 = vrot.slane %v4250_v13, %v17550_v4  ;;  %v4265_v32 = vcombine.high %v4257_v5, %v4257_v5 }
 0x239   : > { %v14091_v48 = vmax.f32 %v14089_v8, %v14090_v19  ;;  %v15150_v10 = vsel %vm15134_vm7, %v14084_v7, %v18023_v3  ;;  %v8936_v40 = vcombine.low %v8928_v63, %v8935_v50  ;;  %v4273_v56 = vrot.slane %v4257_v5, %v17550_v4 }
 0x23a   : > { %v8967_v6 = vrot.slane %v8960_v55, %v17550_v4  ;;  %v8999_v23 = vcombine.low %v8984_v39, %v8991_v31  ;;  %v4266_v28 = vcombine.high %v4264_v24, %v4264_v24  ;;  %v4280_v42 = vrot.slane %v4264_v24, %v17550_v4 }
 0x23b   : > { %v15151_v14 = vsel %vm15136_vm8, %v14091_v48, %v15150_v10  ;;  %v14099_v52 = vsel %vm13923_vm1, %v8936_v40, -inf  ;;  %v4287_v54 = vrot.slane %v4265_v32, %v17550_v4  ;;  %v4295_v46 = vcombine.high %v4273_v56, %v4273_v56 }
 0x23c   : > { %15284 = vst.msk [vmem:[%s17767_s24 + $0x10] sm:$0xff] %vm15281_vm9, %v15151_v14  ;;  %v8975_v60 = vcombine.low %v8967_v6, %v8974_v62  ;;  %v9006_v3 = vrot.slane %v8999_v23, %v17550_v4  ;;  %v14100_v1 = vrot.slane %v14099_v52, 4  ;;  %v4294_v36 = vrot.slane %v4266_v28, %v17550_v4 }
 0x23d   : > { %v4296_v47 = vcombine.high %v4280_v42, %v4280_v42  ;;  %v4297_v31 = vcombine.high %v4287_v54, %v4287_v54  ;;  %v9094_v0 = vcombine.low %v4273_v56, %v4287_v54  ;;  %v18102_v44 = vrot.slane %v4295_v46, %v17550_v4 }
 0x23e   : > { %v9014_v18 = vcombine.low %v9006_v3, %v9013_v22  ;;  %v14101_v50 = vmax.f32 %v14099_v52, %v14100_v1  ;;  %v14106_v45 = vsel %vm13923_vm1, %v8975_v60, -inf  ;;  %v4298_v20 = vcombine.high %v4294_v36, %v4294_v36 }
 0x23f   : > { %v14107_v8 = vrot.slane %v14106_v45, 4  ;;  %v18111_v15 = vrot.slane %v9094_v0, %v17550_v4  ;;  %v9130_v57 = vrot.slane %v18102_v44, %v17550_v4  ;;  %v9132_v27 = vcombine.low %v4297_v31, %v4280_v42 }
 0x240   : > { %v14102_v16 = vrot.slane %v14101_v50, 2  ;;  %v14113_v13 = vsel %vm13923_vm1, %v9014_v18, -inf  ;;  %v9133_v5 = vcombine.low %v4294_v36, %v4296_v47  ;;  %v9154_v34 = vrot.slane %v4298_v20, %v17550_v4 }
 0x241   : > { %v14108_v22 = vmax.f32 %v14106_v45, %v14107_v8  ;;  %v14114_v7 = vrot.slane %v14113_v13, 4  ;;  %v9140_v19 = vrot.slane %v9132_v27, %v17550_v4  ;;  %v3055_v63 = vadd.f32 %v17918_v38, %v18070_v11 }
 0x242   : > { %v14103_v62 = vmax.f32 %v14101_v50, %v14102_v16  ;;  %v9147_v55 = vrot.slane %v9133_v5, %v17550_v4  ;;  %v9169_v39 = vrot.slane %v9154_v34, %v17550_v4  ;;  %v9045_v24 = vrot.slane %v9038_v49, %v17550_v4 }
 0x243   : > { %v14109_v32 = vrot.slane %v14108_v22, 2  ;;  %v14115_v48 = vmax.f32 %v14113_v13, %v14114_v7  ;;  %v3149_v10 = vmax.f32 %v3055_v63, 0.0  ;;  %v16486_v40 = vadd.f32 %v17737_v43, %v17437_v25  ;;  %v18138_v43 = vpop.f32.mrb[33].mxu0 }
 0x244   : > { %v14104_v56 = vrot.slane %v14103_v62, 1  ;;  %v9155_v6 = vcombine.low %v9140_v19, %v9147_v55  ;;  %v16487_v11 = vadd.f32 %v17753_v9, %v17441_v26  ;;  %v18132_v23 = vadd.f32 %v17808_v37, %v17449_v33 }
 0x245   : > { %v14110_v28 = vmax.f32 %v14108_v22, %v14109_v32  ;;  %v14116_v42 = vrot.slane %v14115_v48, 2  ;;  %v4201_v14 = vcombine.high %v3149_v10, %v3149_v10  ;;  %v4208_v61 = vrot.slane %v3149_v10, %v17550_v4 }
 0x246   : > { %v14105_v12 = vmax.f32 %v14103_v62, %v14104_v56  ;;  %v9162_v49 = vrot.slane %v9155_v6, %v17550_v4  ;;  %v3058_v52 = vadd.f32 %v17918_v38, %v16486_v40  ;;  %v3057_v25 = vadd.f32 %v17918_v38, %v16487_v11 }
 0x247   : > { %v14111_v54 = vrot.slane %v14110_v28, 1  ;;  %v14117_v26 = vmax.f32 %v14115_v48, %v14116_v42  ;;  %v4215_v9 = vrot.slane %v4201_v14, %v17550_v4  ;;  %v4216_v33 = vcombine.high %v4208_v61, %v4208_v61 }
 0x248   : > { %v15152_v37 = vsel %vm15124_vm2, %v14105_v12, %v18037_v59  ;;  %v9170_v46 = vcombine.low %v9162_v49, %v9169_v39  ;;  %v4224_v60 = vrot.slane %v4208_v61, %v17550_v4  ;;  %v3152_v3 = vmax.f32 %v3058_v52, 0.0  ;;  %v18166_v49 = vpop.f32.mrb[34].mxu0 }
 0x249   : > { %v14112_v1 = vmax.f32 %v14110_v28, %v14111_v54  ;;  %v14118_v36 = vrot.slane %v14117_v26, 1  ;;  %v4217_v47 = vcombine.high %v4215_v9, %v4215_v9  ;;  %v4231_v31 = vrot.slane %v4215_v9, %v17550_v4 }
 0x24a   : > { %v14141_v0 = vsel %vm13923_vm1, %v9170_v46, -inf  ;;  %v4238_v18 = vrot.slane %v4216_v33, %v17550_v4  ;;  %v4246_v50 = vcombine.high %v4224_v60, %v4224_v60  ;;  %v9037_v45 = vrot.slane %v4224_v60, %v17550_v4 }
 0x24b   : > { %v14119_v20 = vmax.f32 %v14117_v26, %v14118_v36  ;;  %v15153_v8 = vsel %vm15126_vm3, %v14112_v1, %v15152_v37  ;;  %v14142_v59 = vrot.slane %v14141_v0, 4  ;;  %v4245_v27 = vrot.slane %v4217_v47, %v17550_v4 }
 0x24c   : > { %v4248_v16 = vcombine.high %v4238_v18, %v4238_v18  ;;  %v9052_v13 = vrot.slane %v9037_v45, %v17550_v4  ;;  %v9054_v5 = vcombine.low %v4238_v18, %v4246_v50  ;;  %v4348_v34 = vcombine.high %v3152_v3, %v3152_v3 }
 0x24d   : > { %v14143_v22 = vmax.f32 %v14141_v0, %v14142_v59  ;;  %v9076_v7 = vrot.slane %v4245_v27, %v17550_v4  ;;  %v15688_v19 = vcombine.high %v4231_v31, %v4245_v27  ;;  %v18153_v63 = vsel %vm15128_vm4, %v14119_v20, %v15153_v8 }
 0x24e   : > { %v9053_v62 = vcombine.low %v9045_v24, %v9052_v13  ;;  %v9055_v55 = vcombine.low %v4248_v16, %v4231_v31  ;;  %v9062_v39 = vrot.slane %v9054_v5, %v17550_v4  ;;  %v4355_v32 = vrot.slane %v3152_v3, %v17550_v4 }
 0x24f   : > { %v14144_v48 = vrot.slane %v14143_v22, 2  ;;  %v9091_v10 = vrot.slane %v9076_v7, %v17550_v4  ;;  %v9101_v40 = vrot.slane %v15688_v19, %v17550_v4  ;;  %v4362_v56 = vrot.slane %v4348_v34, %v17550_v4 }
 0x250   : > { %v9069_v6 = vrot.slane %v9055_v55, %v17550_v4  ;;  %v14120_v11 = vsel %vm13923_vm1, %v9053_v62, -inf  ;;  %v4363_v28 = vcombine.high %v4355_v32, %v4355_v32  ;;  %v18163_v42 = vrot.slane %v4355_v32, %v17550_v4 }
 0x251   : > { %v14145_v24 = vmax.f32 %v14143_v22, %v14144_v48  ;;  %v9116_v14 = vcombine.low %v9101_v40, %v18111_v15  ;;  %v14121_v61 = vrot.slane %v14120_v11, 4  ;;  %v4364_v12 = vcombine.high %v4362_v56, %v4362_v56  ;;  %v18197_v48 = vpop.f32.mrb[35].mxu0 }
 0x252   : > { %v9077_v52 = vcombine.low %v9062_v39, %v9069_v6  ;;  %v4378_v54 = vrot.slane %v4362_v56, %v17550_v4  ;;  %v4385_v26 = vrot.slane %v4363_v28, %v17550_v4  ;;  %v3151_v9 = vmax.f32 %v3057_v25, 0.0 }
 0x253   : > { %v14146_v33 = vrot.slane %v14145_v24, 1  ;;  %v9123_v37 = vrot.slane %v9116_v14, %v17550_v4  ;;  %v14122_v46 = vmax.f32 %v14120_v11, %v14121_v61  ;;  %v18172_v60 = vrot.slane %v4364_v12, %v17550_v4 }
 0x254   : > { %v9084_v3 = vrot.slane %v9077_v52, %v17550_v4  ;;  %v4394_v15 = vcombine.high %v4378_v54, %v4378_v54  ;;  %v9232_v1 = vrot.slane %v4385_v26, %v17550_v4  ;;  %v15690_v36 = vcombine.high %v18163_v42, %v4385_v26 }
 0x255   : > { %v18177_v47 = vmax.f32 %v14145_v24, %v14146_v33  ;;  %v9131_v25 = vcombine.low %v9123_v37, %v9130_v57  ;;  %v14123_v31 = vrot.slane %v14122_v46, 2  ;;  %v9250_v0 = vcombine.low %v4378_v54, %v18172_v60 }
 0x256   : > { %v9092_v18 = vcombine.low %v9084_v3, %v9091_v10  ;;  %v18184_v50 = vrot.slane %v9232_v1, %v17550_v4  ;;  %v9257_v45 = vrot.slane %v15690_v36, %v17550_v4  ;;  %v9271_v20 = vrot.slane %v4394_v15, %v17550_v4 }
 0x257   : > { %v14124_v8 = vmax.f32 %v14122_v46, %v14123_v31  ;;  %v14134_v59 = vsel %vm13923_vm1, %v9131_v25, -inf  ;;  %v9264_v27 = vrot.slane %v9250_v0, %v17550_v4  ;;  %v4299_v16 = vcombine.high %v3151_v9, %v3151_v9 }
 0x258   : > { %v14127_v44 = vsel %vm13923_vm1, %v9092_v18, -inf  ;;  %v14135_v57 = vrot.slane %v14134_v59, 4  ;;  %v9286_v13 = vrot.slane %v9271_v20, %v17550_v4  ;;  %v4306_v5 = vrot.slane %v3151_v9, %v17550_v4 }
 0x259   : > { %v14125_v34 = vrot.slane %v14124_v8, 1  ;;  %v14128_v22 = vrot.slane %v14127_v44, 4  ;;  %v9272_v7 = vcombine.low %v9257_v45, %v9264_v27  ;;  %v4313_v19 = vrot.slane %v4299_v16, %v17550_v4 }
 0x25a   : > { %v14136_v62 = vmax.f32 %v14134_v59, %v14135_v57  ;;  %v4314_v55 = vcombine.high %v4306_v5, %v4306_v5  ;;  %v4322_v39 = vrot.slane %v4306_v5, %v17550_v4  ;;  %v3060_v32 = vadd.f32 %v17918_v38, %v18132_v23 }
 0x25b   : > { %v14126_v10 = vmax.f32 %v14124_v8, %v14125_v34  ;;  %v14129_v40 = vmax.f32 %v14127_v44, %v14128_v22  ;;  %v9279_v56 = vrot.slane %v9272_v7, %v17550_v4  ;;  %v4315_v6 = vcombine.high %v4313_v19, %v4313_v19  ;;  %v20443_v7 = vld [vmem:[#allocation8_spill] sm:$0xff] }
 0x25c   : > { %v14137_v11 = vrot.slane %v14136_v62, 2  ;;  %v4329_v28 = vrot.slane %v4313_v19, %v17550_v4  ;;  %v4336_v24 = vrot.slane %v4314_v55, %v17550_v4  ;;  %v3154_v14 = vmax.f32 %v3060_v32, 0.0 }
 0x25d   : > { %v14130_v61 = vrot.slane %v14129_v40, 2  ;;  %v15155_v12 = vsel %vm15130_vm5, %v14126_v10, %v18153_v63  ;;  %v9287_v52 = vcombine.low %v9279_v56, %v9286_v13  ;;  %v4343_v23 = vrot.slane %v4315_v6, %v17550_v4  ;;  %v18221_v6 = vpop.f32.mrb[36].mxu0 }
 0x25e   : > { %v14138_v54 = vmax.f32 %v14136_v62, %v14137_v11  ;;  %v4345_v26 = vcombine.high %v4329_v28, %v4329_v28  ;;  %v9171_v9 = vcombine.low %v4322_v39, %v4336_v24  ;;  %v15689_v33 = vcombine.high %v4322_v39, %v4336_v24 }
 0x25f   : > { %v14131_v37 = vmax.f32 %v14129_v40, %v14130_v61  ;;  %v14162_v46 = vsel %vm13923_vm1, %v9287_v52, -inf  ;;  %v4347_v3 = vcombine.high %v4343_v23, %v4343_v23  ;;  %v9193_v15 = vrot.slane %v4329_v28, %v17550_v4 }
 0x260   : > { %v14139_v1 = vrot.slane %v14138_v54, 1  ;;  %v14163_v36 = vrot.slane %v14162_v46, 4  ;;  %v9179_v25 = vrot.slane %v9171_v9, %v17550_v4  ;;  %v9186_v31 = vrot.slane %v15689_v33, %v17550_v4 }
 0x261   : > { %v14132_v63 = vrot.slane %v14131_v37, 1  ;;  %v9208_v0 = vrot.slane %v9193_v15, %v17550_v4  ;;  %v9210_v18 = vcombine.low %v4343_v23, %v4345_v26  ;;  %v9211_v45 = vcombine.low %v4347_v3, %v18163_v42 }
 0x262   : > { %v14140_v20 = vmax.f32 %v14138_v54, %v14139_v1  ;;  %v14164_v8 = vmax.f32 %v14162_v46, %v14163_v36  ;;  %v9194_v59 = vcombine.low %v9179_v25, %v9186_v31  ;;  %v4446_v27 = vcombine.high %v3154_v14, %v3154_v14 }
 0x263   : > { %v14133_v16 = vmax.f32 %v14131_v37, %v14132_v63  ;;  %v9218_v44 = vrot.slane %v9210_v18, %v17550_v4  ;;  %v9225_v57 = vrot.slane %v9211_v45, %v17550_v4  ;;  %v4453_v13 = vrot.slane %v3154_v14, %v17550_v4 }
 0x264   : > { %v14165_v5 = vrot.slane %v14164_v8, 2  ;;  %v9201_v34 = vrot.slane %v9194_v59, %v17550_v4  ;;  %v4460_v22 = vrot.slane %v4446_v27, %v17550_v4  ;;  %v16489_v42 = vadd.f32 %v17828_v41, %v20443_v7  ;;  %v20444_v59 = vld [vmem:[#allocation9_spill] sm:$0xff] }
 0x265   : > { %v15156_v19 = vsel %vm15132_vm6, %v14133_v16, %v15155_v12  ;;  %v9233_v62 = vcombine.low %v9218_v44, %v9225_v57  ;;  %v4461_v55 = vcombine.high %v4453_v13, %v4453_v13  ;;  %v4469_v39 = vrot.slane %v4453_v13, %v17550_v4  ;;  %v20445_v16 = vld [vmem:[#allocation10_spill] sm:$0xff]  ;;  %v20446_v57 = vld [vmem:[#allocation11_spill] sm:$0xff] }
 0x266   : > { %v15157_v32 = vsel %vm15134_vm7, %v14140_v20, %v15156_v19  ;;  %v14166_v10 = vmax.f32 %v14164_v8, %v14165_v5  ;;  %v9209_v40 = vcombine.low %v9201_v34, %v9208_v0  ;;  %v4462_v56 = vcombine.high %v4460_v22, %v4460_v22  ;;  %v18254_v5 = vpop.f32.mrb[37].mxu0  ;;  %v20447_v19 = vld [vmem:[#allocation12_spill] sm:$0xff] }
 0x267   : > { %v15158_v11 = vsel %vm15136_vm8, %v18177_v47, %v15157_v32  ;;  %v9240_v28 = vrot.slane %v9233_v62, %v17550_v4  ;;  %v4476_v41 = vrot.slane %v4460_v22, %v17550_v4  ;;  %v4483_v24 = vrot.slane %v4461_v55, %v17550_v4 }
 0x268   : > { %15285 = vst.msk [vmem:[%s17767_s24 + $0x18] sm:$0xff] %vm15281_vm9, %v15158_v11  ;;  %v14167_v14 = vrot.slane %v14166_v10, 1  ;;  %v14148_v61 = vsel %vm13923_vm1, %v9209_v40, -inf  ;;  %v4490_v12 = vrot.slane %v4462_v56, %v17550_v4  ;;  %v4491_v52 = vcombine.high %v4469_v39, %v4469_v39 }
 0x269   : > { %v9248_v23 = vcombine.low %v9240_v28, %v18184_v50  ;;  %v14149_v54 = vrot.slane %v14148_v61, 4  ;;  %v4493_v26 = vcombine.high %v4483_v24, %v4483_v24  ;;  %v9349_v47 = vrot.slane %v4469_v39, %v17550_v4 }
 0x26a   : > { %v14168_v9 = vmax.f32 %v14166_v10, %v14167_v14  ;;  %v9366_v33 = vcombine.low %v4483_v24, %v4491_v52  ;;  %v9388_v37 = vrot.slane %v4490_v12, %v17550_v4  ;;  %v15692_v46 = vcombine.high %v4476_v41, %v4490_v12 }
 0x26b   : > { %v14150_v3 = vmax.f32 %v14148_v61, %v14149_v54  ;;  %v14155_v15 = vsel %vm13923_vm1, %v9248_v23, -inf  ;;  %v18237_v1 = vrot.slane %v9349_v47, %v17550_v4  ;;  %v9367_v36 = vcombine.low %v4493_v26, %v4476_v41 }
 0x26c   : > { %v14156_v25 = vrot.slane %v14155_v15, 4  ;;  %v9374_v31 = vrot.slane %v9366_v33, %v17550_v4  ;;  %v9403_v50 = vrot.slane %v9388_v37, %v17550_v4  ;;  %v18242_v63 = vrot.slane %v15692_v46, %v17550_v4 }
 0x26d   : > { %v14151_v0 = vrot.slane %v14150_v3, 2  ;;  %v9381_v18 = vrot.slane %v9367_v36, %v17550_v4  ;;  %v3059_v45 = vadd.f32 %v17918_v38, %v16489_v42  ;;  %v4396_v20 = vcombine.high %v18172_v60, %v18172_v60 }
 0x26e   : > { %v14157_v8 = vmax.f32 %v14155_v15, %v14156_v25  ;;  %v16490_v27 = vadd.f32 %v17875_v53, %v20444_v59  ;;  %v16491_v44 = vadd.f32 %v17887_v30, %v20445_v16  ;;  %v16492_v13 = vadd.f32 %v17915_v2, %v20446_v57 }
 0x26f   : > { %v14152_v34 = vmax.f32 %v14150_v3, %v14151_v0  ;;  %v9389_v22 = vcombine.low %v9374_v31, %v9381_v18  ;;  %v3153_v7 = vmax.f32 %v3059_v45, 0.0  ;;  %v18258_v42 = vadd.f32 %v17938_v21, %v20447_v19 }
 0x270   : > { %v14158_v60 = vrot.slane %v14157_v8, 2  ;;  %v3062_v62 = vadd.f32 %v17918_v38, %v16490_v27  ;;  %v3061_v53 = vadd.f32 %v17918_v38, %v16491_v44  ;;  %v3064_v55 = vadd.f32 %v17918_v38, %v16492_v13 }
 0x271   : > { %v14153_v30 = vrot.slane %v14152_v34, 1  ;;  %v9396_v39 = vrot.slane %v9389_v22, %v17550_v4  ;;  %v4397_v2 = vcombine.high %v3153_v7, %v3153_v7  ;;  %v4404_v32 = vrot.slane %v3153_v7, %v17550_v4 }
 0x272   : > { %v14159_v10 = vmax.f32 %v14157_v8, %v14158_v60  ;;  %v3156_v40 = vmax.f32 %v3062_v62, 0.0  ;;  %v3155_v56 = vmax.f32 %v3061_v53, 0.0  ;;  %v18265_v11 = vmax.f32 %v3064_v55, 0.0 }
 0x273   : > { %v14154_v21 = vmax.f32 %v14152_v34, %v14153_v30  ;;  %v9404_v28 = vcombine.low %v9396_v39, %v9403_v50  ;;  %v4411_v41 = vrot.slane %v4397_v2, %v17550_v4  ;;  %v4412_v24 = vcombine.high %v4404_v32, %v4404_v32 }
 0x274   : > { %v14160_v14 = vrot.slane %v14159_v10, 1  ;;  %v4420_v61 = vrot.slane %v4404_v32, %v17550_v4  ;;  %v4544_v38 = vcombine.high %v3156_v40, %v3156_v40  ;;  %v4551_v12 = vrot.slane %v3156_v40, %v17550_v4 }
 0x275   : > { %v14183_v52 = vsel %vm13923_vm1, %v9404_v28, -inf  ;;  %v4413_v23 = vcombine.high %v4411_v41, %v4411_v41  ;;  %v4427_v54 = vrot.slane %v4411_v41, %v17550_v4  ;;  %v4434_v26 = vrot.slane %v4412_v24, %v17550_v4 }
 0x276   : > { %v14161_v47 = vmax.f32 %v14159_v10, %v14160_v14  ;;  %v14184_v33 = vrot.slane %v14183_v52, 4  ;;  %v4442_v37 = vcombine.high %v4420_v61, %v4420_v61  ;;  %v9288_v46 = vcombine.low %v4396_v20, %v4420_v61  ;;  %v18281_v20 = vpop.f32.mrb[38].mxu0 }
 0x277   : > { %v4441_v3 = vrot.slane %v4413_v23, %v17550_v4  ;;  %v4444_v15 = vcombine.high %v4434_v26, %v4434_v26  ;;  %v4558_v36 = vrot.slane %v4544_v38, %v17550_v4  ;;  %v4559_v25 = vcombine.high %v4551_v12, %v4551_v12 }
 0x278   : > { %v15159_v31 = vsel %vm15124_vm2, %v14161_v47, %v14154_v21  ;;  %v14185_v50 = vmax.f32 %v14183_v52, %v14184_v33  ;;  %v9289_v0 = vcombine.low %v4434_v26, %v4442_v37  ;;  %v9296_v18 = vrot.slane %v9288_v46, %v17550_v4 }
 0x279   : > { %v18278_v45 = vsel %vm15126_vm3, %v14168_v9, %v15159_v31  ;;  %v9310_v8 = vrot.slane %v4444_v15, %v17550_v4  ;;  %v9327_v59 = vcombine.low %v4427_v54, %v4441_v3  ;;  %v15691_v27 = vcombine.high %v4427_v54, %v4441_v3  ;;  %v18313_v3 = vpop.f32.mrb[39].mxu0 }
 0x27a   : > { %v14186_v16 = vrot.slane %v14185_v50, 2  ;;  %v9303_v44 = vrot.slane %v9289_v0, %v17550_v4  ;;  %v4560_v57 = vcombine.high %v4558_v36, %v4558_v36  ;;  %v4567_v13 = vrot.slane %v4551_v12, %v17550_v4 }
 0x27b   : > { %v9325_v34 = vrot.slane %v9310_v8, %v17550_v4  ;;  %v9335_v22 = vrot.slane %v9327_v59, %v17550_v4  ;;  %v9342_v7 = vrot.slane %v15691_v27, %v17550_v4  ;;  %v4574_v9 = vrot.slane %v4558_v36, %v17550_v4 }
 0x27c   : > { %v14187_v19 = vmax.f32 %v14185_v50, %v14186_v16  ;;  %v9311_v60 = vcombine.low %v9296_v18, %v9303_v44  ;;  %v4581_v62 = vrot.slane %v4559_v25, %v17550_v4  ;;  %v18291_v53 = vrot.slane %v4560_v57, %v17550_v4 }
 0x27d   : > { %v9350_v55 = vcombine.low %v9335_v22, %v9342_v7  ;;  %v4590_v30 = vcombine.high %v4574_v9, %v4574_v9  ;;  %v9505_v39 = vrot.slane %v4574_v9, %v17550_v4  ;;  %v4495_v2 = vcombine.high %v3155_v56, %v3155_v56 }
 0x27e   : > { %v14188_v32 = vrot.slane %v14187_v19, 1  ;;  %v9318_v10 = vrot.slane %v9311_v60, %v17550_v4  ;;  %v9483_v40 = vcombine.low %v4567_v13, %v4581_v62  ;;  %v15693_v21 = vcombine.high %v4567_v13, %v4581_v62 }
 0x27f   : > { %v9357_v28 = vrot.slane %v9350_v55, %v17550_v4  ;;  %v9520_v41 = vrot.slane %v9505_v39, %v17550_v4  ;;  %v18298_v24 = vcombine.low %v18291_v53, %v4590_v30  ;;  %v4502_v14 = vrot.slane %v3155_v56, %v17550_v4 }
 0x280   : > { %v18301_v61 = vmax.f32 %v14187_v19, %v14188_v32  ;;  %v9326_v38 = vcombine.low %v9318_v10, %v9325_v34  ;;  %v9491_v12 = vrot.slane %v9483_v40, %v17550_v4  ;;  %v9498_v52 = vrot.slane %v15693_v21, %v17550_v4 }
 0x281   : > { %v9365_v23 = vcombine.low %v9357_v28, %v18237_v1  ;;  %v4509_v54 = vrot.slane %v4495_v2, %v17550_v4  ;;  %v4510_v26 = vcombine.high %v4502_v14, %v4502_v14  ;;  %v4518_v47 = vrot.slane %v4502_v14, %v17550_v4 }
 0x282   : > { %v14169_v33 = vsel %vm13923_vm1, %v9326_v38, -inf  ;;  %v9506_v37 = vcombine.low %v9491_v12, %v9498_v52  ;;  %v4642_v56 = vcombine.high %v18265_v11, %v18265_v11  ;;  %v4649_v46 = vrot.slane %v18265_v11, %v17550_v4 }
 0x283   : > { %v14170_v15 = vrot.slane %v14169_v33, 4  ;;  %v14176_v36 = vsel %vm13923_vm1, %v9365_v23, -inf  ;;  %v4511_v1 = vcombine.high %v4509_v54, %v4509_v54  ;;  %v4525_v25 = vrot.slane %v4509_v54, %v17550_v4 }
 0x284   : > { %v14177_v31 = vrot.slane %v14176_v36, 4  ;;  %v9513_v50 = vrot.slane %v9506_v37, %v17550_v4  ;;  %v4532_v0 = vrot.slane %v4510_v26, %v17550_v4  ;;  %v4540_v18 = vcombine.high %v4518_v47, %v4518_v47 }
 0x285   : > { %v14171_v8 = vmax.f32 %v14169_v33, %v14170_v15  ;;  %v4539_v59 = vrot.slane %v4511_v1, %v17550_v4  ;;  %v4541_v27 = vcombine.high %v4525_v25, %v4525_v25  ;;  %v4656_v11 = vrot.slane %v4642_v56, %v17550_v4 }
 0x286   : > { %v14178_v16 = vmax.f32 %v14176_v36, %v14177_v31  ;;  %v9521_v44 = vcombine.low %v9513_v50, %v9520_v41  ;;  %v4542_v57 = vcombine.high %v4532_v0, %v4532_v0  ;;  %v9406_v13 = vcombine.low %v4518_v47, %v4532_v0 }
 0x287   : > { %v14172_v34 = vrot.slane %v14171_v8, 2  ;;  %v4543_v22 = vcombine.high %v4539_v59, %v4539_v59  ;;  %v9427_v7 = vrot.slane %v4540_v18, %v17550_v4  ;;  %v9445_v9 = vcombine.low %v4539_v59, %v4541_v27  ;;  %v18342_v18 = vpop.f32.mrb[40].mxu0 }
 0x288   : > { %v14179_v19 = vrot.slane %v14178_v16, 2  ;;  %v14204_v60 = vsel %vm13923_vm1, %v9521_v44, -inf  ;;  %v9420_v62 = vrot.slane %v9406_v13, %v17550_v4  ;;  %v9444_v55 = vcombine.low %v4542_v57, %v4525_v25 }
 0x289   : > { %v14173_v30 = vmax.f32 %v14171_v8, %v14172_v34  ;;  %v14205_v39 = vrot.slane %v14204_v60, 4  ;;  %v9442_v2 = vrot.slane %v9427_v7, %v17550_v4  ;;  %v9459_v32 = vrot.slane %v9445_v9, %v17550_v4 }
 0x28a   : > { %v14180_v10 = vmax.f32 %v14178_v16, %v14179_v19  ;;  %v9428_v40 = vcombine.low %v18242_v63, %v9420_v62  ;;  %v9452_v21 = vrot.slane %v9444_v55, %v17550_v4  ;;  %v9466_v28 = vrot.slane %v4543_v22, %v17550_v4 }
 0x28b   : > { %v14174_v41 = vrot.slane %v14173_v30, 1  ;;  %v14206_v14 = vmax.f32 %v14204_v60, %v14205_v39  ;;  %v4657_v38 = vcombine.high %v4649_v46, %v4649_v46  ;;  %v4658_v12 = vcombine.high %v4656_v11, %v4656_v11 }
 0x28c   : > { %v14181_v52 = vrot.slane %v14180_v10, 1  ;;  %v9435_v23 = vrot.slane %v9428_v40, %v17550_v4  ;;  %v9467_v54 = vcombine.low %v9452_v21, %v9459_v32  ;;  %v9481_v26 = vrot.slane %v9466_v28, %v17550_v4 }
 0x28d   : > { %v14175_v47 = vmax.f32 %v14173_v30, %v14174_v41  ;;  %v14207_v33 = vrot.slane %v14206_v14, 2  ;;  %v18332_v37 = vrot.slane %v4649_v46, %v17550_v4  ;;  %v4672_v63 = vrot.slane %v4656_v11, %v17550_v4  ;;  %v18362_v30 = vld [vmem:[#allocation4] ss:$0 sm:$0xff]  ;;  %v20448_v41 = vld [vmem:[#allocation13_spill] sm:$0xff] }
 0x28e   : > { %v14182_v56 = vmax.f32 %v14180_v10, %v14181_v52  ;;  %v9443_v15 = vcombine.low %v9435_v23, %v9442_v2  ;;  %v9474_v36 = vrot.slane %v9467_v54, %v17550_v4  ;;  %v4679_v1 = vrot.slane %v4657_v38, %v17550_v4  ;;  %v20449_v38 = vld [vmem:[#allocation14_spill] sm:$0xff]  ;;  %v20450_v54 = vld [vmem:[#allocation15_spill] sm:$0xff] }
 0x28f   : > { %v15161_v25 = vsel %vm15128_vm4, %v14175_v47, %v18278_v45  ;;  %v14208_v31 = vmax.f32 %v14206_v14, %v14207_v33  ;;  %v4686_v50 = vrot.slane %v4658_v12, %v17550_v4  ;;  %v4687_v0 = vcombine.high %v18332_v37, %v18332_v37 }
 0x290   : > { %v15162_v46 = vsel %vm15130_vm5, %v14182_v56, %v15161_v25  ;;  %v9482_v8 = vcombine.low %v9474_v36, %v9481_v26  ;;  %v14190_v59 = vsel %vm13923_vm1, %v9443_v15, -inf  ;;  %v4689_v27 = vcombine.high %v4679_v1, %v4679_v1  ;;  %v20451_v26 = vld [vmem:[#allocation16_spill] sm:$0xff] }
 0x291   : > { %v14209_v11 = vrot.slane %v14208_v31, 1  ;;  %v14191_v16 = vrot.slane %v14190_v59, 4  ;;  %v15163_v44 = vsel %vm15132_vm6, %v18301_v61, %v15162_v46  ;;  %v18348_v45 = vcombine.low %v4679_v1, %v4687_v0  ;;  %v18393_v46 = vpop.f32.mrb[41].mxu0 }
 0x292   : > { %v14197_v57 = vsel %vm13923_vm1, %v9482_v8, -inf  ;;  %v18352_v13 = vrot.slane %v4689_v27, %v17550_v4  ;;  %v9639_v34 = vcombine.low %v4672_v63, %v4686_v50  ;;  %v15695_v22 = vcombine.high %v4672_v63, %v4686_v50 }
 0x293   : > { %v18354_v7 = vmax.f32 %v14208_v31, %v14209_v11  ;;  %v14192_v9 = vmax.f32 %v14190_v59, %v14191_v16  ;;  %v14198_v19 = vrot.slane %v14197_v57, 4  ;;  %v9615_v60 = vrot.slane %v18348_v45, %v17550_v4 }
 0x294   : > { %v9637_v62 = vrot.slane %v18352_v13, %v17550_v4  ;;  %v9647_v61 = vrot.slane %v9639_v34, %v17550_v4  ;;  %v9654_v55 = vrot.slane %v15695_v22, %v17550_v4  ;;  %v3063_v39 = vadd.f32 %v18362_v30, %v18258_v42 }
 0x295   : > { %v14193_v2 = vrot.slane %v14192_v9, 2  ;;  %v14199_v32 = vmax.f32 %v14197_v57, %v14198_v19  ;;  %v4592_v10 = vcombine.high %v18291_v53, %v18291_v53  ;;  %v9530_v40 = vrot.slane %v18298_v24, %v17550_v4 }
 0x296   : > { %v9662_v21 = vcombine.low %v9647_v61, %v9654_v55  ;;  %v3157_v28 = vmax.f32 %v3063_v39, 0.0  ;;  %v16494_v14 = vadd.f32 %v17982_v35, %v20448_v41  ;;  %v16495_v12 = vadd.f32 %v17995_v17, %v20449_v38 }
 0x297   : > { %v14194_v52 = vmax.f32 %v14192_v9, %v14193_v2  ;;  %v14200_v23 = vrot.slane %v14199_v32, 2  ;;  %v16496_v42 = vadd.f32 %v18032_v58, %v20450_v54  ;;  %v18378_v47 = vadd.f32 %v18072_v29, %v20451_v26 }
 0x298   : > { %v4593_v53 = vcombine.high %v3157_v28, %v3157_v28  ;;  %v4600_v24 = vrot.slane %v3157_v28, %v17550_v4  ;;  %v3066_v33 = vadd.f32 %v18362_v30, %v16494_v14  ;;  %v3065_v63 = vadd.f32 %v18362_v30, %v16495_v12 }
 0x299   : > { %v14195_v35 = vrot.slane %v14194_v52, 1  ;;  %v14201_v56 = vmax.f32 %v14199_v32, %v14200_v23  ;;  %v18384_v17 = vrot.slane %v9662_v21, %v17550_v4  ;;  %v3068_v15 = vadd.f32 %v18362_v30, %v16496_v42 }
 0x29a   : > { %v4607_v58 = vrot.slane %v4593_v53, %v17550_v4  ;;  %v4608_v36 = vcombine.high %v4600_v24, %v4600_v24  ;;  %v4616_v29 = vrot.slane %v4600_v24, %v17550_v4  ;;  %v3160_v1 = vmax.f32 %v3066_v33, 0.0 }
 0x29b   : > { %v14196_v25 = vmax.f32 %v14194_v52, %v14195_v35  ;;  %v14202_v31 = vrot.slane %v14201_v56, 1  ;;  %v18389_v50 = vmax.f32 %v3065_v63, 0.0  ;;  %v18391_v0 = vmax.f32 %v3068_v15, 0.0 }
 0x29c   : > { %v4609_v8 = vcombine.high %v4607_v58, %v4607_v58  ;;  %v4623_v59 = vrot.slane %v4607_v58, %v17550_v4  ;;  %v4630_v27 = vrot.slane %v4608_v36, %v17550_v4  ;;  %v9523_v11 = vcombine.low %v4592_v10, %v4616_v29 }
 0x29d   : > { %v14203_v16 = vmax.f32 %v14201_v56, %v14202_v31  ;;  %v15164_v57 = vsel %vm15134_vm7, %v14196_v25, %v15163_v44  ;;  %v4740_v34 = vcombine.high %v3160_v1, %v3160_v1  ;;  %v4747_v22 = vrot.slane %v3160_v1, %v17550_v4 }
 0x29e   : > { %v4637_v9 = vrot.slane %v4609_v8, %v17550_v4  ;;  %v4639_v19 = vcombine.high %v4623_v59, %v4623_v59  ;;  %v9537_v61 = vrot.slane %v9523_v11, %v17550_v4  ;;  %v9544_v55 = vrot.slane %v4630_v27, %v17550_v4 }
 0x29f   : > { %v15165_v39 = vsel %vm15136_vm8, %v14203_v16, %v15164_v57  ;;  %v15694_v2 = vcombine.high %v4616_v29, %v4630_v27  ;;  %v4754_v32 = vrot.slane %v4740_v34, %v17550_v4  ;;  %v4755_v21 = vcombine.high %v4747_v22, %v4747_v22 }
 0x2a0   : > { %15286 = vst.msk [vmem:[%s17767_s24 + $0x20] sm:$0xff] %vm15281_vm9, %v15165_v39  ;;  %v4641_v10 = vcombine.high %v4637_v9, %v4637_v9  ;;  %v9545_v44 = vcombine.low %v9530_v40, %v9537_v61  ;;  %v9559_v28 = vrot.slane %v9544_v55, %v17550_v4  ;;  %v9562_v41 = vcombine.low %v4623_v59, %v4637_v9 }
 0x2a1   : > { %v9569_v14 = vrot.slane %v15694_v2, %v17550_v4  ;;  %v9583_v38 = vrot.slane %v4639_v19, %v17550_v4  ;;  %v4756_v12 = vcombine.high %v4754_v32, %v4754_v32  ;;  %v4763_v52 = vrot.slane %v4747_v22, %v17550_v4 }
 0x2a2   : > { %v9552_v23 = vrot.slane %v9545_v44, %v17550_v4  ;;  %v9576_v54 = vrot.slane %v9562_v41, %v17550_v4  ;;  %v9600_v42 = vcombine.low %v4641_v10, %v18332_v37  ;;  %v4770_v26 = vrot.slane %v4754_v32, %v17550_v4  ;;  %v18421_v37 = vpop.f32.mrb[42].mxu0 }
 0x2a3   : > { %v9598_v40 = vrot.slane %v9583_v38, %v17550_v4  ;;  %v4777_v53 = vrot.slane %v4755_v21, %v17550_v4  ;;  %v4784_v24 = vrot.slane %v4756_v12, %v17550_v4  ;;  %v4785_v33 = vcombine.high %v4763_v52, %v4763_v52 }
 0x2a4   : > { %v9560_v63 = vcombine.low %v9552_v23, %v9559_v28  ;;  %v9584_v35 = vcombine.low %v9569_v14, %v9576_v54  ;;  %v9608_v56 = vrot.slane %v9600_v42, %v17550_v4  ;;  %v4786_v15 = vcombine.high %v4770_v26, %v4770_v26 }
 0x2a5   : > { %v4787_v58 = vcombine.high %v4777_v53, %v4777_v53  ;;  %v4788_v36 = vcombine.high %v4784_v24, %v4784_v24  ;;  %v9718_v29 = vcombine.low %v4763_v52, %v4777_v53  ;;  %v18419_v1 = vrot.slane %v4785_v33, %v17550_v4 }
 0x2a6   : > { %v9591_v25 = vrot.slane %v9584_v35, %v17550_v4  ;;  %v9623_v31 = vcombine.low %v9608_v56, %v9615_v60  ;;  %v14211_v8 = vsel %vm13923_vm1, %v9560_v63, -inf  ;;  %v9757_v59 = vcombine.low %v4784_v24, %v4786_v15 }
 0x2a7   : > { %v14212_v27 = vrot.slane %v14211_v8, 4  ;;  %v18429_v11 = vrot.slane %v9718_v29, %v17550_v4  ;;  %v9754_v16 = vrot.slane %v18419_v1, %v17550_v4  ;;  %v9756_v57 = vcombine.low %v4787_v58, %v4770_v26 }
 0x2a8   : > { %v9599_v34 = vcombine.low %v9591_v25, %v9598_v40  ;;  %v9630_v22 = vrot.slane %v9623_v31, %v17550_v4  ;;  %v9771_v9 = vrot.slane %v9757_v59, %v17550_v4  ;;  %v9778_v19 = vrot.slane %v4788_v36, %v17550_v4 }
 0x2a9   : > { %v14213_v45 = vmax.f32 %v14211_v8, %v14212_v27  ;;  %v9764_v60 = vrot.slane %v9756_v57, %v17550_v4  ;;  %v4691_v61 = vcombine.high %v18389_v50, %v18389_v50  ;;  %v4698_v55 = vrot.slane %v18389_v50, %v17550_v4 }
 0x2aa   : > { %v9638_v39 = vcombine.low %v9630_v22, %v9637_v62  ;;  %v14218_v2 = vsel %vm13923_vm1, %v9599_v34, -inf  ;;  %v9793_v32 = vrot.slane %v9778_v19, %v17550_v4  ;;  %v4838_v21 = vcombine.high %v18391_v0, %v18391_v0  ;;  %v18453_v62 = vpop.f32.mrb[43].mxu0 }
 0x2ab   : > { %v14214_v10 = vrot.slane %v14213_v45, 2  ;;  %v14219_v44 = vrot.slane %v14218_v2, 4  ;;  %v9779_v28 = vcombine.low %v9764_v60, %v9771_v9  ;;  %v4705_v41 = vrot.slane %v4691_v61, %v17550_v4 }
 0x2ac   : > { %v14225_v14 = vsel %vm13923_vm1, %v9638_v39, -inf  ;;  %v4706_v38 = vcombine.high %v4698_v55, %v4698_v55  ;;  %v4714_v50 = vrot.slane %v4698_v55, %v17550_v4  ;;  %v4845_v13 = vrot.slane %v18391_v0, %v17550_v4 }
 0x2ad   : > { %v14215_v12 = vmax.f32 %v14213_v45, %v14214_v10  ;;  %v14220_v52 = vmax.f32 %v14218_v2, %v14219_v44  ;;  %v14226_v23 = vrot.slane %v14225_v14, 4  ;;  %v9786_v54 = vrot.slane %v9779_v28, %v17550_v4 }
 0x2ae   : > { %v4707_v42 = vcombine.high %v4705_v41, %v4705_v41  ;;  %v4721_v26 = vrot.slane %v4705_v41, %v17550_v4  ;;  %v4728_v40 = vrot.slane %v4706_v38, %v17550_v4  ;;  %v4736_v53 = vcombine.high %v4714_v50, %v4714_v50 }
 0x2af   : > { %v14216_v24 = vrot.slane %v14215_v12, 1  ;;  %v14221_v33 = vrot.slane %v14220_v52, 2  ;;  %v14227_v63 = vmax.f32 %v14225_v14, %v14226_v23  ;;  %v9794_v35 = vcombine.low %v9786_v54, %v9793_v32 }
 0x2b0   : > { %v4735_v56 = vrot.slane %v4707_v42, %v17550_v4  ;;  %v4738_v0 = vcombine.high %v4728_v40, %v4728_v40  ;;  %v9661_v15 = vrot.slane %v4714_v50, %v17550_v4  ;;  %v9678_v58 = vcombine.low %v4728_v40, %v4736_v53  ;;  %v18480_v53 = vpop.f32.mrb[44].mxu0 }
 0x2b1   : > { %v14217_v36 = vmax.f32 %v14215_v12, %v14216_v24  ;;  %v14222_v29 = vmax.f32 %v14220_v52, %v14221_v33  ;;  %v14228_v25 = vrot.slane %v14227_v63, 2  ;;  %v14253_v31 = vsel %vm13923_vm1, %v9794_v35, -inf }
 0x2b2   : > { %v14254_v8 = vrot.slane %v14253_v31, 4  ;;  %v9676_v59 = vrot.slane %v9661_v15, %v17550_v4  ;;  %v9679_v27 = vcombine.low %v4738_v0, %v4721_v26  ;;  %v9686_v57 = vrot.slane %v9678_v58, %v17550_v4 }
 0x2b3   : > { %v14223_v34 = vrot.slane %v14222_v29, 1  ;;  %v14229_v22 = vmax.f32 %v14227_v63, %v14228_v25  ;;  %v15166_v9 = vsel %vm15124_vm2, %v14217_v36, %v18354_v7  ;;  %v9700_v19 = vrot.slane %v4735_v56, %v17550_v4 }
 0x2b4   : > { %v14255_v45 = vmax.f32 %v14253_v31, %v14254_v8  ;;  %v9677_v60 = vcombine.low %v18384_v17, %v9676_v59  ;;  %v9693_v61 = vrot.slane %v9679_v27, %v17550_v4  ;;  %v15696_v55 = vcombine.high %v4721_v26, %v4735_v56 }
 0x2b5   : > { %v14224_v39 = vmax.f32 %v14222_v29, %v14223_v34  ;;  %v14230_v2 = vrot.slane %v14229_v22, 1  ;;  %v9715_v32 = vrot.slane %v9700_v19, %v17550_v4  ;;  %v4852_v10 = vrot.slane %v4838_v21, %v17550_v4 }
 0x2b6   : > { %v14256_v44 = vrot.slane %v14255_v45, 2  ;;  %v9701_v28 = vcombine.low %v9686_v57, %v9693_v61  ;;  %v9725_v41 = vrot.slane %v15696_v55, %v17550_v4  ;;  %v14232_v7 = vsel %vm13923_vm1, %v9677_v60, -inf }
 0x2b7   : > { %v14231_v14 = vmax.f32 %v14229_v22, %v14230_v2  ;;  %v15167_v38 = vsel %vm15126_vm3, %v14224_v39, %v15166_v9  ;;  %v14233_v50 = vrot.slane %v14232_v7, 4  ;;  %v4853_v17 = vcombine.high %v4845_v13, %v4845_v13  ;;  %v20452_v2 = vld [vmem:[#allocation17_spill] sm:$0xff] }
 0x2b8   : > { %v14257_v12 = vmax.f32 %v14255_v45, %v14256_v44  ;;  %v9708_v52 = vrot.slane %v9701_v28, %v17550_v4  ;;  %v9740_v23 = vcombine.low %v9725_v41, %v18429_v11  ;;  %v4854_v54 = vcombine.high %v4852_v10, %v4852_v10 }
 0x2b9   : > { %v14234_v42 = vmax.f32 %v14232_v7, %v14233_v50  ;;  %v15168_v21 = vsel %vm15128_vm4, %v14231_v14, %v15167_v38  ;;  %v18477_v26 = vrot.slane %v4845_v13, %v17550_v4  ;;  %v4868_v40 = vrot.slane %v4852_v10, %v17550_v4  ;;  %v18510_v10 = vpop.f32.mrb[45].mxu0 }
 0x2ba   : > { %v14258_v24 = vrot.slane %v14257_v12, 1  ;;  %v9716_v33 = vcombine.low %v9708_v52, %v9715_v32  ;;  %v9747_v63 = vrot.slane %v9740_v23, %v17550_v4  ;;  %v18484_v35 = vrot.slane %v4853_v17, %v17550_v4 }
 0x2bb   : > { %v14235_v56 = vrot.slane %v14234_v42, 2  ;;  %v18487_v11 = vrot.slane %v4854_v54, %v17550_v4  ;;  %v4884_v0 = vcombine.high %v4868_v40, %v4868_v40  ;;  %v3067_v13 = vadd.f32 %v18362_v30, %v18378_v47 }
 0x2bc   : > { %v18491_v15 = vmax.f32 %v14257_v12, %v14258_v24  ;;  %v9755_v58 = vcombine.low %v9747_v63, %v9754_v16  ;;  %v14239_v36 = vsel %vm13923_vm1, %v9716_v33, -inf  ;;  %v15698_v31 = vcombine.high %v18477_v26, %v18484_v35  ;;  %v20453_v24 = vld [vmem:[#allocation18_spill] sm:$0xff] }
 0x2bd   : > { %v14236_v29 = vmax.f32 %v14234_v42, %v14235_v56  ;;  %v14240_v25 = vrot.slane %v14239_v36, 4  ;;  %v9874_v8 = vcombine.low %v4868_v40, %v18487_v11  ;;  %v9856_v47 = vrot.slane %v18484_v35, %v17550_v4 }
 0x2be   : > { %v14246_v59 = vsel %vm13923_vm1, %v9755_v58, -inf  ;;  %v9895_v27 = vrot.slane %v4884_v0, %v17550_v4  ;;  %v3161_v57 = vmax.f32 %v3067_v13, 0.0  ;;  %v9881_v22 = vrot.slane %v15698_v31, %v17550_v4 }
 0x2bf   : > { %v14237_v34 = vrot.slane %v14236_v29, 1  ;;  %v14241_v1 = vmax.f32 %v14239_v36, %v14240_v25  ;;  %v14247_v16 = vrot.slane %v14246_v59, 4  ;;  %v9888_v9 = vrot.slane %v9874_v8, %v17550_v4 }
 0x2c0   : > { %v9910_v19 = vrot.slane %v9895_v27, %v17550_v4  ;;  %v4789_v45 = vcombine.high %v3161_v57, %v3161_v57  ;;  %v4796_v60 = vrot.slane %v3161_v57, %v17550_v4  ;;  %v16498_v32 = vadd.f32 %v18108_v51, %v20452_v2 }
 0x2c1   : > { %v14238_v61 = vmax.f32 %v14236_v29, %v14237_v34  ;;  %v14242_v55 = vrot.slane %v14241_v1, 2  ;;  %v14248_v39 = vmax.f32 %v14246_v59, %v14247_v16  ;;  %v9896_v44 = vcombine.low %v9881_v22, %v9888_v9 }
 0x2c2   : > { %v4803_v28 = vrot.slane %v4789_v45, %v17550_v4  ;;  %v4804_v41 = vcombine.high %v4796_v60, %v4796_v60  ;;  %v4812_v7 = vrot.slane %v4796_v60, %v17550_v4  ;;  %v3070_v17 = vadd.f32 %v18362_v30, %v16498_v32 }
 0x2c3   : > { %v14243_v14 = vmax.f32 %v14241_v1, %v14242_v55  ;;  %v14249_v38 = vrot.slane %v14248_v39, 2  ;;  %v15169_v50 = vsel %vm15130_vm5, %v14238_v61, %v15168_v21  ;;  %v9903_v12 = vrot.slane %v9896_v44, %v17550_v4 }
 0x2c4   : > { %v4805_v52 = vcombine.high %v4803_v28, %v4803_v28  ;;  %v4819_v23 = vrot.slane %v4803_v28, %v17550_v4  ;;  %v4826_v51 = vrot.slane %v4804_v41, %v17550_v4  ;;  %v3164_v40 = vmax.f32 %v3070_v17, 0.0 }
 0x2c5   : > { %v14244_v54 = vrot.slane %v14243_v14, 1  ;;  %v14250_v42 = vmax.f32 %v14248_v39, %v14249_v38  ;;  %v16499_v33 = vadd.f32 %v18138_v43, %v20453_v24  ;;  %v9911_v63 = vcombine.low %v9903_v12, %v9910_v19 }
 0x2c6   : > { %v4833_v56 = vrot.slane %v4805_v52, %v17550_v4  ;;  %v4835_v0 = vcombine.high %v4819_v23, %v4819_v23  ;;  %v9795_v21 = vcombine.low %v4812_v7, %v4826_v51  ;;  %v15697_v36 = vcombine.high %v4812_v7, %v4826_v51  ;;  %v18541_v7 = vpop.f32.mrb[48].mxu1 }
 0x2c7   : > { %v14245_v13 = vmax.f32 %v14243_v14, %v14244_v54  ;;  %v14251_v58 = vrot.slane %v14250_v42, 1  ;;  %v9817_v29 = vrot.slane %v4819_v23, %v17550_v4  ;;  %v14274_v25 = vsel %vm13923_vm1, %v9911_v63, -inf  ;;  %v18543_v14 = vpop.f32.mrb[46].mxu0 }
 0x2c8   : > { %v4837_v31 = vcombine.high %v4833_v56, %v4833_v56  ;;  %v9803_v8 = vrot.slane %v9795_v21, %v17550_v4  ;;  %v9834_v59 = vcombine.low %v4833_v56, %v4835_v0  ;;  %v14275_v57 = vrot.slane %v14274_v25, 4 }
 0x2c9   : > { %v14252_v27 = vmax.f32 %v14250_v42, %v14251_v58  ;;  %v15170_v43 = vsel %vm15132_vm6, %v14245_v13, %v15169_v50  ;;  %v9810_v34 = vrot.slane %v15697_v36, %v17550_v4  ;;  %v9832_v1 = vrot.slane %v9817_v29, %v17550_v4 }
 0x2ca   : > { %v9835_v16 = vcombine.low %v4837_v31, %v18477_v26  ;;  %v9842_v22 = vrot.slane %v9834_v59, %v17550_v4  ;;  %v4936_v9 = vcombine.high %v3164_v40, %v3164_v40  ;;  %v14276_v45 = vmax.f32 %v14274_v25, %v14275_v57 }
 0x2cb   : > { %v15171_v19 = vsel %vm15134_vm7, %v14252_v27, %v15170_v43  ;;  %v9818_v60 = vcombine.low %v9803_v8, %v9810_v34  ;;  %v4943_v61 = vrot.slane %v3164_v40, %v17550_v4  ;;  %v3069_v32 = vadd.f32 %v18362_v30, %v16499_v33 }
 0x2cc   : > { %v15172_v55 = vsel %vm15136_vm8, %v18491_v15, %v15171_v19  ;;  %v9849_v39 = vrot.slane %v9835_v16, %v17550_v4  ;;  %v4950_v2 = vrot.slane %v4936_v9, %v17550_v4  ;;  %v14277_v26 = vrot.slane %v14276_v45, 2  ;;  %v20455_v19 = vld [vmem:[#allocation20_spill] sm:$0xff] }
 0x2cd   : > { %15287 = vst.msk [vmem:[%s17767_s24 + $0x28] sm:$0xff] %vm15281_vm9, %v15172_v55  ;;  %v9825_v44 = vrot.slane %v9818_v60, %v17550_v4  ;;  %v4951_v28 = vcombine.high %v4943_v61, %v4943_v61  ;;  %v4959_v41 = vrot.slane %v4943_v61, %v17550_v4  ;;  %v9871_v15 = vrot.slane %v9856_v47, %v17550_v4  ;;  %v18581_v60 = vpop.f32.mrb[49].mxu1  ;;  %v18583_v61 = vpop.f32.mrb[47].mxu0 }
 0x2ce   : > { %v9857_v38 = vcombine.low %v9842_v22, %v9849_v39  ;;  %v4952_v50 = vcombine.high %v4950_v2, %v4950_v2  ;;  %v18550_v17 = vrot.slane %v4950_v2, %v17550_v4  ;;  %v14278_v12 = vmax.f32 %v14276_v45, %v14277_v26  ;;  %v20454_v22 = vld [vmem:[#allocation19_spill] sm:$0xff] }
 0x2cf   : > { %v9833_v52 = vcombine.low %v9825_v44, %v9832_v1  ;;  %v4973_v23 = vrot.slane %v4951_v28, %v17550_v4  ;;  %v4981_v51 = vcombine.high %v4959_v41, %v4959_v41  ;;  %v9973_v40 = vrot.slane %v4959_v41, %v17550_v4 }
 0x2d0   : > { %v9864_v54 = vrot.slane %v9857_v38, %v17550_v4  ;;  %v18555_v42 = vrot.slane %v4952_v50, %v17550_v4  ;;  %v3163_v24 = vmax.f32 %v3069_v32, 0.0  ;;  %v14279_v35 = vrot.slane %v14278_v12, 1 }
 0x2d1   : > { %v14260_v47 = vsel %vm13923_vm1, %v9833_v52, -inf  ;;  %v4983_v33 = vcombine.high %v4973_v23, %v4973_v23  ;;  %v9990_v63 = vcombine.low %v4973_v23, %v4981_v51  ;;  %v4886_v13 = vcombine.high %v18487_v11, %v18487_v11 }
 0x2d2   : > { %v9872_v56 = vcombine.low %v9864_v54, %v9871_v15  ;;  %v14261_v0 = vrot.slane %v14260_v47, 4  ;;  %v10012_v21 = vrot.slane %v18555_v42, %v17550_v4  ;;  %v18563_v58 = vmax.f32 %v14278_v12, %v14279_v35 }
 0x2d3   : > { %v18566_v36 = vrot.slane %v9973_v40, %v17550_v4  ;;  %v9991_v29 = vcombine.low %v4983_v33, %v18550_v17  ;;  %v9998_v25 = vrot.slane %v9990_v63, %v17550_v4  ;;  %v15700_v59 = vcombine.high %v18550_v17, %v18555_v42 }
 0x2d4   : > { %v14262_v31 = vmax.f32 %v14260_v47, %v14261_v0  ;;  %v14267_v8 = vsel %vm13923_vm1, %v9872_v56, -inf  ;;  %v4887_v27 = vcombine.high %v3163_v24, %v3163_v24  ;;  %v10027_v11 = vrot.slane %v10012_v21, %v17550_v4 }
 0x2d5   : > { %v14268_v43 = vrot.slane %v14267_v8, 4  ;;  %v10005_v57 = vrot.slane %v9991_v29, %v17550_v4  ;;  %v4894_v34 = vrot.slane %v3163_v24, %v17550_v4  ;;  %v16500_v9 = vadd.f32 %v18166_v49, %v20454_v22 }
 0x2d6   : > { %v14263_v1 = vrot.slane %v14262_v31, 2  ;;  %v4901_v16 = vrot.slane %v4887_v27, %v17550_v4  ;;  %v16501_v45 = vadd.f32 %v18197_v48, %v20455_v19  ;;  %v18603_v19 = vpop.f32.mrb[48].mxu0 }
 0x2d7   : > { %v14269_v55 = vmax.f32 %v14267_v8, %v14268_v43  ;;  %v10013_v39 = vcombine.low %v9998_v25, %v10005_v57  ;;  %v4902_v2 = vcombine.high %v4894_v34, %v4894_v34  ;;  %v4910_v32 = vrot.slane %v4894_v34, %v17550_v4 }
 0x2d8   : > { %v14264_v26 = vmax.f32 %v14262_v31, %v14263_v1  ;;  %v4903_v44 = vcombine.high %v4901_v16, %v4901_v16  ;;  %v4917_v28 = vrot.slane %v4901_v16, %v17550_v4  ;;  %v3072_v41 = vadd.f32 %v18362_v30, %v16500_v9  ;;  %v18601_v9 = vpop.f32.mrb[50].mxu1 }
 0x2d9   : > { %v14270_v15 = vrot.slane %v14269_v55, 2  ;;  %v10020_v49 = vrot.slane %v10013_v39, %v17550_v4  ;;  %v4924_v48 = vrot.slane %v4902_v2, %v17550_v4  ;;  %v4932_v38 = vcombine.high %v4910_v32, %v4910_v32 }
 0x2da   : > { %v14265_v50 = vrot.slane %v14264_v26, 1  ;;  %v4931_v12 = vrot.slane %v4903_v44, %v17550_v4  ;;  %v9912_v52 = vcombine.low %v4886_v13, %v4910_v32  ;;  %v3166_v23 = vmax.f32 %v3072_v41, 0.0 }
 0x2db   : > { %v14271_v51 = vmax.f32 %v14269_v55, %v14270_v15  ;;  %v10028_v54 = vcombine.low %v10020_v49, %v10027_v11  ;;  %v4934_v40 = vcombine.high %v4924_v48, %v4924_v48  ;;  %v9913_v24 = vcombine.low %v4924_v48, %v4932_v38 }
 0x2dc   : > { %v14266_v35 = vmax.f32 %v14264_v26, %v14265_v50  ;;  %v9920_v47 = vrot.slane %v9912_v52, %v17550_v4  ;;  %v9951_v33 = vcombine.low %v4917_v28, %v4931_v12  ;;  %v15699_v63 = vcombine.high %v4917_v28, %v4931_v12  ;;  %v20456_v52 = vld [vmem:[#allocation21_spill] sm:$0xff] }
 0x2dd   : > { %v14272_v56 = vrot.slane %v14271_v51, 1  ;;  %v14295_v0 = vsel %vm13923_vm1, %v10028_v54, -inf  ;;  %v9927_v21 = vrot.slane %v9913_v24, %v17550_v4  ;;  %v9934_v29 = vrot.slane %v4934_v40, %v17550_v4 }
 0x2de   : > { %v14296_v25 = vrot.slane %v14295_v0, 4  ;;  %v9959_v13 = vrot.slane %v9951_v33, %v17550_v4  ;;  %v9966_v31 = vrot.slane %v15699_v63, %v17550_v4  ;;  %v5034_v8 = vcombine.high %v3166_v23, %v3166_v23 }
 0x2df   : > { %v14273_v27 = vmax.f32 %v14271_v51, %v14272_v56  ;;  %v9935_v43 = vcombine.low %v9920_v47, %v9927_v21  ;;  %v9949_v57 = vrot.slane %v9934_v29, %v17550_v4  ;;  %v5041_v11 = vrot.slane %v3166_v23, %v17550_v4 }
 0x2e0   : > { %v14297_v34 = vmax.f32 %v14295_v0, %v14296_v25  ;;  %v9974_v1 = vcombine.low %v9959_v13, %v9966_v31  ;;  %v5048_v16 = vrot.slane %v5034_v8, %v17550_v4  ;;  %v3071_v22 = vadd.f32 %v18362_v30, %v16501_v45 }
 0x2e1   : > { %v15173_v55 = vsel %vm15124_vm2, %v14273_v27, %v14266_v35  ;;  %v9942_v39 = vrot.slane %v9935_v43, %v17550_v4  ;;  %v5049_v2 = vcombine.high %v5041_v11, %v5041_v11  ;;  %v5057_v32 = vrot.slane %v5041_v11, %v17550_v4  ;;  %v18639_v11 = vpop.f32.mrb[51].mxu1 }
 0x2e2   : > { %v18610_v26 = vsel %vm15126_vm3, %v18563_v58, %v15173_v55  ;;  %v14298_v44 = vrot.slane %v14297_v34, 2  ;;  %v9981_v28 = vrot.slane %v9974_v1, %v17550_v4  ;;  %v5050_v41 = vcombine.high %v5048_v16, %v5048_v16 }
 0x2e3   : > { %v9950_v45 = vcombine.low %v9942_v39, %v9949_v57  ;;  %v5064_v15 = vrot.slane %v5048_v16, %v17550_v4  ;;  %v5071_v49 = vrot.slane %v5049_v2, %v17550_v4  ;;  %v3165_v48 = vmax.f32 %v3071_v22, 0.0 }
 0x2e4   : > { %v14299_v38 = vmax.f32 %v14297_v34, %v14298_v44  ;;  %v9989_v50 = vcombine.low %v9981_v28, %v18566_v36  ;;  %v18617_v12 = vrot.slane %v5050_v41, %v17550_v4  ;;  %v16502_v58 = vadd.f32 %v18221_v6, %v20456_v52  ;;  %v18641_v34 = vpop.f32.mrb[49].mxu0 }
 0x2e5   : > { %v14281_v23 = vsel %vm13923_vm1, %v9950_v45, -inf  ;;  %v5080_v51 = vcombine.high %v5064_v15, %v5064_v15  ;;  %v10107_v54 = vcombine.low %v5057_v32, %v5071_v49  ;;  %v15701_v40 = vcombine.high %v5057_v32, %v5071_v49 }
 0x2e6   : > { %v14300_v24 = vrot.slane %v14299_v38, 1  ;;  %v14282_v35 = vrot.slane %v14281_v23, 4  ;;  %v14288_v47 = vsel %vm13923_vm1, %v9989_v50, -inf  ;;  %v10129_v33 = vrot.slane %v5064_v15, %v17550_v4 }
 0x2e7   : > { %v10037_v36 = vrot.slane %v15700_v59, %v17550_v4  ;;  %v14289_v63 = vrot.slane %v14288_v47, 4  ;;  %v10115_v56 = vrot.slane %v10107_v54, %v17550_v4  ;;  %v10122_v6 = vrot.slane %v15701_v40, %v17550_v4  ;;  %v20457_v59 = vld [vmem:[#allocation22_spill] sm:$0xff] }
 0x2e8   : > { %v14301_v0 = vmax.f32 %v14299_v38, %v14300_v24  ;;  %v14283_v21 = vmax.f32 %v14281_v23, %v14282_v35  ;;  %v18631_v29 = vcombine.low %v18617_v12, %v5080_v51  ;;  %v4985_v25 = vcombine.high %v3165_v48, %v3165_v48 }
 0x2e9   : > { %v14290_v13 = vmax.f32 %v14288_v47, %v14289_v63  ;;  %v10130_v31 = vcombine.low %v10115_v56, %v10122_v6  ;;  %v4992_v8 = vrot.slane %v3165_v48, %v17550_v4  ;;  %v3074_v27 = vadd.f32 %v18362_v30, %v16502_v58 }
 0x2ea   : > { %v14284_v43 = vrot.slane %v14283_v21, 2  ;;  %v10144_v17 = vrot.slane %v10129_v33, %v17550_v4  ;;  %v4999_v42 = vrot.slane %v4985_v25, %v17550_v4  ;;  %v16503_v57 = vadd.f32 %v18254_v5, %v20457_v59 }
 0x2eb   : > { %v14291_v1 = vrot.slane %v14290_v13, 2  ;;  %v10137_v16 = vrot.slane %v10130_v31, %v17550_v4  ;;  %v5000_v22 = vcombine.high %v4992_v8, %v4992_v8  ;;  %v5008_v55 = vrot.slane %v4992_v8, %v17550_v4 }
 0x2ec   : > { %v14285_v39 = vmax.f32 %v14283_v21, %v14284_v43  ;;  %v5001_v2 = vcombine.high %v4999_v42, %v4999_v42  ;;  %v5015_v32 = vrot.slane %v4999_v42, %v17550_v4  ;;  %v3168_v44 = vmax.f32 %v3074_v27, 0.0 }
 0x2ed   : > { %v14292_v28 = vmax.f32 %v14290_v13, %v14291_v1  ;;  %v10145_v41 = vcombine.low %v10137_v16, %v10144_v17  ;;  %v5022_v45 = vrot.slane %v5000_v22, %v17550_v4  ;;  %v5030_v5 = vcombine.high %v5008_v55, %v5008_v55 }
 0x2ee   : > { %v14286_v15 = vrot.slane %v14285_v39, 1  ;;  %v5029_v49 = vrot.slane %v5001_v2, %v17550_v4  ;;  %v5031_v48 = vcombine.high %v5015_v32, %v5015_v32  ;;  %v5132_v38 = vcombine.high %v3168_v44, %v3168_v44 }
 0x2ef   : > { %v14293_v50 = vrot.slane %v14292_v28, 1  ;;  %v14316_v52 = vsel %vm13923_vm1, %v10145_v41, -inf  ;;  %v5032_v58 = vcombine.high %v5022_v45, %v5022_v45  ;;  %v10030_v23 = vcombine.low %v5008_v55, %v5022_v45  ;;  %v18675_v41 = vpop.f32.mrb[50].mxu0 }
 0x2f0   : > { %v14287_v51 = vmax.f32 %v14285_v39, %v14286_v15  ;;  %v14317_v54 = vrot.slane %v14316_v52, 4  ;;  %v5033_v40 = vcombine.high %v5029_v49, %v5029_v49  ;;  %v10051_v24 = vrot.slane %v5030_v5, %v17550_v4 }
 0x2f1   : > { %v14294_v35 = vmax.f32 %v14292_v28, %v14293_v50  ;;  %v10044_v47 = vrot.slane %v10030_v23, %v17550_v4  ;;  %v10068_v33 = vcombine.low %v5032_v58, %v5015_v32  ;;  %v10069_v63 = vcombine.low %v5029_v49, %v5031_v48  ;;  %v18673_v28 = vpop.f32.mrb[52].mxu1  ;;  %v20458_v50 = vld [vmem:[#allocation23_spill] sm:$0xff] }
 0x2f2   : > { %v15175_v56 = vsel %vm15128_vm4, %v14287_v51, %v18610_v26  ;;  %v14318_v6 = vmax.f32 %v14316_v52, %v14317_v54  ;;  %v10090_v21 = vrot.slane %v5033_v40, %v17550_v4  ;;  %v5082_v25 = vcombine.high %v18617_v12, %v18617_v12 }
 0x2f3   : > { %v15176_v13 = vsel %vm15130_vm5, %v14294_v35, %v15175_v56  ;;  %v10052_v31 = vcombine.low %v10037_v36, %v10044_v47  ;;  %v10076_v8 = vrot.slane %v10068_v33, %v17550_v4  ;;  %v10083_v27 = vrot.slane %v10069_v63, %v17550_v4 }
 0x2f4   : > { %v14319_v43 = vrot.slane %v14318_v6, 2  ;;  %v10066_v17 = vrot.slane %v10051_v24, %v17550_v4  ;;  %v18661_v42 = vsel %vm15132_vm6, %v14301_v0, %v15176_v13  ;;  %v5139_v26 = vrot.slane %v3168_v44, %v17550_v4 }
 0x2f5   : > { %v10059_v59 = vrot.slane %v10052_v31, %v17550_v4  ;;  %v10091_v1 = vcombine.low %v10076_v8, %v10083_v27  ;;  %v5146_v12 = vrot.slane %v5132_v38, %v17550_v4  ;;  %v3073_v16 = vadd.f32 %v18362_v30, %v16503_v57 }
 0x2f6   : > { %v14320_v36 = vmax.f32 %v14318_v6, %v14319_v43  ;;  %v10105_v22 = vrot.slane %v10090_v21, %v17550_v4  ;;  %v5147_v55 = vcombine.high %v5139_v26, %v5139_v26  ;;  %v18669_v39 = vrot.slane %v5139_v26, %v17550_v4 }
 0x2f7   : > { %v10067_v2 = vcombine.low %v10059_v59, %v10066_v17  ;;  %v10098_v0 = vrot.slane %v10091_v1, %v17550_v4  ;;  %v5148_v32 = vcombine.high %v5146_v12, %v5146_v12  ;;  %v5162_v44 = vrot.slane %v5146_v12, %v17550_v4 }
 0x2f8   : > { %v14321_v45 = vrot.slane %v14320_v36, 1  ;;  %v5169_v57 = vrot.slane %v5147_v55, %v17550_v4  ;;  %v5177_v5 = vcombine.high %v18669_v39, %v18669_v39  ;;  %v3167_v15 = vmax.f32 %v3073_v16, 0.0 }
 0x2f9   : > { %v10106_v49 = vcombine.low %v10098_v0, %v10105_v22  ;;  %v14302_v48 = vsel %vm13923_vm1, %v10067_v2, -inf  ;;  %v5176_v38 = vrot.slane %v5148_v32, %v17550_v4  ;;  %v16504_v52 = vadd.f32 %v18281_v20, %v20458_v50  ;;  %v20459_v32 = vld [vmem:[#allocation24_spill] sm:$0xff] }
 0x2fa   : > { %v14303_v58 = vrot.slane %v14302_v48, 4  ;;  %v5179_v23 = vcombine.high %v5169_v57, %v5169_v57  ;;  %v18684_v51 = vcombine.low %v5169_v57, %v5177_v5  ;;  %v10154_v54 = vrot.slane %v18631_v29, %v17550_v4 }
 0x2fb   : > { %v14309_v40 = vsel %vm13923_vm1, %v10106_v49, -inf  ;;  %v10263_v24 = vcombine.low %v5162_v44, %v5176_v38  ;;  %v15703_v35 = vcombine.high %v5162_v44, %v5176_v38  ;;  %v5083_v47 = vcombine.high %v3167_v15, %v3167_v15 }
 0x2fc   : > { %v18689_v33 = vmax.f32 %v14320_v36, %v14321_v45  ;;  %v14304_v63 = vmax.f32 %v14302_v48, %v14303_v58  ;;  %v14310_v56 = vrot.slane %v14309_v40, 4  ;;  %v18692_v6 = vrot.slane %v5179_v23, %v17550_v4  ;;  %v18717_v58 = vpop.f32.mrb[51].mxu0 }
 0x2fd   : > { %v10239_v20 = vrot.slane %v18684_v51, %v17550_v4  ;;  %v18697_v21 = vrot.slane %v10263_v24, %v17550_v4  ;;  %v5090_v29 = vrot.slane %v3167_v15, %v17550_v4  ;;  %v5097_v13 = vrot.slane %v5083_v47, %v17550_v4 }
 0x2fe   : > { %v14305_v31 = vrot.slane %v14304_v63, 2  ;;  %v14311_v8 = vmax.f32 %v14309_v40, %v14310_v56  ;;  %v18702_v27 = vrot.slane %v15703_v35, %v17550_v4  ;;  %v3076_v43 = vadd.f32 %v18362_v30, %v16504_v52  ;;  %v18715_v52 = vpop.f32.mrb[53].mxu1 }
 0x2ff   : > { %v10261_v17 = vrot.slane %v18692_v6, %v17550_v4  ;;  %v5098_v26 = vcombine.high %v5090_v29, %v5090_v29  ;;  %v5099_v59 = vcombine.high %v5097_v13, %v5097_v13  ;;  %v5106_v1 = vrot.slane %v5090_v29, %v17550_v4 }
 0x300   : > { %v14306_v12 = vmax.f32 %v14304_v63, %v14305_v31  ;;  %v14312_v16 = vrot.slane %v14311_v8, 2  ;;  %v5113_v36 = vrot.slane %v5097_v13, %v17550_v4  ;;  %v3170_v22 = vmax.f32 %v3076_v43, 0.0 }
 0x301   : > { %v5120_v55 = vrot.slane %v5098_v26, %v17550_v4  ;;  %v5127_v2 = vrot.slane %v5099_v59, %v17550_v4  ;;  %v10147_v0 = vcombine.low %v5082_v25, %v5106_v1  ;;  %v16505_v44 = vadd.f32 %v18313_v3, %v20459_v32 }
 0x302   : > { %v14307_v45 = vrot.slane %v14306_v12, 1  ;;  %v14313_v57 = vmax.f32 %v14311_v8, %v14312_v16  ;;  %v5129_v5 = vcombine.high %v5113_v36, %v5113_v36  ;;  %v5230_v15 = vcombine.high %v3170_v22, %v3170_v22 }
 0x303   : > { %v5131_v49 = vcombine.high %v5127_v2, %v5127_v2  ;;  %v10161_v48 = vrot.slane %v10147_v0, %v17550_v4  ;;  %v10168_v38 = vrot.slane %v5120_v55, %v17550_v4  ;;  %v15702_v50 = vcombine.high %v5106_v1, %v5120_v55 }
 0x304   : > { %v14308_v23 = vmax.f32 %v14306_v12, %v14307_v45  ;;  %v14314_v51 = vrot.slane %v14313_v57, 1  ;;  %v10186_v25 = vcombine.low %v5113_v36, %v5127_v2  ;;  %v10207_v40 = vrot.slane %v5129_v5, %v17550_v4 }
 0x305   : > { %v10286_v3 = vcombine.low %v18697_v21, %v18702_v27  ;;  %v10169_v24 = vcombine.low %v10154_v54, %v10161_v48  ;;  %v10183_v35 = vrot.slane %v10168_v38, %v17550_v4  ;;  %v10224_v47 = vcombine.low %v5131_v49, %v18669_v39  ;;  %v18744_v48 = vpop.f32.mrb[54].mxu1  ;;  %v18746_v38 = vpop.f32.mrb[52].mxu0 }
 0x306   : > { %v14315_v63 = vmax.f32 %v14313_v57, %v14314_v51  ;;  %v15178_v56 = vsel %vm15134_vm7, %v14308_v23, %v18661_v42  ;;  %v10193_v6 = vrot.slane %v15702_v50, %v17550_v4  ;;  %v10200_v29 = vrot.slane %v10186_v25, %v17550_v4 }
 0x307   : > { %v10176_v13 = vrot.slane %v10169_v24, %v17550_v4  ;;  %v10232_v31 = vrot.slane %v10224_v47, %v17550_v4  ;;  %v5237_v21 = vrot.slane %v3170_v22, %v17550_v4  ;;  %v5244_v54 = vrot.slane %v5230_v15, %v17550_v4 }
 0x308   : > { %v15179_v8 = vsel %vm15136_vm8, %v14315_v63, %v15178_v56  ;;  %v10208_v27 = vcombine.low %v10193_v6, %v10200_v29  ;;  %v10222_v39 = vrot.slane %v10207_v40, %v17550_v4  ;;  %v3075_v43 = vadd.f32 %v18362_v30, %v16505_v44 }
 0x309   : > { %15288 = vst.msk [vmem:[%s17767_s24 + $0x30] sm:$0xff] %vm15281_vm9, %v15179_v8  ;;  %v10184_v42 = vcombine.low %v10176_v13, %v10183_v35  ;;  %v10247_v26 = vcombine.low %v10232_v31, %v10239_v20  ;;  %v5245_v59 = vcombine.high %v5237_v21, %v5237_v21  ;;  %v5246_v1 = vcombine.high %v5244_v54, %v5244_v54 }
 0x30a   : > { %v10215_v12 = vrot.slane %v10208_v27, %v17550_v4  ;;  %v5253_v16 = vrot.slane %v5237_v21, %v17550_v4  ;;  %v5260_v36 = vrot.slane %v5244_v54, %v17550_v4  ;;  %v3169_v22 = vmax.f32 %v3075_v43, 0.0  ;;  %v20460_v27 = vld [vmem:[#allocation25_spill] sm:$0xff] }
 0x30b   : > { %v10254_v55 = vrot.slane %v10247_v26, %v17550_v4  ;;  %v14323_v2 = vsel %vm13923_vm1, %v10184_v42, -inf  ;;  %v5267_v0 = vrot.slane %v5245_v59, %v17550_v4  ;;  %v5274_v30 = vrot.slane %v5246_v1, %v17550_v4 }
 0x30c   : > { %v10223_v32 = vcombine.low %v10215_v12, %v10222_v39  ;;  %v14324_v44 = vrot.slane %v14323_v2, 4  ;;  %v5275_v20 = vcombine.high %v5253_v16, %v5253_v16  ;;  %v5276_v45 = vcombine.high %v5260_v36, %v5260_v36 }
 0x30d   : > { %v10262_v57 = vcombine.low %v10254_v55, %v10261_v17  ;;  %v5277_v5 = vcombine.high %v5267_v0, %v5267_v0  ;;  %v5278_v15 = vcombine.high %v5274_v30, %v5274_v30  ;;  %v10342_v49 = vcombine.low %v5253_v16, %v5267_v0  ;;  %v18766_v55 = vpop.f32.mrb[55].mxu1 }
 0x30e   : > { %v14325_v50 = vmax.f32 %v14323_v2, %v14324_v44  ;;  %v14330_v23 = vsel %vm13923_vm1, %v10223_v32, -inf  ;;  %v10381_v51 = vcombine.low %v5274_v30, %v5276_v45  ;;  %v10293_v25 = vrot.slane %v10286_v3, %v17550_v4  ;;  %v18768_v2 = vpop.f32.mrb[53].mxu0 }
 0x30f   : > { %v14331_v40 = vrot.slane %v14330_v23, 4  ;;  %v14337_v24 = vsel %vm13923_vm1, %v10262_v57, -inf  ;;  %v18752_v35 = vrot.slane %v5275_v20, %v17550_v4  ;;  %v10380_v17 = vcombine.low %v5277_v5, %v5260_v36 }
 0x310   : > { %v14326_v47 = vrot.slane %v14325_v50, 2  ;;  %v14338_v63 = vrot.slane %v14337_v24, 4  ;;  %v18755_v56 = vrot.slane %v10342_v49, %v17550_v4  ;;  %v10395_v6 = vrot.slane %v10381_v51, %v17550_v4 }
 0x311   : > { %v14332_v29 = vmax.f32 %v14330_v23, %v14331_v40  ;;  %v10388_v13 = vrot.slane %v10380_v17, %v17550_v4  ;;  %v10402_v31 = vrot.slane %v5278_v15, %v17550_v4  ;;  %v5181_v3 = vcombine.high %v3169_v22, %v3169_v22 }
 0x312   : > { %v14327_v21 = vmax.f32 %v14325_v50, %v14326_v47  ;;  %v14339_v54 = vmax.f32 %v14337_v24, %v14338_v63  ;;  %v5188_v8 = vrot.slane %v3169_v22, %v17550_v4  ;;  %v16506_v39 = vadd.f32 %v18342_v18, %v20460_v27 }
 0x313   : > { %v14333_v43 = vrot.slane %v14332_v29, 2  ;;  %v10403_v42 = vcombine.low %v10388_v13, %v10395_v6  ;;  %v10417_v26 = vrot.slane %v10402_v31, %v17550_v4  ;;  %v5195_v59 = vrot.slane %v5181_v3, %v17550_v4 }
 0x314   : > { %v14328_v1 = vrot.slane %v14327_v21, 1  ;;  %v14340_v12 = vrot.slane %v14339_v54, 2  ;;  %v5196_v16 = vcombine.high %v5188_v8, %v5188_v8  ;;  %v5204_v36 = vrot.slane %v5188_v8, %v17550_v4 }
 0x315   : > { %v14334_v0 = vmax.f32 %v14332_v29, %v14333_v43  ;;  %v10410_v22 = vrot.slane %v10403_v42, %v17550_v4  ;;  %v5197_v30 = vcombine.high %v5195_v59, %v5195_v59  ;;  %v5211_v18 = vrot.slane %v5195_v59, %v17550_v4  ;;  %v18785_v42 = vld [vmem:[#allocation4] ss:$0 sm:$0xff] }
 0x316   : > { %v14329_v32 = vmax.f32 %v14327_v21, %v14328_v1  ;;  %v14341_v44 = vmax.f32 %v14339_v54, %v14340_v12  ;;  %v5218_v20 = vrot.slane %v5196_v16, %v17550_v4  ;;  %v5226_v45 = vcombine.high %v5204_v36, %v5204_v36  ;;  %v20461_v12 = vld [vmem:[#allocation26_spill] sm:$0xff] }
 0x317   : > { %v14335_v57 = vrot.slane %v14334_v0, 1  ;;  %v10418_v5 = vcombine.low %v10410_v22, %v10417_v26  ;;  %v5225_v15 = vrot.slane %v5197_v30, %v17550_v4  ;;  %v10285_v49 = vrot.slane %v5204_v36, %v17550_v4 }
 0x318   : > { %v14342_v50 = vrot.slane %v14341_v44, 1  ;;  %v15180_v23 = vsel %vm15124_vm2, %v14329_v32, %v18689_v33  ;;  %v5228_v51 = vcombine.high %v5218_v20, %v5218_v20  ;;  %v10302_v40 = vcombine.low %v5218_v20, %v5226_v45  ;;  %v20463_v20 = vld [vmem:[#allocation28_spill] sm:$0xff] }
 0x319   : > { %v14336_v24 = vmax.f32 %v14334_v0, %v14335_v57  ;;  %v14365_v17 = vsel %vm13923_vm1, %v10418_v5, -inf  ;;  %v10300_v47 = vrot.slane %v10285_v49, %v17550_v4  ;;  %v10324_v63 = vrot.slane %v5225_v15, %v17550_v4 }
 0x31a   : > { %v14343_v6 = vmax.f32 %v14341_v44, %v14342_v50  ;;  %v14366_v29 = vrot.slane %v14365_v17, 4  ;;  %v10303_v13 = vcombine.low %v5228_v51, %v5211_v18  ;;  %v10310_v31 = vrot.slane %v10302_v40, %v17550_v4  ;;  %v18808_v51 = vpop.f32.mrb[54].mxu0 }
 0x31b   : > { %v15181_v3 = vsel %vm15126_vm3, %v14336_v24, %v15180_v23  ;;  %v10301_v21 = vcombine.low %v10293_v25, %v10300_v47  ;;  %v10339_v54 = vrot.slane %v10324_v63, %v17550_v4  ;;  %v15704_v33 = vcombine.high %v5211_v18, %v5225_v15  ;;  %v20462_v25 = vld [vmem:[#allocation27_spill] sm:$0xff]  ;;  %v18806_v23 = vpop.f32.mrb[56].mxu1 }
 0x31c   : > { %v14367_v8 = vmax.f32 %v14365_v17, %v14366_v29  ;;  %v10317_v27 = vrot.slane %v10303_v13, %v17550_v4  ;;  %v15182_v43 = vsel %vm15128_vm4, %v14343_v6, %v15181_v3  ;;  %v3078_v26 = vadd.f32 %v18785_v42, %v16506_v39 }
 0x31d   : > { %v10349_v59 = vrot.slane %v15704_v33, %v17550_v4  ;;  %v14344_v1 = vsel %vm13923_vm1, %v10301_v21, -inf  ;;  %v16507_v16 = vadd.f32 %v18393_v46, %v20461_v12  ;;  %v16508_v36 = vadd.f32 %v18421_v37, %v20462_v25 }
 0x31e   : > { %v14368_v0 = vrot.slane %v14367_v8, 2  ;;  %v10325_v22 = vcombine.low %v10310_v31, %v10317_v27  ;;  %v14345_v30 = vrot.slane %v14344_v1, 4  ;;  %v3172_v18 = vmax.f32 %v3078_v26, 0.0 }
 0x31f   : > { %v10364_v32 = vcombine.low %v10349_v59, %v18755_v56  ;;  %v3077_v44 = vadd.f32 %v18785_v42, %v16507_v16  ;;  %v3080_v39 = vadd.f32 %v18785_v42, %v16508_v36  ;;  %v18799_v45 = vadd.f32 %v18453_v62, %v20463_v20 }
 0x320   : > { %v14369_v57 = vmax.f32 %v14367_v8, %v14368_v0  ;;  %v10332_v46 = vrot.slane %v10325_v22, %v17550_v4  ;;  %v14346_v5 = vmax.f32 %v14344_v1, %v14345_v30  ;;  %v5328_v15 = vcombine.high %v3172_v18, %v3172_v18 }
 0x321   : > { %v10378_v37 = vrot.slane %v18752_v35, %v17550_v4  ;;  %v10371_v49 = vrot.slane %v10364_v32, %v17550_v4  ;;  %v5335_v56 = vrot.slane %v3172_v18, %v17550_v4  ;;  %v3171_v50 = vmax.f32 %v3077_v44, 0.0 }
 0x322   : > { %v10340_v40 = vcombine.low %v10332_v46, %v10339_v54  ;;  %v14347_v62 = vrot.slane %v14346_v5, 2  ;;  %v5342_v24 = vrot.slane %v5328_v15, %v17550_v4  ;;  %v18811_v17 = vmax.f32 %v3080_v39, 0.0  ;;  %v18827_v46 = vpop.f32.mrb[57].mxu1 }
 0x323   : > { %v14370_v47 = vrot.slane %v14369_v57, 1  ;;  %v10379_v63 = vcombine.low %v10371_v49, %v10378_v37  ;;  %v5343_v6 = vcombine.high %v5335_v56, %v5335_v56  ;;  %v5351_v35 = vrot.slane %v5335_v56, %v17550_v4 }
 0x324   : > { %v14348_v29 = vmax.f32 %v14346_v5, %v14347_v62  ;;  %v14351_v13 = vsel %vm13923_vm1, %v10340_v40, -inf  ;;  %v5344_v31 = vcombine.high %v5342_v24, %v5342_v24  ;;  %v5279_v3 = vcombine.high %v3171_v50, %v3171_v50  ;;  %v18829_v5 = vpop.f32.mrb[55].mxu0 }
 0x325   : > { %v14352_v21 = vrot.slane %v14351_v13, 4  ;;  %v14358_v33 = vsel %vm13923_vm1, %v10379_v63, -inf  ;;  %v5358_v54 = vrot.slane %v5342_v24, %v17550_v4  ;;  %v5365_v8 = vrot.slane %v5343_v6, %v17550_v4 }
 0x326   : > { %v14349_v27 = vrot.slane %v14348_v29, 1  ;;  %v14359_v26 = vrot.slane %v14358_v33, 4  ;;  %v18819_v59 = vrot.slane %v5344_v31, %v17550_v4  ;;  %v5286_v1 = vrot.slane %v3171_v50, %v17550_v4 }
 0x327   : > { %v14371_v12 = vmax.f32 %v14369_v57, %v14370_v47  ;;  %v14353_v16 = vmax.f32 %v14351_v13, %v14352_v21  ;;  %v5374_v25 = vcombine.high %v5358_v54, %v5358_v54  ;;  %v15706_v36 = vcombine.high %v5351_v35, %v5365_v8 }
 0x328   : > { %v14350_v0 = vmax.f32 %v14348_v29, %v14349_v27  ;;  %v14360_v22 = vmax.f32 %v14358_v33, %v14359_v26  ;;  %v10498_v30 = vcombine.low %v5358_v54, %v18819_v59  ;;  %v5293_v18 = vrot.slane %v5279_v3, %v17550_v4 }
 0x329   : > { %v14354_v32 = vrot.slane %v14353_v16, 2  ;;  %v10480_v44 = vrot.slane %v5365_v8, %v17550_v4  ;;  %v10505_v39 = vrot.slane %v15706_v36, %v17550_v4  ;;  %v10519_v20 = vrot.slane %v5374_v25, %v17550_v4 }
 0x32a   : > { %v14361_v57 = vrot.slane %v14360_v22, 2  ;;  %v15183_v15 = vsel %vm15130_vm5, %v14350_v0, %v15182_v43  ;;  %v10512_v37 = vrot.slane %v10498_v30, %v17550_v4  ;;  %v5294_v49 = vcombine.high %v5286_v1, %v5286_v1 }
 0x32b   : > { %v14355_v56 = vmax.f32 %v14353_v16, %v14354_v32  ;;  %v10534_v50 = vrot.slane %v10519_v20, %v17550_v4  ;;  %v5295_v40 = vcombine.high %v5293_v18, %v5293_v18  ;;  %v5302_v62 = vrot.slane %v5286_v1, %v17550_v4 }
 0x32c   : > { %v14362_v24 = vmax.f32 %v14360_v22, %v14361_v57  ;;  %v10520_v47 = vcombine.low %v10505_v39, %v10512_v37  ;;  %v5309_v63 = vrot.slane %v5293_v18, %v17550_v4  ;;  %v5316_v6 = vrot.slane %v5294_v49, %v17550_v4 }
 0x32d   : > { %v14356_v29 = vrot.slane %v14355_v56, 1  ;;  %v5323_v13 = vrot.slane %v5295_v40, %v17550_v4  ;;  %v5426_v43 = vcombine.high %v18811_v17, %v18811_v17  ;;  %v5433_v31 = vrot.slane %v18811_v17, %v17550_v4 }
 0x32e   : > { %v14363_v3 = vrot.slane %v14362_v24, 1  ;;  %v10527_v21 = vrot.slane %v10520_v47, %v17550_v4  ;;  %v5325_v33 = vcombine.high %v5309_v63, %v5309_v63  ;;  %v10419_v54 = vcombine.low %v5302_v62, %v5316_v6 }
 0x32f   : > { %v14357_v8 = vmax.f32 %v14355_v56, %v14356_v29  ;;  %v5327_v27 = vcombine.high %v5323_v13, %v5323_v13  ;;  %v15705_v26 = vcombine.high %v5302_v62, %v5316_v6  ;;  %v10441_v1 = vrot.slane %v5309_v63, %v17550_v4  ;;  %v18858_v62 = vpop.f32.mrb[58].mxu1 }
 0x330   : > { %v14364_v16 = vmax.f32 %v14362_v24, %v14363_v3  ;;  %v10535_v25 = vcombine.low %v10527_v21, %v10534_v50  ;;  %v10427_v36 = vrot.slane %v10419_v54, %v17550_v4  ;;  %v10458_v0 = vcombine.low %v5323_v13, %v5325_v33  ;;  %v18860_v24 = vpop.f32.mrb[56].mxu0 }
 0x331   : > { %v15184_v22 = vsel %vm15132_vm6, %v14357_v8, %v15183_v15  ;;  %v10495_v17 = vrot.slane %v10480_v44, %v17550_v4  ;;  %v10434_v30 = vrot.slane %v15705_v26, %v17550_v4  ;;  %v10459_v18 = vcombine.low %v5327_v27, %v5351_v35 }
 0x332   : > { %v15185_v32 = vsel %vm15134_vm7, %v14364_v16, %v15184_v22  ;;  %v14386_v39 = vsel %vm13923_vm1, %v10535_v25, -inf  ;;  %v10466_v20 = vrot.slane %v10458_v0, %v17550_v4  ;;  %v5440_v57 = vrot.slane %v5426_v43, %v17550_v4 }
 0x333   : > { %v15186_v37 = vsel %vm15136_vm8, %v14371_v12, %v15185_v32  ;;  %v14387_v49 = vrot.slane %v14386_v39, 4  ;;  %v10442_v56 = vcombine.low %v10427_v36, %v10434_v30  ;;  %v10473_v50 = vrot.slane %v10459_v18, %v17550_v4 }
 0x334   : > { %15289 = vst.msk [vmem:[%s17767_s24 + $0x38] sm:$0xff] %vm15281_vm9, %v15186_v37  ;;  %v10456_v44 = vrot.slane %v10441_v1, %v17550_v4  ;;  %v5441_v15 = vcombine.high %v5433_v31, %v5433_v31  ;;  %v5442_v35 = vcombine.high %v5440_v57, %v5440_v57  ;;  %v5449_v40 = vrot.slane %v5433_v31, %v17550_v4 }
 0x335   : > { %v14388_v47 = vmax.f32 %v14386_v39, %v14387_v49  ;;  %v10449_v63 = vrot.slane %v10442_v56, %v17550_v4  ;;  %v10481_v12 = vcombine.low %v10466_v20, %v10473_v50  ;;  %v3079_v6 = vadd.f32 %v18785_v42, %v18799_v45  ;;  %v18889_v50 = vpop.f32.mrb[59].mxu1 }
 0x336   : > { %v5463_v29 = vrot.slane %v5441_v15, %v17550_v4  ;;  %v18867_v13 = vrot.slane %v5442_v35, %v17550_v4  ;;  %v5471_v43 = vcombine.high %v5449_v40, %v5449_v40  ;;  %v10597_v3 = vrot.slane %v5449_v40, %v17550_v4  ;;  %v20464_v40 = vld [vmem:[#allocation29_spill] sm:$0xff] }
 0x337   : > { %v14389_v31 = vrot.slane %v14388_v47, 2  ;;  %v10457_v21 = vcombine.low %v10449_v63, %v10456_v44  ;;  %v10488_v33 = vrot.slane %v10481_v12, %v17550_v4  ;;  %v18872_v54 = vrot.slane %v5440_v57, %v17550_v4  ;;  %v18891_v44 = vpop.f32.mrb[57].mxu0  ;;  %v20465_v63 = vld [vmem:[#allocation30_spill] sm:$0xff] }
 0x338   : > { %v5473_v8 = vcombine.high %v5463_v29, %v5463_v29  ;;  %v10614_v27 = vcombine.low %v5463_v29, %v5471_v43  ;;  %v10636_v45 = vrot.slane %v18867_v13, %v17550_v4  ;;  %v3173_v26 = vmax.f32 %v3079_v6, 0.0 }
 0x339   : > { %v14390_v1 = vmax.f32 %v14388_v47, %v14389_v31  ;;  %v10496_v16 = vcombine.low %v10488_v33, %v10495_v17  ;;  %v14372_v25 = vsel %vm13923_vm1, %v10457_v21, -inf  ;;  %v18878_v36 = vrot.slane %v10597_v3, %v17550_v4 }
 0x33a   : > { %v14373_v0 = vrot.slane %v14372_v25, 4  ;;  %v10615_v22 = vcombine.low %v5473_v8, %v18872_v54  ;;  %v10622_v30 = vrot.slane %v10614_v27, %v17550_v4  ;;  %v15708_v18 = vcombine.high %v18872_v54, %v18867_v13 }
 0x33b   : > { %v14391_v32 = vrot.slane %v14390_v1, 1  ;;  %v14379_v39 = vsel %vm13923_vm1, %v10496_v16, -inf  ;;  %v10651_v20 = vrot.slane %v10636_v45, %v17550_v4  ;;  %v5376_v17 = vcombine.high %v18819_v59, %v18819_v59 }
 0x33c   : > { %v14374_v57 = vmax.f32 %v14372_v25, %v14373_v0  ;;  %v14380_v37 = vrot.slane %v14379_v39, 4  ;;  %v10629_v49 = vrot.slane %v10615_v22, %v17550_v4  ;;  %v5377_v56 = vcombine.high %v3173_v26, %v3173_v26 }
 0x33d   : > { %v14392_v15 = vmax.f32 %v14390_v1, %v14391_v32  ;;  %v5384_v35 = vrot.slane %v3173_v26, %v17550_v4  ;;  %v16510_v47 = vadd.f32 %v18480_v53, %v20464_v40  ;;  %v16511_v12 = vadd.f32 %v18510_v10, %v20465_v63 }
 0x33e   : > { %v14375_v6 = vrot.slane %v14374_v57, 2  ;;  %v14381_v59 = vmax.f32 %v14379_v39, %v14380_v37  ;;  %v10637_v29 = vcombine.low %v10622_v30, %v10629_v49  ;;  %v5391_v43 = vrot.slane %v5377_v56, %v17550_v4 }
 0x33f   : > { %v5392_v3 = vcombine.high %v5384_v35, %v5384_v35  ;;  %v5400_v31 = vrot.slane %v5384_v35, %v17550_v4  ;;  %v3082_v21 = vadd.f32 %v18785_v42, %v16510_v47  ;;  %v3081_v33 = vadd.f32 %v18785_v42, %v16511_v12 }
 0x340   : > { %v14376_v8 = vmax.f32 %v14374_v57, %v14375_v6  ;;  %v14382_v27 = vrot.slane %v14381_v59, 2  ;;  %v10644_v45 = vrot.slane %v10637_v29, %v17550_v4  ;;  %v5393_v53 = vcombine.high %v5391_v43, %v5391_v43 }
 0x341   : > { %v5407_v26 = vrot.slane %v5391_v43, %v17550_v4  ;;  %v5414_v10 = vrot.slane %v5392_v3, %v17550_v4  ;;  %v5422_v1 = vcombine.high %v5400_v31, %v5400_v31  ;;  %v10536_v16 = vcombine.low %v5376_v17, %v5400_v31 }
 0x342   : > { %v14377_v25 = vrot.slane %v14376_v8, 1  ;;  %v14383_v0 = vmax.f32 %v14381_v59, %v14382_v27  ;;  %v10652_v22 = vcombine.low %v10644_v45, %v10651_v20  ;;  %v5421_v30 = vrot.slane %v5393_v53, %v17550_v4 }
 0x343   : > { %v5424_v32 = vcombine.high %v5414_v10, %v5414_v10  ;;  %v10537_v39 = vcombine.low %v5414_v10, %v5422_v1  ;;  %v10544_v37 = vrot.slane %v10536_v16, %v17550_v4  ;;  %v3176_v57 = vmax.f32 %v3082_v21, 0.0  ;;  %v18919_v10 = vpop.f32.mrb[58].mxu0 }
 0x344   : > { %v14378_v49 = vmax.f32 %v14376_v8, %v14377_v25  ;;  %v14384_v56 = vrot.slane %v14383_v0, 1  ;;  %v14407_v35 = vsel %vm13923_vm1, %v10652_v22, -inf  ;;  %v10575_v40 = vcombine.low %v5407_v26, %v5421_v30 }
 0x345   : > { %v14408_v47 = vrot.slane %v14407_v35, 4  ;;  %v10551_v63 = vrot.slane %v10537_v39, %v17550_v4  ;;  %v10558_v17 = vrot.slane %v5424_v32, %v17550_v4  ;;  %v15707_v12 = vcombine.high %v5407_v26, %v5421_v30  ;;  %v18917_v26 = vpop.f32.mrb[60].mxu1 }
 0x346   : > { %v14385_v6 = vmax.f32 %v14383_v0, %v14384_v56  ;;  %v10583_v20 = vrot.slane %v10575_v40, %v17550_v4  ;;  %v5524_v59 = vcombine.high %v3176_v57, %v3176_v57  ;;  %v5531_v29 = vrot.slane %v3176_v57, %v17550_v4  ;;  %v20466_v56 = vld [vmem:[#allocation31_spill] sm:$0xff] }
 0x347   : > { %v14409_v43 = vmax.f32 %v14407_v35, %v14408_v47  ;;  %v10559_v3 = vcombine.low %v10544_v37, %v10551_v63  ;;  %v10573_v31 = vrot.slane %v10558_v17, %v17550_v4  ;;  %v10590_v21 = vrot.slane %v15707_v12, %v17550_v4 }
 0x348   : > { %v15187_v8 = vsel %vm15124_vm2, %v14385_v6, %v14378_v49  ;;  %v5538_v27 = vrot.slane %v5524_v59, %v17550_v4  ;;  %v5539_v45 = vcombine.high %v5531_v29, %v5531_v29  ;;  %v5547_v53 = vrot.slane %v5531_v29, %v17550_v4 }
 0x349   : > { %v18922_v1 = vsel %vm15126_vm3, %v14392_v15, %v15187_v8  ;;  %v14410_v16 = vrot.slane %v14409_v43, 2  ;;  %v10566_v25 = vrot.slane %v10559_v3, %v17550_v4  ;;  %v10598_v0 = vcombine.low %v10583_v20, %v10590_v21 }
 0x34a   : > { %v5540_v22 = vcombine.high %v5538_v27, %v5538_v27  ;;  %v5554_v30 = vrot.slane %v5538_v27, %v17550_v4  ;;  %v5561_v32 = vrot.slane %v5539_v45, %v17550_v4  ;;  %v3175_v39 = vmax.f32 %v3081_v33, 0.0 }
 0x34b   : > { %v14411_v37 = vmax.f32 %v14409_v43, %v14410_v16  ;;  %v10574_v57 = vcombine.low %v10566_v25, %v10573_v31  ;;  %v10605_v49 = vrot.slane %v10598_v0, %v17550_v4  ;;  %v16512_v35 = vadd.f32 %v18543_v14, %v20466_v56  ;;  %v18954_v25 = vpop.f32.mrb[61].mxu1  ;;  %v18956_v0 = vpop.f32.mrb[59].mxu0 }
 0x34c   : > { %v18931_v15 = vrot.slane %v5540_v22, %v17550_v4  ;;  %v5570_v40 = vcombine.high %v5554_v30, %v5554_v30  ;;  %v10731_v47 = vcombine.low %v5547_v53, %v5561_v32  ;;  %v15709_v63 = vcombine.high %v5547_v53, %v5561_v32  ;;  %v20467_v53 = vld [vmem:[#allocation32_spill] sm:$0xff] }
 0x34d   : > { %v14412_v17 = vrot.slane %v14411_v37, 1  ;;  %v10613_v12 = vcombine.low %v10605_v49, %v18878_v36  ;;  %v14393_v6 = vsel %vm13923_vm1, %v10574_v57, -inf  ;;  %v10753_v33 = vrot.slane %v5554_v30, %v17550_v4 }
 0x34e   : > { %v18940_v20 = vrot.slane %v15708_v18, %v17550_v4  ;;  %v14394_v14 = vrot.slane %v14393_v6, 4  ;;  %v10739_v59 = vrot.slane %v10731_v47, %v17550_v4  ;;  %v10746_v29 = vrot.slane %v15709_v63, %v17550_v4 }
 0x34f   : > { %v14413_v43 = vmax.f32 %v14411_v37, %v14412_v17  ;;  %v14400_v3 = vsel %vm13923_vm1, %v10613_v12, -inf  ;;  %v18946_v36 = vcombine.low %v18931_v15, %v5570_v40  ;;  %v5475_v31 = vcombine.high %v3175_v39, %v3175_v39 }
 0x350   : > { %v14395_v21 = vmax.f32 %v14393_v6, %v14394_v14  ;;  %v14401_v8 = vrot.slane %v14400_v3, 4  ;;  %v10754_v27 = vcombine.low %v10739_v59, %v10746_v29  ;;  %v5482_v45 = vrot.slane %v3175_v39, %v17550_v4 }
 0x351   : > { %v10768_v13 = vrot.slane %v10753_v33, %v17550_v4  ;;  %v5489_v54 = vrot.slane %v5475_v31, %v17550_v4  ;;  %v3084_v18 = vadd.f32 %v18785_v42, %v16512_v35  ;;  %v16513_v16 = vadd.f32 %v18583_v61, %v20467_v53 }
 0x352   : > { %v14396_v22 = vrot.slane %v14395_v21, 2  ;;  %v14402_v30 = vmax.f32 %v14400_v3, %v14401_v8  ;;  %v10761_v32 = vrot.slane %v10754_v27, %v17550_v4  ;;  %v5490_v37 = vcombine.high %v5482_v45, %v5482_v45 }
 0x353   : > { %v5491_v57 = vcombine.high %v5489_v54, %v5489_v54  ;;  %v5498_v39 = vrot.slane %v5482_v45, %v17550_v4  ;;  %v5505_v49 = vrot.slane %v5489_v54, %v17550_v4  ;;  %v3178_v56 = vmax.f32 %v3084_v18, 0.0 }
 0x354   : > { %v14397_v40 = vmax.f32 %v14395_v21, %v14396_v22  ;;  %v14403_v35 = vrot.slane %v14402_v30, 2  ;;  %v10769_v47 = vcombine.low %v10761_v32, %v10768_v13  ;;  %v5512_v61 = vrot.slane %v5490_v37, %v17550_v4 }
 0x355   : > { %v5519_v63 = vrot.slane %v5491_v57, %v17550_v4  ;;  %v5520_v17 = vcombine.high %v5498_v39, %v5498_v39  ;;  %v5521_v12 = vcombine.high %v5505_v49, %v5505_v49  ;;  %v5622_v6 = vcombine.high %v3178_v56, %v3178_v56 }
 0x356   : > { %v14398_v33 = vrot.slane %v14397_v40, 1  ;;  %v14404_v14 = vmax.f32 %v14402_v30, %v14403_v35  ;;  %v14428_v59 = vsel %vm13923_vm1, %v10769_v47, -inf  ;;  %v5522_v29 = vcombine.high %v5512_v61, %v5512_v61 }
 0x357   : > { %v14429_v3 = vrot.slane %v14428_v59, 4  ;;  %v5523_v31 = vcombine.high %v5519_v63, %v5519_v63  ;;  %v10654_v8 = vcombine.low %v5498_v39, %v5512_v61  ;;  %v10675_v27 = vrot.slane %v5520_v17, %v17550_v4 }
 0x358   : > { %v14399_v21 = vmax.f32 %v14397_v40, %v14398_v33  ;;  %v14405_v45 = vrot.slane %v14404_v14, 1  ;;  %v10692_v13 = vcombine.low %v5522_v29, %v5505_v49  ;;  %v10693_v54 = vcombine.low %v5519_v63, %v5521_v12 }
 0x359   : > { %v14430_v18 = vmax.f32 %v14428_v59, %v14429_v3  ;;  %v10668_v53 = vrot.slane %v10654_v8, %v17550_v4  ;;  %v10714_v22 = vrot.slane %v5523_v31, %v17550_v4  ;;  %v5572_v30 = vcombine.high %v18931_v15, %v18931_v15  ;;  %v18983_v59 = vpop.f32.mrb[62].mxu1 }
 0x35a   : > { %v14406_v32 = vmax.f32 %v14404_v14, %v14405_v45  ;;  %v15189_v37 = vsel %vm15128_vm4, %v14399_v21, %v18922_v1  ;;  %v10700_v57 = vrot.slane %v10692_v13, %v17550_v4  ;;  %v10707_v39 = vrot.slane %v10693_v54, %v17550_v4 }
 0x35b   : > { %v14431_v40 = vrot.slane %v14430_v18, 2  ;;  %v10676_v49 = vcombine.low %v18940_v20, %v10668_v53  ;;  %v10690_v35 = vrot.slane %v10675_v27, %v17550_v4  ;;  %v5629_v47 = vrot.slane %v3178_v56, %v17550_v4  ;;  %v18985_v20 = vpop.f32.mrb[60].mxu0 }
 0x35c   : > { %v15190_v61 = vsel %vm15130_vm5, %v14406_v32, %v15189_v37  ;;  %v10715_v63 = vcombine.low %v10700_v57, %v10707_v39  ;;  %v5636_v15 = vrot.slane %v5622_v6, %v17550_v4  ;;  %v3083_v17 = vadd.f32 %v18785_v42, %v16513_v16 }
 0x35d   : > { %v14432_v12 = vmax.f32 %v14430_v18, %v14431_v40  ;;  %v10683_v1 = vrot.slane %v10676_v49, %v17550_v4  ;;  %v18981_v33 = vsel %vm15132_vm6, %v14413_v43, %v15190_v61  ;;  %v5637_v14 = vcombine.high %v5629_v47, %v5629_v47 }
 0x35e   : > { %v10722_v56 = vrot.slane %v10715_v63, %v17550_v4  ;;  %v10729_v29 = vrot.slane %v10714_v22, %v17550_v4  ;;  %v5638_v3 = vcombine.high %v5636_v15, %v5636_v15  ;;  %v5645_v6 = vrot.slane %v5629_v47, %v17550_v4 }
 0x35f   : > { %v10691_v31 = vcombine.low %v10683_v1, %v10690_v35  ;;  %v5652_v16 = vrot.slane %v5636_v15, %v17550_v4  ;;  %v5659_v8 = vrot.slane %v5637_v14, %v17550_v4  ;;  %v3177_v27 = vmax.f32 %v3083_v17, 0.0 }
 0x360   : > { %v14433_v43 = vrot.slane %v14432_v12, 1  ;;  %v10730_v21 = vcombine.low %v10722_v56, %v10729_v29  ;;  %v5666_v45 = vrot.slane %v5638_v3, %v17550_v4  ;;  %v5667_v13 = vcombine.high %v5645_v6, %v5645_v6 }
 0x361   : > { %v14414_v54 = vsel %vm13923_vm1, %v10691_v31, -inf  ;;  %v5669_v18 = vcombine.high %v5659_v8, %v5659_v8  ;;  %v5573_v53 = vcombine.high %v3177_v27, %v3177_v27  ;;  %v10778_v22 = vrot.slane %v18946_v36, %v17550_v4 }
 0x362   : > { %v14415_v32 = vrot.slane %v14414_v54, 4  ;;  %v14421_v37 = vsel %vm13923_vm1, %v10730_v21, -inf  ;;  %v10849_v57 = vcombine.low %v5659_v8, %v5667_v13  ;;  %v10887_v39 = vcombine.low %v5652_v16, %v5666_v45 }
 0x363   : > { %v14422_v40 = vrot.slane %v14421_v37, 4  ;;  %v18998_v49 = vrot.slane %v5669_v18, %v17550_v4  ;;  %v15711_v35 = vcombine.high %v5652_v16, %v5666_v45  ;;  %v5580_v47 = vrot.slane %v3177_v27, %v17550_v4 }
 0x364   : > { %v19001_v61 = vmax.f32 %v14432_v12, %v14433_v43  ;;  %v14416_v63 = vmax.f32 %v14414_v54, %v14415_v32  ;;  %v10863_v15 = vrot.slane %v10849_v57, %v17550_v4  ;;  %v5587_v17 = vrot.slane %v5573_v53, %v17550_v4 }
 0x365   : > { %v14423_v36 = vmax.f32 %v14421_v37, %v14422_v40  ;;  %v10885_v1 = vrot.slane %v18998_v49, %v17550_v4  ;;  %v19008_v14 = vrot.slane %v10887_v39, %v17550_v4  ;;  %v5588_v56 = vcombine.high %v5580_v47, %v5580_v47 }
 0x366   : > { %v14417_v29 = vrot.slane %v14416_v63, 2  ;;  %v5589_v3 = vcombine.high %v5587_v17, %v5587_v17  ;;  %v5596_v31 = vrot.slane %v5580_v47, %v17550_v4  ;;  %v5603_v12 = vrot.slane %v5587_v17, %v17550_v4 }
 0x367   : > { %v14424_v16 = vrot.slane %v14423_v36, 2  ;;  %v10902_v8 = vrot.slane %v15711_v35, %v17550_v4  ;;  %v5610_v27 = vrot.slane %v5588_v56, %v17550_v4  ;;  %v16514_v43 = vadd.f32 %v18603_v19, %v18541_v7  ;;  %v19024_v56 = vpop.f32.mrb[63].mxu1 }
 0x368   : > { %v14418_v21 = vmax.f32 %v14416_v63, %v14417_v29  ;;  %v5617_v45 = vrot.slane %v5589_v3, %v17550_v4  ;;  %v5619_v13 = vcombine.high %v5603_v12, %v5603_v12  ;;  %v10771_v54 = vcombine.low %v5572_v30, %v5596_v31  ;;  %v19026_v29 = vpop.f32.mrb[61].mxu0 }
 0x369   : > { %v14425_v18 = vmax.f32 %v14423_v36, %v14424_v16  ;;  %v10792_v53 = vrot.slane %v5610_v27, %v17550_v4  ;;  %v15710_v32 = vcombine.high %v5596_v31, %v5610_v27  ;;  %v3086_v37 = vadd.f32 %v18785_v42, %v16514_v43 }
 0x36a   : > { %v14419_v57 = vrot.slane %v14418_v21, 1  ;;  %v5621_v39 = vcombine.high %v5617_v45, %v5617_v45  ;;  %v10785_v40 = vrot.slane %v10771_v54, %v17550_v4  ;;  %v10810_v49 = vcombine.low %v5603_v12, %v5617_v45 }
 0x36b   : > { %v14426_v35 = vrot.slane %v14425_v18, 1  ;;  %v10910_v47 = vcombine.low %v19008_v14, %v10902_v8  ;;  %v10817_v7 = vrot.slane %v15710_v32, %v17550_v4  ;;  %v10831_v19 = vrot.slane %v5619_v13, %v17550_v4 }
 0x36c   : > { %v14420_v63 = vmax.f32 %v14418_v21, %v14419_v57  ;;  %v10793_v30 = vcombine.low %v10778_v22, %v10785_v40  ;;  %v10824_v17 = vrot.slane %v10810_v49, %v17550_v4  ;;  %v10848_v36 = vcombine.low %v5621_v39, %v5645_v6 }
 0x36d   : > { %v14427_v3 = vmax.f32 %v14425_v18, %v14426_v35  ;;  %v10807_v31 = vrot.slane %v10792_v53, %v17550_v4  ;;  %v3180_v12 = vmax.f32 %v3086_v37, 0.0  ;;  %v16515_v14 = vadd.f32 %v18641_v34, %v18581_v60 }
 0x36e   : > { %v15192_v16 = vsel %vm15134_vm7, %v14420_v63, %v18981_v33  ;;  %v10800_v22 = vrot.slane %v10793_v30, %v17550_v4  ;;  %v10832_v8 = vcombine.low %v10817_v7, %v10824_v17  ;;  %v10856_v27 = vrot.slane %v10848_v36, %v17550_v4  ;;  %v19056_v36 = vpop.f32.mrb[64].mxu1 }
 0x36f   : > { %v15193_v6 = vsel %vm15136_vm8, %v14427_v3, %v15192_v16  ;;  %v5720_v43 = vcombine.high %v3180_v12, %v3180_v12  ;;  %v5727_v21 = vrot.slane %v3180_v12, %v17550_v4  ;;  %v3085_v45 = vadd.f32 %v18785_v42, %v16515_v14  ;;  %v19058_v3 = vpop.f32.mrb[62].mxu0 }
 0x370   : > { %15290 = vst.msk [vmem:[%s17767_s24 + $0x40] sm:$0xff] %vm15281_vm9, %v15193_v6  ;;  %v10808_v13 = vcombine.low %v10800_v22, %v10807_v31  ;;  %v10839_v60 = vrot.slane %v10832_v8, %v17550_v4  ;;  %v10846_v34 = vrot.slane %v10831_v19, %v17550_v4  ;;  %v10871_v33 = vcombine.low %v10856_v27, %v10863_v15 }
 0x371   : > { %v5734_v54 = vrot.slane %v5720_v43, %v17550_v4  ;;  %v5735_v18 = vcombine.high %v5727_v21, %v5727_v21  ;;  %v5743_v53 = vrot.slane %v5727_v21, %v17550_v4  ;;  %v3179_v32 = vmax.f32 %v3085_v45, 0.0 }
 0x372   : > { %v10847_v37 = vcombine.low %v10839_v60, %v10846_v34  ;;  %v10878_v57 = vrot.slane %v10871_v33, %v17550_v4  ;;  %v14435_v39 = vsel %vm13923_vm1, %v10808_v13, -inf  ;;  %v19048_v40 = vadd.f32 %v18675_v41, %v18601_v9 }
 0x373   : > { %v14436_v49 = vrot.slane %v14435_v39, 4  ;;  %v5736_v35 = vcombine.high %v5734_v54, %v5734_v54  ;;  %v5750_v7 = vrot.slane %v5734_v54, %v17550_v4  ;;  %v5757_v15 = vrot.slane %v5735_v18, %v17550_v4 }
 0x374   : > { %v10886_v19 = vcombine.low %v10878_v57, %v10885_v1  ;;  %v14442_v63 = vsel %vm13923_vm1, %v10847_v37, -inf  ;;  %v5765_v30 = vcombine.high %v5743_v53, %v5743_v53  ;;  %v19054_v17 = vrot.slane %v10910_v47, %v17550_v4 }
 0x375   : > { %v14437_v31 = vmax.f32 %v14435_v39, %v14436_v49  ;;  %v14443_v9 = vrot.slane %v14442_v63, 4  ;;  %v5764_v41 = vrot.slane %v5736_v35, %v17550_v4  ;;  %v5766_v12 = vcombine.high %v5750_v7, %v5750_v7 }
 0x376   : > { %v14449_v14 = vsel %vm13923_vm1, %v10886_v19, -inf  ;;  %v5767_v16 = vcombine.high %v5757_v15, %v5757_v15  ;;  %v10966_v22 = vcombine.low %v5743_v53, %v5757_v15  ;;  %v5671_v1 = vcombine.high %v3179_v32, %v3179_v32 }
 0x377   : > { %v14438_v8 = vrot.slane %v14437_v31, 2  ;;  %v14444_v27 = vmax.f32 %v14442_v63, %v14443_v9  ;;  %v14450_v6 = vrot.slane %v14449_v14, 4  ;;  %v5768_v43 = vcombine.high %v5764_v41, %v5764_v41 }
 0x378   : > { %v19063_v47 = vrot.slane %v10966_v22, %v17550_v4  ;;  %v19066_v21 = vrot.slane %v5765_v30, %v17550_v4  ;;  %v11004_v45 = vcombine.low %v5767_v16, %v5750_v7  ;;  %v11005_v13 = vcombine.low %v5764_v41, %v5766_v12 }
 0x379   : > { %v14439_v60 = vmax.f32 %v14437_v31, %v14438_v8  ;;  %v14445_v34 = vrot.slane %v14444_v27, 2  ;;  %v14451_v33 = vmax.f32 %v14449_v14, %v14450_v6  ;;  %v11026_v54 = vrot.slane %v5768_v43, %v17550_v4  ;;  %v19076_v14 = vpop.f32.mrb[65].mxu1 }
 0x37a   : > { %v11012_v18 = vrot.slane %v11004_v45, %v17550_v4  ;;  %v11019_v53 = vrot.slane %v11005_v13, %v17550_v4  ;;  %v5678_v37 = vrot.slane %v3179_v32, %v17550_v4  ;;  %v5685_v57 = vrot.slane %v5671_v1, %v17550_v4  ;;  %v19078_v32 = vpop.f32.mrb[63].mxu0 }
 0x37b   : > { %v14440_v39 = vrot.slane %v14439_v60, 1  ;;  %v14446_v49 = vmax.f32 %v14444_v27, %v14445_v34  ;;  %v14452_v35 = vrot.slane %v14451_v33, 2  ;;  %v11041_v15 = vrot.slane %v11026_v54, %v17550_v4 }
 0x37c   : > { %v11027_v7 = vcombine.low %v11012_v18, %v11019_v53  ;;  %v5686_v19 = vcombine.high %v5678_v37, %v5678_v37  ;;  %v5687_v63 = vcombine.high %v5685_v57, %v5685_v57  ;;  %v5694_v30 = vrot.slane %v5678_v37, %v17550_v4 }
 0x37d   : > { %v14441_v31 = vmax.f32 %v14439_v60, %v14440_v39  ;;  %v14447_v9 = vrot.slane %v14446_v49, 1  ;;  %v14453_v41 = vmax.f32 %v14451_v33, %v14452_v35  ;;  %v5701_v12 = vrot.slane %v5685_v57, %v17550_v4 }
 0x37e   : > { %v11034_v16 = vrot.slane %v11027_v7, %v17550_v4  ;;  %v5708_v22 = vrot.slane %v5686_v19, %v17550_v4  ;;  %v5715_v1 = vrot.slane %v5687_v63, %v17550_v4  ;;  %v5716_v8 = vcombine.high %v5694_v30, %v5694_v30 }
 0x37f   : > { %v14448_v27 = vmax.f32 %v14446_v49, %v14447_v9  ;;  %v14454_v6 = vrot.slane %v14453_v41, 1  ;;  %v15194_v43 = vsel %vm15124_vm2, %v14441_v31, %v19001_v61  ;;  %v10909_v45 = vrot.slane %v5694_v30, %v17550_v4 }
 0x380   : > { %v11002_v13 = vrot.slane %v19066_v21, %v17550_v4  ;;  %v11042_v60 = vcombine.low %v11034_v16, %v11041_v15  ;;  %v5718_v34 = vcombine.high %v5708_v22, %v5708_v22  ;;  %v10926_v33 = vcombine.low %v5708_v22, %v5716_v8 }
 0x381   : > { %v14455_v54 = vmax.f32 %v14453_v41, %v14454_v6  ;;  %v15195_v18 = vsel %vm15126_vm3, %v14448_v27, %v15194_v43  ;;  %v10924_v53 = vrot.slane %v10909_v45, %v17550_v4  ;;  %v15712_v37 = vcombine.high %v5701_v12, %v5715_v1 }
 0x382   : > { %v14477_v57 = vsel %vm13923_vm1, %v11042_v60, -inf  ;;  %v10927_v39 = vcombine.low %v5718_v34, %v5701_v12  ;;  %v10934_v49 = vrot.slane %v10926_v33, %v17550_v4  ;;  %v10948_v61 = vrot.slane %v5715_v1, %v17550_v4 }
 0x383   : > { %v14478_v35 = vrot.slane %v14477_v57, 4  ;;  %v10925_v7 = vcombine.low %v19054_v17, %v10924_v53  ;;  %v10973_v21 = vrot.slane %v15712_v37, %v17550_v4  ;;  %v15196_v15 = vsel %vm15128_vm4, %v14455_v54, %v15195_v18 }
 0x384   : > { %v10941_v19 = vrot.slane %v10927_v39, %v17550_v4  ;;  %v3088_v63 = vadd.f32 %v18785_v42, %v19048_v40  ;;  %v16517_v30 = vadd.f32 %v18717_v58, %v18639_v11  ;;  %v16518_v31 = vadd.f32 %v18746_v38, %v18673_v28  ;;  %v19111_v58 = vpop.f32.mrb[66].mxu1  ;;  %v19113_v38 = vpop.f32.mrb[64].mxu0 }
 0x385   : > { %v14479_v9 = vmax.f32 %v14477_v57, %v14478_v35  ;;  %v10988_v41 = vcombine.low %v10973_v21, %v19063_v47  ;;  %v14456_v17 = vsel %vm13923_vm1, %v10925_v7, -inf  ;;  %v16519_v12 = vadd.f32 %v18768_v2, %v18715_v52 }
 0x386   : > { %v10949_v16 = vcombine.low %v10934_v49, %v10941_v19  ;;  %v14457_v22 = vrot.slane %v14456_v17, 4  ;;  %v3182_v1 = vmax.f32 %v3088_v63, 0.0  ;;  %v3087_v8 = vadd.f32 %v18785_v42, %v16517_v30 }
 0x387   : > { %v14480_v40 = vrot.slane %v14479_v9, 2  ;;  %v10963_v27 = vrot.slane %v10948_v61, %v17550_v4  ;;  %v10995_v11 = vrot.slane %v10988_v41, %v17550_v4  ;;  %v3090_v28 = vadd.f32 %v18785_v42, %v16518_v31 }
 0x388   : > { %v10956_v47 = vrot.slane %v10949_v16, %v17550_v4  ;;  %v14458_v6 = vmax.f32 %v14456_v17, %v14457_v22  ;;  %v5818_v52 = vcombine.high %v3182_v1, %v3182_v1  ;;  %v5825_v2 = vrot.slane %v3182_v1, %v17550_v4 }
 0x389   : > { %v14481_v43 = vmax.f32 %v14479_v9, %v14480_v40  ;;  %v11003_v45 = vcombine.low %v10995_v11, %v11002_v13  ;;  %v3181_v60 = vmax.f32 %v3087_v8, 0.0  ;;  %v19118_v34 = vadd.f32 %v18785_v42, %v16519_v12 }
 0x38a   : > { %v10964_v33 = vcombine.low %v10956_v47, %v10963_v27  ;;  %v14459_v54 = vrot.slane %v14458_v6, 2  ;;  %v5832_v18 = vrot.slane %v5818_v52, %v17550_v4  ;;  %v5833_v53 = vcombine.high %v5825_v2, %v5825_v2 }
 0x38b   : > { %v14482_v37 = vrot.slane %v14481_v43, 1  ;;  %v14470_v57 = vsel %vm13923_vm1, %v11003_v45, -inf  ;;  %v5769_v39 = vcombine.high %v3181_v60, %v3181_v60  ;;  %v3184_v49 = vmax.f32 %v3090_v28, 0.0 }
 0x38c   : > { %v14460_v61 = vmax.f32 %v14458_v6, %v14459_v54  ;;  %v14463_v35 = vsel %vm13923_vm1, %v10964_v33, -inf  ;;  %v14471_v7 = vrot.slane %v14470_v57, 4  ;;  %v5834_v21 = vcombine.high %v5832_v18, %v5832_v18 }
 0x38d   : > { %v14464_v13 = vrot.slane %v14463_v35, 4  ;;  %v5841_v19 = vrot.slane %v5825_v2, %v17550_v4  ;;  %v5848_v42 = vrot.slane %v5832_v18, %v17550_v4  ;;  %v5855_v63 = vrot.slane %v5833_v53, %v17550_v4 }
 0x38e   : > { %v14461_v30 = vrot.slane %v14460_v61, 1  ;;  %v14472_v31 = vmax.f32 %v14470_v57, %v14471_v7  ;;  %v19127_v9 = vrot.slane %v5834_v21, %v17550_v4  ;;  %v5776_v41 = vrot.slane %v3181_v60, %v17550_v4 }
 0x38f   : > { %v14483_v17 = vmax.f32 %v14481_v43, %v14482_v37  ;;  %v14465_v12 = vmax.f32 %v14463_v35, %v14464_v13  ;;  %v5864_v16 = vcombine.high %v5848_v42, %v5848_v42  ;;  %v15714_v22 = vcombine.high %v5841_v19, %v5855_v63  ;;  %v19143_v35 = vpop.f32.mrb[65].mxu0 }
 0x390   : > { %v14462_v1 = vmax.f32 %v14460_v61, %v14461_v30  ;;  %v14473_v8 = vrot.slane %v14472_v31, 2  ;;  %v11122_v40 = vcombine.low %v5848_v42, %v19127_v9  ;;  %v5783_v27 = vrot.slane %v5769_v39, %v17550_v4  ;;  %v19141_v61 = vpop.f32.mrb[67].mxu1 }
 0x391   : > { %v14466_v11 = vrot.slane %v14465_v12, 2  ;;  %v11104_v28 = vrot.slane %v5855_v63, %v17550_v4  ;;  %v11129_v47 = vrot.slane %v15714_v22, %v17550_v4  ;;  %v11143_v6 = vrot.slane %v5864_v16, %v17550_v4 }
 0x392   : > { %v14474_v52 = vmax.f32 %v14472_v31, %v14473_v8  ;;  %v15197_v2 = vsel %vm15130_vm5, %v14462_v1, %v15196_v15  ;;  %v11136_v43 = vrot.slane %v11122_v40, %v17550_v4  ;;  %v5784_v45 = vcombine.high %v5776_v41, %v5776_v41 }
 0x393   : > { %v14467_v60 = vmax.f32 %v14465_v12, %v14466_v11  ;;  %v11158_v33 = vrot.slane %v11143_v6, %v17550_v4  ;;  %v5785_v54 = vcombine.high %v5783_v27, %v5783_v27  ;;  %v5792_v18 = vrot.slane %v5776_v41, %v17550_v4 }
 0x394   : > { %v14475_v53 = vrot.slane %v14474_v52, 1  ;;  %v11144_v37 = vcombine.low %v11129_v47, %v11136_v43  ;;  %v5799_v57 = vrot.slane %v5783_v27, %v17550_v4  ;;  %v5806_v39 = vrot.slane %v5784_v45, %v17550_v4 }
 0x395   : > { %v14468_v15 = vrot.slane %v14467_v60, 1  ;;  %v5813_v7 = vrot.slane %v5785_v54, %v17550_v4  ;;  %v5916_v21 = vcombine.high %v3184_v49, %v3184_v49  ;;  %v5923_v13 = vrot.slane %v3184_v49, %v17550_v4 }
 0x396   : > { %v14476_v42 = vmax.f32 %v14474_v52, %v14475_v53  ;;  %v11151_v63 = vrot.slane %v11144_v37, %v17550_v4  ;;  %v5815_v30 = vcombine.high %v5799_v57, %v5799_v57  ;;  %v11043_v31 = vcombine.low %v5792_v18, %v5806_v39 }
 0x397   : > { %v14469_v41 = vmax.f32 %v14467_v60, %v14468_v15  ;;  %v5817_v12 = vcombine.high %v5813_v7, %v5813_v7  ;;  %v15713_v16 = vcombine.high %v5792_v18, %v5806_v39  ;;  %v11065_v22 = vrot.slane %v5799_v57, %v17550_v4  ;;  %v19164_v57 = vpop.f32.mrb[68].mxu1  ;;  %v19166_v39 = vpop.f32.mrb[66].mxu0 }
 0x398   : > { %v11159_v1 = vcombine.low %v11151_v63, %v11158_v33  ;;  %v11051_v8 = vrot.slane %v11043_v31, %v17550_v4  ;;  %v11082_v40 = vcombine.low %v5813_v7, %v5815_v30  ;;  %v5930_v27 = vrot.slane %v5916_v21, %v17550_v4 }
 0x399   : > { %v15198_v11 = vsel %vm15132_vm6, %v14469_v41, %v15197_v2  ;;  %v11119_v49 = vrot.slane %v11104_v28, %v17550_v4  ;;  %v11058_v47 = vrot.slane %v15713_v16, %v17550_v4  ;;  %v11083_v6 = vcombine.low %v5817_v12, %v5841_v19 }
 0x39a   : > { %v15199_v52 = vsel %vm15134_vm7, %v14476_v42, %v15198_v11  ;;  %v14498_v43 = vsel %vm13923_vm1, %v11159_v1, -inf  ;;  %v11090_v45 = vrot.slane %v11082_v40, %v17550_v4  ;;  %v5931_v60 = vcombine.high %v5923_v13, %v5923_v13 }
 0x39b   : > { %v15200_v33 = vsel %vm15136_vm8, %v14483_v17, %v15199_v52  ;;  %v14499_v54 = vrot.slane %v14498_v43, 4  ;;  %v11066_v18 = vcombine.low %v11051_v8, %v11058_v47  ;;  %v11097_v53 = vrot.slane %v11083_v6, %v17550_v4 }
 0x39c   : > { %15291 = vst.msk [vmem:[%s17767_s24 + $0x48] sm:$0xff] %vm15281_vm9, %v15200_v33  ;;  %v11080_v28 = vrot.slane %v11065_v22, %v17550_v4  ;;  %v5932_v2 = vcombine.high %v5930_v27, %v5930_v27  ;;  %v5939_v19 = vrot.slane %v5923_v13, %v17550_v4  ;;  %v5953_v37 = vrot.slane %v5931_v60, %v17550_v4 }
 0x39d   : > { %v14500_v15 = vmax.f32 %v14498_v43, %v14499_v54  ;;  %v11073_v17 = vrot.slane %v11066_v18, %v17550_v4  ;;  %v11105_v7 = vcombine.low %v11090_v45, %v11097_v53  ;;  %v19170_v21 = vrot.slane %v5930_v27, %v17550_v4  ;;  %v19195_v18 = vpop.f32.mrb[67].mxu0 }
 0x39e   : > { %v19173_v42 = vrot.slane %v5932_v2, %v17550_v4  ;;  %v5961_v63 = vcombine.high %v5939_v19, %v5939_v19  ;;  %v5963_v30 = vcombine.high %v5953_v37, %v5953_v37  ;;  %v11221_v13 = vrot.slane %v5939_v19, %v17550_v4 }
 0x39f   : > { %v14501_v31 = vrot.slane %v14500_v15, 2  ;;  %v11081_v41 = vcombine.low %v11073_v17, %v11080_v28  ;;  %v11112_v12 = vrot.slane %v11105_v7, %v17550_v4  ;;  %v3183_v16 = vmax.f32 %v19118_v34, 0.0 }
 0x3a0   : > { %v11238_v22 = vcombine.low %v5953_v37, %v5961_v63  ;;  %v11239_v1 = vcombine.low %v5963_v30, %v19170_v21  ;;  %v11260_v8 = vrot.slane %v19173_v42, %v17550_v4  ;;  %v5866_v40 = vcombine.high %v19127_v9, %v19127_v9 }
 0x3a1   : > { %v14502_v27 = vmax.f32 %v14500_v15, %v14501_v31  ;;  %v11120_v11 = vcombine.low %v11112_v12, %v11119_v49  ;;  %v14484_v47 = vsel %vm13923_vm1, %v11081_v41, -inf  ;;  %v19185_v6 = vrot.slane %v11221_v13, %v17550_v4  ;;  %v19193_v49 = vpop.f32.mrb[69].mxu1 }
 0x3a2   : > { %v14485_v52 = vrot.slane %v14484_v47, 4  ;;  %v11246_v43 = vrot.slane %v11238_v22, %v17550_v4  ;;  %v11253_v34 = vrot.slane %v11239_v1, %v17550_v4  ;;  %v15716_v45 = vcombine.high %v19170_v21, %v19173_v42 }
 0x3a3   : > { %v14503_v60 = vrot.slane %v14502_v27, 1  ;;  %v14491_v33 = vsel %vm13923_vm1, %v11120_v11, -inf  ;;  %v11275_v9 = vrot.slane %v11260_v8, %v17550_v4  ;;  %v5867_v54 = vcombine.high %v3183_v16, %v3183_v16 }
 0x3a4   : > { %v14486_v53 = vmax.f32 %v14484_v47, %v14485_v52  ;;  %v14492_v28 = vrot.slane %v14491_v33, 4  ;;  %v11261_v2 = vcombine.low %v11246_v43, %v11253_v34  ;;  %v5874_v19 = vrot.slane %v3183_v16, %v17550_v4  ;;  %v19206_v16 = vld [vmem:[#allocation4] ss:$0 sm:$0xff] }
 0x3a5   : > { %v14504_v37 = vmax.f32 %v14502_v27, %v14503_v60  ;;  %v5881_v15 = vrot.slane %v5867_v54, %v17550_v4  ;;  %v16520_v17 = vadd.f32 %v18808_v51, %v18744_v48  ;;  %v16521_v7 = vadd.f32 %v18829_v5, %v18766_v55 }
 0x3a6   : > { %v14487_v63 = vrot.slane %v14486_v53, 2  ;;  %v14493_v30 = vmax.f32 %v14491_v33, %v14492_v28  ;;  %v11268_v13 = vrot.slane %v11261_v2, %v17550_v4  ;;  %v5882_v31 = vcombine.high %v5874_v19, %v5874_v19 }
 0x3a7   : > { %v5883_v41 = vcombine.high %v5881_v15, %v5881_v15  ;;  %v5890_v12 = vrot.slane %v5874_v19, %v17550_v4  ;;  %v5897_v22 = vrot.slane %v5881_v15, %v17550_v4  ;;  %v3092_v1 = vadd.f32 %v19206_v16, %v16520_v17 }
 0x3a8   : > { %v14488_v8 = vmax.f32 %v14486_v53, %v14487_v63  ;;  %v14494_v27 = vrot.slane %v14493_v30, 2  ;;  %v11276_v48 = vcombine.low %v11268_v13, %v11275_v9  ;;  %v5904_v51 = vrot.slane %v5882_v31, %v17550_v4 }
 0x3a9   : > { %v5911_v55 = vrot.slane %v5883_v41, %v17550_v4  ;;  %v5912_v5 = vcombine.high %v5890_v12, %v5890_v12  ;;  %v11160_v11 = vcombine.low %v5866_v40, %v5890_v12  ;;  %v3186_v47 = vmax.f32 %v3092_v1, 0.0 }
 0x3aa   : > { %v14489_v52 = vrot.slane %v14488_v8, 1  ;;  %v14495_v43 = vmax.f32 %v14493_v30, %v14494_v27  ;;  %v14519_v34 = vsel %vm13923_vm1, %v11276_v48, -inf  ;;  %v5914_v60 = vcombine.high %v5904_v51, %v5904_v51 }
 0x3ab   : > { %v14520_v33 = vrot.slane %v14519_v34, 4  ;;  %v11161_v54 = vcombine.low %v5904_v51, %v5912_v5  ;;  %v11168_v28 = vrot.slane %v11160_v11, %v17550_v4  ;;  %v11199_v2 = vcombine.low %v5897_v22, %v5911_v55  ;;  %v19223_v11 = vpop.f32.mrb[70].mxu1 }
 0x3ac   : > { %v14490_v53 = vmax.f32 %v14488_v8, %v14489_v52  ;;  %v14496_v19 = vrot.slane %v14495_v43, 1  ;;  %v11182_v9 = vrot.slane %v5914_v60, %v17550_v4  ;;  %v15715_v15 = vcombine.high %v5897_v22, %v5911_v55  ;;  %v19225_v52 = vpop.f32.mrb[68].mxu0 }
 0x3ad   : > { %v14521_v17 = vmax.f32 %v14519_v34, %v14520_v33  ;;  %v11175_v63 = vrot.slane %v11161_v54, %v17550_v4  ;;  %v11207_v40 = vrot.slane %v11199_v2, %v17550_v4  ;;  %v6014_v13 = vcombine.high %v3186_v47, %v3186_v47 }
 0x3ae   : > { %v14497_v30 = vmax.f32 %v14495_v43, %v14496_v19  ;;  %v11197_v31 = vrot.slane %v11182_v9, %v17550_v4  ;;  %v11214_v41 = vrot.slane %v15715_v15, %v17550_v4  ;;  %v6021_v12 = vrot.slane %v3186_v47, %v17550_v4 }
 0x3af   : > { %v14522_v1 = vrot.slane %v14521_v17, 2  ;;  %v11183_v27 = vcombine.low %v11168_v28, %v11175_v63  ;;  %v6028_v8 = vrot.slane %v6014_v13, %v17550_v4  ;;  %v3091_v48 = vadd.f32 %v19206_v16, %v16521_v7 }
 0x3b0   : > { %v15201_v22 = vsel %vm15124_vm2, %v14497_v30, %v14490_v53  ;;  %v11222_v51 = vcombine.low %v11207_v40, %v11214_v41  ;;  %v6029_v55 = vcombine.high %v6021_v12, %v6021_v12  ;;  %v6037_v5 = vrot.slane %v6021_v12, %v17550_v4 }
 0x3b1   : > { %v19228_v43 = vsel %vm15126_vm3, %v14504_v37, %v15201_v22  ;;  %v14523_v47 = vmax.f32 %v14521_v17, %v14522_v1  ;;  %v11190_v34 = vrot.slane %v11183_v27, %v17550_v4  ;;  %v6030_v60 = vcombine.high %v6028_v8, %v6028_v8 }
 0x3b2   : > { %v11229_v33 = vrot.slane %v11222_v51, %v17550_v4  ;;  %v6044_v7 = vrot.slane %v6028_v8, %v17550_v4  ;;  %v6051_v54 = vrot.slane %v6029_v55, %v17550_v4  ;;  %v3185_v28 = vmax.f32 %v3091_v48, 0.0 }
 0x3b3   : > { %v19238_v2 = vrot.slane %v15716_v45, %v17550_v4  ;;  %v14524_v53 = vrot.slane %v14523_v47, 1  ;;  %v11198_v37 = vcombine.low %v11190_v34, %v11197_v31  ;;  %v16522_v19 = vadd.f32 %v18860_v24, %v18806_v23 }
 0x3b4   : > { %v11237_v9 = vcombine.low %v11229_v33, %v19185_v6  ;;  %v19244_v15 = vrot.slane %v6030_v60, %v17550_v4  ;;  %v11355_v17 = vcombine.low %v6037_v5, %v6051_v54  ;;  %v15717_v63 = vcombine.high %v6037_v5, %v6051_v54 }
 0x3b5   : > { %v14505_v40 = vsel %vm13923_vm1, %v11198_v37, -inf  ;;  %v6060_v13 = vcombine.high %v6044_v7, %v6044_v7  ;;  %v11377_v30 = vrot.slane %v6044_v7, %v17550_v4  ;;  %v5965_v21 = vcombine.high %v3185_v28, %v3185_v28  ;;  %v19261_v37 = vpop.f32.mrb[71].mxu1 }
 0x3b6   : > { %v14506_v42 = vrot.slane %v14505_v40, 4  ;;  %v14512_v45 = vsel %vm13923_vm1, %v11237_v9, -inf  ;;  %v11363_v31 = vrot.slane %v11355_v17, %v17550_v4  ;;  %v11370_v23 = vrot.slane %v15717_v63, %v17550_v4 }
 0x3b7   : > { %v14525_v24 = vmax.f32 %v14523_v47, %v14524_v53  ;;  %v14513_v6 = vrot.slane %v14512_v45, 4  ;;  %v11392_v41 = vrot.slane %v11377_v30, %v17550_v4  ;;  %v5972_v12 = vrot.slane %v3185_v28, %v17550_v4 }
 0x3b8   : > { %v14507_v1 = vmax.f32 %v14505_v40, %v14506_v42  ;;  %v11378_v27 = vcombine.low %v11363_v31, %v11370_v23  ;;  %v5979_v8 = vrot.slane %v5965_v21, %v17550_v4  ;;  %v3094_v48 = vadd.f32 %v19206_v16, %v16522_v19  ;;  %v19263_v19 = vpop.f32.mrb[69].mxu0 }
 0x3b9   : > { %v14514_v22 = vmax.f32 %v14512_v45, %v14513_v6  ;;  %v5980_v51 = vcombine.high %v5972_v12, %v5972_v12  ;;  %v5988_v55 = vrot.slane %v5972_v12, %v17550_v4  ;;  %v16523_v5 = vadd.f32 %v18891_v44, %v18827_v46 }
 0x3ba   : > { %v14508_v34 = vrot.slane %v14507_v1, 2  ;;  %v11385_v47 = vrot.slane %v11378_v27, %v17550_v4  ;;  %v5981_v60 = vcombine.high %v5979_v8, %v5979_v8  ;;  %v5995_v33 = vrot.slane %v5979_v8, %v17550_v4 }
 0x3bb   : > { %v14515_v7 = vrot.slane %v14514_v22, 2  ;;  %v6002_v54 = vrot.slane %v5980_v51, %v17550_v4  ;;  %v6010_v28 = vcombine.high %v5988_v55, %v5988_v55  ;;  %v3188_v53 = vmax.f32 %v3094_v48, 0.0 }
 0x3bc   : > { %v14509_v9 = vmax.f32 %v14507_v1, %v14508_v34  ;;  %v11393_v17 = vcombine.low %v11385_v47, %v11392_v41  ;;  %v6009_v63 = vrot.slane %v5981_v60, %v17550_v4  ;;  %v6011_v46 = vcombine.high %v5995_v33, %v5995_v33 }
 0x3bd   : > { %v14516_v44 = vmax.f32 %v14514_v22, %v14515_v7  ;;  %v6012_v40 = vcombine.high %v6002_v54, %v6002_v54  ;;  %v11278_v30 = vcombine.low %v5988_v55, %v6002_v54  ;;  %v11299_v21 = vrot.slane %v6010_v28, %v17550_v4 }
 0x3be   : > { %v14510_v42 = vrot.slane %v14509_v9, 1  ;;  %v14540_v45 = vsel %vm13923_vm1, %v11393_v17, -inf  ;;  %v6013_v31 = vcombine.high %v6009_v63, %v6009_v63  ;;  %v11317_v23 = vcombine.low %v6009_v63, %v6011_v46 }
 0x3bf   : > { %v14517_v6 = vrot.slane %v14516_v44, 1  ;;  %v19269_v12 = vcombine.low %v19244_v15, %v6060_v13  ;;  %v14541_v27 = vrot.slane %v14540_v45, 4  ;;  %v11292_v41 = vrot.slane %v11278_v30, %v17550_v4 }
 0x3c0   : > { %v14511_v1 = vmax.f32 %v14509_v9, %v14510_v42  ;;  %v11316_v8 = vcombine.low %v6012_v40, %v5995_v33  ;;  %v11331_v48 = vrot.slane %v11317_v23, %v17550_v4  ;;  %v11338_v22 = vrot.slane %v6013_v31, %v17550_v4 }
 0x3c1   : > { %v14518_v51 = vmax.f32 %v14516_v44, %v14517_v6  ;;  %v14542_v55 = vmax.f32 %v14540_v45, %v14541_v27  ;;  %v11300_v34 = vcombine.low %v19238_v2, %v11292_v41  ;;  %v6112_v47 = vcombine.high %v3188_v53, %v3188_v53  ;;  %v19298_v41 = vpop.f32.mrb[72].mxu1 }
 0x3c2   : > { %v15203_v60 = vsel %vm15128_vm4, %v14511_v1, %v19228_v43  ;;  %v11314_v13 = vrot.slane %v11299_v21, %v17550_v4  ;;  %v11324_v7 = vrot.slane %v11316_v8, %v17550_v4  ;;  %v6119_v54 = vrot.slane %v3188_v53, %v17550_v4  ;;  %v19300_v1 = vpop.f32.mrb[70].mxu0 }
 0x3c3   : > { %v15204_v33 = vsel %vm15130_vm5, %v14518_v51, %v15203_v60  ;;  %v14543_v28 = vrot.slane %v14542_v55, 2  ;;  %v11307_v9 = vrot.slane %v11300_v34, %v17550_v4  ;;  %v6126_v17 = vrot.slane %v6112_v47, %v17550_v4 }
 0x3c4   : > { %v11339_v63 = vcombine.low %v11324_v7, %v11331_v48  ;;  %v19284_v2 = vsel %vm15132_vm6, %v14525_v24, %v15204_v33  ;;  %v6127_v46 = vcombine.high %v6119_v54, %v6119_v54  ;;  %v19287_v43 = vrot.slane %v6119_v54, %v17550_v4 }
 0x3c5   : > { %v14544_v44 = vmax.f32 %v14542_v55, %v14543_v28  ;;  %v11315_v40 = vcombine.low %v11307_v9, %v11314_v13  ;;  %v11353_v30 = vrot.slane %v11338_v22, %v17550_v4  ;;  %v6128_v53 = vcombine.high %v6126_v17, %v6126_v17 }
 0x3c6   : > { %v11346_v21 = vrot.slane %v11339_v63, %v17550_v4  ;;  %v6149_v42 = vrot.slane %v6127_v46, %v17550_v4  ;;  %v6157_v45 = vcombine.high %v19287_v43, %v19287_v43  ;;  %v3093_v31 = vadd.f32 %v19206_v16, %v16523_v5 }
 0x3c7   : > { %v14545_v24 = vrot.slane %v14544_v44, 1  ;;  %v14526_v23 = vsel %vm13923_vm1, %v11315_v40, -inf  ;;  %v6142_v6 = vrot.slane %v6126_v17, %v17550_v4  ;;  %v6156_v27 = vrot.slane %v6128_v53, %v17550_v4 }
 0x3c8   : > { %v11354_v8 = vcombine.low %v11346_v21, %v11353_v30  ;;  %v14527_v48 = vrot.slane %v14526_v23, 4  ;;  %v6159_v22 = vcombine.high %v6149_v42, %v6149_v42  ;;  %v19302_v51 = vcombine.low %v6149_v42, %v6157_v45 }
 0x3c9   : > { %v11511_v55 = vcombine.low %v6142_v6, %v6156_v27  ;;  %v15719_v34 = vcombine.high %v6142_v6, %v6156_v27  ;;  %v3187_v47 = vmax.f32 %v3093_v31, 0.0  ;;  %v6062_v5 = vcombine.high %v19244_v15, %v19244_v15 }
 0x3ca   : > { %v19306_v60 = vmax.f32 %v14544_v44, %v14545_v24  ;;  %v14528_v13 = vmax.f32 %v14526_v23, %v14527_v48  ;;  %v14533_v7 = vsel %vm13923_vm1, %v11354_v8, -inf  ;;  %v19310_v54 = vrot.slane %v6159_v22, %v17550_v4  ;;  %v19329_v48 = vpop.f32.mrb[73].mxu1  ;;  %v19331_v22 = vpop.f32.mrb[71].mxu0 }
 0x3cb   : > { %v14534_v33 = vrot.slane %v14533_v7, 4  ;;  %v11487_v28 = vrot.slane %v19302_v51, %v17550_v4  ;;  %v11519_v9 = vrot.slane %v11511_v55, %v17550_v4  ;;  %v6063_v17 = vcombine.high %v3187_v47, %v3187_v47 }
 0x3cc   : > { %v14529_v63 = vrot.slane %v14528_v13, 2  ;;  %v11509_v46 = vrot.slane %v19310_v54, %v17550_v4  ;;  %v11526_v15 = vrot.slane %v15719_v34, %v17550_v4  ;;  %v6070_v44 = vrot.slane %v3187_v47, %v17550_v4 }
 0x3cd   : > { %v14535_v40 = vmax.f32 %v14533_v7, %v14534_v33  ;;  %v6077_v30 = vrot.slane %v6063_v17, %v17550_v4  ;;  %v11402_v53 = vrot.slane %v19269_v12, %v17550_v4  ;;  %v16524_v21 = vadd.f32 %v18919_v10, %v18858_v62 }
 0x3ce   : > { %v14530_v42 = vmax.f32 %v14528_v13, %v14529_v63  ;;  %v6078_v45 = vcombine.high %v6070_v44, %v6070_v44  ;;  %v6086_v31 = vrot.slane %v6070_v44, %v17550_v4  ;;  %v16525_v24 = vadd.f32 %v18956_v0, %v18889_v50 }
 0x3cf   : > { %v14536_v23 = vrot.slane %v14535_v40, 2  ;;  %v6079_v6 = vcombine.high %v6077_v30, %v6077_v30  ;;  %v6093_v27 = vrot.slane %v6077_v30, %v17550_v4  ;;  %v3096_v8 = vadd.f32 %v19206_v16, %v16524_v21 }
 0x3d0   : > { %v14531_v12 = vrot.slane %v14530_v42, 1  ;;  %v6100_v62 = vrot.slane %v6078_v45, %v17550_v4  ;;  %v11395_v10 = vcombine.low %v6062_v5, %v6086_v31  ;;  %v3095_v51 = vadd.f32 %v19206_v16, %v16525_v24 }
 0x3d1   : > { %v14537_v55 = vmax.f32 %v14535_v40, %v14536_v23  ;;  %v6107_v34 = vrot.slane %v6079_v6, %v17550_v4  ;;  %v6109_v50 = vcombine.high %v6093_v27, %v6093_v27  ;;  %v3190_v0 = vmax.f32 %v3096_v8, 0.0 }
 0x3d2   : > { %v14532_v47 = vmax.f32 %v14530_v42, %v14531_v12  ;;  %v11409_v13 = vrot.slane %v11395_v10, %v17550_v4  ;;  %v11416_v7 = vrot.slane %v6100_v62, %v17550_v4  ;;  %v15718_v33 = vcombine.high %v6086_v31, %v6100_v62 }
 0x3d3   : > { %v14538_v17 = vrot.slane %v14537_v55, 1  ;;  %v6111_v63 = vcombine.high %v6107_v34, %v6107_v34  ;;  %v11434_v44 = vcombine.low %v6093_v27, %v6107_v34  ;;  %v11455_v30 = vrot.slane %v6109_v50, %v17550_v4 }
 0x3d4   : > { %v15206_v5 = vsel %vm15134_vm7, %v14532_v47, %v19284_v2  ;;  %v11534_v40 = vcombine.low %v11519_v9, %v11526_v15  ;;  %v11417_v21 = vcombine.low %v11402_v53, %v11409_v13  ;;  %v11431_v45 = vrot.slane %v11416_v7, %v17550_v4 }
 0x3d5   : > { %v14539_v24 = vmax.f32 %v14537_v55, %v14538_v17  ;;  %v11441_v42 = vrot.slane %v15718_v33, %v17550_v4  ;;  %v11448_v23 = vrot.slane %v11434_v44, %v17550_v4  ;;  %v11472_v31 = vcombine.low %v6111_v63, %v19287_v43 }
 0x3d6   : > { %v11424_v6 = vrot.slane %v11417_v21, %v17550_v4  ;;  %v6210_v27 = vcombine.high %v3190_v0, %v3190_v0  ;;  %v6217_v8 = vrot.slane %v3190_v0, %v17550_v4  ;;  %v3189_v12 = vmax.f32 %v3095_v51, 0.0  ;;  %v19364_v21 = vpop.f32.mrb[72].mxu0 }
 0x3d7   : > { %v15207_v2 = vsel %vm15136_vm8, %v14539_v24, %v15206_v5  ;;  %v11456_v62 = vcombine.low %v11441_v42, %v11448_v23  ;;  %v11470_v9 = vrot.slane %v11455_v30, %v17550_v4  ;;  %v11480_v15 = vrot.slane %v11472_v31, %v17550_v4  ;;  %v19362_v5 = vpop.f32.mrb[74].mxu1 }
 0x3d8   : > { %15292 = vst.msk [vmem:[%s17767_s24 + $0x50] sm:$0xff] %vm15281_vm9, %v15207_v2  ;;  %v11432_v53 = vcombine.low %v11424_v6, %v11431_v45  ;;  %v6224_v10 = vrot.slane %v6210_v27, %v17550_v4  ;;  %v6225_v55 = vcombine.high %v6217_v8, %v6217_v8  ;;  %v6233_v43 = vrot.slane %v6217_v8, %v17550_v4 }
 0x3d9   : > { %v11463_v34 = vrot.slane %v11456_v62, %v17550_v4  ;;  %v11495_v50 = vcombine.low %v11480_v15, %v11487_v28  ;;  %v6161_v0 = vcombine.high %v3189_v12, %v3189_v12  ;;  %v19356_v51 = vrot.slane %v11534_v40, %v17550_v4 }
 0x3da   : > { %v14547_v47 = vsel %vm13923_vm1, %v11432_v53, -inf  ;;  %v6226_v13 = vcombine.high %v6224_v10, %v6224_v10  ;;  %v6240_v7 = vrot.slane %v6224_v10, %v17550_v4  ;;  %v6247_v33 = vrot.slane %v6225_v55, %v17550_v4 }
 0x3db   : > { %v11471_v17 = vcombine.low %v11463_v34, %v11470_v9  ;;  %v11502_v63 = vrot.slane %v11495_v50, %v17550_v4  ;;  %v14548_v44 = vrot.slane %v14547_v47, 4  ;;  %v6255_v30 = vcombine.high %v6233_v43, %v6233_v43 }
 0x3dc   : > { %v6254_v28 = vrot.slane %v6226_v13, %v17550_v4  ;;  %v6256_v40 = vcombine.high %v6240_v7, %v6240_v7  ;;  %v6257_v45 = vcombine.high %v6247_v33, %v6247_v33  ;;  %v11590_v24 = vcombine.low %v6233_v43, %v6247_v33 }
 0x3dd   : > { %v11510_v42 = vcombine.low %v11502_v63, %v11509_v46  ;;  %v14549_v23 = vmax.f32 %v14547_v47, %v14548_v44  ;;  %v14554_v31 = vsel %vm13923_vm1, %v11471_v17, -inf  ;;  %v6168_v6 = vrot.slane %v3189_v12, %v17550_v4 }
 0x3de   : > { %v14555_v27 = vrot.slane %v14554_v31, 4  ;;  %v6258_v8 = vcombine.high %v6254_v28, %v6254_v28  ;;  %v19373_v2 = vrot.slane %v6255_v30, %v17550_v4  ;;  %v11628_v62 = vcombine.low %v6257_v45, %v6240_v7 }
 0x3df   : > { %v14550_v9 = vrot.slane %v14549_v23, 2  ;;  %v14561_v15 = vsel %vm13923_vm1, %v11510_v42, -inf  ;;  %v19377_v53 = vrot.slane %v11590_v24, %v17550_v4  ;;  %v11629_v10 = vcombine.low %v6254_v28, %v6256_v40 }
 0x3e0   : > { %v14556_v54 = vmax.f32 %v14554_v31, %v14555_v27  ;;  %v14562_v46 = vrot.slane %v14561_v15, 4  ;;  %v11636_v55 = vrot.slane %v11628_v62, %v17550_v4  ;;  %v11650_v43 = vrot.slane %v6258_v8, %v17550_v4 }
 0x3e1   : > { %v14551_v12 = vmax.f32 %v14549_v23, %v14550_v9  ;;  %v11643_v34 = vrot.slane %v11629_v10, %v17550_v4  ;;  %v6175_v50 = vrot.slane %v6161_v0, %v17550_v4  ;;  %v6176_v47 = vcombine.high %v6168_v6, %v6168_v6  ;;  %v19387_v23 = vpop.f32.mrb[75].mxu1  ;;  %v19389_v0 = vpop.f32.mrb[73].mxu0 }
 0x3e2   : > { %v14557_v13 = vrot.slane %v14556_v54, 2  ;;  %v14563_v7 = vmax.f32 %v14561_v15, %v14562_v46  ;;  %v11665_v33 = vrot.slane %v11650_v43, %v17550_v4  ;;  %v6184_v17 = vrot.slane %v6168_v6, %v17550_v4 }
 0x3e3   : > { %v14552_v63 = vrot.slane %v14551_v12, 1  ;;  %v11651_v44 = vcombine.low %v11636_v55, %v11643_v34  ;;  %v6177_v30 = vcombine.high %v6175_v50, %v6175_v50  ;;  %v6191_v28 = vrot.slane %v6175_v50, %v17550_v4 }
 0x3e4   : > { %v14558_v40 = vmax.f32 %v14556_v54, %v14557_v13  ;;  %v14564_v45 = vrot.slane %v14563_v7, 2  ;;  %v6198_v24 = vrot.slane %v6176_v47, %v17550_v4  ;;  %v6206_v42 = vcombine.high %v6184_v17, %v6184_v17 }
 0x3e5   : > { %v14553_v31 = vmax.f32 %v14551_v12, %v14552_v63  ;;  %v11658_v27 = vrot.slane %v11651_v44, %v17550_v4  ;;  %v6205_v8 = vrot.slane %v6177_v30, %v17550_v4  ;;  %v11533_v6 = vrot.slane %v6184_v17, %v17550_v4 }
 0x3e6   : > { %v14559_v62 = vrot.slane %v14558_v40, 1  ;;  %v14565_v9 = vmax.f32 %v14563_v7, %v14564_v45  ;;  %v6208_v15 = vcombine.high %v6198_v24, %v6198_v24  ;;  %v11550_v10 = vcombine.low %v6198_v24, %v6206_v42 }
 0x3e7   : > { %v15208_v54 = vsel %vm15124_vm2, %v14553_v31, %v19306_v60  ;;  %v11666_v46 = vcombine.low %v11658_v27, %v11665_v33  ;;  %v11548_v55 = vrot.slane %v11533_v6, %v17550_v4  ;;  %v11572_v43 = vrot.slane %v6205_v8, %v17550_v4 }
 0x3e8   : > { %v14560_v34 = vmax.f32 %v14558_v40, %v14559_v62  ;;  %v14566_v12 = vrot.slane %v14565_v9, 1  ;;  %v11551_v50 = vcombine.low %v6208_v15, %v6191_v28  ;;  %v11558_v47 = vrot.slane %v11550_v10, %v17550_v4 }
 0x3e9   : > { %v14589_v13 = vsel %vm13923_vm1, %v11666_v46, -inf  ;;  %v11549_v17 = vcombine.low %v19356_v51, %v11548_v55  ;;  %v11587_v7 = vrot.slane %v11572_v43, %v17550_v4  ;;  %v15720_v63 = vcombine.high %v6191_v28, %v6205_v8  ;;  %v19422_v46 = vpop.f32.mrb[76].mxu1  ;;  %v19424_v55 = vpop.f32.mrb[74].mxu0 }
 0x3ea   : > { %v14567_v44 = vmax.f32 %v14565_v9, %v14566_v12  ;;  %v15209_v60 = vsel %vm15126_vm3, %v14560_v34, %v15208_v54  ;;  %v14590_v33 = vrot.slane %v14589_v13, 4  ;;  %v11565_v30 = vrot.slane %v11551_v50, %v17550_v4 }
 0x3eb   : > { %v11597_v45 = vrot.slane %v15720_v63, %v17550_v4  ;;  %v14568_v40 = vsel %vm13923_vm1, %v11549_v17, -inf  ;;  %v16526_v24 = vadd.f32 %v18985_v20, %v18917_v26  ;;  %v16527_v42 = vadd.f32 %v19026_v29, %v18954_v25 }
 0x3ec   : > { %v14591_v51 = vmax.f32 %v14589_v13, %v14590_v33  ;;  %v11573_v31 = vcombine.low %v11558_v47, %v11565_v30  ;;  %v14569_v27 = vrot.slane %v14568_v40, 4  ;;  %v15210_v28 = vsel %vm15128_vm4, %v14567_v44, %v15209_v60 }
 0x3ed   : > { %v11612_v8 = vcombine.low %v11597_v45, %v19377_v53  ;;  %v3098_v6 = vadd.f32 %v19206_v16, %v16526_v24  ;;  %v3097_v62 = vadd.f32 %v19206_v16, %v16527_v42  ;;  %v16528_v9 = vadd.f32 %v19058_v3, %v18983_v59 }
 0x3ee   : > { %v14592_v15 = vrot.slane %v14591_v51, 2  ;;  %v11580_v26 = vrot.slane %v11573_v31, %v17550_v4  ;;  %v14570_v20 = vmax.f32 %v14568_v40, %v14569_v27  ;;  %v16529_v25 = vadd.f32 %v19078_v32, %v19024_v56 }
 0x3ef   : > { %v11626_v29 = vrot.slane %v19373_v2, %v17550_v4  ;;  %v11619_v10 = vrot.slane %v11612_v8, %v17550_v4  ;;  %v3192_v53 = vmax.f32 %v3098_v6, 0.0  ;;  %v3191_v54 = vmax.f32 %v3097_v62, 0.0 }
 0x3f0   : > { %v14593_v43 = vmax.f32 %v14591_v51, %v14592_v15  ;;  %v11588_v59 = vcombine.low %v11580_v26, %v11587_v7  ;;  %v14571_v3 = vrot.slane %v14570_v20, 2  ;;  %v19427_v34 = vadd.f32 %v19206_v16, %v16528_v9 }
 0x3f1   : > { %v11627_v12 = vcombine.low %v11619_v10, %v11626_v29  ;;  %v6308_v50 = vcombine.high %v3192_v53, %v3192_v53  ;;  %v6315_v56 = vrot.slane %v3192_v53, %v17550_v4  ;;  %v19431_v32 = vadd.f32 %v19206_v16, %v16529_v25 }
 0x3f2   : > { %v14572_v2 = vmax.f32 %v14570_v20, %v14571_v3  ;;  %v14575_v47 = vsel %vm13923_vm1, %v11588_v59, -inf  ;;  %v6259_v13 = vcombine.high %v3191_v54, %v3191_v54  ;;  %v6266_v17 = vrot.slane %v3191_v54, %v17550_v4  ;;  %v19446_v54 = vpop.f32.mrb[77].mxu1  ;;  %v19448_v59 = vpop.f32.mrb[75].mxu0 }
 0x3f3   : > { %v14576_v63 = vrot.slane %v14575_v47, 4  ;;  %v14582_v7 = vsel %vm13923_vm1, %v11627_v12, -inf  ;;  %v6322_v44 = vrot.slane %v6308_v50, %v17550_v4  ;;  %v6323_v60 = vcombine.high %v6315_v56, %v6315_v56 }
 0x3f4   : > { %v14594_v33 = vrot.slane %v14593_v43, 1  ;;  %v14573_v30 = vrot.slane %v14572_v2, 1  ;;  %v14583_v45 = vrot.slane %v14582_v7, 4  ;;  %v6331_v40 = vrot.slane %v6315_v56, %v17550_v4 }
 0x3f5   : > { %v14577_v24 = vmax.f32 %v14575_v47, %v14576_v63  ;;  %v6324_v42 = vcombine.high %v6322_v44, %v6322_v44  ;;  %v6338_v51 = vrot.slane %v6322_v44, %v17550_v4  ;;  %v6345_v31 = vrot.slane %v6323_v60, %v17550_v4 }
 0x3f6   : > { %v14574_v27 = vmax.f32 %v14572_v2, %v14573_v30  ;;  %v14584_v8 = vmax.f32 %v14582_v7, %v14583_v45  ;;  %v6273_v6 = vrot.slane %v6259_v13, %v17550_v4  ;;  %v6274_v62 = vcombine.high %v6266_v17, %v6266_v17 }
 0x3f7   : > { %v14578_v9 = vrot.slane %v14577_v24, 2  ;;  %v19442_v15 = vrot.slane %v6324_v42, %v17550_v4  ;;  %v6354_v26 = vcombine.high %v6338_v51, %v6338_v51  ;;  %v11728_v20 = vrot.slane %v6345_v31, %v17550_v4 }
 0x3f8   : > { %v14585_v25 = vrot.slane %v14584_v8, 2  ;;  %v15211_v29 = vsel %vm15130_vm5, %v14574_v27, %v15210_v28  ;;  %v15722_v10 = vcombine.high %v6331_v40, %v6345_v31  ;;  %v6275_v53 = vcombine.high %v6273_v6, %v6273_v6 }
 0x3f9   : > { %v14595_v3 = vmax.f32 %v14593_v43, %v14594_v33  ;;  %v14579_v12 = vmax.f32 %v14577_v24, %v14578_v9  ;;  %v11743_v50 = vrot.slane %v11728_v20, %v17550_v4  ;;  %v11746_v56 = vcombine.low %v6338_v51, %v19442_v15 }
 0x3fa   : > { %v14586_v2 = vmax.f32 %v14584_v8, %v14585_v25  ;;  %v11753_v47 = vrot.slane %v15722_v10, %v17550_v4  ;;  %v11767_v13 = vrot.slane %v6354_v26, %v17550_v4  ;;  %v6289_v63 = vrot.slane %v6273_v6, %v17550_v4 }
 0x3fb   : > { %v14580_v28 = vrot.slane %v14579_v12, 1  ;;  %v11760_v7 = vrot.slane %v11746_v56, %v17550_v4  ;;  %v6282_v44 = vrot.slane %v6266_v17, %v17550_v4  ;;  %v6296_v60 = vrot.slane %v6274_v62, %v17550_v4 }
 0x3fc   : > { %v14587_v43 = vrot.slane %v14586_v2, 1  ;;  %v6303_v33 = vrot.slane %v6275_v53, %v17550_v4  ;;  %v6305_v30 = vcombine.high %v6289_v63, %v6289_v63  ;;  %v11689_v45 = vrot.slane %v6289_v63, %v17550_v4 }
 0x3fd   : > { %v14581_v24 = vmax.f32 %v14579_v12, %v14580_v28  ;;  %v11768_v42 = vcombine.low %v11753_v47, %v11760_v7  ;;  %v11667_v51 = vcombine.low %v6282_v44, %v6296_v60  ;;  %v15721_v31 = vcombine.high %v6282_v44, %v6296_v60  ;;  %v19478_v60 = vpop.f32.mrb[78].mxu1 }
 0x3fe   : > { %v14588_v27 = vmax.f32 %v14586_v2, %v14587_v43  ;;  %v11782_v8 = vrot.slane %v11767_v13, %v17550_v4  ;;  %v6307_v6 = vcombine.high %v6303_v33, %v6303_v33  ;;  %v11706_v9 = vcombine.low %v6303_v33, %v6305_v30  ;;  %v19480_v43 = vpop.f32.mrb[76].mxu0 }
 0x3ff   : > { %v15212_v17 = vsel %vm15132_vm6, %v14581_v24, %v15211_v29  ;;  %v11775_v62 = vrot.slane %v11768_v42, %v17550_v4  ;;  %v11675_v26 = vrot.slane %v11667_v51, %v17550_v4  ;;  %v11682_v20 = vrot.slane %v15721_v31, %v17550_v4 }
 0x400   : > { %v15213_v25 = vsel %vm15134_vm7, %v14588_v27, %v15212_v17  ;;  %v11704_v10 = vrot.slane %v11689_v45, %v17550_v4  ;;  %v11707_v53 = vcombine.low %v6307_v6, %v6331_v40  ;;  %v3194_v12 = vmax.f32 %v19427_v34, 0.0 }
 0x401   : > { %v15214_v56 = vsel %vm15136_vm8, %v14595_v3, %v15213_v25  ;;  %v11783_v2 = vcombine.low %v11775_v62, %v11782_v8  ;;  %v11690_v47 = vcombine.low %v11675_v26, %v11682_v20  ;;  %v3193_v13 = vmax.f32 %v19431_v32, 0.0 }
 0x402   : > { %15293 = vst.msk [vmem:[%s17767_s24 + $0x58] sm:$0xff] %vm15281_vm9, %v15214_v56  ;;  %v11714_v29 = vrot.slane %v11706_v9, %v17550_v4  ;;  %v11721_v63 = vrot.slane %v11707_v53, %v17550_v4  ;;  %v6406_v28 = vcombine.high %v3194_v12, %v3194_v12  ;;  %v6413_v7 = vrot.slane %v3194_v12, %v17550_v4 }
 0x403   : > { %v14610_v44 = vsel %vm13923_vm1, %v11783_v2, -inf  ;;  %v11697_v40 = vrot.slane %v11690_v47, %v17550_v4  ;;  %v6357_v34 = vcombine.high %v3193_v13, %v3193_v13  ;;  %v6364_v3 = vrot.slane %v3193_v13, %v17550_v4 }
 0x404   : > { %v14611_v32 = vrot.slane %v14610_v44, 4  ;;  %v11729_v33 = vcombine.low %v11714_v29, %v11721_v63  ;;  %v6420_v30 = vrot.slane %v6406_v28, %v17550_v4  ;;  %v6421_v45 = vcombine.high %v6413_v7, %v6413_v7 }
 0x405   : > { %v11705_v24 = vcombine.low %v11697_v40, %v11704_v10  ;;  %v6429_v42 = vrot.slane %v6413_v7, %v17550_v4  ;;  %v6356_v51 = vcombine.high %v19442_v15, %v19442_v15  ;;  %v6371_v31 = vrot.slane %v6357_v34, %v17550_v4 }
 0x406   : > { %v14612_v27 = vmax.f32 %v14610_v44, %v14611_v32  ;;  %v11736_v8 = vrot.slane %v11729_v33, %v17550_v4  ;;  %v6422_v6 = vcombine.high %v6420_v30, %v6420_v30  ;;  %v6372_v9 = vcombine.high %v6364_v3, %v6364_v3 }
 0x407   : > { %v14596_v17 = vsel %vm13923_vm1, %v11705_v24, -inf  ;;  %v6443_v62 = vrot.slane %v6421_v45, %v17550_v4  ;;  %v6451_v26 = vcombine.high %v6429_v42, %v6429_v42  ;;  %v11845_v20 = vrot.slane %v6429_v42, %v17550_v4  ;;  %v19500_v45 = vpop.f32.mrb[79].mxu1  ;;  %v19502_v24 = vpop.f32.mrb[77].mxu0 }
 0x408   : > { %v14613_v25 = vrot.slane %v14612_v27, 2  ;;  %v11744_v10 = vcombine.low %v11736_v8, %v11743_v50  ;;  %v14597_v53 = vrot.slane %v14596_v17, 4  ;;  %v6450_v12 = vrot.slane %v6422_v6, %v17550_v4 }
 0x409   : > { %v6436_v15 = vrot.slane %v6420_v30, %v17550_v4  ;;  %v6453_v56 = vcombine.high %v6443_v62, %v6443_v62  ;;  %v11862_v2 = vcombine.low %v6443_v62, %v6451_v26  ;;  %v6373_v47 = vcombine.high %v6371_v31, %v6371_v31 }
 0x40a   : > { %v14614_v13 = vmax.f32 %v14612_v27, %v14613_v25  ;;  %v14598_v29 = vmax.f32 %v14596_v17, %v14597_v53  ;;  %v14603_v63 = vsel %vm13923_vm1, %v11744_v10, -inf  ;;  %v11884_v28 = vrot.slane %v6450_v12, %v17550_v4 }
 0x40b   : > { %v14604_v7 = vrot.slane %v14603_v63, 4  ;;  %v19496_v44 = vrot.slane %v11845_v20, %v17550_v4  ;;  %v11863_v40 = vcombine.low %v6453_v56, %v6436_v15  ;;  %v15724_v50 = vcombine.high %v6436_v15, %v6450_v12 }
 0x40c   : > { %v14615_v34 = vrot.slane %v14614_v13, 1  ;;  %v14599_v32 = vrot.slane %v14598_v29, 2  ;;  %v11870_v33 = vrot.slane %v11862_v2, %v17550_v4  ;;  %v6380_v30 = vrot.slane %v6364_v3, %v17550_v4 }
 0x40d   : > { %v14605_v42 = vmax.f32 %v14603_v63, %v14604_v7  ;;  %v11877_v27 = vrot.slane %v11863_v40, %v17550_v4  ;;  %v11899_v8 = vrot.slane %v11884_v28, %v17550_v4  ;;  %v19507_v6 = vrot.slane %v15724_v50, %v17550_v4 }
 0x40e   : > { %v14600_v17 = vmax.f32 %v14598_v29, %v14599_v32  ;;  %v6387_v62 = vrot.slane %v6371_v31, %v17550_v4  ;;  %v6394_v26 = vrot.slane %v6372_v9, %v17550_v4  ;;  %v6401_v20 = vrot.slane %v6373_v47, %v17550_v4 }
 0x40f   : > { %v14606_v3 = vrot.slane %v14605_v42, 2  ;;  %v11885_v25 = vcombine.low %v11870_v33, %v11877_v27  ;;  %v6402_v10 = vcombine.high %v6380_v30, %v6380_v30  ;;  %v11784_v53 = vcombine.low %v6356_v51, %v6380_v30 }
 0x410   : > { %v14601_v12 = vrot.slane %v14600_v17, 1  ;;  %v6404_v15 = vcombine.high %v6394_v26, %v6394_v26  ;;  %v11823_v56 = vcombine.low %v6387_v62, %v6401_v20  ;;  %v15723_v2 = vcombine.high %v6387_v62, %v6401_v20 }
 0x411   : > { %v14607_v63 = vmax.f32 %v14605_v42, %v14606_v3  ;;  %v11892_v28 = vrot.slane %v11885_v25, %v17550_v4  ;;  %v11785_v7 = vcombine.low %v6394_v26, %v6402_v10  ;;  %v11792_v29 = vrot.slane %v11784_v53, %v17550_v4 }
 0x412   : > { %v14616_v40 = vmax.f32 %v14614_v13, %v14615_v34  ;;  %v11806_v31 = vrot.slane %v6404_v15, %v17550_v4  ;;  %v11831_v9 = vrot.slane %v11823_v56, %v17550_v4  ;;  %v11838_v47 = vrot.slane %v15723_v2, %v17550_v4 }
 0x413   : > { %v14608_v50 = vrot.slane %v14607_v63, 1  ;;  %v11900_v32 = vcombine.low %v11892_v28, %v11899_v8  ;;  %v11799_v51 = vrot.slane %v11785_v7, %v17550_v4  ;;  %v16530_v33 = vadd.f32 %v19113_v38, %v19056_v36  ;;  %v19529_v38 = vpop.f32.mrb[80].mxu1 }
 0x414   : > { %v14602_v30 = vmax.f32 %v14600_v17, %v14601_v12  ;;  %v11846_v42 = vcombine.low %v11831_v9, %v11838_v47  ;;  %v16531_v27 = vadd.f32 %v19143_v35, %v19076_v14  ;;  %v16532_v13 = vadd.f32 %v19166_v39, %v19111_v58  ;;  %v19531_v17 = vpop.f32.mrb[78].mxu0 }
 0x415   : > { %v14609_v34 = vmax.f32 %v14607_v63, %v14608_v50  ;;  %v14631_v62 = vsel %vm13923_vm1, %v11900_v32, -inf  ;;  %v11807_v26 = vcombine.low %v11792_v29, %v11799_v51  ;;  %v3102_v20 = vadd.f32 %v19206_v16, %v16530_v33 }
 0x416   : > { %v14632_v8 = vrot.slane %v14631_v62, 4  ;;  %v11821_v3 = vrot.slane %v11806_v31, %v17550_v4  ;;  %v11853_v25 = vrot.slane %v11846_v42, %v17550_v4  ;;  %v3101_v36 = vadd.f32 %v19206_v16, %v16531_v27 }
 0x417   : > { %v15215_v14 = vsel %vm15124_vm2, %v14609_v34, %v14602_v30  ;;  %v11814_v58 = vrot.slane %v11807_v26, %v17550_v4  ;;  %v3196_v35 = vmax.f32 %v3102_v20, 0.0  ;;  %v19537_v39 = vadd.f32 %v19195_v18, %v19141_v61 }
 0x418   : > { %v19540_v10 = vsel %vm15126_vm3, %v14616_v40, %v15215_v14  ;;  %v14633_v53 = vmax.f32 %v14631_v62, %v14632_v8  ;;  %v11861_v12 = vcombine.low %v11853_v25, %v19496_v44  ;;  %v3195_v15 = vmax.f32 %v3101_v36, 0.0 }
 0x419   : > { %v11822_v56 = vcombine.low %v11814_v58, %v11821_v3  ;;  %v6504_v2 = vcombine.high %v3196_v35, %v3196_v35  ;;  %v6511_v63 = vrot.slane %v3196_v35, %v17550_v4  ;;  %v3104_v28 = vadd.f32 %v19206_v16, %v16532_v13 }
 0x41a   : > { %v14634_v7 = vrot.slane %v14633_v53, 2  ;;  %v14624_v29 = vsel %vm13923_vm1, %v11861_v12, -inf  ;;  %v6455_v31 = vcombine.high %v3195_v15, %v3195_v15  ;;  %v6462_v61 = vrot.slane %v3195_v15, %v17550_v4 }
 0x41b   : > { %v14617_v18 = vsel %vm13923_vm1, %v11822_v56, -inf  ;;  %v14625_v40 = vrot.slane %v14624_v29, 4  ;;  %v6518_v9 = vrot.slane %v6504_v2, %v17550_v4  ;;  %v6519_v47 = vcombine.high %v6511_v63, %v6511_v63 }
 0x41c   : > { %v14635_v44 = vmax.f32 %v14633_v53, %v14634_v7  ;;  %v14618_v50 = vrot.slane %v14617_v18, 4  ;;  %v6527_v32 = vrot.slane %v6511_v63, %v17550_v4  ;;  %v6469_v51 = vrot.slane %v6455_v31, %v17550_v4 }
 0x41d   : > { %v14626_v33 = vmax.f32 %v14624_v29, %v14625_v40  ;;  %v6520_v16 = vcombine.high %v6518_v9, %v6518_v9  ;;  %v6534_v30 = vrot.slane %v6518_v9, %v17550_v4  ;;  %v6541_v42 = vrot.slane %v6519_v47, %v17550_v4 }
 0x41e   : > { %v14636_v27 = vrot.slane %v14635_v44, 1  ;;  %v14619_v13 = vmax.f32 %v14617_v18, %v14618_v50  ;;  %v6470_v34 = vcombine.high %v6462_v61, %v6462_v61  ;;  %v3198_v62 = vmax.f32 %v3104_v28, 0.0  ;;  %v19564_v50 = vpop.f32.mrb[81].mxu1 }
 0x41f   : > { %v14627_v26 = vrot.slane %v14626_v33, 2  ;;  %v19554_v20 = vrot.slane %v6520_v16, %v17550_v4  ;;  %v11979_v8 = vcombine.low %v6527_v32, %v6541_v42  ;;  %v6471_v3 = vcombine.high %v6469_v51, %v6469_v51 }
 0x420   : > { %v14620_v25 = vrot.slane %v14619_v13, 2  ;;  %v6550_v36 = vcombine.high %v6534_v30, %v6534_v30  ;;  %v15725_v14 = vcombine.high %v6527_v32, %v6541_v42  ;;  %v12001_v58 = vrot.slane %v6534_v30, %v17550_v4 }
 0x421   : > { %v14637_v35 = vmax.f32 %v14635_v44, %v14636_v27  ;;  %v14628_v53 = vmax.f32 %v14626_v33, %v14627_v26  ;;  %v11987_v12 = vrot.slane %v11979_v8, %v17550_v4  ;;  %v6478_v15 = vrot.slane %v6462_v61, %v17550_v4  ;;  %v19566_v61 = vpop.f32.mrb[79].mxu0 }
 0x422   : > { %v14621_v56 = vmax.f32 %v14619_v13, %v14620_v25  ;;  %v11994_v2 = vrot.slane %v15725_v14, %v17550_v4  ;;  %v12016_v63 = vrot.slane %v12001_v58, %v17550_v4  ;;  %v6485_v28 = vrot.slane %v6469_v51, %v17550_v4 }
 0x423   : > { %v14629_v7 = vrot.slane %v14628_v53, 1  ;;  %v6492_v29 = vrot.slane %v6470_v34, %v17550_v4  ;;  %v6499_v31 = vrot.slane %v6471_v3, %v17550_v4  ;;  %v6500_v18 = vcombine.high %v6478_v15, %v6478_v15 }
 0x424   : > { %v14622_v40 = vrot.slane %v14621_v56, 1  ;;  %v12002_v9 = vcombine.low %v11987_v12, %v11994_v2  ;;  %v6501_v47 = vcombine.high %v6485_v28, %v6485_v28  ;;  %v6602_v44 = vcombine.high %v3198_v62, %v3198_v62 }
 0x425   : > { %v14630_v32 = vmax.f32 %v14628_v53, %v14629_v7  ;;  %v6502_v33 = vcombine.high %v6492_v29, %v6492_v29  ;;  %v6503_v16 = vcombine.high %v6499_v31, %v6499_v31  ;;  %v11902_v30 = vcombine.low %v6478_v15, %v6492_v29 }
 0x426   : > { %v14623_v42 = vmax.f32 %v14621_v56, %v14622_v40  ;;  %v12009_v51 = vrot.slane %v12002_v9, %v17550_v4  ;;  %v11923_v27 = vrot.slane %v6500_v18, %v17550_v4  ;;  %v11941_v13 = vcombine.low %v6499_v31, %v6501_v47  ;;  %v19594_v9 = vld [vmem:[#allocation4] ss:$0 sm:$0xff] }
 0x427   : > { %v19571_v34 = vcombine.low %v19554_v20, %v6550_v36  ;;  %v11916_v26 = vrot.slane %v11902_v30, %v17550_v4  ;;  %v11940_v8 = vcombine.low %v6502_v33, %v6485_v28  ;;  %v6609_v3 = vrot.slane %v3198_v62, %v17550_v4 }
 0x428   : > { %v15217_v25 = vsel %vm15128_vm4, %v14623_v42, %v19540_v10  ;;  %v12017_v14 = vcombine.low %v12009_v51, %v12016_v63  ;;  %v11955_v58 = vrot.slane %v11941_v13, %v17550_v4  ;;  %v11962_v53 = vrot.slane %v6503_v16, %v17550_v4 }
 0x429   : > { %v15218_v12 = vsel %vm15130_vm5, %v14630_v32, %v15217_v25  ;;  %v11924_v15 = vcombine.low %v19507_v6, %v11916_v26  ;;  %v11938_v36 = vrot.slane %v11923_v27, %v17550_v4  ;;  %v11948_v56 = vrot.slane %v11940_v8, %v17550_v4 }
 0x42a   : > { %v14652_v2 = vsel %vm13923_vm1, %v12017_v14, -inf  ;;  %v19585_v62 = vsel %vm15132_vm6, %v14637_v35, %v15218_v12  ;;  %v6616_v10 = vrot.slane %v6602_v44, %v17550_v4  ;;  %v6617_v63 = vcombine.high %v6609_v3, %v6609_v3 }
 0x42b   : > { %v14653_v28 = vrot.slane %v14652_v2, 4  ;;  %v11931_v7 = vrot.slane %v11924_v15, %v17550_v4  ;;  %v11963_v29 = vcombine.low %v11948_v56, %v11955_v58  ;;  %v19590_v31 = vrot.slane %v6609_v3, %v17550_v4  ;;  %v19608_v3 = vpop.f32.mrb[80].mxu0 }
 0x42c   : > { %v11977_v6 = vrot.slane %v11962_v53, %v17550_v4  ;;  %v6618_v18 = vcombine.high %v6616_v10, %v6616_v10  ;;  %v6639_v40 = vrot.slane %v6617_v63, %v17550_v4  ;;  %v3103_v35 = vadd.f32 %v19594_v9, %v19537_v39  ;;  %v19606_v39 = vpop.f32.mrb[82].mxu1 }
 0x42d   : > { %v14654_v47 = vmax.f32 %v14652_v2, %v14653_v28  ;;  %v11939_v44 = vcombine.low %v11931_v7, %v11938_v36  ;;  %v11970_v32 = vrot.slane %v11963_v29, %v17550_v4  ;;  %v6647_v33 = vcombine.high %v19590_v31, %v19590_v31 }
 0x42e   : > { %v6632_v16 = vrot.slane %v6616_v10, %v17550_v4  ;;  %v6646_v30 = vrot.slane %v6618_v18, %v17550_v4  ;;  %v6649_v42 = vcombine.high %v6639_v40, %v6639_v40  ;;  %v3197_v51 = vmax.f32 %v3103_v35, 0.0 }
 0x42f   : > { %v14655_v27 = vrot.slane %v14654_v47, 2  ;;  %v11978_v13 = vcombine.low %v11970_v32, %v11977_v6  ;;  %v14638_v26 = vsel %vm13923_vm1, %v11939_v44, -inf  ;;  %v19604_v8 = vcombine.low %v6639_v40, %v6647_v33 }
 0x430   : > { %v14639_v25 = vrot.slane %v14638_v26, 4  ;;  %v19611_v14 = vrot.slane %v6649_v42, %v17550_v4  ;;  %v12135_v58 = vcombine.low %v6632_v16, %v6646_v30  ;;  %v15727_v53 = vcombine.high %v6632_v16, %v6646_v30  ;;  %v19630_v30 = vpop.f32.mrb[83].mxu1  ;;  %v19632_v42 = vpop.f32.mrb[81].mxu0 }
 0x431   : > { %v14656_v12 = vmax.f32 %v14654_v47, %v14655_v27  ;;  %v14645_v15 = vsel %vm13923_vm1, %v11978_v13, -inf  ;;  %v6552_v36 = vcombine.high %v19554_v20, %v19554_v20  ;;  %v6553_v56 = vcombine.high %v3197_v51, %v3197_v51 }
 0x432   : > { %v14640_v2 = vmax.f32 %v14638_v26, %v14639_v25  ;;  %v14646_v10 = vrot.slane %v14645_v15, 4  ;;  %v12111_v63 = vrot.slane %v19604_v8, %v17550_v4  ;;  %v12133_v28 = vrot.slane %v19611_v14, %v17550_v4 }
 0x433   : > { %v14657_v7 = vrot.slane %v14656_v12, 1  ;;  %v12143_v29 = vrot.slane %v12135_v58, %v17550_v4  ;;  %v6560_v6 = vrot.slane %v3197_v51, %v17550_v4  ;;  %v6567_v18 = vrot.slane %v6553_v56, %v17550_v4 }
 0x434   : > { %v14641_v40 = vrot.slane %v14640_v2, 2  ;;  %v14647_v35 = vmax.f32 %v14645_v15, %v14646_v10  ;;  %v12150_v20 = vrot.slane %v15727_v53, %v17550_v4  ;;  %v16534_v47 = vadd.f32 %v19225_v52, %v19164_v57 }
 0x435   : > { %v19626_v44 = vmax.f32 %v14656_v12, %v14657_v7  ;;  %v6568_v32 = vcombine.high %v6560_v6, %v6560_v6  ;;  %v6569_v33 = vcombine.high %v6567_v18, %v6567_v18  ;;  %v12026_v16 = vrot.slane %v19571_v34, %v17550_v4 }
 0x436   : > { %v14642_v51 = vmax.f32 %v14640_v2, %v14641_v40  ;;  %v14648_v27 = vrot.slane %v14647_v35, 2  ;;  %v6576_v13 = vrot.slane %v6560_v6, %v17550_v4  ;;  %v6583_v26 = vrot.slane %v6567_v18, %v17550_v4 }
 0x437   : > { %v6590_v8 = vrot.slane %v6568_v32, %v17550_v4  ;;  %v6597_v57 = vrot.slane %v6569_v33, %v17550_v4  ;;  %v3106_v52 = vadd.f32 %v19594_v9, %v16534_v47  ;;  %v16535_v25 = vadd.f32 %v19263_v19, %v19193_v49 }
 0x438   : > { %v14643_v34 = vrot.slane %v14642_v51, 1  ;;  %v14649_v58 = vmax.f32 %v14647_v35, %v14648_v27  ;;  %v6599_v53 = vcombine.high %v6583_v26, %v6583_v26  ;;  %v12019_v12 = vcombine.low %v6552_v36, %v6576_v13 }
 0x439   : > { %v6601_v15 = vcombine.high %v6597_v57, %v6597_v57  ;;  %v12040_v56 = vrot.slane %v6590_v8, %v17550_v4  ;;  %v15726_v2 = vcombine.high %v6576_v13, %v6590_v8  ;;  %v12058_v10 = vcombine.low %v6583_v26, %v6597_v57 }
 0x43a   : > { %v14644_v7 = vmax.f32 %v14642_v51, %v14643_v34  ;;  %v14650_v6 = vrot.slane %v14649_v58, 1  ;;  %v12033_v18 = vrot.slane %v12019_v12, %v17550_v4  ;;  %v12079_v40 = vrot.slane %v6599_v53, %v17550_v4 }
 0x43b   : > { %v12158_v32 = vcombine.low %v12143_v29, %v12150_v20  ;;  %v12065_v47 = vrot.slane %v15726_v2, %v17550_v4  ;;  %v12072_v49 = vrot.slane %v12058_v10, %v17550_v4  ;;  %v12096_v19 = vcombine.low %v6601_v15, %v19590_v31 }
 0x43c   : > { %v14651_v36 = vmax.f32 %v14649_v58, %v14650_v6  ;;  %v15220_v35 = vsel %vm15134_vm7, %v14644_v7, %v19585_v62  ;;  %v12041_v33 = vcombine.low %v12026_v16, %v12033_v18  ;;  %v12055_v51 = vrot.slane %v12040_v56, %v17550_v4 }
 0x43d   : > { %v12080_v27 = vcombine.low %v12065_v47, %v12072_v49  ;;  %v12104_v13 = vrot.slane %v12096_v19, %v17550_v4  ;;  %v3200_v26 = vmax.f32 %v3106_v52, 0.0  ;;  %v3105_v29 = vadd.f32 %v19594_v9, %v16535_v25 }
 0x43e   : > { %v15221_v20 = vsel %vm15136_vm8, %v14651_v36, %v15220_v35  ;;  %v12048_v8 = vrot.slane %v12041_v33, %v17550_v4  ;;  %v12094_v57 = vrot.slane %v12079_v40, %v17550_v4  ;;  %v16536_v31 = vadd.f32 %v19300_v1, %v19223_v11  ;;  %v19677_v40 = vpop.f32.mrb[84].mxu1 }
 0x43f   : > { %15294 = vst.msk [vmem:[%s17767_s24 + $0x60] sm:$0xff] %vm15281_vm9, %v15221_v20  ;;  %v12087_v62 = vrot.slane %v12080_v27, %v17550_v4  ;;  %v12119_v16 = vcombine.low %v12104_v13, %v12111_v63  ;;  %v6700_v34 = vcombine.high %v3200_v26, %v3200_v26  ;;  %v6707_v58 = vrot.slane %v3200_v26, %v17550_v4 }
 0x440   : > { %v12056_v52 = vcombine.low %v12048_v8, %v12055_v51  ;;  %v3199_v53 = vmax.f32 %v3105_v29, 0.0  ;;  %v19662_v25 = vrot.slane %v12158_v32, %v17550_v4  ;;  %v19666_v12 = vadd.f32 %v19331_v22, %v19261_v37  ;;  %v19679_v32 = vpop.f32.mrb[82].mxu0 }
 0x441   : > { %v12095_v15 = vcombine.low %v12087_v62, %v12094_v57  ;;  %v12126_v11 = vrot.slane %v12119_v16, %v17550_v4  ;;  %v6714_v1 = vrot.slane %v6700_v34, %v17550_v4  ;;  %v6715_v56 = vcombine.high %v6707_v58, %v6707_v58 }
 0x442   : > { %v14659_v63 = vsel %vm13923_vm1, %v12056_v52, -inf  ;;  %v6723_v2 = vrot.slane %v6707_v58, %v17550_v4  ;;  %v6651_v10 = vcombine.high %v3199_v53, %v3199_v53  ;;  %v6658_v7 = vrot.slane %v3199_v53, %v17550_v4 }
 0x443   : > { %v12134_v6 = vcombine.low %v12126_v11, %v12133_v28  ;;  %v14660_v18 = vrot.slane %v14659_v63, 4  ;;  %v14666_v37 = vsel %vm13923_vm1, %v12095_v15, -inf  ;;  %v6716_v22 = vcombine.high %v6714_v1, %v6714_v1 }
 0x444   : > { %v14667_v47 = vrot.slane %v14666_v37, 4  ;;  %v6730_v49 = vrot.slane %v6714_v1, %v17550_v4  ;;  %v6737_v19 = vrot.slane %v6715_v56, %v17550_v4  ;;  %v6745_v36 = vcombine.high %v6723_v2, %v6723_v2 }
 0x445   : > { %v14661_v35 = vmax.f32 %v14659_v63, %v14660_v18  ;;  %v14673_v33 = vsel %vm13923_vm1, %v12134_v6, -inf  ;;  %v6744_v14 = vrot.slane %v6716_v22, %v17550_v4  ;;  %v6665_v28 = vrot.slane %v6651_v10, %v17550_v4  ;;  %v19696_v22 = vpop.f32.mrb[85].mxu1 }
 0x446   : > { %v14668_v51 = vmax.f32 %v14666_v37, %v14667_v47  ;;  %v14674_v27 = vrot.slane %v14673_v33, 4  ;;  %v6746_v13 = vcombine.high %v6730_v49, %v6730_v49  ;;  %v6747_v26 = vcombine.high %v6737_v19, %v6737_v19  ;;  %v19698_v47 = vpop.f32.mrb[83].mxu0 }
 0x447   : > { %v14662_v29 = vrot.slane %v14661_v35, 2  ;;  %v6748_v20 = vcombine.high %v6744_v14, %v6744_v14  ;;  %v12214_v8 = vcombine.low %v6723_v2, %v6737_v19  ;;  %v19687_v57 = vrot.slane %v6745_v36, %v17550_v4 }
 0x448   : > { %v14669_v62 = vrot.slane %v14668_v51, 2  ;;  %v14675_v16 = vmax.f32 %v14673_v33, %v14674_v27  ;;  %v12252_v34 = vcombine.low %v6747_v26, %v6730_v49  ;;  %v12253_v58 = vcombine.low %v6744_v14, %v6746_v13 }
 0x449   : > { %v14663_v52 = vmax.f32 %v14661_v35, %v14662_v29  ;;  %v12228_v53 = vrot.slane %v12214_v8, %v17550_v4  ;;  %v12274_v15 = vrot.slane %v6748_v20, %v17550_v4  ;;  %v3108_v11 = vadd.f32 %v19594_v9, %v16536_v31 }
 0x44a   : > { %v14670_v1 = vmax.f32 %v14668_v51, %v14669_v62  ;;  %v14676_v56 = vrot.slane %v14675_v16, 2  ;;  %v12260_v63 = vrot.slane %v12252_v34, %v17550_v4  ;;  %v12267_v2 = vrot.slane %v12253_v58, %v17550_v4 }
 0x44b   : > { %v14664_v10 = vrot.slane %v14663_v52, 1  ;;  %v12250_v6 = vrot.slane %v19687_v57, %v17550_v4  ;;  %v6666_v18 = vcombine.high %v6658_v7, %v6658_v7  ;;  %v6667_v37 = vcombine.high %v6665_v28, %v6665_v28 }
 0x44c   : > { %v14671_v49 = vrot.slane %v14670_v1, 1  ;;  %v14677_v19 = vmax.f32 %v14675_v16, %v14676_v56  ;;  %v12275_v36 = vcombine.low %v12260_v63, %v12267_v2  ;;  %v6674_v31 = vrot.slane %v6658_v7, %v17550_v4 }
 0x44d   : > { %v14665_v35 = vmax.f32 %v14663_v52, %v14664_v10  ;;  %v12289_v33 = vrot.slane %v12274_v15, %v17550_v4  ;;  %v6688_v14 = vrot.slane %v6666_v18, %v17550_v4  ;;  %v6695_v51 = vrot.slane %v6667_v37, %v17550_v4 }
 0x44e   : > { %v14672_v27 = vmax.f32 %v14670_v1, %v14671_v49  ;;  %v14678_v13 = vrot.slane %v14677_v19, 1  ;;  %v12282_v26 = vrot.slane %v12275_v36, %v17550_v4  ;;  %v6696_v29 = vcombine.high %v6674_v31, %v6674_v31 }
 0x44f   : > { %v15222_v20 = vsel %vm15124_vm2, %v14665_v35, %v19626_v44  ;;  %v6681_v8 = vrot.slane %v6665_v28, %v17550_v4  ;;  %v6698_v57 = vcombine.high %v6688_v14, %v6688_v14  ;;  %v12157_v7 = vrot.slane %v6674_v31, %v17550_v4 }
 0x450   : > { %v14679_v62 = vmax.f32 %v14677_v19, %v14678_v13  ;;  %v15223_v16 = vsel %vm15126_vm3, %v14672_v27, %v15222_v20  ;;  %v12290_v34 = vcombine.low %v12282_v26, %v12289_v33  ;;  %v12174_v58 = vcombine.low %v6688_v14, %v6696_v29 }
 0x451   : > { %v12172_v52 = vrot.slane %v12157_v7, %v17550_v4  ;;  %v12175_v15 = vcombine.low %v6698_v57, %v6681_v8  ;;  %v12196_v1 = vrot.slane %v6695_v51, %v17550_v4  ;;  %v15728_v56 = vcombine.high %v6681_v8, %v6695_v51 }
 0x452   : > { %v14701_v63 = vsel %vm13923_vm1, %v12290_v34, -inf  ;;  %v12182_v44 = vrot.slane %v12174_v58, %v17550_v4  ;;  %v19715_v28 = vsel %vm15128_vm4, %v14679_v62, %v15223_v16  ;;  %v3202_v2 = vmax.f32 %v3108_v11, 0.0 }
 0x453   : > { %v14702_v10 = vrot.slane %v14701_v63, 4  ;;  %v12173_v18 = vcombine.low %v19662_v25, %v12172_v52  ;;  %v12189_v37 = vrot.slane %v12175_v15, %v17550_v4  ;;  %v12221_v49 = vrot.slane %v15728_v56, %v17550_v4  ;;  %v19738_v56 = vpop.f32.mrb[86].mxu1 }
 0x454   : > { %v6798_v19 = vcombine.high %v3202_v2, %v3202_v2  ;;  %v6805_v36 = vrot.slane %v3202_v2, %v17550_v4  ;;  %v3107_v31 = vadd.f32 %v19594_v9, %v19666_v12  ;;  %v16538_v35 = vadd.f32 %v19364_v21, %v19298_v41 }
 0x455   : > { %v14703_v33 = vmax.f32 %v14701_v63, %v14702_v10  ;;  %v12197_v14 = vcombine.low %v12182_v44, %v12189_v37  ;;  %v12236_v51 = vcombine.low %v12221_v49, %v12228_v53  ;;  %v14680_v11 = vsel %vm13923_vm1, %v12173_v18, -inf  ;;  %v19740_v63 = vpop.f32.mrb[84].mxu0 }
 0x456   : > { %v12211_v25 = vrot.slane %v12196_v1, %v17550_v4  ;;  %v14681_v27 = vrot.slane %v14680_v11, 4  ;;  %v6812_v13 = vrot.slane %v6798_v19, %v17550_v4  ;;  %v6813_v26 = vcombine.high %v6805_v36, %v6805_v36 }
 0x457   : > { %v14704_v29 = vrot.slane %v14703_v33, 2  ;;  %v12204_v20 = vrot.slane %v12197_v14, %v17550_v4  ;;  %v12243_v8 = vrot.slane %v12236_v51, %v17550_v4  ;;  %v3201_v12 = vmax.f32 %v3107_v31, 0.0 }
 0x458   : > { %v14682_v57 = vmax.f32 %v14680_v11, %v14681_v27  ;;  %v6814_v7 = vcombine.high %v6812_v13, %v6812_v13  ;;  %v6828_v41 = vrot.slane %v6812_v13, %v17550_v4  ;;  %v19732_v21 = vrot.slane %v6813_v26, %v17550_v4 }
 0x459   : > { %v14705_v53 = vmax.f32 %v14703_v33, %v14704_v29  ;;  %v12212_v62 = vcombine.low %v12204_v20, %v12211_v25  ;;  %v12251_v16 = vcombine.low %v12243_v8, %v12250_v6  ;;  %v6821_v34 = vrot.slane %v6805_v36, %v17550_v4 }
 0x45a   : > { %v14683_v58 = vrot.slane %v14682_v57, 2  ;;  %v19736_v52 = vrot.slane %v6814_v7, %v17550_v4  ;;  %v6844_v15 = vcombine.high %v6828_v41, %v6828_v41  ;;  %v6749_v1 = vcombine.high %v3201_v12, %v3201_v12 }
 0x45b   : > { %v14706_v44 = vrot.slane %v14705_v53, 1  ;;  %v14687_v2 = vsel %vm13923_vm1, %v12212_v62, -inf  ;;  %v14694_v10 = vsel %vm13923_vm1, %v12251_v16, -inf  ;;  %v15730_v18 = vcombine.high %v6821_v34, %v19732_v21  ;;  %v19757_v62 = vpop.f32.mrb[85].mxu0 }
 0x45c   : > { %v14684_v6 = vmax.f32 %v14682_v57, %v14683_v58  ;;  %v14688_v37 = vrot.slane %v14687_v2, 4  ;;  %v14695_v49 = vrot.slane %v14694_v10, 4  ;;  %v12352_v19 = vrot.slane %v19732_v21, %v17550_v4 }
 0x45d   : > { %v14707_v36 = vmax.f32 %v14705_v53, %v14706_v44  ;;  %v12370_v31 = vcombine.low %v6828_v41, %v19736_v52  ;;  %v12377_v33 = vrot.slane %v15730_v18, %v17550_v4  ;;  %v12391_v14 = vrot.slane %v6844_v15, %v17550_v4  ;;  %v19755_v53 = vpop.f32.mrb[87].mxu1 }
 0x45e   : > { %v14685_v51 = vrot.slane %v14684_v6, 1  ;;  %v14689_v11 = vmax.f32 %v14687_v2, %v14688_v37  ;;  %v14696_v25 = vmax.f32 %v14694_v10, %v14695_v49  ;;  %v6756_v27 = vrot.slane %v3201_v12, %v17550_v4 }
 0x45f   : > { %v12384_v13 = vrot.slane %v12370_v31, %v17550_v4  ;;  %v12406_v26 = vrot.slane %v12391_v14, %v17550_v4  ;;  %v6763_v29 = vrot.slane %v6749_v1, %v17550_v4  ;;  %v3110_v20 = vadd.f32 %v19594_v9, %v16538_v35 }
 0x460   : > { %v14686_v8 = vmax.f32 %v14684_v6, %v14685_v51  ;;  %v14690_v57 = vrot.slane %v14689_v11, 2  ;;  %v14697_v7 = vrot.slane %v14696_v25, 2  ;;  %v6764_v41 = vcombine.high %v6756_v27, %v6756_v27 }
 0x461   : > { %v12392_v16 = vcombine.low %v12377_v33, %v12384_v13  ;;  %v6765_v58 = vcombine.high %v6763_v29, %v6763_v29  ;;  %v6772_v12 = vrot.slane %v6756_v27, %v17550_v4  ;;  %v6779_v15 = vrot.slane %v6763_v29, %v17550_v4 }
 0x462   : > { %v14691_v44 = vmax.f32 %v14689_v11, %v14690_v57  ;;  %v14698_v2 = vmax.f32 %v14696_v25, %v14697_v7  ;;  %v15225_v1 = vsel %vm15130_vm5, %v14686_v8, %v19715_v28  ;;  %v6786_v35 = vrot.slane %v6764_v41, %v17550_v4 }
 0x463   : > { %v12399_v10 = vrot.slane %v12392_v16, %v17550_v4  ;;  %v6793_v18 = vrot.slane %v6765_v58, %v17550_v4  ;;  %v6795_v6 = vcombine.high %v6779_v15, %v6779_v15  ;;  %v12313_v37 = vrot.slane %v6779_v15, %v17550_v4 }
 0x464   : > { %v14692_v49 = vrot.slane %v14691_v44, 1  ;;  %v14699_v31 = vrot.slane %v14698_v2, 1  ;;  %v12291_v33 = vcombine.low %v6772_v12, %v6786_v35  ;;  %v15729_v14 = vcombine.high %v6772_v12, %v6786_v35 }
 0x465   : > { %v12407_v51 = vcombine.low %v12399_v10, %v12406_v26  ;;  %v6797_v27 = vcombine.high %v6793_v18, %v6793_v18  ;;  %v12328_v11 = vrot.slane %v12313_v37, %v17550_v4  ;;  %v12330_v25 = vcombine.low %v6793_v18, %v6795_v6  ;;  %v19778_v18 = vpop.f32.mrb[88].mxu1 }
 0x466   : > { %v14693_v13 = vmax.f32 %v14691_v44, %v14692_v49  ;;  %v14700_v28 = vmax.f32 %v14698_v2, %v14699_v31  ;;  %v12299_v29 = vrot.slane %v12291_v33, %v17550_v4  ;;  %v12306_v8 = vrot.slane %v15729_v14, %v17550_v4 }
 0x467   : > { %v14722_v57 = vsel %vm13923_vm1, %v12407_v51, -inf  ;;  %v12331_v7 = vcombine.low %v6797_v27, %v6821_v34  ;;  %v12338_v41 = vrot.slane %v12330_v25, %v17550_v4  ;;  %v3204_v16 = vmax.f32 %v3110_v20, 0.0  ;;  %v19780_v34 = vpop.f32.mrb[86].mxu0 }
 0x468   : > { %v15226_v58 = vsel %vm15132_vm6, %v14693_v13, %v15225_v1  ;;  %v14723_v26 = vrot.slane %v14722_v57, 4  ;;  %v12314_v12 = vcombine.low %v12299_v29, %v12306_v8  ;;  %v16539_v15 = vadd.f32 %v19389_v0, %v19329_v48 }
 0x469   : > { %v15227_v44 = vsel %vm15134_vm7, %v14700_v28, %v15226_v58  ;;  %v12345_v2 = vrot.slane %v12331_v7, %v17550_v4  ;;  %v6896_v35 = vcombine.high %v3204_v16, %v3204_v16  ;;  %v6903_v10 = vrot.slane %v3204_v16, %v17550_v4 }
 0x46a   : > { %v15228_v20 = vsel %vm15136_vm8, %v14707_v36, %v15227_v44  ;;  %v14724_v6 = vmax.f32 %v14722_v57, %v14723_v26  ;;  %v12321_v1 = vrot.slane %v12314_v12, %v17550_v4  ;;  %v3109_v37 = vadd.f32 %v19594_v9, %v16539_v15 }
 0x46b   : > { %15295 = vst.msk [vmem:[%s17767_s24 + $0x68] sm:$0xff] %vm15281_vm9, %v15228_v20  ;;  %v12353_v48 = vcombine.low %v12338_v41, %v12345_v2  ;;  %v6910_v0 = vrot.slane %v6896_v35, %v17550_v4  ;;  %v6911_v49 = vcombine.high %v6903_v10, %v6903_v10  ;;  %v6919_v31 = vrot.slane %v6903_v10, %v17550_v4 }
 0x46c   : > { %v12367_v33 = vrot.slane %v12352_v19, %v17550_v4  ;;  %v14725_v14 = vrot.slane %v14724_v6, 2  ;;  %v12329_v36 = vcombine.low %v12321_v1, %v12328_v11  ;;  %v3203_v51 = vmax.f32 %v3109_v37, 0.0 }
 0x46d   : > { %v12360_v27 = vrot.slane %v12353_v48, %v17550_v4  ;;  %v6912_v25 = vcombine.high %v6910_v0, %v6910_v0  ;;  %v19795_v13 = vrot.slane %v6910_v0, %v17550_v4  ;;  %v6933_v28 = vrot.slane %v6911_v49, %v17550_v4 }
 0x46e   : > { %v14726_v29 = vmax.f32 %v14724_v6, %v14725_v14  ;;  %v14708_v8 = vsel %vm13923_vm1, %v12329_v36, -inf  ;;  %v6941_v57 = vcombine.high %v6919_v31, %v6919_v31  ;;  %v12469_v7 = vrot.slane %v6919_v31, %v17550_v4  ;;  %v19821_v36 = vpop.f32.mrb[89].mxu1 }
 0x46f   : > { %v12368_v41 = vcombine.low %v12360_v27, %v12367_v33  ;;  %v14709_v21 = vrot.slane %v14708_v8, 4  ;;  %v19801_v19 = vrot.slane %v6912_v25, %v17550_v4  ;;  %v6943_v11 = vcombine.high %v6933_v28, %v6933_v28  ;;  %v19823_v27 = vpop.f32.mrb[87].mxu0 }
 0x470   : > { %v14727_v16 = vrot.slane %v14726_v29, 1  ;;  %v12486_v58 = vcombine.low %v6933_v28, %v6941_v57  ;;  %v6846_v26 = vcombine.high %v19736_v52, %v19736_v52  ;;  %v6847_v12 = vcombine.high %v3203_v51, %v3203_v51 }
 0x471   : > { %v14710_v15 = vmax.f32 %v14708_v8, %v14709_v21  ;;  %v14715_v44 = vsel %vm13923_vm1, %v12368_v41, -inf  ;;  %v12487_v2 = vcombine.low %v6943_v11, %v19795_v13  ;;  %v12508_v35 = vrot.slane %v19801_v19, %v17550_v4 }
 0x472   : > { %v14728_v10 = vmax.f32 %v14726_v29, %v14727_v16  ;;  %v14716_v20 = vrot.slane %v14715_v44, 4  ;;  %v19810_v6 = vrot.slane %v12469_v7, %v17550_v4  ;;  %v12494_v1 = vrot.slane %v12486_v58, %v17550_v4 }
 0x473   : > { %v14711_v37 = vrot.slane %v14710_v15, 2  ;;  %v12501_v48 = vrot.slane %v12487_v2, %v17550_v4  ;;  %v15732_v52 = vcombine.high %v19795_v13, %v19801_v19  ;;  %v6854_v0 = vrot.slane %v3203_v51, %v17550_v4 }
 0x474   : > { %v14717_v49 = vmax.f32 %v14715_v44, %v14716_v20  ;;  %v12523_v31 = vrot.slane %v12508_v35, %v17550_v4  ;;  %v6861_v33 = vrot.slane %v6847_v12, %v17550_v4  ;;  %v16540_v14 = vadd.f32 %v19424_v55, %v19362_v5 }
 0x475   : > { %v14712_v25 = vmax.f32 %v14710_v15, %v14711_v37  ;;  %v12509_v28 = vcombine.low %v12494_v1, %v12501_v48  ;;  %v6862_v29 = vcombine.high %v6854_v0, %v6854_v0  ;;  %v6870_v8 = vrot.slane %v6854_v0, %v17550_v4 }
 0x476   : > { %v14718_v57 = vrot.slane %v14717_v49, 2  ;;  %v6863_v7 = vcombine.high %v6861_v33, %v6861_v33  ;;  %v6877_v51 = vrot.slane %v6861_v33, %v17550_v4  ;;  %v3112_v41 = vadd.f32 %v19594_v9, %v16540_v14 }
 0x477   : > { %v14713_v21 = vrot.slane %v14712_v25, 1  ;;  %v12516_v11 = vrot.slane %v12509_v28, %v17550_v4  ;;  %v6884_v5 = vrot.slane %v6862_v29, %v17550_v4  ;;  %v6892_v55 = vcombine.high %v6870_v8, %v6870_v8 }
 0x478   : > { %v14719_v16 = vmax.f32 %v14717_v49, %v14718_v57  ;;  %v6891_v58 = vrot.slane %v6863_v7, %v17550_v4  ;;  %v12408_v12 = vcombine.low %v6846_v26, %v6870_v8  ;;  %v3206_v15 = vmax.f32 %v3112_v41, 0.0 }
 0x479   : > { %v14714_v44 = vmax.f32 %v14712_v25, %v14713_v21  ;;  %v12524_v2 = vcombine.low %v12516_v11, %v12523_v31  ;;  %v6894_v35 = vcombine.high %v6884_v5, %v6884_v5  ;;  %v12409_v20 = vcombine.low %v6884_v5, %v6892_v55 }
 0x47a   : > { %v14720_v1 = vrot.slane %v14719_v16, 1  ;;  %v12416_v37 = vrot.slane %v12408_v12, %v17550_v4  ;;  %v12447_v48 = vcombine.low %v6877_v51, %v6891_v58  ;;  %v15731_v0 = vcombine.high %v6877_v51, %v6891_v58 }
 0x47b   : > { %v14743_v33 = vsel %vm13923_vm1, %v12524_v2, -inf  ;;  %v12423_v14 = vrot.slane %v12409_v20, %v17550_v4  ;;  %v12430_v28 = vrot.slane %v6894_v35, %v17550_v4  ;;  %v6994_v49 = vcombine.high %v3206_v15, %v3206_v15  ;;  %v19847_v2 = vpop.f32.mrb[90].mxu1  ;;  %v19849_v35 = vpop.f32.mrb[88].mxu0 }
 0x47c   : > { %v14721_v29 = vmax.f32 %v14719_v16, %v14720_v1  ;;  %v14744_v57 = vrot.slane %v14743_v33, 4  ;;  %v12455_v26 = vrot.slane %v12447_v48, %v17550_v4  ;;  %v12462_v31 = vrot.slane %v15731_v0, %v17550_v4 }
 0x47d   : > { %v12431_v25 = vcombine.low %v12416_v37, %v12423_v14  ;;  %v12445_v8 = vrot.slane %v12430_v28, %v17550_v4  ;;  %v7001_v7 = vrot.slane %v3206_v15, %v17550_v4  ;;  %v7008_v51 = vrot.slane %v6994_v49, %v17550_v4 }
 0x47e   : > { %v15229_v41 = vsel %vm15124_vm2, %v14721_v29, %v14714_v44  ;;  %v14745_v21 = vmax.f32 %v14743_v33, %v14744_v57  ;;  %v12470_v11 = vcombine.low %v12455_v26, %v12462_v31  ;;  %v16541_v5 = vadd.f32 %v19448_v59, %v19387_v23 }
 0x47f   : > { %v19844_v55 = vsel %vm15126_vm3, %v14728_v10, %v15229_v41  ;;  %v12438_v16 = vrot.slane %v12431_v25, %v17550_v4  ;;  %v7009_v58 = vcombine.high %v7001_v7, %v7001_v7  ;;  %v7010_v12 = vcombine.high %v7008_v51, %v7008_v51 }
 0x480   : > { %v14746_v15 = vrot.slane %v14745_v21, 2  ;;  %v12477_v20 = vrot.slane %v12470_v11, %v17550_v4  ;;  %v7017_v44 = vrot.slane %v7001_v7, %v17550_v4  ;;  %v7024_v1 = vrot.slane %v7008_v51, %v17550_v4 }
 0x481   : > { %v12446_v37 = vcombine.low %v12438_v16, %v12445_v8  ;;  %v7031_v23 = vrot.slane %v7009_v58, %v17550_v4  ;;  %v19856_v59 = vrot.slane %v7010_v12, %v17550_v4  ;;  %v3111_v10 = vadd.f32 %v19594_v9, %v16541_v5 }
 0x482   : > { %v14747_v48 = vmax.f32 %v14745_v21, %v14746_v15  ;;  %v12485_v0 = vcombine.low %v12477_v20, %v19810_v6  ;;  %v7040_v33 = vcombine.high %v7024_v1, %v7024_v1  ;;  %v12625_v14 = vrot.slane %v7024_v1, %v17550_v4  ;;  %v19882_v1 = vpop.f32.mrb[91].mxu1 }
 0x483   : > { %v14729_v28 = vsel %vm13923_vm1, %v12446_v37, -inf  ;;  %v12603_v49 = vcombine.low %v7017_v44, %v7031_v23  ;;  %v15733_v29 = vcombine.high %v7017_v44, %v7031_v23  ;;  %v3205_v57 = vmax.f32 %v3111_v10, 0.0  ;;  %v19884_v37 = vpop.f32.mrb[89].mxu0 }
 0x484   : > { %v19866_v26 = vrot.slane %v15732_v52, %v17550_v4  ;;  %v14748_v31 = vrot.slane %v14747_v48, 1  ;;  %v14730_v25 = vrot.slane %v14729_v28, 4  ;;  %v14736_v8 = vsel %vm13923_vm1, %v12485_v0, -inf }
 0x485   : > { %v14737_v7 = vrot.slane %v14736_v8, 4  ;;  %v12611_v6 = vrot.slane %v12603_v49, %v17550_v4  ;;  %v12618_v51 = vrot.slane %v15733_v29, %v17550_v4  ;;  %v12640_v41 = vrot.slane %v12625_v14, %v17550_v4 }
 0x486   : > { %v14731_v21 = vmax.f32 %v14729_v28, %v14730_v25  ;;  %v19873_v11 = vcombine.low %v19856_v59, %v7040_v33  ;;  %v6945_v5 = vcombine.high %v3205_v57, %v3205_v57  ;;  %v6952_v13 = vrot.slane %v3205_v57, %v17550_v4 }
 0x487   : > { %v14738_v19 = vmax.f32 %v14736_v8, %v14737_v7  ;;  %v12626_v52 = vcombine.low %v12611_v6, %v12618_v51  ;;  %v16542_v16 = vadd.f32 %v19480_v43, %v19422_v46  ;;  %v16543_v58 = vadd.f32 %v19502_v24, %v19446_v54 }
 0x488   : > { %v14732_v12 = vrot.slane %v14731_v21, 2  ;;  %v6959_v15 = vrot.slane %v6945_v5, %v17550_v4  ;;  %v6960_v20 = vcombine.high %v6952_v13, %v6952_v13  ;;  %v6968_v44 = vrot.slane %v6952_v13, %v17550_v4 }
 0x489   : > { %v14749_v23 = vmax.f32 %v14747_v48, %v14748_v31  ;;  %v14739_v10 = vrot.slane %v14738_v19, 2  ;;  %v12633_v0 = vrot.slane %v12626_v52, %v17550_v4  ;;  %v3114_v33 = vadd.f32 %v19594_v9, %v16542_v16 }
 0x48a   : > { %v14733_v46 = vmax.f32 %v14731_v21, %v14732_v12  ;;  %v6961_v43 = vcombine.high %v6959_v15, %v6959_v15  ;;  %v6975_v54 = vrot.slane %v6959_v15, %v17550_v4  ;;  %v6982_v24 = vrot.slane %v6960_v20, %v17550_v4 }
 0x48b   : > { %v14740_v14 = vmax.f32 %v14738_v19, %v14739_v10  ;;  %v12641_v28 = vcombine.low %v12633_v0, %v12640_v41  ;;  %v6990_v49 = vcombine.high %v6968_v44, %v6968_v44  ;;  %v3208_v29 = vmax.f32 %v3114_v33, 0.0 }
 0x48c   : > { %v14734_v57 = vrot.slane %v14733_v46, 1  ;;  %v6989_v25 = vrot.slane %v6961_v43, %v17550_v4  ;;  %v6991_v8 = vcombine.high %v6975_v54, %v6975_v54  ;;  %v6992_v48 = vcombine.high %v6982_v24, %v6982_v24 }
 0x48d   : > { %v14741_v31 = vrot.slane %v14740_v14, 1  ;;  %v14764_v7 = vsel %vm13923_vm1, %v12641_v28, -inf  ;;  %v12526_v6 = vcombine.low %v6968_v44, %v6982_v24  ;;  %v12547_v51 = vrot.slane %v6990_v49, %v17550_v4 }
 0x48e   : > { %v14735_v21 = vmax.f32 %v14733_v46, %v14734_v57  ;;  %v14765_v5 = vrot.slane %v14764_v7, 4  ;;  %v6993_v13 = vcombine.high %v6989_v25, %v6989_v25  ;;  %v12564_v52 = vcombine.low %v6992_v48, %v6975_v54 }
 0x48f   : > { %v14742_v16 = vmax.f32 %v14740_v14, %v14741_v31  ;;  %v12540_v41 = vrot.slane %v12526_v6, %v17550_v4  ;;  %v12565_v19 = vcombine.low %v6989_v25, %v6991_v8  ;;  %v3113_v12 = vadd.f32 %v19594_v9, %v16543_v58  ;;  %v19911_v31 = vpop.f32.mrb[92].mxu1 }
 0x490   : > { %v15231_v15 = vsel %vm15128_vm4, %v14735_v21, %v19844_v55  ;;  %v14766_v20 = vmax.f32 %v14764_v7, %v14765_v5  ;;  %v12572_v10 = vrot.slane %v12564_v52, %v17550_v4  ;;  %v12586_v44 = vrot.slane %v6993_v13, %v17550_v4  ;;  %v19913_v7 = vpop.f32.mrb[90].mxu0 }
 0x491   : > { %v15232_v0 = vsel %vm15130_vm5, %v14742_v16, %v15231_v15  ;;  %v12548_v33 = vcombine.low %v19866_v26, %v12540_v41  ;;  %v12579_v46 = vrot.slane %v12565_v19, %v17550_v4  ;;  %v7092_v43 = vcombine.high %v3208_v29, %v3208_v29 }
 0x492   : > { %v14767_v54 = vrot.slane %v14766_v20, 2  ;;  %v12562_v24 = vrot.slane %v12547_v51, %v17550_v4  ;;  %v19904_v58 = vsel %vm15132_vm6, %v14749_v23, %v15232_v0  ;;  %v7099_v55 = vrot.slane %v3208_v29, %v17550_v4 }
 0x493   : > { %v12555_v14 = vrot.slane %v12548_v33, %v17550_v4  ;;  %v12587_v28 = vcombine.low %v12572_v10, %v12579_v46  ;;  %v7106_v49 = vrot.slane %v7092_v43, %v17550_v4  ;;  %v3207_v57 = vmax.f32 %v3113_v12, 0.0 }
 0x494   : > { %v14768_v25 = vmax.f32 %v14766_v20, %v14767_v54  ;;  %v12601_v26 = vrot.slane %v12586_v44, %v17550_v4  ;;  %v7107_v8 = vcombine.high %v7099_v55, %v7099_v55  ;;  %v7115_v48 = vrot.slane %v7099_v55, %v17550_v4 }
 0x495   : > { %v12563_v23 = vcombine.low %v12555_v14, %v12562_v24  ;;  %v12594_v6 = vrot.slane %v12587_v28, %v17550_v4  ;;  %v7108_v29 = vcombine.high %v7106_v49, %v7106_v49  ;;  %v7122_v51 = vrot.slane %v7106_v49, %v17550_v4 }
 0x496   : > { %v14769_v21 = vrot.slane %v14768_v25, 1  ;;  %v7129_v5 = vrot.slane %v7107_v8, %v17550_v4  ;;  %v7137_v13 = vcombine.high %v7115_v48, %v7115_v48  ;;  %v7043_v52 = vcombine.high %v3207_v57, %v3207_v57 }
 0x497   : > { %v12602_v16 = vcombine.low %v12594_v6, %v12601_v26  ;;  %v14750_v41 = vsel %vm13923_vm1, %v12563_v23, -inf  ;;  %v7136_v19 = vrot.slane %v7108_v29, %v17550_v4  ;;  %v7050_v12 = vrot.slane %v3207_v57, %v17550_v4 }
 0x498   : > { %v14751_v15 = vrot.slane %v14750_v41, 4  ;;  %v7139_v20 = vcombine.high %v7129_v5, %v7129_v5  ;;  %v12721_v10 = vcombine.low %v7129_v5, %v7137_v13  ;;  %v7042_v44 = vcombine.high %v19856_v59, %v19856_v59 }
 0x499   : > { %v14757_v0 = vsel %vm13923_vm1, %v12602_v16, -inf  ;;  %v12759_v33 = vcombine.low %v7122_v51, %v7136_v19  ;;  %v15735_v46 = vcombine.high %v7122_v51, %v7136_v19  ;;  %v7057_v43 = vrot.slane %v7043_v52, %v17550_v4 }
 0x49a   : > { %v19925_v54 = vmax.f32 %v14768_v25, %v14769_v21  ;;  %v14752_v24 = vmax.f32 %v14750_v41, %v14751_v15  ;;  %v14758_v55 = vrot.slane %v14757_v0, 4  ;;  %v12742_v14 = vrot.slane %v7139_v20, %v17550_v4 }
 0x49b   : > { %v12735_v28 = vrot.slane %v12721_v10, %v17550_v4  ;;  %v19930_v49 = vrot.slane %v12759_v33, %v17550_v4  ;;  %v7058_v57 = vcombine.high %v7050_v12, %v7050_v12  ;;  %v7059_v26 = vcombine.high %v7057_v43, %v7057_v43 }
 0x49c   : > { %v14753_v59 = vrot.slane %v14752_v24, 2  ;;  %v14759_v8 = vmax.f32 %v14757_v0, %v14758_v55  ;;  %v12774_v23 = vrot.slane %v15735_v46, %v17550_v4  ;;  %v7066_v6 = vrot.slane %v7050_v12, %v17550_v4  ;;  %v19942_v46 = vpop.f32.mrb[93].mxu1 }
 0x49d   : > { %v12757_v25 = vrot.slane %v12742_v14, %v17550_v4  ;;  %v7073_v29 = vrot.slane %v7057_v43, %v17550_v4  ;;  %v7080_v51 = vrot.slane %v7058_v57, %v17550_v4  ;;  %v7087_v21 = vrot.slane %v7059_v26, %v17550_v4  ;;  %v19944_v43 = vpop.f32.mrb[91].mxu0 }
 0x49e   : > { %v14754_v5 = vmax.f32 %v14752_v24, %v14753_v59  ;;  %v14760_v13 = vrot.slane %v14759_v8, 2  ;;  %v12643_v52 = vcombine.low %v7042_v44, %v7066_v6  ;;  %v12650_v16 = vrot.slane %v19873_v11, %v17550_v4 }
 0x49f   : > { %v7089_v41 = vcombine.high %v7073_v29, %v7073_v29  ;;  %v7091_v19 = vcombine.high %v7087_v21, %v7087_v21  ;;  %v12664_v15 = vrot.slane %v7080_v51, %v17550_v4  ;;  %v15734_v20 = vcombine.high %v7066_v6, %v7080_v51 }
 0x4a0   : > { %v14755_v12 = vrot.slane %v14754_v5, 1  ;;  %v14761_v10 = vmax.f32 %v14759_v8, %v14760_v13  ;;  %v12657_v0 = vrot.slane %v12643_v52, %v17550_v4  ;;  %v12682_v33 = vcombine.low %v7073_v29, %v7087_v21 }
 0x4a1   : > { %v12782_v24 = vcombine.low %v19930_v49, %v12774_v23  ;;  %v12689_v44 = vrot.slane %v15734_v20, %v17550_v4  ;;  %v12703_v11 = vrot.slane %v7089_v41, %v17550_v4  ;;  %v12720_v55 = vcombine.low %v7091_v19, %v7115_v48  ;;  %v19974_v20 = vld [vmem:[#allocation4] ss:$0 sm:$0xff] }
 0x4a2   : > { %v14756_v14 = vmax.f32 %v14754_v5, %v14755_v12  ;;  %v14762_v57 = vrot.slane %v14761_v10, 1  ;;  %v12665_v26 = vcombine.low %v12650_v16, %v12657_v0  ;;  %v12696_v59 = vrot.slane %v12682_v33, %v17550_v4 }
 0x4a3   : > { %v12679_v8 = vrot.slane %v12664_v15, %v17550_v4  ;;  %v12728_v6 = vrot.slane %v12720_v55, %v17550_v4  ;;  %v16544_v29 = vadd.f32 %v19531_v17, %v19478_v60  ;;  %v16545_v49 = vadd.f32 %v19566_v61, %v19500_v45  ;;  %v19987_v55 = vpop.f32.mrb[92].mxu0 }
 0x4a4   : > { %v14763_v23 = vmax.f32 %v14761_v10, %v14762_v57  ;;  %v15234_v48 = vsel %vm15134_vm7, %v14756_v14, %v19904_v58  ;;  %v12672_v51 = vrot.slane %v12665_v26, %v17550_v4  ;;  %v12704_v21 = vcombine.low %v12689_v44, %v12696_v59 }
 0x4a5   : > { %v12718_v5 = vrot.slane %v12703_v11, %v17550_v4  ;;  %v12743_v13 = vcombine.low %v12728_v6, %v12735_v28  ;;  %v3116_v52 = vadd.f32 %v19594_v9, %v16544_v29  ;;  %v3115_v16 = vadd.f32 %v19594_v9, %v16545_v49 }
 0x4a6   : > { %v15235_v41 = vsel %vm15136_vm8, %v14763_v23, %v15234_v48  ;;  %v12680_v60 = vcombine.low %v12672_v51, %v12679_v8  ;;  %v12711_v17 = vrot.slane %v12704_v21, %v17550_v4  ;;  %v16546_v45 = vadd.f32 %v19608_v3, %v19529_v38 }
 0x4a7   : > { %15296 = vst.msk [vmem:[%s17767_s24 + $0x70] sm:$0xff] %vm15281_vm9, %v15235_v41  ;;  %v12750_v61 = vrot.slane %v12743_v13, %v17550_v4  ;;  %v3210_v58 = vmax.f32 %v3116_v52, 0.0  ;;  %v3209_v19 = vmax.f32 %v3115_v16, 0.0  ;;  %v19971_v28 = vadd.f32 %v19632_v42, %v19564_v50 }
 0x4a8   : > { %v12719_v15 = vcombine.low %v12711_v17, %v12718_v5  ;;  %v14771_v9 = vsel %vm13923_vm1, %v12680_v60, -inf  ;;  %v3118_v12 = vadd.f32 %v19974_v20, %v16546_v45  ;;  %v19979_v38 = vadd.f32 %v19679_v32, %v19606_v39 }
 0x4a9   : > { %v12758_v3 = vcombine.low %v12750_v61, %v12757_v25  ;;  %v14772_v10 = vrot.slane %v14771_v9, 4  ;;  %v7190_v0 = vcombine.high %v3210_v58, %v3210_v58  ;;  %v7197_v33 = vrot.slane %v3210_v58, %v17550_v4 }
 0x4aa   : > { %v14778_v44 = vsel %vm13923_vm1, %v12719_v15, -inf  ;;  %v7141_v50 = vcombine.high %v3209_v19, %v3209_v19  ;;  %v7148_v42 = vrot.slane %v3209_v19, %v17550_v4  ;;  %v19985_v11 = vrot.slane %v12782_v24, %v17550_v4 }
 0x4ab   : > { %v14773_v14 = vmax.f32 %v14771_v9, %v14772_v10  ;;  %v14779_v57 = vrot.slane %v14778_v44, 4  ;;  %v14785_v39 = vsel %vm13923_vm1, %v12758_v3, -inf  ;;  %v7204_v32 = vrot.slane %v7190_v0, %v17550_v4  ;;  %v19998_v0 = vpop.f32.mrb[93].mxu0 }
 0x4ac   : > { %v14786_v25 = vrot.slane %v14785_v39, 4  ;;  %v7205_v26 = vcombine.high %v7197_v33, %v7197_v33  ;;  %v7213_v59 = vrot.slane %v7197_v33, %v17550_v4  ;;  %v3212_v8 = vmax.f32 %v3118_v12, 0.0 }
 0x4ad   : > { %v14774_v6 = vrot.slane %v14773_v14, 2  ;;  %v14780_v29 = vmax.f32 %v14778_v44, %v14779_v57  ;;  %v7206_v49 = vcombine.high %v7204_v32, %v7204_v32  ;;  %v7220_v23 = vrot.slane %v7204_v32, %v17550_v4 }
 0x4ae   : > { %v14787_v24 = vmax.f32 %v14785_v39, %v14786_v25  ;;  %v7227_v48 = vrot.slane %v7205_v26, %v17550_v4  ;;  %v7235_v51 = vcombine.high %v7213_v59, %v7213_v59  ;;  %v7155_v21 = vrot.slane %v7141_v50, %v17550_v4 }
 0x4af   : > { %v14775_v5 = vmax.f32 %v14773_v14, %v14774_v6  ;;  %v14781_v13 = vrot.slane %v14780_v29, 2  ;;  %v7234_v52 = vrot.slane %v7206_v49, %v17550_v4  ;;  %v7236_v16 = vcombine.high %v7220_v23, %v7220_v23 }
 0x4b0   : > { %v14788_v41 = vrot.slane %v14787_v24, 2  ;;  %v7237_v60 = vcombine.high %v7227_v48, %v7227_v48  ;;  %v12838_v17 = vcombine.low %v7213_v59, %v7227_v48  ;;  %v7156_v45 = vcombine.high %v7148_v42, %v7148_v42 }
 0x4b1   : > { %v14776_v61 = vrot.slane %v14775_v5, 1  ;;  %v14782_v58 = vmax.f32 %v14780_v29, %v14781_v13  ;;  %v7238_v19 = vcombine.high %v7234_v52, %v7234_v52  ;;  %v12877_v15 = vcombine.low %v7234_v52, %v7236_v16 }
 0x4b2   : > { %v14789_v9 = vmax.f32 %v14787_v24, %v14788_v41  ;;  %v12852_v12 = vrot.slane %v12838_v17, %v17550_v4  ;;  %v12859_v3 = vrot.slane %v7235_v51, %v17550_v4  ;;  %v12876_v10 = vcombine.low %v7237_v60, %v7220_v23 }
 0x4b3   : > { %v14777_v33 = vmax.f32 %v14775_v5, %v14776_v61  ;;  %v14783_v44 = vrot.slane %v14782_v58, 1  ;;  %v12891_v50 = vrot.slane %v12877_v15, %v17550_v4  ;;  %v12898_v14 = vrot.slane %v7238_v19, %v17550_v4 }
 0x4b4   : > { %v14790_v57 = vrot.slane %v14789_v9, 1  ;;  %v12884_v39 = vrot.slane %v12876_v10, %v17550_v4  ;;  %v7157_v32 = vcombine.high %v7155_v21, %v7155_v21  ;;  %v7164_v25 = vrot.slane %v7148_v42, %v17550_v4 }
 0x4b5   : > { %v14784_v26 = vmax.f32 %v14782_v58, %v14783_v44  ;;  %v15236_v59 = vsel %vm15124_vm2, %v14777_v33, %v19925_v54  ;;  %v12913_v6 = vrot.slane %v12898_v14, %v17550_v4  ;;  %v7171_v29 = vrot.slane %v7155_v21, %v17550_v4 }
 0x4b6   : > { %v14791_v49 = vmax.f32 %v14789_v9, %v14790_v57  ;;  %v12899_v23 = vcombine.low %v12884_v39, %v12891_v50  ;;  %v7178_v24 = vrot.slane %v7156_v45, %v17550_v4  ;;  %v7185_v48 = vrot.slane %v7157_v32, %v17550_v4 }
 0x4b7   : > { %v15237_v51 = vsel %vm15126_vm3, %v14784_v26, %v15236_v59  ;;  %v7186_v5 = vcombine.high %v7164_v25, %v7164_v25  ;;  %v12781_v13 = vrot.slane %v7164_v25, %v17550_v4  ;;  %v7288_v42 = vcombine.high %v3212_v8, %v3212_v8 }
 0x4b8   : > { %v12906_v52 = vrot.slane %v12899_v23, %v17550_v4  ;;  %v7188_v16 = vcombine.high %v7178_v24, %v7178_v24  ;;  %v12820_v54 = vrot.slane %v7185_v48, %v17550_v4  ;;  %v15736_v41 = vcombine.high %v7171_v29, %v7185_v48 }
 0x4b9   : > { %v12796_v21 = vrot.slane %v12781_v13, %v17550_v4  ;;  %v12798_v60 = vcombine.low %v7178_v24, %v7186_v5  ;;  %v20016_v17 = vsel %vm15128_vm4, %v14791_v49, %v15237_v51  ;;  %v7295_v45 = vrot.slane %v3212_v8, %v17550_v4 }
 0x4ba   : > { %v12874_v61 = vrot.slane %v12859_v3, %v17550_v4  ;;  %v12914_v58 = vcombine.low %v12906_v52, %v12913_v6  ;;  %v12799_v19 = vcombine.low %v7188_v16, %v7171_v29  ;;  %v12845_v15 = vrot.slane %v15736_v41, %v17550_v4 }
 0x4bb   : > { %v12797_v9 = vcombine.low %v19985_v11, %v12796_v21  ;;  %v12835_v10 = vrot.slane %v12820_v54, %v17550_v4  ;;  %v7302_v33 = vrot.slane %v7288_v42, %v17550_v4  ;;  %v7303_v44 = vcombine.high %v7295_v45, %v7295_v45 }
 0x4bc   : > { %v14813_v50 = vsel %vm13923_vm1, %v12914_v58, -inf  ;;  %v12806_v14 = vrot.slane %v12798_v60, %v17550_v4  ;;  %v12813_v57 = vrot.slane %v12799_v19, %v17550_v4  ;;  %v12860_v8 = vcombine.low %v12845_v15, %v12852_v12 }
 0x4bd   : > { %v14814_v39 = vrot.slane %v14813_v50, 4  ;;  %v14792_v3 = vsel %vm13923_vm1, %v12797_v9, -inf  ;;  %v7304_v32 = vcombine.high %v7302_v33, %v7302_v33  ;;  %v7318_v25 = vrot.slane %v7302_v33, %v17550_v4 }
 0x4be   : > { %v12821_v26 = vcombine.low %v12806_v14, %v12813_v57  ;;  %v12867_v11 = vrot.slane %v12860_v8, %v17550_v4  ;;  %v14793_v59 = vrot.slane %v14792_v3, 4  ;;  %v20031_v6 = vrot.slane %v7303_v44, %v17550_v4 }
 0x4bf   : > { %v14815_v29 = vmax.f32 %v14813_v50, %v14814_v39  ;;  %v20034_v49 = vrot.slane %v7295_v45, %v17550_v4  ;;  %v20037_v23 = vrot.slane %v7304_v32, %v17550_v4  ;;  %v7334_v12 = vcombine.high %v7318_v25, %v7318_v25 }
 0x4c0   : > { %v12828_v24 = vrot.slane %v12821_v26, %v17550_v4  ;;  %v12875_v48 = vcombine.low %v12867_v11, %v12874_v61  ;;  %v14794_v51 = vmax.f32 %v14792_v3, %v14793_v59  ;;  %v3117_v5 = vadd.f32 %v19974_v20, %v19971_v28 }
 0x4c1   : > { %v14816_v13 = vrot.slane %v14815_v29, 2  ;;  %v15738_v42 = vcombine.high %v20034_v49, %v20031_v6  ;;  %v12994_v52 = vcombine.low %v7318_v25, %v20037_v23  ;;  %v13015_v16 = vrot.slane %v7334_v12, %v17550_v4 }
 0x4c2   : > { %v12836_v54 = vcombine.low %v12828_v24, %v12835_v10  ;;  %v14795_v41 = vrot.slane %v14794_v51, 2  ;;  %v14806_v21 = vsel %vm13923_vm1, %v12875_v48, -inf  ;;  %v12976_v60 = vrot.slane %v20031_v6, %v17550_v4 }
 0x4c3   : > { %v14817_v45 = vmax.f32 %v14815_v29, %v14816_v13  ;;  %v14807_v61 = vrot.slane %v14806_v21, 4  ;;  %v13001_v58 = vrot.slane %v15738_v42, %v17550_v4  ;;  %v13008_v28 = vrot.slane %v12994_v52, %v17550_v4 }
 0x4c4   : > { %v14796_v19 = vmax.f32 %v14794_v51, %v14795_v41  ;;  %v14799_v15 = vsel %vm13923_vm1, %v12836_v54, -inf  ;;  %v13030_v9 = vrot.slane %v13015_v16, %v17550_v4  ;;  %v3211_v33 = vmax.f32 %v3117_v5, 0.0 }
 0x4c5   : > { %v14818_v44 = vrot.slane %v14817_v45, 1  ;;  %v14800_v10 = vrot.slane %v14799_v15, 4  ;;  %v14808_v50 = vmax.f32 %v14806_v21, %v14807_v61  ;;  %v13016_v14 = vcombine.low %v13001_v58, %v13008_v28 }
 0x4c6   : > { %v14797_v57 = vrot.slane %v14796_v19, 1  ;;  %v7239_v8 = vcombine.high %v3211_v33, %v3211_v33  ;;  %v7246_v39 = vrot.slane %v3211_v33, %v17550_v4  ;;  %v3120_v3 = vadd.f32 %v19974_v20, %v19979_v38 }
 0x4c7   : > { %v14819_v32 = vmax.f32 %v14817_v45, %v14818_v44  ;;  %v14801_v25 = vmax.f32 %v14799_v15, %v14800_v10  ;;  %v14809_v26 = vrot.slane %v14808_v50, 2  ;;  %v13023_v11 = vrot.slane %v13016_v14, %v17550_v4 }
 0x4c8   : > { %v14798_v59 = vmax.f32 %v14796_v19, %v14797_v57  ;;  %v7253_v29 = vrot.slane %v7239_v8, %v17550_v4  ;;  %v7254_v12 = vcombine.high %v7246_v39, %v7246_v39  ;;  %v7262_v24 = vrot.slane %v7246_v39, %v17550_v4 }
 0x4c9   : > { %v14802_v48 = vrot.slane %v14801_v25, 2  ;;  %v14810_v51 = vmax.f32 %v14808_v50, %v14809_v26  ;;  %v13031_v5 = vcombine.low %v13023_v11, %v13030_v9  ;;  %v3214_v13 = vmax.f32 %v3120_v3, 0.0 }
 0x4ca   : > { %v15239_v42 = vsel %vm15130_vm5, %v14798_v59, %v20016_v17  ;;  %v7255_v52 = vcombine.high %v7253_v29, %v7253_v29  ;;  %v7269_v38 = vrot.slane %v7253_v29, %v17550_v4  ;;  %v7276_v16 = vrot.slane %v7254_v12, %v17550_v4 }
 0x4cb   : > { %v14803_v54 = vmax.f32 %v14801_v25, %v14802_v48  ;;  %v14811_v41 = vrot.slane %v14810_v51, 1  ;;  %v14834_v21 = vsel %vm13923_vm1, %v13031_v5, -inf  ;;  %v7386_v45 = vcombine.high %v3214_v13, %v3214_v13 }
 0x4cc   : > { %v14835_v61 = vrot.slane %v14834_v21, 4  ;;  %v7283_v58 = vrot.slane %v7255_v52, %v17550_v4  ;;  %v7285_v28 = vcombine.high %v7269_v38, %v7269_v38  ;;  %v12915_v19 = vcombine.low %v7262_v24, %v7276_v16 }
 0x4cd   : > { %v14804_v15 = vrot.slane %v14803_v54, 1  ;;  %v14812_v9 = vmax.f32 %v14810_v51, %v14811_v41  ;;  %v15737_v33 = vcombine.high %v7262_v24, %v7276_v16  ;;  %v12937_v17 = vrot.slane %v7269_v38, %v17550_v4 }
 0x4ce   : > { %v14836_v44 = vmax.f32 %v14834_v21, %v14835_v61  ;;  %v7287_v10 = vcombine.high %v7283_v58, %v7283_v58  ;;  %v12923_v50 = vrot.slane %v12915_v19, %v17550_v4  ;;  %v12954_v14 = vcombine.low %v7283_v58, %v7285_v28 }
 0x4cf   : > { %v14805_v57 = vmax.f32 %v14803_v54, %v14804_v15  ;;  %v12930_v8 = vrot.slane %v15737_v33, %v17550_v4  ;;  %v12952_v39 = vrot.slane %v12937_v17, %v17550_v4  ;;  %v7393_v3 = vrot.slane %v3214_v13, %v17550_v4 }
 0x4d0   : > { %v14837_v25 = vrot.slane %v14836_v44, 2  ;;  %v12955_v26 = vcombine.low %v7287_v10, %v20034_v49  ;;  %v12962_v11 = vrot.slane %v12954_v14, %v17550_v4  ;;  %v7400_v59 = vrot.slane %v7386_v45, %v17550_v4 }
 0x4d1   : > { %v15240_v29 = vsel %vm15132_vm6, %v14805_v57, %v15239_v42  ;;  %v12938_v12 = vcombine.low %v12923_v50, %v12930_v8  ;;  %v7401_v24 = vcombine.high %v7393_v3, %v7393_v3  ;;  %v7409_v48 = vrot.slane %v7393_v3, %v17550_v4 }
 0x4d2   : > { %v15241_v51 = vsel %vm15134_vm7, %v14812_v9, %v15240_v29  ;;  %v14838_v5 = vmax.f32 %v14836_v44, %v14837_v25  ;;  %v12969_v52 = vrot.slane %v12955_v26, %v17550_v4  ;;  %v7402_v13 = vcombine.high %v7400_v59, %v7400_v59 }
 0x4d3   : > { %v15242_v38 = vsel %vm15136_vm8, %v14819_v32, %v15241_v51  ;;  %v12945_v49 = vrot.slane %v12938_v12, %v17550_v4  ;;  %v7416_v16 = vrot.slane %v7400_v59, %v17550_v4  ;;  %v7423_v54 = vrot.slane %v7401_v24, %v17550_v4 }
 0x4d4   : > { %15297 = vst.msk [vmem:[%s17767_s24 + $0x78] sm:$0xff] %vm15281_vm9, %v15242_v38  ;;  %v14839_v42 = vrot.slane %v14838_v5, 1  ;;  %v12977_v41 = vcombine.low %v12962_v11, %v12969_v52  ;;  %v7430_v21 = vrot.slane %v7402_v13, %v17550_v4  ;;  %v7431_v45 = vcombine.high %v7409_v48, %v7409_v48 }
 0x4d5   : > { %v12953_v61 = vcombine.low %v12945_v49, %v12952_v39  ;;  %v7433_v58 = vcombine.high %v7423_v54, %v7423_v54  ;;  %v13093_v28 = vrot.slane %v7409_v48, %v17550_v4  ;;  %v16549_v32 = vadd.f32 %v19698_v47, %v19630_v30 }
 0x4d6   : > { %v12991_v19 = vrot.slane %v12976_v60, %v17550_v4  ;;  %v12984_v15 = vrot.slane %v12977_v41, %v17550_v4  ;;  %v13110_v9 = vcombine.low %v7423_v54, %v7431_v45  ;;  %v13132_v33 = vrot.slane %v7430_v21, %v17550_v4 }
 0x4d7   : > { %v20093_v17 = vmax.f32 %v14838_v5, %v14839_v42  ;;  %v14820_v44 = vsel %vm13923_vm1, %v12953_v61, -inf  ;;  %v13111_v10 = vcombine.low %v7433_v58, %v7416_v16  ;;  %v15740_v50 = vcombine.high %v7416_v16, %v7430_v21 }
 0x4d8   : > { %v12992_v14 = vcombine.low %v12984_v15, %v12991_v19  ;;  %v14821_v57 = vrot.slane %v14820_v44, 4  ;;  %v20097_v30 = vrot.slane %v13093_v28, %v17550_v4  ;;  %v13118_v47 = vrot.slane %v13110_v9, %v17550_v4 }
 0x4d9   : > { %v13125_v6 = vrot.slane %v13111_v10, %v17550_v4  ;;  %v13147_v60 = vrot.slane %v13132_v33, %v17550_v4  ;;  %v20103_v8 = vrot.slane %v15740_v50, %v17550_v4  ;;  %v3119_v39 = vadd.f32 %v19974_v20, %v16549_v32 }
 0x4da   : > { %v14822_v3 = vmax.f32 %v14820_v44, %v14821_v57  ;;  %v14827_v25 = vsel %vm13923_vm1, %v12992_v14, -inf  ;;  %v16550_v26 = vadd.f32 %v19740_v63, %v19677_v40  ;;  %v16551_v11 = vadd.f32 %v19757_v62, %v19696_v22 }
 0x4db   : > { %v14828_v59 = vrot.slane %v14827_v25, 4  ;;  %v13133_v29 = vcombine.low %v13118_v47, %v13125_v6  ;;  %v3213_v12 = vmax.f32 %v3119_v39, 0.0  ;;  %v16552_v24 = vadd.f32 %v19780_v34, %v19738_v56 }
 0x4dc   : > { %v14823_v48 = vrot.slane %v14822_v3, 2  ;;  %v3122_v51 = vadd.f32 %v19974_v20, %v16550_v26  ;;  %v3121_v5 = vadd.f32 %v19974_v20, %v16551_v11  ;;  %v20117_v52 = vadd.f32 %v19823_v27, %v19755_v53 }
 0x4dd   : > { %v14829_v13 = vmax.f32 %v14827_v25, %v14828_v59  ;;  %v13140_v40 = vrot.slane %v13133_v29, %v17550_v4  ;;  %v7337_v63 = vcombine.high %v3213_v12, %v3213_v12  ;;  %v7344_v22 = vrot.slane %v3213_v12, %v17550_v4 }
 0x4de   : > { %v14824_v62 = vmax.f32 %v14822_v3, %v14823_v48  ;;  %v7336_v38 = vcombine.high %v20037_v23, %v20037_v23  ;;  %v3216_v56 = vmax.f32 %v3122_v51, 0.0  ;;  %v3215_v34 = vmax.f32 %v3121_v5, 0.0 }
 0x4df   : > { %v14830_v49 = vrot.slane %v14829_v13, 2  ;;  %v13148_v16 = vcombine.low %v13140_v40, %v13147_v60  ;;  %v7351_v54 = vrot.slane %v7337_v63, %v17550_v4  ;;  %v7352_v42 = vcombine.high %v7344_v22, %v7344_v22 }
 0x4e0   : > { %v14825_v41 = vrot.slane %v14824_v62, 1  ;;  %v7360_v53 = vrot.slane %v7344_v22, %v17550_v4  ;;  %v7484_v27 = vcombine.high %v3216_v56, %v3216_v56  ;;  %v7491_v21 = vrot.slane %v3216_v56, %v17550_v4 }
 0x4e1   : > { %v14831_v45 = vmax.f32 %v14829_v13, %v14830_v49  ;;  %v14855_v61 = vsel %vm13923_vm1, %v13148_v16, -inf  ;;  %v7353_v58 = vcombine.high %v7351_v54, %v7351_v54  ;;  %v7367_v28 = vrot.slane %v7351_v54, %v17550_v4 }
 0x4e2   : > { %v14826_v23 = vmax.f32 %v14824_v62, %v14825_v41  ;;  %v14856_v32 = vrot.slane %v14855_v61, 4  ;;  %v7374_v19 = vrot.slane %v7352_v42, %v17550_v4  ;;  %v7382_v15 = vcombine.high %v7360_v53, %v7360_v53 }
 0x4e3   : > { %v14832_v9 = vrot.slane %v14831_v45, 1  ;;  %v7381_v33 = vrot.slane %v7353_v58, %v17550_v4  ;;  %v13032_v44 = vcombine.low %v7336_v38, %v7360_v53  ;;  %v7498_v10 = vrot.slane %v7484_v27, %v17550_v4 }
 0x4e4   : > { %v14857_v50 = vmax.f32 %v14855_v61, %v14856_v32  ;;  %v7384_v14 = vcombine.high %v7374_v19, %v7374_v19  ;;  %v13033_v57 = vcombine.low %v7374_v19, %v7382_v15  ;;  %v7499_v47 = vcombine.high %v7491_v21, %v7491_v21 }
 0x4e5   : > { %v14833_v6 = vmax.f32 %v14831_v45, %v14832_v9  ;;  %v13040_v60 = vrot.slane %v13032_v44, %v17550_v4  ;;  %v13071_v39 = vcombine.low %v7367_v28, %v7381_v33  ;;  %v15739_v3 = vcombine.high %v7367_v28, %v7381_v33 }
 0x4e6   : > { %v14858_v25 = vrot.slane %v14857_v50, 2  ;;  %v13047_v26 = vrot.slane %v13033_v57, %v17550_v4  ;;  %v13054_v11 = vrot.slane %v7384_v14, %v17550_v4  ;;  %v3124_v59 = vadd.f32 %v19974_v20, %v16552_v24 }
 0x4e7   : > { %v15243_v29 = vsel %vm15124_vm2, %v14833_v6, %v14826_v23  ;;  %v13079_v12 = vrot.slane %v13071_v39, %v17550_v4  ;;  %v13086_v48 = vrot.slane %v15739_v3, %v17550_v4  ;;  %v7500_v51 = vcombine.high %v7498_v10, %v7498_v10 }
 0x4e8   : > { %v20140_v5 = vsel %vm15126_vm3, %v20093_v17, %v15243_v29  ;;  %v14859_v13 = vmax.f32 %v14857_v50, %v14858_v25  ;;  %v13055_v40 = vcombine.low %v13040_v60, %v13047_v26  ;;  %v7507_v63 = vrot.slane %v7491_v21, %v17550_v4 }
 0x4e9   : > { %v13069_v22 = vrot.slane %v13054_v11, %v17550_v4  ;;  %v13094_v62 = vcombine.low %v13079_v12, %v13086_v48  ;;  %v20145_v24 = vrot.slane %v7498_v10, %v17550_v4  ;;  %v7521_v38 = vrot.slane %v7499_v47, %v17550_v4 }
 0x4ea   : > { %v14860_v56 = vrot.slane %v14859_v13, 1  ;;  %v13062_v49 = vrot.slane %v13055_v40, %v17550_v4  ;;  %v7435_v16 = vcombine.high %v3215_v34, %v3215_v34  ;;  %v7442_v54 = vrot.slane %v3215_v34, %v17550_v4 }
 0x4eb   : > { %v13101_v17 = vrot.slane %v13094_v62, %v17550_v4  ;;  %v20152_v42 = vrot.slane %v7500_v51, %v17550_v4  ;;  %v13227_v41 = vcombine.low %v7507_v63, %v7521_v38  ;;  %v15741_v53 = vcombine.high %v7507_v63, %v7521_v38 }
 0x4ec   : > { %v13070_v27 = vcombine.low %v13062_v49, %v13069_v22  ;;  %v7530_v21 = vcombine.high %v20145_v24, %v20145_v24  ;;  %v13249_v45 = vrot.slane %v20145_v24, %v17550_v4  ;;  %v7449_v61 = vrot.slane %v7435_v16, %v17550_v4 }
 0x4ed   : > { %v20159_v58 = vmax.f32 %v14859_v13, %v14860_v56  ;;  %v13109_v34 = vcombine.low %v13101_v17, %v20097_v30  ;;  %v13235_v28 = vrot.slane %v13227_v41, %v17550_v4  ;;  %v13242_v23 = vrot.slane %v15741_v53, %v17550_v4 }
 0x4ee   : > { %v14841_v32 = vsel %vm13923_vm1, %v13070_v27, -inf  ;;  %v13264_v19 = vrot.slane %v13249_v45, %v17550_v4  ;;  %v7450_v15 = vcombine.high %v7442_v54, %v7442_v54  ;;  %v7451_v9 = vcombine.high %v7449_v61, %v7449_v61 }
 0x4ef   : > { %v14842_v33 = vrot.slane %v14841_v32, 4  ;;  %v14848_v44 = vsel %vm13923_vm1, %v13109_v34, -inf  ;;  %v13250_v10 = vcombine.low %v13235_v28, %v13242_v23  ;;  %v7458_v50 = vrot.slane %v7442_v54, %v17550_v4 }
 0x4f0   : > { %v14849_v14 = vrot.slane %v14848_v44, 4  ;;  %v7465_v57 = vrot.slane %v7449_v61, %v17550_v4  ;;  %v7472_v30 = vrot.slane %v7450_v15, %v17550_v4  ;;  %v7479_v47 = vrot.slane %v7451_v9, %v17550_v4 }
 0x4f1   : > { %v14843_v6 = vmax.f32 %v14841_v32, %v14842_v33  ;;  %v13257_v60 = vrot.slane %v13250_v10, %v17550_v4  ;;  %v7480_v39 = vcombine.high %v7458_v50, %v7458_v50  ;;  %v3218_v3 = vmax.f32 %v3124_v59, 0.0 }
 0x4f2   : > { %v14850_v25 = vmax.f32 %v14848_v44, %v14849_v14  ;;  %v7481_v26 = vcombine.high %v7465_v57, %v7465_v57  ;;  %v7482_v11 = vcombine.high %v7472_v30, %v7472_v30  ;;  %v7483_v29 = vcombine.high %v7479_v47, %v7479_v47 }
 0x4f3   : > { %v14844_v12 = vrot.slane %v14843_v6, 2  ;;  %v13265_v48 = vcombine.low %v13257_v60, %v13264_v19  ;;  %v13150_v51 = vcombine.low %v7458_v50, %v7472_v30  ;;  %v13171_v13 = vrot.slane %v7480_v39, %v17550_v4 }
 0x4f4   : > { %v14851_v40 = vrot.slane %v14850_v25, 2  ;;  %v13188_v63 = vcombine.low %v7482_v11, %v7465_v57  ;;  %v13189_v22 = vcombine.low %v7479_v47, %v7481_v26  ;;  %v13210_v62 = vrot.slane %v7483_v29, %v17550_v4 }
 0x4f5   : > { %v14845_v38 = vmax.f32 %v14843_v6, %v14844_v12  ;;  %v14876_v56 = vsel %vm13923_vm1, %v13265_v48, -inf  ;;  %v13164_v49 = vrot.slane %v13150_v51, %v17550_v4  ;;  %v13186_v59 = vrot.slane %v13171_v13, %v17550_v4 }
 0x4f6   : > { %v14852_v16 = vmax.f32 %v14850_v25, %v14851_v40  ;;  %v14877_v54 = vrot.slane %v14876_v56, 4  ;;  %v13196_v17 = vrot.slane %v13188_v63, %v17550_v4  ;;  %v13203_v41 = vrot.slane %v13189_v22, %v17550_v4 }
 0x4f7   : > { %v14846_v53 = vrot.slane %v14845_v38, 1  ;;  %v13172_v27 = vcombine.low %v20103_v8, %v13164_v49  ;;  %v13225_v45 = vrot.slane %v13210_v62, %v17550_v4  ;;  %v7582_v61 = vcombine.high %v3218_v3, %v3218_v3 }
 0x4f8   : > { %v14853_v34 = vrot.slane %v14852_v16, 1  ;;  %v14878_v28 = vmax.f32 %v14876_v56, %v14877_v54  ;;  %v13211_v23 = vcombine.low %v13196_v17, %v13203_v41  ;;  %v7589_v32 = vrot.slane %v3218_v3, %v17550_v4 }
 0x4f9   : > { %v14847_v19 = vmax.f32 %v14845_v38, %v14846_v53  ;;  %v13179_v15 = vrot.slane %v13172_v27, %v17550_v4  ;;  %v7596_v9 = vrot.slane %v7582_v61, %v17550_v4  ;;  %v3123_v33 = vadd.f32 %v19974_v20, %v20117_v52 }
 0x4fa   : > { %v14854_v44 = vmax.f32 %v14852_v16, %v14853_v34  ;;  %v14879_v10 = vrot.slane %v14878_v28, 2  ;;  %v13218_v8 = vrot.slane %v13211_v23, %v17550_v4  ;;  %v7597_v50 = vcombine.high %v7589_v32, %v7589_v32 }
 0x4fb   : > { %v15245_v14 = vsel %vm15128_vm4, %v14847_v19, %v20140_v5  ;;  %v13187_v57 = vcombine.low %v13179_v15, %v13186_v59  ;;  %v7598_v30 = vcombine.high %v7596_v9, %v7596_v9  ;;  %v20190_v47 = vrot.slane %v7589_v32, %v17550_v4 }
 0x4fc   : > { %v15246_v6 = vsel %vm15130_vm5, %v14854_v44, %v15245_v14  ;;  %v14880_v60 = vmax.f32 %v14878_v28, %v14879_v10  ;;  %v13226_v39 = vcombine.low %v13218_v8, %v13225_v45  ;;  %v7612_v3 = vrot.slane %v7596_v9, %v17550_v4 }
 0x4fd   : > { %v14862_v52 = vsel %vm13923_vm1, %v13187_v57, -inf  ;;  %v15247_v25 = vsel %vm15132_vm6, %v20159_v58, %v15246_v6  ;;  %v7619_v26 = vrot.slane %v7597_v50, %v17550_v4  ;;  %v7626_v5 = vrot.slane %v7598_v30, %v17550_v4 }
 0x4fe   : > { %v14881_v11 = vrot.slane %v14880_v60, 1  ;;  %v14863_v29 = vrot.slane %v14862_v52, 4  ;;  %v14869_v12 = vsel %vm13923_vm1, %v13226_v39, -inf  ;;  %v7627_v48 = vcombine.high %v20190_v47, %v20190_v47 }
 0x4ff   : > { %v14870_v51 = vrot.slane %v14869_v12, 4  ;;  %v7629_v13 = vcombine.high %v7619_v26, %v7619_v26  ;;  %v13383_v40 = vcombine.low %v7612_v3, %v7626_v5  ;;  %v15743_v63 = vcombine.high %v7612_v3, %v7626_v5 }
 0x500   : > { %v13266_v58 = vcombine.low %v20152_v42, %v7530_v21  ;;  %v14864_v22 = vmax.f32 %v14862_v52, %v14863_v29  ;;  %v20206_v62 = vcombine.low %v7619_v26, %v7627_v48  ;;  %v3217_v38 = vmax.f32 %v3123_v33, 0.0 }
 0x501   : > { %v20208_v56 = vmax.f32 %v14880_v60, %v14881_v11  ;;  %v14871_v49 = vmax.f32 %v14869_v12, %v14870_v51  ;;  %v20211_v59 = vrot.slane %v7629_v13, %v17550_v4  ;;  %v13391_v16 = vrot.slane %v13383_v40, %v17550_v4 }
 0x502   : > { %v14865_v54 = vrot.slane %v14864_v22, 2  ;;  %v13359_v17 = vrot.slane %v20206_v62, %v17550_v4  ;;  %v13398_v24 = vrot.slane %v15743_v63, %v17550_v4  ;;  %v7533_v41 = vcombine.high %v3217_v38, %v3217_v38 }
 0x503   : > { %v14872_v21 = vrot.slane %v14871_v49, 2  ;;  %v13381_v53 = vrot.slane %v20211_v59, %v17550_v4  ;;  %v7532_v27 = vcombine.high %v20152_v42, %v20152_v42  ;;  %v7540_v45 = vrot.slane %v3217_v38, %v17550_v4 }
 0x504   : > { %v14866_v61 = vmax.f32 %v14864_v22, %v14865_v54  ;;  %v7547_v34 = vrot.slane %v7533_v41, %v17550_v4  ;;  %v13274_v28 = vrot.slane %v13266_v58, %v17550_v4  ;;  %v16554_v23 = vadd.f32 %v19849_v35, %v19778_v18 }
 0x505   : > { %v14873_v32 = vmax.f32 %v14871_v49, %v14872_v21  ;;  %v7548_v19 = vcombine.high %v7540_v45, %v7540_v45  ;;  %v7556_v15 = vrot.slane %v7540_v45, %v17550_v4  ;;  %v16555_v9 = vadd.f32 %v19884_v37, %v19821_v36 }
 0x506   : > { %v14867_v33 = vrot.slane %v14866_v61, 1  ;;  %v7549_v44 = vcombine.high %v7547_v34, %v7547_v34  ;;  %v7563_v42 = vrot.slane %v7547_v34, %v17550_v4  ;;  %v3126_v10 = vadd.f32 %v19974_v20, %v16554_v23 }
 0x507   : > { %v14874_v8 = vrot.slane %v14873_v32, 1  ;;  %v7570_v50 = vrot.slane %v7548_v19, %v17550_v4  ;;  %v13267_v14 = vcombine.low %v7532_v27, %v7556_v15  ;;  %v3125_v57 = vadd.f32 %v19974_v20, %v16555_v9 }
 0x508   : > { %v14868_v18 = vmax.f32 %v14866_v61, %v14867_v33  ;;  %v7577_v35 = vrot.slane %v7549_v44, %v17550_v4  ;;  %v7579_v30 = vcombine.high %v7563_v42, %v7563_v42  ;;  %v3220_v6 = vmax.f32 %v3126_v10, 0.0 }
 0x509   : > { %v14875_v60 = vmax.f32 %v14873_v32, %v14874_v8  ;;  %v13281_v36 = vrot.slane %v13267_v14, %v17550_v4  ;;  %v13288_v37 = vrot.slane %v7570_v50, %v17550_v4  ;;  %v15742_v39 = vcombine.high %v7556_v15, %v7570_v50 }
 0x50a   : > { %v15248_v3 = vsel %vm15134_vm7, %v14868_v18, %v15247_v25  ;;  %v7581_v52 = vcombine.high %v7577_v35, %v7577_v35  ;;  %v13306_v26 = vcombine.low %v7563_v42, %v7577_v35  ;;  %v13327_v5 = vrot.slane %v7579_v30, %v17550_v4 }
 0x50b   : > { %v15249_v11 = vsel %vm15136_vm8, %v14875_v60, %v15248_v3  ;;  %v13406_v29 = vcombine.low %v13391_v16, %v13398_v24  ;;  %v13289_v12 = vcombine.low %v13274_v28, %v13281_v36  ;;  %v13303_v48 = vrot.slane %v13288_v37, %v17550_v4 }
 0x50c   : > { %15298 = vst.msk [vmem:[%s17767_s24 + $0x80] sm:$0xff] %vm15281_vm9, %v15249_v11  ;;  %v13313_v51 = vrot.slane %v15742_v39, %v17550_v4  ;;  %v13320_v13 = vrot.slane %v13306_v26, %v17550_v4  ;;  %v13344_v40 = vcombine.low %v7581_v52, %v20190_v47  ;;  %v7680_v63 = vcombine.high %v3220_v6, %v3220_v6 }
 0x50d   : > { %v13296_v25 = vrot.slane %v13289_v12, %v17550_v4  ;;  %v13342_v58 = vrot.slane %v13327_v5, %v17550_v4  ;;  %v7687_v22 = vrot.slane %v3220_v6, %v17550_v4  ;;  %v3219_v62 = vmax.f32 %v3125_v57, 0.0 }
 0x50e   : > { %v13328_v38 = vcombine.low %v13313_v51, %v13320_v13  ;;  %v13352_v49 = vrot.slane %v13344_v40, %v17550_v4  ;;  %v7694_v16 = vrot.slane %v7680_v63, %v17550_v4  ;;  %v20252_v54 = vadd.f32 %v19913_v7, %v19847_v2 }
 0x50f   : > { %v13304_v24 = vcombine.low %v13296_v25, %v13303_v48  ;;  %v7695_v41 = vcombine.high %v7687_v22, %v7687_v22  ;;  %v7703_v47 = vrot.slane %v7687_v22, %v17550_v4  ;;  %v20256_v21 = vrot.slane %v13406_v29, %v17550_v4 }
 0x510   : > { %v13335_v27 = vrot.slane %v13328_v38, %v17550_v4  ;;  %v13367_v45 = vcombine.low %v13352_v49, %v13359_v17  ;;  %v7696_v61 = vcombine.high %v7694_v16, %v7694_v16  ;;  %v7710_v34 = vrot.slane %v7694_v16, %v17550_v4 }
 0x511   : > { %v14883_v28 = vsel %vm13923_vm1, %v13304_v24, -inf  ;;  %v7717_v23 = vrot.slane %v7695_v41, %v17550_v4  ;;  %v7725_v32 = vcombine.high %v7703_v47, %v7703_v47  ;;  %v7631_v2 = vcombine.high %v3219_v62, %v3219_v62 }
 0x512   : > { %v13343_v7 = vcombine.low %v13335_v27, %v13342_v58  ;;  %v13374_v19 = vrot.slane %v13367_v45, %v17550_v4  ;;  %v14884_v15 = vrot.slane %v14883_v28, 4  ;;  %v7724_v9 = vrot.slane %v7696_v61, %v17550_v4 }
 0x513   : > { %v7726_v33 = vcombine.high %v7710_v34, %v7710_v34  ;;  %v7727_v44 = vcombine.high %v7717_v23, %v7717_v23  ;;  %v13462_v42 = vcombine.low %v7703_v47, %v7717_v23  ;;  %v7638_v17 = vrot.slane %v3219_v62, %v17550_v4 }
 0x514   : > { %v13382_v10 = vcombine.low %v13374_v19, %v13381_v53  ;;  %v14885_v8 = vmax.f32 %v14883_v28, %v14884_v15  ;;  %v14890_v50 = vsel %vm13923_vm1, %v13343_v7, -inf  ;;  %v7728_v14 = vcombine.high %v7724_v9, %v7724_v9 }
 0x515   : > { %v14891_v57 = vrot.slane %v14890_v50, 4  ;;  %v20270_v18 = vrot.slane %v13462_v42, %v17550_v4  ;;  %v20273_v35 = vrot.slane %v7725_v32, %v17550_v4  ;;  %v13500_v30 = vcombine.low %v7727_v44, %v7710_v34 }
 0x516   : > { %v14886_v6 = vrot.slane %v14885_v8, 2  ;;  %v14897_v60 = vsel %vm13923_vm1, %v13382_v10, -inf  ;;  %v13501_v36 = vcombine.low %v7724_v9, %v7726_v33  ;;  %v13522_v37 = vrot.slane %v7728_v14, %v17550_v4 }
 0x517   : > { %v14892_v59 = vmax.f32 %v14890_v50, %v14891_v57  ;;  %v14898_v53 = vrot.slane %v14897_v60, 4  ;;  %v13508_v39 = vrot.slane %v13500_v30, %v17550_v4  ;;  %v7645_v3 = vrot.slane %v7631_v2, %v17550_v4 }
 0x518   : > { %v14887_v52 = vmax.f32 %v14885_v8, %v14886_v6  ;;  %v13515_v26 = vrot.slane %v13501_v36, %v17550_v4  ;;  %v13537_v5 = vrot.slane %v13522_v37, %v17550_v4  ;;  %v7646_v11 = vcombine.high %v7638_v17, %v7638_v17 }
 0x519   : > { %v14893_v29 = vrot.slane %v14892_v59, 2  ;;  %v14899_v12 = vmax.f32 %v14897_v60, %v14898_v53  ;;  %v7647_v48 = vcombine.high %v7645_v3, %v7645_v3  ;;  %v7654_v51 = vrot.slane %v7638_v17, %v17550_v4 }
 0x51a   : > { %v14888_v13 = vrot.slane %v14887_v52, 1  ;;  %v13523_v40 = vcombine.low %v13508_v39, %v13515_v26  ;;  %v7661_v63 = vrot.slane %v7645_v3, %v17550_v4  ;;  %v7668_v25 = vrot.slane %v7646_v11, %v17550_v4 }
 0x51b   : > { %v14894_v58 = vmax.f32 %v14892_v59, %v14893_v29  ;;  %v14900_v22 = vrot.slane %v14899_v12, 2  ;;  %v7675_v62 = vrot.slane %v7647_v48, %v17550_v4  ;;  %v7676_v38 = vcombine.high %v7654_v51, %v7654_v51 }
 0x51c   : > { %v14889_v49 = vmax.f32 %v14887_v52, %v14888_v13  ;;  %v13530_v16 = vrot.slane %v13523_v40, %v17550_v4  ;;  %v7678_v24 = vcombine.high %v7668_v25, %v7668_v25  ;;  %v13405_v41 = vrot.slane %v7654_v51, %v17550_v4 }
 0x51d   : > { %v14895_v47 = vrot.slane %v14894_v58, 1  ;;  %v14901_v27 = vmax.f32 %v14899_v12, %v14900_v22  ;;  %v13422_v45 = vcombine.low %v7668_v25, %v7676_v38  ;;  %v13444_v61 = vrot.slane %v7675_v62, %v17550_v4 }
 0x51e   : > { %v15250_v34 = vsel %vm15124_vm2, %v14889_v49, %v20208_v56  ;;  %v13538_v28 = vcombine.low %v13530_v16, %v13537_v5  ;;  %v13420_v23 = vrot.slane %v13405_v41, %v17550_v4  ;;  %v13423_v32 = vcombine.low %v7678_v24, %v7661_v63 }
 0x51f   : > { %v14896_v2 = vmax.f32 %v14894_v58, %v14895_v47  ;;  %v14902_v7 = vrot.slane %v14901_v27, 1  ;;  %v13430_v19 = vrot.slane %v13422_v45, %v17550_v4  ;;  %v13459_v15 = vrot.slane %v13444_v61, %v17550_v4 }
 0x520   : > { %v14925_v9 = vsel %vm13923_vm1, %v13538_v28, -inf  ;;  %v13421_v33 = vcombine.low %v20256_v21, %v13420_v23  ;;  %v13437_v44 = vrot.slane %v13423_v32, %v17550_v4  ;;  %v15744_v42 = vcombine.high %v7661_v63, %v7675_v62 }
 0x521   : > { %v14903_v17 = vmax.f32 %v14901_v27, %v14902_v7  ;;  %v15251_v56 = vsel %vm15126_vm3, %v14896_v2, %v15250_v34  ;;  %v14926_v10 = vrot.slane %v14925_v9, 4  ;;  %v3128_v8 = vadd.f32 %v19974_v20, %v20252_v54  ;;  %v16694_v27 = vld [vmem:[#allocation4] ss:$0 sm:$0xff] }
 0x522   : > { %v13445_v50 = vcombine.low %v13430_v19, %v13437_v44  ;;  %v13469_v14 = vrot.slane %v15744_v42, %v17550_v4  ;;  %v14904_v57 = vsel %vm13923_vm1, %v13421_v33, -inf  ;;  %v16557_v30 = vadd.f32 %v19944_v43, %v19882_v1 }
 0x523   : > { %v14927_v6 = vmax.f32 %v14925_v9, %v14926_v10  ;;  %v14905_v21 = vrot.slane %v14904_v57, 4  ;;  %v15252_v60 = vsel %vm15128_vm4, %v14903_v17, %v15251_v56  ;;  %v3222_v36 = vmax.f32 %v3128_v8, 0.0 }
 0x524   : > { %v13452_v37 = vrot.slane %v13445_v50, %v17550_v4  ;;  %v13484_v59 = vcombine.low %v13469_v14, %v20270_v18  ;;  %v3127_v53 = vadd.f32 %v19974_v20, %v16557_v30  ;;  %v16558_v54 = vadd.f32 %v19987_v55, %v19911_v31 }
 0x525   : > { %v14928_v39 = vrot.slane %v14927_v6, 2  ;;  %v14906_v3 = vmax.f32 %v14904_v57, %v14905_v21  ;;  %v7778_v52 = vcombine.high %v3222_v36, %v3222_v36  ;;  %v7785_v26 = vrot.slane %v3222_v36, %v17550_v4 }
 0x526   : > { %v13498_v1 = vrot.slane %v20273_v35, %v17550_v4  ;;  %v13460_v43 = vcombine.low %v13452_v37, %v13459_v15  ;;  %v13491_v5 = vrot.slane %v13484_v59, %v17550_v4  ;;  %v3221_v11 = vmax.f32 %v3127_v53, 0.0 }
 0x527   : > { %v14929_v29 = vmax.f32 %v14927_v6, %v14928_v39  ;;  %v14907_v12 = vrot.slane %v14906_v3, 2  ;;  %v7792_v18 = vrot.slane %v7778_v52, %v17550_v4  ;;  %v7793_v20 = vcombine.high %v7785_v26, %v7785_v26 }
 0x528   : > { %v13499_v48 = vcombine.low %v13491_v5, %v13498_v1  ;;  %v14911_v31 = vsel %vm13923_vm1, %v13460_v43, -inf  ;;  %v7801_v55 = vrot.slane %v7785_v26, %v17550_v4  ;;  %v7729_v63 = vcombine.high %v3221_v11, %v3221_v11 }
 0x529   : > { %v14908_v51 = vmax.f32 %v14906_v3, %v14907_v12  ;;  %v14912_v13 = vrot.slane %v14911_v31, 4  ;;  %v7794_v40 = vcombine.high %v7792_v18, %v7792_v18  ;;  %v14930_v25 = vrot.slane %v14929_v29, 1 }
 0x52a   : > { %v14918_v35 = vsel %vm13923_vm1, %v13499_v48, -inf  ;;  %v7808_v58 = vrot.slane %v7792_v18, %v17550_v4  ;;  %v20319_v22 = vrot.slane %v7793_v20, %v17550_v4  ;;  %v7736_v16 = vrot.slane %v3221_v11, %v17550_v4 }
 0x52b   : > { %v14909_v62 = vrot.slane %v14908_v51, 1  ;;  %v14913_v38 = vmax.f32 %v14911_v31, %v14912_v13  ;;  %v14919_v49 = vrot.slane %v14918_v35, 4  ;;  %v20323_v24 = vrot.slane %v7794_v40, %v17550_v4 }
 0x52c   : > { %v7824_v41 = vcombine.high %v7808_v58, %v7808_v58  ;;  %v15746_v47 = vcombine.high %v7801_v55, %v20319_v22  ;;  %v3130_v45 = vadd.f32 %v16694_v27, %v16558_v54  ;;  %v7743_v23 = vrot.slane %v7729_v63, %v17550_v4 }
 0x52d   : > { %v14910_v61 = vmax.f32 %v14908_v51, %v14909_v62  ;;  %v14914_v34 = vrot.slane %v14913_v38, 2  ;;  %v14920_v28 = vmax.f32 %v14918_v35, %v14919_v49  ;;  %v14931_v32 = vmax.f32 %v14929_v29, %v14930_v25 }
 0x52e   : > { %v13600_v2 = vrot.slane %v20319_v22, %v17550_v4  ;;  %v13618_v7 = vcombine.low %v7808_v58, %v20323_v24  ;;  %v13625_v19 = vrot.slane %v15746_v47, %v17550_v4  ;;  %v7744_v44 = vcombine.high %v7736_v16, %v7736_v16 }
 0x52f   : > { %v14915_v15 = vmax.f32 %v14913_v38, %v14914_v34  ;;  %v14921_v9 = vrot.slane %v14920_v28, 2  ;;  %v15253_v33 = vsel %vm15130_vm5, %v14910_v61, %v15252_v60  ;;  %v13639_v17 = vrot.slane %v7824_v41, %v17550_v4 }
 0x530   : > { %v13632_v42 = vrot.slane %v13618_v7, %v17550_v4  ;;  %v7745_v56 = vcombine.high %v7743_v23, %v7743_v23  ;;  %v7752_v10 = vrot.slane %v7736_v16, %v17550_v4  ;;  %v7759_v14 = vrot.slane %v7743_v23, %v17550_v4 }
 0x531   : > { %v14916_v8 = vrot.slane %v14915_v15, 1  ;;  %v14922_v50 = vmax.f32 %v14920_v28, %v14921_v9  ;;  %v7766_v57 = vrot.slane %v7744_v44, %v17550_v4  ;;  %v3224_v21 = vmax.f32 %v3130_v45, 0.0 }
 0x532   : > { %v13640_v30 = vcombine.low %v13625_v19, %v13632_v42  ;;  %v7773_v6 = vrot.slane %v7745_v56, %v17550_v4  ;;  %v16559_v60 = vadd.f32 %v19998_v0, %v19942_v46  ;;  %v7775_v59 = vcombine.high %v7759_v14, %v7759_v14 }
 0x533   : > { %v14917_v36 = vmax.f32 %v14915_v15, %v14916_v8  ;;  %v14923_v37 = vrot.slane %v14922_v50, 1  ;;  %v13539_v53 = vcombine.low %v7752_v10, %v7766_v57  ;;  %v13654_v39 = vrot.slane %v13639_v17, %v17550_v4 }
 0x534   : > { %v13647_v54 = vrot.slane %v13640_v30, %v17550_v4  ;;  %v7777_v3 = vcombine.high %v7773_v6, %v7773_v6  ;;  %v15745_v52 = vcombine.high %v7752_v10, %v7766_v57  ;;  %v13578_v5 = vcombine.low %v7773_v6, %v7775_v59 }
 0x535   : > { %v14924_v26 = vmax.f32 %v14922_v50, %v14923_v37  ;;  %v15254_v1 = vsel %vm15132_vm6, %v14917_v36, %v15253_v33  ;;  %v13547_v43 = vrot.slane %v13539_v53, %v17550_v4  ;;  %v13561_v0 = vrot.slane %v7759_v14, %v17550_v4 }
 0x536   : > { %v13655_v11 = vcombine.low %v13647_v54, %v13654_v39  ;;  %v13554_v46 = vrot.slane %v15745_v52, %v17550_v4  ;;  %v13579_v29 = vcombine.low %v7777_v3, %v7801_v55  ;;  %v13586_v18 = vrot.slane %v13578_v5, %v17550_v4 }
 0x537   : > { %v15255_v12 = vsel %vm15134_vm7, %v14924_v26, %v15254_v1  ;;  %v7876_v20 = vcombine.high %v3224_v21, %v3224_v21  ;;  %v7883_v48 = vrot.slane %v3224_v21, %v17550_v4  ;;  %v13576_v22 = vrot.slane %v13561_v0, %v17550_v4 }
 0x538   : > { %v15256_v31 = vsel %vm15136_vm8, %v14931_v32, %v15255_v12  ;;  %v14946_v51 = vsel %vm13923_vm1, %v13655_v11, -inf  ;;  %v13562_v13 = vcombine.low %v13547_v43, %v13554_v46  ;;  %v13593_v40 = vrot.slane %v13579_v29, %v17550_v4 }
 0x539   : > { %15299 = vst.msk [vmem:[%s17767_s24 + $0x88] sm:$0xff] %vm15281_vm9, %v15256_v31  ;;  %v14947_v63 = vrot.slane %v14946_v51, 4  ;;  %v7890_v25 = vrot.slane %v7876_v20, %v17550_v4  ;;  %v7891_v55 = vcombine.high %v7883_v48, %v7883_v48  ;;  %v20356_v35 = vrot.slane %v7883_v48, %v17550_v4 }
 0x53a   : > { %v13569_v58 = vrot.slane %v13562_v13, %v17550_v4  ;;  %v13601_v62 = vcombine.low %v13586_v18, %v13593_v40  ;;  %v3129_v38 = vadd.f32 %v16694_v27, %v16559_v60  ;;  %v13615_v49 = vrot.slane %v13600_v2, %v17550_v4 }
 0x53b   : > { %v14948_v16 = vmax.f32 %v14946_v51, %v14947_v63  ;;  %v7892_v41 = vcombine.high %v7890_v25, %v7890_v25  ;;  %v7913_v47 = vrot.slane %v7891_v55, %v17550_v4  ;;  %v7906_v34 = vrot.slane %v7890_v25, %v17550_v4 }
 0x53c   : > { %v13577_v45 = vcombine.low %v13569_v58, %v13576_v22  ;;  %v13608_v61 = vrot.slane %v13601_v62, %v17550_v4  ;;  %v7921_v28 = vcombine.high %v20356_v35, %v20356_v35  ;;  %v3223_v19 = vmax.f32 %v3129_v38, 0.0 }
 0x53d   : > { %v14949_v23 = vrot.slane %v14948_v16, 2  ;;  %v7920_v32 = vrot.slane %v7892_v41, %v17550_v4  ;;  %v7922_v7 = vcombine.high %v7913_v47, %v7913_v47  ;;  %v7826_v42 = vcombine.high %v20323_v24, %v20323_v24 }
 0x53e   : > { %v13616_v27 = vcombine.low %v13608_v61, %v13615_v49  ;;  %v14932_v2 = vsel %vm13923_vm1, %v13577_v45, -inf  ;;  %v13734_v15 = vcombine.low %v7913_v47, %v7921_v28  ;;  %v7827_v10 = vcombine.high %v3223_v19, %v3223_v19 }
 0x53f   : > { %v14950_v9 = vmax.f32 %v14948_v16, %v14949_v23  ;;  %v14933_v33 = vrot.slane %v14932_v2, 4  ;;  %v13735_v44 = vcombine.low %v7922_v7, %v7906_v34  ;;  %v13756_v56 = vrot.slane %v7920_v32, %v17550_v4 }
 0x540   : > { %v14939_v17 = vsel %vm13923_vm1, %v13616_v27, -inf  ;;  %v7834_v8 = vrot.slane %v3223_v19, %v17550_v4  ;;  %v13742_v57 = vrot.slane %v13734_v15, %v17550_v4  ;;  %v7841_v6 = vrot.slane %v7827_v10, %v17550_v4 }
 0x541   : > { %v14934_v50 = vmax.f32 %v14932_v2, %v14933_v33  ;;  %v14940_v14 = vrot.slane %v14939_v17, 4  ;;  %v13749_v30 = vrot.slane %v13735_v44, %v17550_v4  ;;  %v14951_v36 = vrot.slane %v14950_v9, 1 }
 0x542   : > { %v7842_v21 = vcombine.high %v7834_v8, %v7834_v8  ;;  %v7850_v60 = vrot.slane %v7834_v8, %v17550_v4  ;;  %v13771_v53 = vrot.slane %v13756_v56, %v17550_v4  ;;  %v7843_v54 = vcombine.high %v7841_v6, %v7841_v6 }
 0x543   : > { %v14935_v24 = vrot.slane %v14934_v50, 2  ;;  %v14941_v37 = vmax.f32 %v14939_v17, %v14940_v14  ;;  %v13757_v59 = vcombine.low %v13742_v57, %v13749_v30  ;;  %v7857_v5 = vrot.slane %v7841_v6, %v17550_v4 }
 0x544   : > { %v7864_v39 = vrot.slane %v7842_v21, %v17550_v4  ;;  %v7872_v3 = vcombine.high %v7850_v60, %v7850_v60  ;;  %v13656_v43 = vcombine.low %v7826_v42, %v7850_v60  ;;  %v7871_v11 = vrot.slane %v7843_v54, %v17550_v4 }
 0x545   : > { %v14936_v52 = vmax.f32 %v14934_v50, %v14935_v24  ;;  %v14942_v26 = vrot.slane %v14941_v37, 2  ;;  %v13764_v1 = vrot.slane %v13757_v59, %v17550_v4  ;;  %v13717_v25 = vrot.slane %v20356_v35, %v17550_v4 }
 0x546   : > { %v7874_v46 = vcombine.high %v7864_v39, %v7864_v39  ;;  %v13657_v0 = vcombine.low %v7864_v39, %v7872_v3  ;;  %v13664_v20 = vrot.slane %v13656_v43, %v17550_v4  ;;  %v13695_v51 = vcombine.low %v7857_v5, %v7871_v11 }
 0x547   : > { %v14937_v29 = vrot.slane %v14936_v52, 1  ;;  %v14943_v12 = vmax.f32 %v14941_v37, %v14942_v26  ;;  %v13772_v18 = vcombine.low %v13764_v1, %v13771_v53  ;;  %v15747_v13 = vcombine.high %v7857_v5, %v7871_v11 }
 0x548   : > { %v13671_v48 = vrot.slane %v13657_v0, %v17550_v4  ;;  %v13678_v31 = vrot.slane %v7874_v46, %v17550_v4  ;;  %v13703_v58 = vrot.slane %v13695_v51, %v17550_v4  ;;  %v14952_v16 = vmax.f32 %v14950_v9, %v14951_v36 }
 0x549   : > { %v14944_v40 = vrot.slane %v14943_v12, 1  ;;  %v14967_v63 = vsel %vm13923_vm1, %v13772_v18, -inf  ;;  %v14938_v22 = vmax.f32 %v14936_v52, %v14937_v29  ;;  %v13710_v49 = vrot.slane %v15747_v13, %v17550_v4 }
 0x54a   : > { %v13679_v55 = vcombine.low %v13664_v20, %v13671_v48  ;;  %v14968_v38 = vrot.slane %v14967_v63, 4  ;;  %v13693_v47 = vrot.slane %v13678_v31, %v17550_v4  ;;  %v13732_v35 = vrot.slane %v13717_v25, %v17550_v4 }
 0x54b   : > { %v14945_v62 = vmax.f32 %v14943_v12, %v14944_v40  ;;  %v13718_v61 = vcombine.low %v13703_v58, %v13710_v49 }
 0x54c   : > { %v13686_v41 = vrot.slane %v13679_v55, %v17550_v4  ;;  %v14969_v23 = vmax.f32 %v14967_v63, %v14968_v38 }
 0x54d   : > { %v15257_v45 = vsel %vm15124_vm2, %v14945_v62, %v14938_v22  ;;  %v13725_v32 = vrot.slane %v13718_v61, %v17550_v4 }
 0x54e   : > { %v15258_v34 = vsel %vm15126_vm3, %v14952_v16, %v15257_v45  ;;  %v13694_v28 = vcombine.low %v13686_v41, %v13693_v47  ;;  %v14970_v2 = vrot.slane %v14969_v23, 2 }
 0x54f   : > { %v13733_v19 = vcombine.low %v13725_v32, %v13732_v35 }
 0x550   : > { %v14953_v7 = vsel %vm13923_vm1, %v13694_v28, -inf  ;;  %v14971_v17 = vmax.f32 %v14969_v23, %v14970_v2 }
 0x551   : > { %v14954_v27 = vrot.slane %v14953_v7, 4  ;;  %v14960_v9 = vsel %vm13923_vm1, %v13733_v19, -inf }
 0x552   : > { %v14961_v33 = vrot.slane %v14960_v9, 4  ;;  %v14972_v14 = vrot.slane %v14971_v17, 1 }
 0x553   : > { %v14955_v15 = vmax.f32 %v14953_v7, %v14954_v27 }
 0x554   : > { %v14962_v42 = vmax.f32 %v14960_v9, %v14961_v33  ;;  %v14973_v21 = vmax.f32 %v14971_v17, %v14972_v14 }
 0x555   : > { %v14956_v44 = vrot.slane %v14955_v15, 2 }
 0x556   : > { %v14963_v10 = vrot.slane %v14962_v42, 2 }
 0x557   : > { %v14957_v56 = vmax.f32 %v14955_v15, %v14956_v44 }
 0x558   : > { %v14964_v50 = vmax.f32 %v14962_v42, %v14963_v10 }
 0x559   : > { %v14958_v8 = vrot.slane %v14957_v56, 1 }
 0x55a   : > { %v14965_v4 = vrot.slane %v14964_v50, 1 }
 0x55b   : > { %v14959_v57 = vmax.f32 %v14957_v56, %v14958_v8 }
 0x55c   : > { %v14966_v6 = vmax.f32 %v14964_v50, %v14965_v4 }
 0x55d   : > { %v15259_v30 = vsel %vm15128_vm4, %v14959_v57, %v15258_v34 }
 0x55e   : > { %v15260_v60 = vsel %vm15130_vm5, %v14966_v6, %v15259_v30 }
 0x55f   : > { %v15261_v36 = vsel %vm15132_vm6, %v14973_v21, %v15260_v60 }
 0x560   : > { %15301 = vst.msk [vmem:[%s17767_s24 + $0x90] sm:$0x3f] %vm15300_vm10, %v15261_v36 }
 0x561 PF: > { %s15_s12 = sadd.s32 1, %s16765_s12  }
 0x562   : > { %p12_p5 = scmp.ge.s32.totalorder %s15_s12, 4  }
 0x564   :  { %14 = sbr.rel (!%p12_p5) target bundleno = 2 (0x2), region = 71 }
 0x56b   :  { %15323 = vsyncpa [#allocation3], 1 }
 0x56c   :  { %15325 = vsyncpa [#allocation3 + $0x1], 1 }
 0x56d   :  { %15326 = vsyncpa [#allocation5], 1 }

</bundles_post_ra>
